<compile_context>
chip_gen: v6e
topology: v6e:2x2x1
jax: 0.10.0
libtpu: 0.0.40
codegen_flags: <defaults>
</compile_context>

<pallas_src>
import numpy as np
import jax
import jax.numpy as jnp
from jax.experimental import pallas as pl
from jax.experimental.pallas import tpu as pltpu

NUM_JOINTS = 24
DEPTH_DIM = 16
HEIGHT_DIM = 16
WIDTH_DIM = 16
NUM_VOX = DEPTH_DIM * HEIGHT_DIM * WIDTH_DIM        # 4096
FEATURE_CHANNEL = 512                               # resnet18/34 trunk width
HIDDEN = 1024                                       # fc1 / fc2 width
HEAD_DIM = 10 + 23 * 2 + 5 * 4                      # decshape + decphi + decleaf = 76
HEAD_PAD = 128                                      # lane-dense head output width
MAX_BLOCK_B = 8                                     # VMEM cap (v7x: 64 MiB physical)


# ---------------------------------------------------------------------------
# Plain-JAX glue helpers (tiny, fused by XLA)
# ---------------------------------------------------------------------------
def make_coord_table():
    """(V, 4) table: cols 0..2 = coord/dim - 0.5 per axis, col 3 = ones.

    Entries (multiples of 1/16 and 1.0) are exactly representable in bf16.
    """
    idx = jnp.arange(NUM_VOX, dtype=jnp.int32)
    x = (idx % WIDTH_DIM).astype(jnp.float32) / WIDTH_DIM - 0.5
    y = ((idx // WIDTH_DIM) % HEIGHT_DIM).astype(jnp.float32) / HEIGHT_DIM - 0.5
    z = (idx // (WIDTH_DIM * HEIGHT_DIM)).astype(jnp.float32) / DEPTH_DIM - 0.5
    ones = jnp.ones_like(x)
    return jnp.stack([x, y, z, ones], axis=-1)


def fold_projection(trans_inv, intrinsic_param):
    """Fold uvd_to_cam's (scale,shift) -> trans_inv -> K chain into xyz = uvd@A + c.

    uv_homo = uvd * s + o  with s=[4W,4H,0], o=[2W,2H,1];  cam = T3 @ uv_homo,
    T3 = [trans_inv; 0 0 1];  xyz = K @ cam = (K @ T3) @ uv_homo.
    Row form:  xyz = uvd @ (diag(s) @ (K@T3)^T) + o @ (K@T3)^T  = uvd @ A + c.
    """
    B = trans_inv.shape[0]
    bottom = jnp.broadcast_to(jnp.asarray([0.0, 0.0, 1.0], jnp.float32), (B, 1, 3))
    t3 = jnp.concatenate([trans_inv, bottom], axis=1)                 # (B, 3, 3)
    m_t = jnp.einsum("bij,bjk->bki", intrinsic_param, t3)             # (K @ T3)^T
    scale = jnp.asarray([WIDTH_DIM * 4.0, HEIGHT_DIM * 4.0, 0.0], jnp.float32)
    shift = jnp.asarray([WIDTH_DIM * 2.0, HEIGHT_DIM * 2.0, 1.0], jnp.float32)
    proj_a = m_t * scale[None, :, None]                               # diag(s) @ M^T
    proj_c = jnp.einsum("j,bjk->bk", shift, m_t)[:, None, :]          # (B, 1, 3)
    return proj_a, proj_c


def _pick_block_b(B):
    """>=2 grid steps when possible (both v7x TCs busy) and cap block size
    so double-buffered heat blocks stay small under v7x's 64 MiB VMEM."""
    if B == 1:
        return 1
    cand = B // 2 if B % 2 == 0 else B
    bb = min(MAX_BLOCK_B, cand)
    while B % bb != 0:
        bb -= 1
    return bb


# ---------------------------------------------------------------------------
# Fused kernel:
#   norm_heatmap softmax + integral soft-argmax + uvd_to_cam + root-centering
#   + fc head (fc1 -> drop:id -> fc2 -> drop:id -> {decshape, decphi, decleaf})
# ---------------------------------------------------------------------------
def _fused_kernel(heat_ref, table_ref, pa_ref, pc_ref, root_ref, df_ref,
                  pooled_ref, w1_ref, b1_ref, w2_ref, b2_ref, wh_ref, bh_ref,
                  uvdxyz_ref, head_ref):
    bt, nj, nv = heat_ref.shape

    # ---- softmax + soft-argmax: one MXU dot against the (V, 4) table ------
    hm = heat_ref[...].reshape(bt * nj, nv)                   # (Bt*J, V) f32
    m = jnp.max(hm, axis=-1, keepdims=True)                   # stability (XLU)
    e = jnp.exp(hm - m)                                       # f32 exp (v5e-safe)
    # bf16 MXU feed: cols 0..2 = sum(e*(coord/dim-0.5)), col 3 = sum(e)
    r = jnp.dot(e.astype(jnp.bfloat16), table_ref[...],
                preferred_element_type=jnp.float32)           # (Bt*J, 4)
    s = r[:, 3:4]
    inv_s = pl.reciprocal(s, approx=True)                     # EUP
    inv_s = inv_s * (2.0 - s * inv_s)                         # one Newton step
    uvd = (r[:, 0:3] * inv_s).reshape(bt, nj, 3)              # (Bt, J, 3)

    # ---- uvd_to_cam folded to an affine map, fully vectorized over batch ---
    pa = pa_ref[...]                                          # (Bt, 3, 3)
    xyz = (uvd[:, :, 0:1] * pa[:, 0:1, :]
           + uvd[:, :, 1:2] * pa[:, 1:2, :]
           + uvd[:, :, 2:3] * pa[:, 2:3, :]
           + pc_ref[...])                                     # (Bt, J, 3)
    df = df_ref[...]                                          # (Bt, 1, 1)
    root = root_ref[...]                                      # (Bt, 1, 3)
    abs_z = uvd[:, :, 2:3] * df + root[:, :, 2:3]             # (Bt, J, 1)
    xyz = (xyz * abs_z - root) / df                           # return_relative
    xyz = xyz - xyz[:, 0:1, :]                                # subtract root joint 0

    # Single lane-dense packed store: [uvd | xyz | pad2]  -> sliced in wrapper.
    pad = jnp.zeros((bt, nj, 2), jnp.float32)
    uvdxyz_ref[...] = jnp.concatenate([uvd, xyz, pad], axis=-1)

    # ---- fc head (weights VMEM-resident; drop1/drop2 identity at eval) -----
    x = pooled_ref[...][:, 0, :].astype(jnp.bfloat16)         # (Bt, C)
    h = jnp.dot(x, w1_ref[...], preferred_element_type=jnp.float32) + b1_ref[...]
    h = jnp.dot(h.astype(jnp.bfloat16), w2_ref[...],
                preferred_element_type=jnp.float32) + b2_ref[...]
    head = jnp.dot(h.astype(jnp.bfloat16), wh_ref[...],
                   preferred_element_type=jnp.float32) + bh_ref[...]
    head_ref[...] = head[:, None, :]                          # (Bt, 1, HP)


def fused_forward(heat_flat, table, proj_a, proj_c, root3, df3, pooled,
                  w1, b1, w2, b2, wh, bh, block_b=None):
    B, J, V = heat_flat.shape
    C = pooled.shape[-1]
    HP = wh.shape[1]
    if block_b is None:
        block_b = _pick_block_b(B)
    assert B % block_b == 0
    grid = (B // block_b,)

    def batched(shape):
        return pl.BlockSpec((block_b,) + shape, lambda i: (i,) + (0,) * len(shape))

    def const(shape):
        return pl.BlockSpec(shape, lambda i: (0,) * len(shape))

    return pl.pallas_call(
        _fused_kernel,
        out_shape=(jax.ShapeDtypeStruct((B, J, 8), jnp.float32),
                   jax.ShapeDtypeStruct((B, 1, HP), jnp.float32)),
        grid=grid,
        in_specs=[
            batched((J, V)),                 # heatmap logits
            const(table.shape),              # bf16 coord table (shared, 1 DMA)
            batched((3, 3)),                 # folded projection A
            batched((1, 3)),                 # folded projection c
            batched((1, 3)),                 # joint_root
            batched((1, 1)),                 # depth_factor
            batched((1, C)),                 # pooled backbone features
            const(w1.shape), const(b1.shape),
            const(w2.shape), const(b2.shape),
            const(wh.shape), const(bh.shape),
        ],
        out_specs=(batched((J, 8)), batched((1, HP))),
        compiler_params=pltpu.CompilerParams(
            dimension_semantics=("parallel",),
            vmem_limit_bytes=32 * 1024 * 1024),
    )(heat_flat, table, proj_a, proj_c, root3, df3, pooled,
      w1, b1, w2, b2, wh, bh)


# ---------------------------------------------------------------------------
# Wrapper implementing the HybrikBTS.forward tail (no flip path)
# ---------------------------------------------------------------------------
def hybrik_bts_forward(heat_logits, x0_feat, trans_inv, intrinsic_param,
                       joint_root, depth_factor, params):
    B = heat_logits.shape[0]

    # fusion_module output NCHW (B, J*D, H, W) -> (B, J, D*H*W)   (glue reshape)
    heat_flat = heat_logits.reshape(B, NUM_JOINTS, NUM_VOX)
    proj_a, proj_c = fold_projection(trans_inv, intrinsic_param)
    root3 = joint_root.reshape(B, 1, 3)
    df3 = depth_factor.reshape(B, 1, 1)

    # AdaptiveAvgPool2d(1) in plain XLA (64x less DMA into the kernel).
    pooled = x0_feat.reshape(B, FEATURE_CHANNEL, -1).mean(axis=-1)
    pooled = pooled.reshape(B, 1, FEATURE_CHANNEL)

    uvdxyz, head_p = fused_forward(
        heat_flat, params["coord_table"], proj_a, proj_c, root3, df3, pooled,
        params["w1"], params["b1"], params["w2"], params["b2"],
        params["wh"], params["bh"])

    pred_uvd_jts_24 = uvdxyz[:, :, 0:3]
    pred_xyz_jts_24 = uvdxyz[:, :, 3:6]
    maxvals = jnp.ones((B, NUM_JOINTS, 1), jnp.float32)        # norm_type == 'softmax'

    head = head_p.reshape(B, HEAD_PAD)[:, :HEAD_DIM]
    delta_shape = head[:, :10]
    pred_phi = head[:, 10:56].reshape(B, 23, 2)
    pred_leaf = head[:, 56:76].reshape(B, 5, 4)
    pred_shape = delta_shape + params["init_shape"][None, :]

    # TODO(synk): self.smpl.hybrik(...) — SMPL mesh/joint regression needs external
    # model files (basicModel_neutral_lbs pkl, J_regressor); not reproduced here.
    return {
        "pred_uvd_jts": pred_uvd_jts_24.reshape(B, NUM_JOINTS * 3),
        "pred_xyz_jts_24": pred_xyz_jts_24.reshape(B, NUM_JOINTS * 3),
        "pred_shape": pred_shape,
        "pred_delta_shape": delta_shape,
        "pred_phi": pred_phi,
        "pred_leaf": pred_leaf,
        "maxvals": maxvals,
    }


# ---------------------------------------------------------------------------
# Pure-JAX reference (mirrors the PyTorch math; uses the bf16-rounded weights)
# ---------------------------------------------------------------------------
def _reference_forward(heat_logits, x0_feat, trans_inv, K, joint_root, depth_factor, params):
    B = heat_logits.shape[0]
    hm = heat_logits.reshape(B, NUM_JOINTS, NUM_VOX)
    p = jax.nn.softmax(hm, axis=-1)
    p = p / p.sum(-1, keepdims=True)                     # mirrors PyTorch source (no-op)
    h5 = p.reshape(B, NUM_JOINTS, DEPTH_DIM, HEIGHT_DIM, WIDTH_DIM)
    hm_x = h5.sum((2, 3))
    hm_y = h5.sum((2, 4))
    hm_z = h5.sum((3, 4))
    cx = (hm_x * jnp.arange(WIDTH_DIM, dtype=jnp.float32)).sum(-1) / WIDTH_DIM - 0.5
    cy = (hm_y * jnp.arange(HEIGHT_DIM, dtype=jnp.float32)).sum(-1) / HEIGHT_DIM - 0.5
    cz = (hm_z * jnp.arange(DEPTH_DIM, dtype=jnp.float32)).sum(-1) / DEPTH_DIM - 0.5
    uvd = jnp.stack([cx, cy, cz], axis=-1)               # (B, 24, 3)

    pooled = x0_feat.reshape(B, FEATURE_CHANNEL, -1).mean(-1)
    w1 = params["w1"].astype(jnp.float32)
    w2 = params["w2"].astype(jnp.float32)
    wh = params["wh"][:, :HEAD_DIM].astype(jnp.float32)
    bh = params["bh"][:, :HEAD_DIM]
    xc = pooled @ w1 + params["b1"]
    xc = xc @ w2 + params["b2"]
    head = xc @ wh + bh

    u = (uvd[:, :, 0] + 0.5) * WIDTH_DIM * 4.0
    v = (uvd[:, :, 1] + 0.5) * HEIGHT_DIM * 4.0
    dz = uvd[:, :, 2] * depth_factor
    uv_homo = jnp.stack([u, v, jnp.ones_like(u)], axis=-1)
    uv = jnp.einsum("brc,bjc->bjr", trans_inv, uv_homo)
    cam = jnp.concatenate([uv, jnp.ones_like(uv[..., :1])], axis=-1)
    xyz = jnp.einsum("brc,bjc->bjr", K, cam)
    abs_z = dz + joint_root[:, 2:3]
    xyz = xyz * abs_z[..., None]
    xyz = xyz - joint_root[:, None, :]
    xyz = xyz / depth_factor[..., None]
    xyz = xyz - xyz[:, 0:1, :]
    return uvd, head, xyz


if __name__ == "__main__":
    key = jax.random.PRNGKey(0)
    ks = jax.random.split(key, 12)
    B = 2

    # ---- synthetic interface tensors (stand-ins for external submodules) ----
    heat_logits = jax.random.normal(ks[0], (B, NUM_JOINTS * DEPTH_DIM, HEIGHT_DIM, WIDTH_DIM),
                                    jnp.float32)               # fusion_module output (NCHW)
    x0_feat = jax.random.normal(ks[1], (B, FEATURE_CHANNEL, 8, 8), jnp.float32)  # preact output
    trans_inv = jax.random.normal(ks[2], (B, 2, 3), jnp.float32) * 0.01
    intrinsic_param = (jnp.eye(3, dtype=jnp.float32)[None] * 0.002
                       + jax.random.normal(ks[3], (B, 3, 3), jnp.float32) * 0.001)
    joint_root = jax.random.normal(ks[4], (B, 3), jnp.float32)
    depth_factor = 2.0 + jax.random.uniform(ks[5], (B, 1), jnp.float32)

    # ---- parameter init (shapes per module __init__); kernel stores bf16 ----
    w1 = jax.random.normal(ks[6], (FEATURE_CHANNEL, HIDDEN), jnp.float32) * 0.02
    b1 = jax.random.normal(ks[7], (1, HIDDEN), jnp.float32) * 0.01
    w2 = jax.random.normal(ks[8], (HIDDEN, HIDDEN), jnp.float32) * 0.02
    b2 = jax.random.normal(ks[9], (1, HIDDEN), jnp.float32) * 0.01
    wh = jax.random.normal(ks[10], (HIDDEN, HEAD_DIM), jnp.float32) * 0.02
    bh = jax.random.normal(ks[11], (1, HEAD_DIM), jnp.float32) * 0.01
    pad_n = HEAD_PAD - HEAD_DIM

    params = {
        "coord_table": make_coord_table().astype(jnp.bfloat16),       # bf16-exact entries
        "w1": w1.astype(jnp.bfloat16),                         # bf16 weights: halve HBM DMA
        "b1": b1,
        "w2": w2.astype(jnp.bfloat16),
        "b2": b2,
        "wh": jnp.pad(wh, ((0, 0), (0, pad_n))).astype(jnp.bfloat16),  # lane-dense (1024,128)
        "bh": jnp.pad(bh, ((0, 0), (0, pad_n))),
        "init_shape": jnp.linspace(-0.5, 0.5, 10, dtype=jnp.float32),  # h36m_mean_beta stand-in
    }

    out = hybrik_bts_forward(heat_logits, x0_feat, trans_inv, intrinsic_param,
                             joint_root, depth_factor, params)
    jax.block_until_ready(out)

    # ---- verify against pure-JAX reference ----
    uvd_ref, head_ref, xyz_ref = _reference_forward(
        heat_logits, x0_feat, trans_inv, intrinsic_param, joint_root, depth_factor, params)
    np.testing.assert_allclose(np.asarray(out["pred_uvd_jts"]),
                               np.asarray(uvd_ref.reshape(B, -1)), rtol=1e-2, atol=5e-3)
    np.testing.assert_allclose(np.asarray(out["pred_delta_shape"]),
                               np.asarray(head_ref[:, :10]), rtol=1e-2, atol=5e-3)
    np.testing.assert_allclose(np.asarray(out["pred_phi"].reshape(B, -1)),
                               np.asarray(head_ref[:, 10:56]), rtol=1e-2, atol=5e-3)
    np.testing.assert_allclose(np.asarray(out["pred_leaf"].reshape(B, -1)),
                               np.asarray(head_ref[:, 56:76]), rtol=1e-2, atol=5e-3)
    np.testing.assert_allclose(np.asarray(out["pred_xyz_jts_24"]),
                               np.asarray(xyz_ref.reshape(B, -1)), rtol=1e-2, atol=5e-3)

    print("KERNEL_OK")
</pallas_src>

<mosaic_0001>
module attributes {stable_mosaic.version = 11 : i64} {
  func.func @_fused_kernel(%arg0: i32, %arg1: memref<1x24x4096xf32, #tpu.memory_space<vmem>>, %arg2: memref<4096x4xbf16, #tpu.memory_space<vmem>>, %arg3: memref<1x3x3xf32, #tpu.memory_space<vmem>>, %arg4: memref<1x1x3xf32, #tpu.memory_space<vmem>>, %arg5: memref<1x1x3xf32, #tpu.memory_space<vmem>>, %arg6: memref<1x1x1xf32, #tpu.memory_space<vmem>>, %arg7: memref<1x1x512xf32, #tpu.memory_space<vmem>>, %arg8: memref<512x1024xbf16, #tpu.memory_space<vmem>>, %arg9: memref<1x1024xf32, #tpu.memory_space<vmem>>, %arg10: memref<1024x1024xbf16, #tpu.memory_space<vmem>>, %arg11: memref<1x1024xf32, #tpu.memory_space<vmem>>, %arg12: memref<1024x128xbf16, #tpu.memory_space<vmem>>, %arg13: memref<1x128xf32, #tpu.memory_space<vmem>>, %arg14: memref<1x24x8xf32, #tpu.memory_space<vmem>>, %arg15: memref<1x1x128xf32, #tpu.memory_space<vmem>>) attributes {dimension_semantics = [#tpu.dimension_semantics<parallel>], iteration_bounds = array<i64: 2>, scalar_prefetch = 0 : i64, scratch_operands = 0 : i64, tpu.core_type = #tpu.core_type<tc>, window_params = [{transform_indices = @transform_0, window_bounds = array<i64: 1, 24, 4096>}, {pipeline_mode = #tpu.pipeline_mode<synchronous>, transform_indices = @transform_1, window_bounds = array<i64: 4096, 4>}, {transform_indices = @transform_2, window_bounds = array<i64: 1, 3, 3>}, {transform_indices = @transform_3, window_bounds = array<i64: 1, 1, 3>}, {transform_indices = @transform_4, window_bounds = array<i64: 1, 1, 3>}, {transform_indices = @transform_5, window_bounds = array<i64: 1, 1, 1>}, {transform_indices = @transform_6, window_bounds = array<i64: 1, 1, 512>}, {pipeline_mode = #tpu.pipeline_mode<synchronous>, transform_indices = @transform_7, window_bounds = array<i64: 512, 1024>}, {pipeline_mode = #tpu.pipeline_mode<synchronous>, transform_indices = @transform_8, window_bounds = array<i64: 1, 1024>}, {pipeline_mode = #tpu.pipeline_mode<synchronous>, transform_indices = @transform_9, window_bounds = array<i64: 1024, 1024>}, {pipeline_mode = #tpu.pipeline_mode<synchronous>, transform_indices = @transform_10, window_bounds = array<i64: 1, 1024>}, {pipeline_mode = #tpu.pipeline_mode<synchronous>, transform_indices = @transform_11, window_bounds = array<i64: 1024, 128>}, {pipeline_mode = #tpu.pipeline_mode<synchronous>, transform_indices = @transform_12, window_bounds = array<i64: 1, 128>}, {transform_indices = @transform_13, window_bounds = array<i64: 1, 24, 8>}, {transform_indices = @transform_14, window_bounds = array<i64: 1, 1, 128>}]} {
    %c0 = arith.constant 0 : index
    %c0_0 = arith.constant 0 : index
    %c0_1 = arith.constant 0 : index
    %0 = vector.load %arg1[%c0, %c0_0, %c0_1] : memref<1x24x4096xf32, #tpu.memory_space<vmem>>, vector<1x24x4096xf32>
    %1 = vector.shape_cast %0 : vector<1x24x4096xf32> to vector<24x4096xf32>
    %cst = arith.constant dense<0xFF800000> : vector<24xf32>
    %2 = vector.multi_reduction <maximumf>, %1, %cst [1] : vector<24x4096xf32> to vector<24xf32>
    %3 = vector.shape_cast %2 : vector<24xf32> to vector<24x1xf32>
    %4 = vector.broadcast %3 : vector<24x1xf32> to vector<24x4096xf32>
    %5 = arith.subf %1, %4 : vector<24x4096xf32>
    %6 = math.exp %5 : vector<24x4096xf32>
    %7 = arith.truncf %6 : vector<24x4096xf32> to vector<24x4096xbf16>
    %c0_2 = arith.constant 0 : index
    %c0_3 = arith.constant 0 : index
    %8 = vector.load %arg2[%c0_2, %c0_3] : memref<4096x4xbf16, #tpu.memory_space<vmem>>, vector<4096x4xbf16>
    %cst_4 = arith.constant dense<0.000000e+00> : vector<24x4xf32>
    %9 = tpu.matmul %7, %8, %cst_4 {dimension_numbers = #tpu.dot_dimension_numbers<[1], [0], [0], [1], [0, 0, 1, 1], [], []>} : vector<24x4096xbf16>, vector<4096x4xbf16>, vector<24x4xf32> -> vector<24x4xf32>
    %10 = vector.extract_strided_slice %9 {offsets = [0, 3], sizes = [24, 1], strides = [1, 1]} : vector<24x4xf32> to vector<24x1xf32>
    %11 = tpu.reciprocal %10 {approx = true} : vector<24x1xf32> -> vector<24x1xf32>
    %12 = arith.mulf %10, %11 : vector<24x1xf32>
    %cst_5 = arith.constant 2.000000e+00 : f32
    %13 = vector.broadcast %cst_5 : f32 to vector<24x1xf32>
    %14 = arith.subf %13, %12 : vector<24x1xf32>
    %15 = arith.mulf %11, %14 : vector<24x1xf32>
    %16 = vector.extract_strided_slice %9 {offsets = [0, 0], sizes = [24, 3], strides = [1, 1]} : vector<24x4xf32> to vector<24x3xf32>
    %17 = vector.broadcast %15 : vector<24x1xf32> to vector<24x3xf32>
    %18 = arith.mulf %16, %17 : vector<24x3xf32>
    %19 = vector.shape_cast %18 : vector<24x3xf32> to vector<1x24x3xf32>
    %c0_6 = arith.constant 0 : index
    %c0_7 = arith.constant 0 : index
    %c0_8 = arith.constant 0 : index
    %20 = vector.load %arg3[%c0_6, %c0_7, %c0_8] : memref<1x3x3xf32, #tpu.memory_space<vmem>>, vector<1x3x3xf32>
    %21 = vector.extract_strided_slice %19 {offsets = [0, 0, 0], sizes = [1, 24, 1], strides = [1, 1, 1]} : vector<1x24x3xf32> to vector<1x24x1xf32>
    %22 = vector.extract_strided_slice %20 {offsets = [0, 0, 0], sizes = [1, 1, 3], strides = [1, 1, 1]} : vector<1x3x3xf32> to vector<1x1x3xf32>
    %23 = vector.broadcast %21 : vector<1x24x1xf32> to vector<1x24x3xf32>
    %24 = vector.broadcast %22 : vector<1x1x3xf32> to vector<1x24x3xf32>
    %25 = arith.mulf %23, %24 : vector<1x24x3xf32>
    %26 = vector.extract_strided_slice %19 {offsets = [0, 0, 1], sizes = [1, 24, 1], strides = [1, 1, 1]} : vector<1x24x3xf32> to vector<1x24x1xf32>
    %27 = vector.extract_strided_slice %20 {offsets = [0, 1, 0], sizes = [1, 1, 3], strides = [1, 1, 1]} : vector<1x3x3xf32> to vector<1x1x3xf32>
    %28 = vector.broadcast %26 : vector<1x24x1xf32> to vector<1x24x3xf32>
    %29 = vector.broadcast %27 : vector<1x1x3xf32> to vector<1x24x3xf32>
    %30 = arith.mulf %28, %29 : vector<1x24x3xf32>
    %31 = arith.addf %25, %30 : vector<1x24x3xf32>
    %32 = vector.extract_strided_slice %19 {offsets = [0, 0, 2], sizes = [1, 24, 1], strides = [1, 1, 1]} : vector<1x24x3xf32> to vector<1x24x1xf32>
    %33 = vector.extract_strided_slice %20 {offsets = [0, 2, 0], sizes = [1, 1, 3], strides = [1, 1, 1]} : vector<1x3x3xf32> to vector<1x1x3xf32>
    %34 = vector.broadcast %32 : vector<1x24x1xf32> to vector<1x24x3xf32>
    %35 = vector.broadcast %33 : vector<1x1x3xf32> to vector<1x24x3xf32>
    %36 = arith.mulf %34, %35 : vector<1x24x3xf32>
    %37 = arith.addf %31, %36 : vector<1x24x3xf32>
    %c0_9 = arith.constant 0 : index
    %c0_10 = arith.constant 0 : index
    %c0_11 = arith.constant 0 : index
    %38 = vector.load %arg4[%c0_9, %c0_10, %c0_11] : memref<1x1x3xf32, #tpu.memory_space<vmem>>, vector<1x1x3xf32>
    %39 = vector.broadcast %38 : vector<1x1x3xf32> to vector<1x24x3xf32>
    %40 = arith.addf %37, %39 : vector<1x24x3xf32>
    %c0_12 = arith.constant 0 : index
    %c0_13 = arith.constant 0 : index
    %c0_14 = arith.constant 0 : index
    %41 = vector.load %arg6[%c0_12, %c0_13, %c0_14] : memref<1x1x1xf32, #tpu.memory_space<vmem>>, vector<1x1x1xf32>
    %c0_15 = arith.constant 0 : index
    %c0_16 = arith.constant 0 : index
    %c0_17 = arith.constant 0 : index
    %42 = vector.load %arg5[%c0_15, %c0_16, %c0_17] : memref<1x1x3xf32, #tpu.memory_space<vmem>>, vector<1x1x3xf32>
    %43 = vector.extract_strided_slice %19 {offsets = [0, 0, 2], sizes = [1, 24, 1], strides = [1, 1, 1]} : vector<1x24x3xf32> to vector<1x24x1xf32>
    %44 = vector.broadcast %41 : vector<1x1x1xf32> to vector<1x24x1xf32>
    %45 = arith.mulf %43, %44 : vector<1x24x1xf32>
    %46 = vector.extract_strided_slice %42 {offsets = [0, 0, 2], sizes = [1, 1, 1], strides = [1, 1, 1]} : vector<1x1x3xf32> to vector<1x1x1xf32>
    %47 = vector.broadcast %46 : vector<1x1x1xf32> to vector<1x24x1xf32>
    %48 = arith.addf %45, %47 : vector<1x24x1xf32>
    %49 = vector.broadcast %48 : vector<1x24x1xf32> to vector<1x24x3xf32>
    %50 = arith.mulf %40, %49 : vector<1x24x3xf32>
    %51 = vector.broadcast %42 : vector<1x1x3xf32> to vector<1x24x3xf32>
    %52 = arith.subf %50, %51 : vector<1x24x3xf32>
    %53 = vector.broadcast %41 : vector<1x1x1xf32> to vector<1x24x3xf32>
    %54 = arith.divf %52, %53 : vector<1x24x3xf32>
    %55 = vector.extract_strided_slice %54 {offsets = [0, 0, 0], sizes = [1, 1, 3], strides = [1, 1, 1]} : vector<1x24x3xf32> to vector<1x1x3xf32>
    %56 = vector.broadcast %55 : vector<1x1x3xf32> to vector<1x24x3xf32>
    %57 = arith.subf %54, %56 : vector<1x24x3xf32>
    %cst_18 = arith.constant 0.000000e+00 : f32
    %58 = vector.broadcast %cst_18 : f32 to vector<1x24x2xf32>
    %59 = tpu.concatenate %19, %57, %58 in 2 : vector<1x24x3xf32>, vector<1x24x3xf32>, vector<1x24x2xf32> -> vector<1x24x8xf32>
    %c0_19 = arith.constant 0 : index
    %c0_20 = arith.constant 0 : index
    %c0_21 = arith.constant 0 : index
    %60 = vector.load %arg14[%c0_19, %c0_20, %c0_21] : memref<1x24x8xf32, #tpu.memory_space<vmem>>, vector<1x24x8xf32>
    tpu.vector_store %arg14[%c0_19, %c0_20, %c0_21], %59 {strides = array<i32>} : memref<1x24x8xf32, #tpu.memory_space<vmem>>, vector<1x24x8xf32>,
    %c0_22 = arith.constant 0 : index
    %c0_23 = arith.constant 0 : index
    %c0_24 = arith.constant 0 : index
    %61 = vector.load %arg7[%c0_22, %c0_23, %c0_24] : memref<1x1x512xf32, #tpu.memory_space<vmem>>, vector<1x1x512xf32>
    %62 = vector.shape_cast %61 : vector<1x1x512xf32> to vector<1x512xf32>
    %63 = arith.truncf %62 : vector<1x512xf32> to vector<1x512xbf16>
    %c0_25 = arith.constant 0 : index
    %c0_26 = arith.constant 0 : index
    %64 = vector.load %arg8[%c0_25, %c0_26] : memref<512x1024xbf16, #tpu.memory_space<vmem>>, vector<512x1024xbf16>
    %cst_27 = arith.constant dense<0.000000e+00> : vector<1x1024xf32>
    %65 = tpu.matmul %63, %64, %cst_27 {dimension_numbers = #tpu.dot_dimension_numbers<[1], [0], [0], [1], [0, 0, 1, 1], [], []>} : vector<1x512xbf16>, vector<512x1024xbf16>, vector<1x1024xf32> -> vector<1x1024xf32>
    %c0_28 = arith.constant 0 : index
    %c0_29 = arith.constant 0 : index
    %66 = vector.load %arg9[%c0_28, %c0_29] : memref<1x1024xf32, #tpu.memory_space<vmem>>, vector<1x1024xf32>
    %67 = arith.addf %65, %66 : vector<1x1024xf32>
    %68 = arith.truncf %67 : vector<1x1024xf32> to vector<1x1024xbf16>
    %c0_30 = arith.constant 0 : index
    %c0_31 = arith.constant 0 : index
    %69 = vector.load %arg10[%c0_30, %c0_31] : memref<1024x1024xbf16, #tpu.memory_space<vmem>>, vector<1024x1024xbf16>
    %cst_32 = arith.constant dense<0.000000e+00> : vector<1x1024xf32>
    %70 = tpu.matmul %68, %69, %cst_32 {dimension_numbers = #tpu.dot_dimension_numbers<[1], [0], [0], [1], [0, 0, 1, 1], [], []>} : vector<1x1024xbf16>, vector<1024x1024xbf16>, vector<1x1024xf32> -> vector<1x1024xf32>
    %c0_33 = arith.constant 0 : index
    %c0_34 = arith.constant 0 : index
    %71 = vector.load %arg11[%c0_33, %c0_34] : memref<1x1024xf32, #tpu.memory_space<vmem>>, vector<1x1024xf32>
    %72 = arith.addf %70, %71 : vector<1x1024xf32>
    %73 = arith.truncf %72 : vector<1x1024xf32> to vector<1x1024xbf16>
    %c0_35 = arith.constant 0 : index
    %c0_36 = arith.constant 0 : index
    %74 = vector.load %arg12[%c0_35, %c0_36] : memref<1024x128xbf16, #tpu.memory_space<vmem>>, vector<1024x128xbf16>
    %cst_37 = arith.constant dense<0.000000e+00> : vector<1x128xf32>
    %75 = tpu.matmul %73, %74, %cst_37 {dimension_numbers = #tpu.dot_dimension_numbers<[1], [0], [0], [1], [0, 0, 1, 1], [], []>} : vector<1x1024xbf16>, vector<1024x128xbf16>, vector<1x128xf32> -> vector<1x128xf32>
    %c0_38 = arith.constant 0 : index
    %c0_39 = arith.constant 0 : index
    %76 = vector.load %arg13[%c0_38, %c0_39] : memref<1x128xf32, #tpu.memory_space<vmem>>, vector<1x128xf32>
    %77 = arith.addf %75, %76 : vector<1x128xf32>
    %78 = vector.shape_cast %77 : vector<1x128xf32> to vector<1x1x128xf32>
    %c0_40 = arith.constant 0 : index
    %c0_41 = arith.constant 0 : index
    %c0_42 = arith.constant 0 : index
    %79 = vector.load %arg15[%c0_40, %c0_41, %c0_42] : memref<1x1x128xf32, #tpu.memory_space<vmem>>, vector<1x1x128xf32>
    tpu.vector_store %arg15[%c0_40, %c0_41, %c0_42], %78 {strides = array<i32>} : memref<1x1x128xf32, #tpu.memory_space<vmem>>, vector<1x1x128xf32>,
    return
  }
  func.func @transform_0(%arg0: i32) -> (i32, i32, i32) {
    %c0_i32 = arith.constant 0 : i32
    %c0_i32_0 = arith.constant 0 : i32
    %c0_i32_1 = arith.constant 0 : i32
    return %arg0, %c0_i32, %c0_i32_0 : i32, i32, i32
  }
  func.func @transform_1(%arg0: i32) -> (i32, i32) {
    %c0_i32 = arith.constant 0 : i32
    %c0_i32_0 = arith.constant 0 : i32
    %c0_i32_1 = arith.constant 0 : i32
    return %c0_i32, %c0_i32_0 : i32, i32
  }
  func.func @transform_2(%arg0: i32) -> (i32, i32, i32) {
    %c0_i32 = arith.constant 0 : i32
    %c0_i32_0 = arith.constant 0 : i32
    %c0_i32_1 = arith.constant 0 : i32
    return %arg0, %c0_i32, %c0_i32_0 : i32, i32, i32
  }
  func.func @transform_3(%arg0: i32) -> (i32, i32, i32) {
    %c0_i32 = arith.constant 0 : i32
    %c0_i32_0 = arith.constant 0 : i32
    %c0_i32_1 = arith.constant 0 : i32
    return %arg0, %c0_i32, %c0_i32_0 : i32, i32, i32
  }
  func.func @transform_4(%arg0: i32) -> (i32, i32, i32) {
    %c0_i32 = arith.constant 0 : i32
    %c0_i32_0 = arith.constant 0 : i32
    %c0_i32_1 = arith.constant 0 : i32
    return %arg0, %c0_i32, %c0_i32_0 : i32, i32, i32
  }
  func.func @transform_5(%arg0: i32) -> (i32, i32, i32) {
    %c0_i32 = arith.constant 0 : i32
    %c0_i32_0 = arith.constant 0 : i32
    %c0_i32_1 = arith.constant 0 : i32
    return %arg0, %c0_i32, %c0_i32_0 : i32, i32, i32
  }
  func.func @transform_6(%arg0: i32) -> (i32, i32, i32) {
    %c0_i32 = arith.constant 0 : i32
    %c0_i32_0 = arith.constant 0 : i32
    %c0_i32_1 = arith.constant 0 : i32
    return %arg0, %c0_i32, %c0_i32_0 : i32, i32, i32
  }
  func.func @transform_7(%arg0: i32) -> (i32, i32) {
    %c0_i32 = arith.constant 0 : i32
    %c0_i32_0 = arith.constant 0 : i32
    %c0_i32_1 = arith.constant 0 : i32
    return %c0_i32, %c0_i32_0 : i32, i32
  }
  func.func @transform_8(%arg0: i32) -> (i32, i32) {
    %c0_i32 = arith.constant 0 : i32
    %c0_i32_0 = arith.constant 0 : i32
    %c0_i32_1 = arith.constant 0 : i32
    return %c0_i32, %c0_i32_0 : i32, i32
  }
  func.func @transform_9(%arg0: i32) -> (i32, i32) {
    %c0_i32 = arith.constant 0 : i32
    %c0_i32_0 = arith.constant 0 : i32
    %c0_i32_1 = arith.constant 0 : i32
    return %c0_i32, %c0_i32_0 : i32, i32
  }
  func.func @transform_10(%arg0: i32) -> (i32, i32) {
    %c0_i32 = arith.constant 0 : i32
    %c0_i32_0 = arith.constant 0 : i32
    %c0_i32_1 = arith.constant 0 : i32
    return %c0_i32, %c0_i32_0 : i32, i32
  }
  func.func @transform_11(%arg0: i32) -> (i32, i32) {
    %c0_i32 = arith.constant 0 : i32
    %c0_i32_0 = arith.constant 0 : i32
    %c0_i32_1 = arith.constant 0 : i32
    return %c0_i32, %c0_i32_0 : i32, i32
  }
  func.func @transform_12(%arg0: i32) -> (i32, i32) {
    %c0_i32 = arith.constant 0 : i32
    %c0_i32_0 = arith.constant 0 : i32
    %c0_i32_1 = arith.constant 0 : i32
    return %c0_i32, %c0_i32_0 : i32, i32
  }
  func.func @transform_13(%arg0: i32) -> (i32, i32, i32) {
    %c0_i32 = arith.constant 0 : i32
    %c0_i32_0 = arith.constant 0 : i32
    %c0_i32_1 = arith.constant 0 : i32
    return %arg0, %c0_i32, %c0_i32_0 : i32, i32, i32
  }
  func.func @transform_14(%arg0: i32) -> (i32, i32, i32) {
    %c0_i32 = arith.constant 0 : i32
    %c0_i32_0 = arith.constant 0 : i32
    %c0_i32_1 = arith.constant 0 : i32
    return %arg0, %c0_i32, %c0_i32_0 : i32, i32, i32
  }
}

</mosaic_0001>

<bundles_post_ra>
// kernel: tpu_custom_call.1
= control target key start
LH: loop header
LB: loop body
LE: loop exit
PB: predicated region body
PF: predicated region fallthrough
CT: control target
= control target key end

     0   :  { %s15664_s0 = inlined_call_operand.hbm [shape: f32[2,24,4096], index: 0, kind: input, shape index: {}]   ;;  %s15665_s1 = inlined_call_operand.vmem [shape: bf16[4096,4], index: 1, kind: input, shape index: {}]   ;;  %s15666_s2 = inlined_call_operand.vmem [shape: f32[2,3,3], index: 2, kind: input, shape index: {}]   ;;  %s15667_s3 = inlined_call_operand.hbm [shape: f32[2,1,3], index: 3, kind: input, shape index: {}]   ;;  %s15668_s4 = inlined_call_operand.hbm [shape: f32[2,1,3], index: 4, kind: input, shape index: {}]   ;;  %s15669_s5 = inlined_call_operand.vmem [shape: f32[2,1,1], index: 5, kind: input, shape index: {}]   ;;  %s15670_s6 = inlined_call_operand.hbm [shape: f32[2,1,512], index: 6, kind: input, shape index: {}]   ;;  %s15671_s7 = inlined_call_operand.hbm [shape: bf16[512,1024], index: 7, kind: input, shape index: {}]   ;;  %s15672_s8 = inlined_call_operand.hbm [shape: f32[1,1024], index: 8, kind: input, shape index: {}]   ;;  %s15673_s9 = inlined_call_operand.hbm [shape: bf16[1024,1024], index: 9, kind: input, shape index: {}]   ;;  %s15674_s10 = inlined_call_operand.hbm [shape: f32[1,1024], index: 10, kind: input, shape index: {}]   ;;  %s15675_s11 = inlined_call_operand.hbm [shape: bf16[1024,128], index: 11, kind: input, shape index: {}]   ;;  %s15676_s12 = inlined_call_operand.hbm [shape: f32[1,128], index: 12, kind: input, shape index: {}]   ;;  %s15677_s13 = inlined_call_operand.vmem [shape: f32[2,24,8], index: 13, kind: output, shape index: {0}]   ;;  %s15678_s14 = inlined_call_operand.hbm [shape: f32[2,1,128], index: 14, kind: output, shape index: {1}]  }
   0x1   :  { %15698 = sst [smem:[#allocation34_spill]] %s15664_s0 }
   0x2   :  { %15699 = sst [smem:[#allocation35_spill]] %s15665_s1 }
   0x3   :  { %15700 = sst [smem:[#allocation36_spill]] %s15666_s2 }
   0x4   :  { %15701 = sst [smem:[#allocation37_spill]] %s15669_s5 }
   0x5   :  { %15702 = sst [smem:[#allocation38_spill]] %s15671_s7 }
   0x6   :  { %15703 = sst [smem:[#allocation39_spill]] %s15672_s8 }
   0x7   :  { %15704 = sst [smem:[#allocation40_spill]] %s15674_s10 }
   0x8   :  { %15705 = sst [smem:[#allocation41_spill]] %s15677_s13 }
   0x9   :  { %15706 = sst [smem:[#allocation42_spill]] %s15678_s14 }
   0xa   :  { %20 = vsyncpa [#allocation3], 0 }
   0xb   :  { %22 = vsyncpa [#allocation3 + $0x1], 0 }
   0xc   :  { %23 = vsyncpa [#allocation6], 0 }
   0xd   :  { %25 = vsyncpa [#allocation6 + $0x1], 0 }
   0xe   :  { %26 = vsyncpa [#allocation9], 0 }
   0xf   :  { %28 = vsyncpa [#allocation9 + $0x1], 0 }
  0x10   :  { %29 = vsyncpa [#allocation12], 0 }
  0x11   :  { %30 = vsyncpa [#allocation15], 0 }
  0x12   :  { %31 = vsyncpa [#allocation18], 0 }
  0x13   :  { %32 = vsyncpa [#allocation4], 0 }
  0x14   :  { %34 = vsyncpa [#allocation4 + $0x1], 0  ;;  %s13789_s29 = smov 0   ;;  %s13791_s30 = smov 0  }
  0x15   :  { %s13793_s15 = smov 0   ;;  %s13795_s16 = smov 0  }
  0x16 LB: > { %15707 = sst [smem:[#allocation28_spill]] %s13677_s29  ;;  %s13691_s17 = smov [#allocation10]   ;;  %s13689_s16 = sphi %s13795_s16, %s15754_s16   ;;  %s13685_s15 = sphi %s13793_s15, %s15756_s15   ;;  %s13681_s30 = sphi %s13791_s30, %s15758_s30   ;;  %s13677_s29 = sphi %s13789_s29, %s15757_s29  }
  0x17   : > { %15708 = sst [smem:[#allocation29_spill]] %s13685_s15  ;;  %s415_s18 = sshll.u32 %s13691_s17, 4  ;;  %s416_s18 = int_to_ptr.vmem [resolvable:$true] %s415_s18 }
  0x18   : > { %s13810_s19 = sadd.s32 4294967295, %s13689_s16   ;;  %p10909_p0 = scmp.ge.s32.totalorder %s13689_s16, 1 }
  0x19   : > { %p15690_p1 = scmp.eq.s32.totalorder %s13810_s19, 0  ;;  %p400_p2 = scmp.lt.s32.totalorder %s13689_s16, 3 }
  0x1a   : > { %s13692_s21 = smov [#allocation11]   ;;  %s13693_s24 = smov [#allocation14]  }
  0x1b   : > { %p13815_p3 = pnand %p10909_p0, %p400_p2  ;;  %s429_s22 = sshll.u32 %s13692_s21, 4  ;;  %s430_s22 = int_to_ptr.vmem [resolvable:$true] %s429_s22 }
  0x1c   : > { %s453_s25 = sshll.u32 %s13693_s24, 4  ;;  %s13344_s27 = scalar_lea.vmem %s416_s18, 32768  ;;  %s13828_s25 = int_to_ptr.vmem [resolvable:$true] %s453_s25 }
  0x1d   : > { %s15709_s20 = scalar_select %p13815_p3, 1, 0 }
  0x1e   : > { %p12602_p5 = pneg %p13815_p3  ;;  %p13345_p8 = scmp.ne.s32.totalorder %s416_s18, %s13344_s27 }
  0x1f   : > { %p13352_p11 = scmp.lt.s32.totalorder %s416_s18, %s416_s18  ;;  %p13353_p12 = scmp.lt.s32.totalorder %s13344_s27, %s13344_s27 }
  0x20   : > { %p13824_p6 = pnand %p12602_p5, %p15690_p1 }
  0x21   : > { %p13354_p13 = por %p13353_p12, %p13352_p11 }
  0x22   : > { %s15710_s23 = scalar_select %p13824_p6, 1, 0 }
  0x23   : > { %p13832_p7 = pneg %p13824_p6 }
  0x25   : > { %s15711_s26 = scalar_select %p13832_p7, 1, 0 }
  0x26   : > { %p13347_p9 = pnand %p13345_p8, %p13832_p7 }
  0x28   : > { %p13348_p10 = pneg %p13347_p9 }
  0x2a   : > { %p13355_p0 = pnand %p13354_p13, %p13348_p10 }
  0x2c   : > { %13358 = shalt.err (!%p13355_p0)
}
  0x2d   : > { %s15681_s28 = smov 512   ;;  %s15682_s17 = smov 32  }
  0x2e   : > { %s15712_s7 = sld [smem:[#allocation38_spill]]  ;;  %s13370_s14 = scalar_lea.vmem %s430_s22, 128 }
  0x2f   : > { %p13371_p2 = scmp.ne.s32.totalorder %s430_s22, %s13370_s14  ;;  %p13378_p9 = scmp.lt.s32.totalorder %s430_s22, %s430_s22 }
  0x30   : > { %p13379_p10 = scmp.lt.s32.totalorder %s13370_s14, %s13370_s14 }
  0x31   : > { %p13373_p5 = pnand %p13371_p2, %p13832_p7 }
  0x32   : > { %p13380_p11 = por %p13379_p10, %p13378_p9 }
  0x33   : > { %p13374_p8 = pneg %p13373_p5 }
  0x34   : > { %12605 = dma.hbm_to_vmem [thread:$0]  (!%p13824_p6), %s15712_s7, 32768, %s416_s18, [#allocation9], %s15681_s28, %s15681_s28, %s15682_s17  }
  0x35   : > { %p13381_p12 = pnand %p13380_p11, %p13374_p8 }
  0x37   : > { %13384 = shalt.err (!%p13381_p12)
}
  0x38   : > { %s15713_s8 = sld [smem:[#allocation39_spill]]  ;;  %s13396_s18 = scalar_lea.vmem %s13828_s25, 128 }
  0x39   : > { %p13397_p13 = scmp.ne.s32.totalorder %s13828_s25, %s13396_s18  ;;  %p13404_p5 = scmp.lt.s32.totalorder %s13828_s25, %s13828_s25 }
  0x3a   : > { %p13405_p9 = scmp.lt.s32.totalorder %s13396_s18, %s13396_s18 }
  0x3b   : > { %p13399_p0 = pnand %p13397_p13, %p13832_p7 }
  0x3c   : > { %p13406_p8 = por %p13405_p9, %p13404_p5 }
  0x3d   : > { %p13400_p2 = pneg %p13399_p0 }
  0x3e   : > { %12608 = dma.hbm_to_vmem [thread:$0]  (!%p13824_p6), %s15713_s8, 128, %s430_s22, [#allocation12]  }
  0x3f   : > { %p13407_p10 = pnand %p13406_p8, %p13400_p2 }
  0x41   : > { %13410 = shalt.err (!%p13407_p10)
}
  0x42   : > { %s15714_s10 = sld [smem:[#allocation40_spill]]  ;;  %s10908_s22 = sadd.s32 4294967294, %s13689_s16  }
  0x43   : > { %s13867_s21 = sadd.s32 1, %s13689_s16   ;;  %s47_s24 = sadd.s32 1, %s13685_s15 }
  0x44   : > { %15715 = sst [smem:[#allocation30_spill]] %s13867_s21  ;;  %s44_s27 = ssub.s32 %s13689_s16, %s13867_s21 }
  0x45   : > { %p54_p11 = scmp.ne.s32.totalorder %s13685_s15, %s13681_s30  ;;  %p45_p12 = scmp.eq.s32.totalorder %s44_s27, 0 }
  0x46   : > { %p55_p13 = scmp.eq.s32.totalorder %s13689_s16, 0  ;;  %p60_p0 = scmp.ne.s32.totalorder %s13681_s30, %s13677_s29 }
  0x47   : > { %p387_p2 = scmp.eq.s32.totalorder %s13810_s19, 1  ;;  %p393_p10 = scmp.eq.s32.totalorder %s10908_s22, 1 }
  0x48   : > { %12614 = dma.hbm_to_vmem [thread:$0]  (!%p13824_p6), %s15714_s10, 128, %s13828_s25, [#allocation15]  }
  0x49   : > { %s13879_s18 = scalar_select %p45_p12, %s13685_s15, %s47_s24  }
  0x4a   : > { %p56_p5 = por %p55_p13, %p54_p11  ;;  %p13883_p9 = por %p15690_p1, %p60_p0 }
  0x4b   : > { %15716 = sst [smem:[#allocation31_spill]] %s13879_s18  ;;  %p13887_p8 = por %p387_p2, %p54_p11 }
  0x4c   : > { %s15717_s25 = scalar_select %p13883_p9, 1, 0 }
  0x4d   : > { %s15718_s13 = scalar_select %p13887_p8, 1, 0 }
  0x4e   : > { %p12644_p4 = scmp.lt.s32.totalorder %s13689_s16, 2  ;;  %s13893_s14 = sand.u32 1, %s13685_s15  }
  0x4f   : > { %15719 = sst [smem:[#allocation32_spill]] %s15718_s13  ;;  %p13895_p3 = por %p393_p10, %p60_p0 }
  0x50   : > { %p13900_p12 = pnand %p12644_p4, %p56_p5  ;;  %s10918_s17 = sshll.u32 %s13689_s16, 4 }
  0x51   : > { %s15720_s27 = scalar_select %p13895_p3, 1, 0 }
  0x52   : > { %s13908_s10 = scalar_lea.hbm %s15667_s3, %s10918_s17  ;;  %s519_s22 = scalar_lea.vmem [#allocation5], %s13893_s14 }
  0x53   : > { %15721 = sst [smem:[#allocation33_spill]] %s15720_s27  ;;  %s526_s18 = sshll.u32 %s519_s22, 4  ;;  %s527_s18 = int_to_ptr.vmem [resolvable:$true] %s526_s18 }
  0x54   : > { %s13914_s24 = scalar_lea.hbm %s15668_s4, %s10918_s17  ;;  %s15723_s27 = sand.u32 1, %s13689_s16  }
  0x55   : > { %s13918_s29 = scalar_lea.sflag [#allocation6], %s15723_s27  ;;  %s13411_s13 = scalar_lea.hbm %s13908_s10, 16 }
  0x56   : > { %p13412_p4 = scmp.ne.s32.totalorder %s13908_s10, %s13411_s13  ;;  %p13924_p11 = pneg %p13900_p12 }
  0x57   : > { %s13416_s15 = scalar_lea.hbm %s15667_s3, 32  ;;  %p13417_p2 = scmp.lt.s32.totalorder %s13908_s10, %s15667_s3 }
  0x58   : > { %p13414_p13 = pnand %p13924_p11, %p13412_p4  ;;  %p13418_p5 = scmp.lt.s32.totalorder %s13416_s15, %s13411_s13 }
  0x5a   : > { %p13415_p0 = pneg %p13414_p13  ;;  %p13419_p10 = por %p13418_p5, %p13417_p2 }
  0x5c   : > { %p13420_p1 = pnand %p13419_p10, %p13415_p0 }
  0x5e   : > { %13423 = shalt.err (!%p13420_p1)
}
  0x5f   : > { %s13424_s27 = scalar_lea.vmem %s527_s18, 16  ;;  %s13696_s2 = smov [#allocation5]  }
  0x60   : > { %p13425_p3 = scmp.ne.s32.totalorder %s527_s18, %s13424_s27  ;;  %s13429_s5 = sshll.u32 %s13696_s2, 4  ;;  %s13430_s5 = int_to_ptr.vmem [resolvable:$false] %s13429_s5 }
  0x61   : > { %s13431_s1 = scalar_lea.vmem %s13430_s5, 32  ;;  %p13432_p4 = scmp.lt.s32.totalorder %s527_s18, %s13430_s5 }
  0x62   : > { %p13427_p8 = pnand %p13425_p3, %p13924_p11  ;;  %p13433_p13 = scmp.lt.s32.totalorder %s13431_s1, %s13424_s27 }
  0x64   : > { %p13428_p9 = pneg %p13427_p8  ;;  %p13434_p6 = por %p13433_p13, %p13432_p4 }
  0x66   : > { %p13435_p7 = pnand %p13434_p6, %p13428_p9 }
  0x68   : > { %13438 = shalt.err (!%p13435_p7)
}
  0x69   : > { %12627 = dma.hbm_to_vmem [thread:$0]  (!%p13900_p12), %s13908_s10, 16, %s527_s18, %s13918_s29  }
  0x6a   : > { %s13697_s13 = smov [#allocation13]   ;;  %s13698_s22 = smov [#allocation16]  }
  0x6b   : > { %s439_s8 = sshll.u32 %s13697_s13, 4  ;;  %s463_s15 = sshll.u32 %s13698_s22, 4  ;;  %s440_s8 = int_to_ptr.vmem [resolvable:$true] %s439_s8  ;;  %s464_s15 = int_to_ptr.vmem [resolvable:$true] %s463_s15 }
  0x6c   : > { %s13450_s2 = scalar_lea.vmem %s440_s8, 65536  ;;  %p15725_p3 = scmp.ne.s32.totalorder %s15711_s26, 0 }
  0x6d   : > { %p13451_p1 = scmp.ne.s32.totalorder %s440_s8, %s13450_s2  ;;  %p13458_p2 = scmp.lt.s32.totalorder %s440_s8, %s440_s8 }
  0x6e   : > { %p13459_p6 = scmp.lt.s32.totalorder %s13450_s2, %s13450_s2 }
  0x6f   : > { %p13453_p8 = pnand %p13451_p1, %p15725_p3 }
  0x70   : > { %p13460_p7 = por %p13459_p6, %p13458_p2 }
  0x71   : > { %p13454_p0 = pneg %p13453_p8 }
  0x73   : > { %p13461_p9 = pnand %p13460_p7, %p13454_p0 }
  0x75   : > { %13464 = shalt.err (!%p13461_p9)
}
  0x76   : > { %p15726_p5 = scmp.ne.s32.totalorder %s15710_s23, 0  ;;  %s15727_s1 = smov 32  }
  0x77   : > { %s15728_s5 = smov 512   ;;  %s13476_s17 = scalar_lea.vmem %s464_s15, 8192 }
  0x78   : > { %12611 = dma.hbm_to_vmem [thread:$0]  (!%p15726_p5), %s15673_s9, 65536, %s440_s8, [#allocation12], %s15728_s5, %s15728_s5, %s15727_s1  }
  0x79   : > { %p13477_p10 = scmp.ne.s32.totalorder %s464_s15, %s13476_s17  ;;  %p13484_p1 = scmp.lt.s32.totalorder %s464_s15, %s464_s15 }
  0x7a   : > { %p13485_p8 = scmp.lt.s32.totalorder %s13476_s17, %s13476_s17 }
  0x7b   : > { %p13479_p4 = pnand %p13477_p10, %p15725_p3 }
  0x7c   : > { %p13486_p2 = por %p13485_p8, %p13484_p1 }
  0x7d   : > { %p13480_p13 = pneg %p13479_p4 }
  0x7f   : > { %p13487_p0 = pnand %p13486_p2, %p13480_p13 }
  0x81   : > { %13490 = shalt.err (!%p13487_p0)
}
  0x82   : > { %s13699_s21 = smov 64   ;;  %s13700_s27 = smov 4  }
  0x83   : > { %12617 = dma.hbm_to_vmem [thread:$0]  (!%p15726_p5), %s15675_s11, 8192, %s464_s15, [#allocation15], %s13699_s21, %s13699_s21, %s13700_s27  }
  0x84   : > { %s13701_s8 = smov [#allocation17]   ;;  %s12564_s1 = smul.u32 768, %s13893_s14 }
  0x85   : > { %s477_s2 = sshll.u32 %s13701_s8, 4  ;;  %s12565_s5 = smul.u32 12288, %s13689_s16  ;;  %s478_s2 = int_to_ptr.vmem [resolvable:$true] %s477_s2 }
  0x86   : > { %s13502_s10 = scalar_lea.vmem %s478_s2, 16  ;;  %s13509_s18 = scalar_lea.vmem %s478_s2, 32 }
  0x87   : > { %p13503_p6 = scmp.ne.s32.totalorder %s478_s2, %s13502_s10  ;;  %p13510_p10 = scmp.lt.s32.totalorder %s478_s2, %s478_s2 }
  0x88   : > { %p13511_p4 = scmp.lt.s32.totalorder %s13509_s18, %s13502_s10 }
  0x89   : > { %p13505_p7 = pnand %p13503_p6, %p15725_p3 }
  0x8a   : > { %p13512_p13 = por %p13511_p4, %p13510_p10 }
  0x8b   : > { %p13506_p9 = pneg %p13505_p7 }
  0x8d   : > { %p13513_p1 = pnand %p13512_p13, %p13506_p9 }
  0x8f   : > { %13516 = shalt.err (!%p13513_p1)
}
  0x90   : > { %12620 = dma.hbm_to_vmem [thread:$0]  (!%p15726_p5), %s15676_s12, 16, %s478_s2, [#allocation18]  }
  0x91   : > { %s15729_s0 = sld [smem:[#allocation34_spill]]  ;;  %s492_s13 = scalar_lea.vmem [#allocation2], %s12564_s1 }
  0x92   : > { %s499_s22 = sshll.u32 %s492_s13, 4  ;;  %s489_s8 = scalar_lea.sflag [#allocation3], %s13893_s14  ;;  %s13974_s22 = int_to_ptr.vmem [resolvable:$true] %s499_s22 }
  0x97   : > { %s13972_s26 = scalar_lea.hbm %s15729_s0, %s12565_s5  ;;  %s13522_s18 = scalar_lea.hbm %s15729_s0, 24576 }
  0x98   : > { %s13517_s23 = scalar_lea.hbm %s13972_s26, 12288  ;;  %p13523_p5 = scmp.lt.s32.totalorder %s13972_s26, %s15729_s0 }
  0x99   : > { %p13518_p3 = scmp.ne.s32.totalorder %s13972_s26, %s13517_s23  ;;  %p13524_p0 = scmp.lt.s32.totalorder %s13522_s18, %s13517_s23 }
  0x9b   : > { %p13520_p8 = pnand %p13518_p3, %p13924_p11  ;;  %p13525_p6 = por %p13524_p0, %p13523_p5 }
  0x9d   : > { %p13521_p2 = pneg %p13520_p8 }
  0x9f   : > { %p13526_p7 = pnand %p13525_p6, %p13521_p2 }
  0xa1   : > { %13529 = shalt.err (!%p13526_p7)
}
  0xa2   : > { %s13530_s1 = scalar_lea.vmem %s13974_s22, 12288  ;;  %s13702_s15 = smov [#allocation2]  }
  0xa3   : > { %p13531_p9 = scmp.ne.s32.totalorder %s13974_s22, %s13530_s1  ;;  %s13535_s21 = sshll.u32 %s13702_s15, 4  ;;  %s13536_s21 = int_to_ptr.vmem [resolvable:$false] %s13535_s21 }
  0xa4   : > { %s13537_s27 = scalar_lea.vmem %s13536_s21, 24576  ;;  %p13538_p13 = scmp.lt.s32.totalorder %s13974_s22, %s13536_s21 }
  0xa5   : > { %p13533_p10 = pnand %p13531_p9, %p13924_p11  ;;  %p13539_p1 = scmp.lt.s32.totalorder %s13537_s27, %s13530_s1 }
  0xa7   : > { %p13534_p4 = pneg %p13533_p10  ;;  %p13540_p3 = por %p13539_p1, %p13538_p13 }
  0xa9   : > { %p13541_p8 = pnand %p13540_p3, %p13534_p4 }
  0xab   : > { %13544 = shalt.err (!%p13541_p8)
}
  0xac   : > { %s13703_s13 = smov 4096   ;;  %s13704_s23 = smov 256  }
  0xad   : > { %12624 = dma.hbm_to_vmem [thread:$0]  (!%p13900_p12), %s13972_s26, 12288, %s13974_s22, %s489_s8, %s13703_s13, %s13703_s13, %s13704_s23  }
  0xae   : > { %s10920_s10 = sshll.u32 %s13893_s14, 2  ;;  %s536_s2 = scalar_lea.vmem [#allocation7], %s13893_s14 }
  0xaf   : > { %s543_s18 = sshll.u32 %s536_s2, 4  ;;  %s12027_s17 = sshll.u32 %s13689_s16, 6  ;;  %s544_s18 = int_to_ptr.vmem [resolvable:$true] %s543_s18 }
  0xb0   : > { %s13545_s5 = scalar_lea.hbm %s13914_s24, 16  ;;  %s13550_s21 = scalar_lea.hbm %s15668_s4, 32 }
  0xb1   : > { %p13546_p2 = scmp.ne.s32.totalorder %s13914_s24, %s13545_s5  ;;  %p13551_p6 = scmp.lt.s32.totalorder %s13914_s24, %s15668_s4 }
  0xb2   : > { %p13552_p7 = scmp.lt.s32.totalorder %s13550_s21, %s13545_s5 }
  0xb3   : > { %p13548_p5 = pnand %p13546_p2, %p13924_p11 }
  0xb4   : > { %p13553_p9 = por %p13552_p7, %p13551_p6 }
  0xb5   : > { %p13549_p0 = pneg %p13548_p5 }
  0xb7   : > { %p13554_p10 = pnand %p13553_p9, %p13549_p0 }
  0xb9   : > { %13557 = shalt.err (!%p13554_p10)
}
  0xba   : > { %s13558_s26 = scalar_lea.vmem %s544_s18, 16  ;;  %s13705_s22 = smov [#allocation7]  }
  0xbb   : > { %p13559_p4 = scmp.ne.s32.totalorder %s544_s18, %s13558_s26  ;;  %s13563_s8 = sshll.u32 %s13705_s22, 4  ;;  %s13564_s8 = int_to_ptr.vmem [resolvable:$false] %s13563_s8 }
  0xbc   : > { %s13565_s13 = scalar_lea.vmem %s13564_s8, 32  ;;  %p13566_p3 = scmp.lt.s32.totalorder %s544_s18, %s13564_s8 }
  0xbd   : > { %p13561_p13 = pnand %p13559_p4, %p13924_p11  ;;  %p13567_p8 = scmp.lt.s32.totalorder %s13565_s13, %s13558_s26 }
  0xbf   : > { %p13562_p1 = pneg %p13561_p13  ;;  %p13568_p2 = por %p13567_p8, %p13566_p3 }
  0xc1   : > { %p13569_p5 = pnand %p13568_p2, %p13562_p1 }
  0xc3   : > { %13572 = shalt.err (!%p13569_p5)
}
  0xc4   : > { %12630 = dma.hbm_to_vmem [thread:$0]  (!%p13900_p12), %s13914_s24, 16, %s544_s18, %s13918_s29  }
  0xc5   : > { %s14022_s2 = scalar_lea.hbm %s15670_s6, %s12027_s17  ;;  %s560_s5 = scalar_lea.vmem [#allocation8], %s10920_s10 }
  0xc6   : > { %s568_s1 = sshll.u32 %s560_s5, 4  ;;  %s15730_s15 = sand.u32 1, %s13689_s16   ;;  %s569_s1 = int_to_ptr.vmem [resolvable:$true] %s568_s1 }
  0xc7   : > { %s557_s21 = scalar_lea.sflag [#allocation9], %s15730_s15  ;;  %s13573_s27 = scalar_lea.hbm %s14022_s2, 64 }
  0xc8   : > { %p13574_p0 = scmp.ne.s32.totalorder %s14022_s2, %s13573_s27  ;;  %s13578_s18 = scalar_lea.hbm %s15670_s6, 128 }
  0xc9   : > { %p13579_p9 = scmp.lt.s32.totalorder %s14022_s2, %s15670_s6  ;;  %p13580_p10 = scmp.lt.s32.totalorder %s13578_s18, %s13573_s27 }
  0xca   : > { %p13576_p6 = pnand %p13574_p0, %p13924_p11 }
  0xcb   : > { %p13581_p4 = por %p13580_p10, %p13579_p9 }
  0xcc   : > { %p13577_p7 = pneg %p13576_p6 }
  0xce   : > { %p13582_p13 = pnand %p13581_p4, %p13577_p7 }
  0xd0   : > { %13585 = shalt.err (!%p13582_p13)
}
  0xd1   : > { %s13586_s14 = scalar_lea.vmem %s569_s1, 64  ;;  %s13706_s10 = smov [#allocation8]  }
  0xd2   : > { %p13587_p1 = scmp.ne.s32.totalorder %s569_s1, %s13586_s14  ;;  %s13591_s22 = sshll.u32 %s13706_s10, 4  ;;  %s13592_s22 = int_to_ptr.vmem [resolvable:$false] %s13591_s22 }
  0xd3   : > { %s13593_s8 = scalar_lea.vmem %s13592_s22, 128  ;;  %p13594_p2 = scmp.lt.s32.totalorder %s569_s1, %s13592_s22 }
  0xd4   : > { %p13589_p3 = pnand %p13587_p1, %p13924_p11  ;;  %p13595_p5 = scmp.lt.s32.totalorder %s13593_s8, %s13586_s14 }
  0xd6   : > { %p13590_p8 = pneg %p13589_p3  ;;  %p13596_p0 = por %p13595_p5, %p13594_p2 }
  0xd8   : > { %p13597_p6 = pnand %p13596_p0, %p13590_p8 }
  0xda   : > { %13600 = shalt.err (!%p13597_p6)
}
  0xdb   : > { %12633 = dma.hbm_to_vmem [thread:$0]  (!%p13900_p12), %s14022_s2, 64, %s569_s1, %s557_s21  }
  0xdc   : > { %p15731_p7 = scmp.ne.s32.totalorder %s15709_s20, 0 }
  0xdd   : > { %s14047_s7 = sand.u32 (!%p15731_p7), 1, %s13681_s30   ;;  %p15732_p11 = scmp.ne.s32.totalorder (!%p15731_p7), %s15717_s25, 0 }
  0xde   : > { %577 = sbr.rel (%p15731_p7) target bundleno = 1931 (0x78b), region = 72  ;;  %s580_s0 = scalar_lea.sflag (!%p15731_p7), [#allocation3], %s14047_s7 }
  0xdf   : > { %s12566_s13 = smul.u32 (!%p15731_p7), 768, %s14047_s7 }
  0xe1   : > { %s14051_s23 = scalar_lea.vmem (!%p15731_p7), [#allocation2], %s12566_s13 }
  0xe3   : > { %13644 = dma.done.wait (%p15732_p11), %s580_s0, 12288  }
  0xe4   : > { %13646 = vsyncadd (%p15732_p11), %s580_s0, 4294955008  ;;  %s588_s20 = sand.u32 1, %s13810_s19   ;;  %s591_s2 = scalar_lea.vmem [#allocation5], %s14047_s7 }
  0xe5   : > { %s589_s28 = scalar_lea.sflag [#allocation6], %s588_s20 }
  0xe6   : > { %13648 = dma.done.wait (%p15732_p11), %s589_s28, 32  }
  0xe7   : > { %13650 = vsyncadd (%p15732_p11), %s589_s28, 4294967264  ;;  %s10924_s5 = sshll.u32 %s14047_s7, 2  ;;  %s599_s1 = scalar_lea.vmem [#allocation7], %s14047_s7 }
  0xe8   : > { %s605_s15 = scalar_lea.sflag [#allocation9], %s588_s20  ;;  %s14065_s21 = scalar_lea.vmem [#allocation8], %s10924_s5 }
  0xe9   : > { %13652 = dma.done.wait (%p15732_p11), %s605_s15, 64  }
  0xea   : > { %13654 = vsyncadd (%p15732_p11), %s605_s15, 4294967232  ;;  %p15733_p12 = scmp.eq.s32.totalorder %s13810_s19, 0 }
  0xec   : > { %13656 = dma.done.wait (%p15733_p12), [#allocation9], 32768   ;;  %p15734_p9 = pmov %p15733_p12 }
  0xee   : > { %13658 = vsyncadd (%p15734_p9), [#allocation9], 4294934528  ;;  %p15735_p10 = pmov %p15734_p9 }
  0xef   : > { %p15736_p4 = pmov %p15734_p9 }
  0xf0   : > { %13660 = dma.done.wait (%p15735_p10), [#allocation12], 65664  }
  0xf1   : > { %13662 = vsyncadd (%p15736_p4), [#allocation12], 4294901632  ;;  %p15737_p13 = pmov %p15736_p4 }
  0xf2   : > { %p15738_p1 = pmov %p15736_p4 }
  0xf3   : > { %13664 = dma.done.wait (%p15737_p13), [#allocation15], 8320  }
  0xf4   : > { %13666 = vsyncadd (%p15738_p1), [#allocation15], 4294958976  ;;  %p15739_p3 = pmov %p15738_p1 }
  0xf5   : > { %p15740_p8 = pmov %p15738_p1 }
  0xf6   : > { %13668 = dma.done.wait (%p15739_p3), [#allocation18], 16  }
  0xf7   : > { %13670 = vsyncadd (%p15740_p8), [#allocation18], 4294967280  ;;  %v714_v0 = vld [vmem:[%s14051_s23] sm:$0xff]  ;;  %v715_v1 = vld [vmem:[%s14051_s23 + $0x8] sm:$0xff]  ;;  %s15741_s29 = sld [smem:[#allocation35_spill]]  ;;  %p701_p2 = scmp.lt.s32.totalorder %s13810_s19, 1 }
  0xf8   : > { %v716_v2 = vld [vmem:[%s14051_s23 + $0x10] sm:$0xff]  ;;  %v717_v3 = vld [vmem:[%s14051_s23 + $0x18] sm:$0xff]  ;;  %v718_v4 = vld [vmem:[%s14051_s23 + $0x20] sm:$0xff]  ;;  %s13709_s18 = smov 2   ;;  %s15744_s14 = sld [smem:[#allocation36_spill]]  ;;  %vm4254_vm0 = vcmask 23552  }
  0xf9   : > { %v719_v5 = vld [vmem:[%s14051_s23 + $0x28] sm:$0xff]  ;;  %v810_v6 = vmax.f32 %v714_v0, %v716_v2  ;;  %v720_v7 = vld [vmem:[%s14051_s23 + $0x30] sm:$0xff]  ;;  %v811_v8 = vmax.f32 %v715_v1, %v717_v3  ;;  %v721_v9 = vld [vmem:[%s14051_s23 + $0x38] sm:$0xff]  ;;  %vm4258_vm1 = vcmask 48128   ;;  %s15745_s0 = sld [smem:[#allocation41_spill]]  ;;  %vm4262_vm2 = vcmask 64512  }
  0xfa   : > { %v722_v11 = vld [vmem:[%s14051_s23 + $0x40] sm:$0xff]  ;;  %v723_v13 = vld [vmem:[%s14051_s23 + $0x48] sm:$0xff]  ;;  %v724_v15 = vld [vmem:[%s14051_s23 + $0x50] sm:$0xff]  ;;  %s15746_s28 = sld [smem:[#allocation32_spill]]  ;;  %s12024_s5 = sshll.u32 %s13810_s19, 4 }
  0xfb   : > { %v812_v10 = vmax.f32 %v810_v6, %v718_v4  ;;  %v813_v12 = vmax.f32 %v811_v8, %v719_v5  ;;  %v725_v17 = vld [vmem:[%s14051_s23 + $0x58] sm:$0xff]  ;;  %v726_v19 = vld [vmem:[%s14051_s23 + $0x60] sm:$0xff]  ;;  %v727_v21 = vld [vmem:[%s14051_s23 + $0x68] sm:$0xff]  ;;  %s700_s15 = scalar_lea.vmem [#allocation19], %s14047_s7 }
  0xfc   : > { %v728_v23 = vld [vmem:[%s14051_s23 + $0x70] sm:$0xff]  ;;  %v729_v24 = vld [vmem:[%s14051_s23 + $0x78] sm:$0xff]  ;;  %v746_v26 = vld [vmem:[%s14051_s23 + $0x100] sm:$0xff] }
  0xfd   : > { %v814_v14 = vmax.f32 %v812_v10, %v720_v7  ;;  %v815_v16 = vmax.f32 %v813_v12, %v721_v9  ;;  %v747_v28 = vld [vmem:[%s14051_s23 + $0x108] sm:$0xff]  ;;  %v748_v29 = vld [vmem:[%s14051_s23 + $0x110] sm:$0xff]  ;;  %v749_v30 = vld [vmem:[%s14051_s23 + $0x118] sm:$0xff]  ;;  %s15742_s24 = smov %s15741_s29 }
  0xfe   : > { %v730_v31 = vld [vmem:[%s14051_s23 + $0x80] sm:$0xff]  ;;  %v751_v34 = vld [vmem:[%s14051_s23 + $0x128] sm:$0xff]  ;;  %v843_v35 = vmax.f32 %v746_v26, %v748_v29  ;;  %v844_v36 = vmax.f32 %v747_v28, %v749_v30  ;;  %v752_v39 = vld [vmem:[%s14051_s23 + $0x130] sm:$0xff] }
  0xff   : > { %v816_v18 = vmax.f32 %v814_v14, %v722_v11  ;;  %v817_v20 = vmax.f32 %v815_v16, %v723_v13  ;;  %v750_v33 = vld [vmem:[%s14051_s23 + $0x120] sm:$0xff]  ;;  %v731_v37 = vld [vmem:[%s14051_s23 + $0x88] sm:$0xff]  ;;  %v753_v40 = vld [vmem:[%s14051_s23 + $0x138] sm:$0xff] }
 0x100   : > { %v732_v41 = vld [vmem:[%s14051_s23 + $0x90] sm:$0xff]  ;;  %v845_v43 = vmax.f32 %v843_v35, %v750_v33  ;;  %v846_v44 = vmax.f32 %v844_v36, %v751_v34  ;;  %v733_v45 = vld [vmem:[%s14051_s23 + $0x98] sm:$0xff]  ;;  %v754_v47 = vld [vmem:[%s14051_s23 + $0x140] sm:$0xff]  ;;  %p15749_p0 = scmp.ne.s32.totalorder %s15746_s28, 0 }
 0x101   : > { %v818_v22 = vmax.f32 %v816_v18, %v724_v15  ;;  %v819_v25 = vmax.f32 %v817_v20, %v725_v17  ;;  %v755_v48 = vld [vmem:[%s14051_s23 + $0x148] sm:$0xff]  ;;  %v734_v49 = vld [vmem:[%s14051_s23 + $0xa0] sm:$0xff]  ;;  %v756_v55 = vld [vmem:[%s14051_s23 + $0x150] sm:$0xff] }
 0x102   : > { %v847_v51 = vmax.f32 %v845_v43, %v752_v39  ;;  %v848_v52 = vmax.f32 %v846_v44, %v753_v40  ;;  %v735_v53 = vld [vmem:[%s14051_s23 + $0xa8] sm:$0xff]  ;;  %v757_v56 = vld [vmem:[%s14051_s23 + $0x158] sm:$0xff]  ;;  %v736_v57 = vld [vmem:[%s14051_s23 + $0xb0] sm:$0xff] }
 0x103   : > { %v820_v27 = vmax.f32 %v818_v22, %v726_v19  ;;  %v821_v32 = vmax.f32 %v819_v25, %v727_v21  ;;  %v737_v58 = vld [vmem:[%s14051_s23 + $0xb8] sm:$0xff]  ;;  %v738_v62 = vld [vmem:[%s14051_s23 + $0xc0] sm:$0xff]  ;;  %v759_v1 = vld [vmem:[%s14051_s23 + $0x168] sm:$0xff] }
 0x104   : > { %v849_v60 = vmax.f32 %v847_v51, %v754_v47  ;;  %v850_v61 = vmax.f32 %v848_v52, %v755_v48  ;;  %v758_v0 = vld [vmem:[%s14051_s23 + $0x160] sm:$0xff]  ;;  %v739_v2 = vld [vmem:[%s14051_s23 + $0xc8] sm:$0xff]  ;;  %v740_v3 = vld [vmem:[%s14051_s23 + $0xd0] sm:$0xff] }
 0x105   : > { %v822_v38 = vmax.f32 %v820_v27, %v728_v23  ;;  %v823_v42 = vmax.f32 %v821_v32, %v729_v24  ;;  %v760_v5 = vld [vmem:[%s14051_s23 + $0x170] sm:$0xff]  ;;  %v741_v8 = vld [vmem:[%s14051_s23 + $0xd8] sm:$0xff]  ;;  %v778_v11 = vld [vmem:[%s14051_s23 + $0x200] sm:$0xff] }
 0x106   : > { %v851_v6 = vmax.f32 %v849_v60, %v756_v55  ;;  %v852_v7 = vmax.f32 %v850_v61, %v757_v56  ;;  %v761_v10 = vld [vmem:[%s14051_s23 + $0x178] sm:$0xff]  ;;  %v779_v12 = vld [vmem:[%s14051_s23 + $0x208] sm:$0xff]  ;;  %v780_v16 = vld [vmem:[%s14051_s23 + $0x210] sm:$0xff] }
 0x107   : > { %v824_v46 = vmax.f32 %v822_v38, %v730_v31  ;;  %v825_v50 = vmax.f32 %v823_v42, %v731_v37  ;;  %v781_v17 = vld [vmem:[%s14051_s23 + $0x218] sm:$0xff]  ;;  %v782_v18 = vld [vmem:[%s14051_s23 + $0x220] sm:$0xff]  ;;  %v763_v21 = vld [vmem:[%s14051_s23 + $0x188] sm:$0xff]  ;;  %v876_v23 = vmax.f32 %v778_v11, %v780_v16 }
 0x108   : > { %v853_v14 = vmax.f32 %v851_v6, %v758_v0  ;;  %v854_v15 = vmax.f32 %v852_v7, %v759_v1  ;;  %v762_v20 = vld [vmem:[%s14051_s23 + $0x180] sm:$0xff]  ;;  %v783_v22 = vld [vmem:[%s14051_s23 + $0x228] sm:$0xff]  ;;  %v877_v24 = vmax.f32 %v779_v12, %v781_v17  ;;  %v784_v29 = vld [vmem:[%s14051_s23 + $0x230] sm:$0xff] }
 0x109   : > { %v826_v54 = vmax.f32 %v824_v46, %v732_v41  ;;  %v827_v59 = vmax.f32 %v825_v50, %v733_v45  ;;  %v742_v25 = vld [vmem:[%s14051_s23 + $0xe0] sm:$0xff]  ;;  %v785_v30 = vld [vmem:[%s14051_s23 + $0x238] sm:$0xff]  ;;  %v743_v31 = vld [vmem:[%s14051_s23 + $0xe8] sm:$0xff]  ;;  %v878_v35 = vmax.f32 %v876_v23, %v782_v18 }
 0x10a   : > { %v855_v27 = vmax.f32 %v853_v14, %v760_v5  ;;  %v856_v28 = vmax.f32 %v854_v15, %v761_v10  ;;  %v764_v33 = vld [vmem:[%s14051_s23 + $0x190] sm:$0xff]  ;;  %v765_v34 = vld [vmem:[%s14051_s23 + $0x198] sm:$0xff]  ;;  %v879_v36 = vmax.f32 %v877_v24, %v783_v22  ;;  %v786_v41 = vld [vmem:[%s14051_s23 + $0x240] sm:$0xff] }
 0x10b   : > { %v828_v63 = vmax.f32 %v826_v54, %v734_v49  ;;  %v829_v4 = vmax.f32 %v827_v59, %v735_v53  ;;  %v744_v37 = vld [vmem:[%s14051_s23 + $0xf0] sm:$0xff]  ;;  %v787_v42 = vld [vmem:[%s14051_s23 + $0x248] sm:$0xff]  ;;  %v745_v43 = vld [vmem:[%s14051_s23 + $0xf8] sm:$0xff]  ;;  %v880_v47 = vmax.f32 %v878_v35, %v784_v29 }
 0x10c   : > { %v857_v39 = vmax.f32 %v855_v27, %v762_v20  ;;  %v858_v40 = vmax.f32 %v856_v28, %v763_v21  ;;  %v766_v45 = vld [vmem:[%s14051_s23 + $0x1a0] sm:$0xff]  ;;  %v767_v46 = vld [vmem:[%s14051_s23 + $0x1a8] sm:$0xff]  ;;  %v881_v48 = vmax.f32 %v879_v36, %v785_v30  ;;  %v788_v52 = vld [vmem:[%s14051_s23 + $0x250] sm:$0xff] }
 0x10d   : > { %v830_v9 = vmax.f32 %v828_v63, %v736_v57  ;;  %v831_v13 = vmax.f32 %v829_v4, %v737_v58  ;;  %v789_v53 = vld [vmem:[%s14051_s23 + $0x258] sm:$0xff]  ;;  %v768_v55 = vld [vmem:[%s14051_s23 + $0x1b0] sm:$0xff]  ;;  %v770_v57 = vld [vmem:[%s14051_s23 + $0x1c0] sm:$0xff]  ;;  %v882_v58 = vmax.f32 %v880_v47, %v786_v41 }
 0x10e   : > { %v859_v50 = vmax.f32 %v857_v39, %v764_v33  ;;  %v860_v51 = vmax.f32 %v858_v40, %v765_v34  ;;  %v769_v56 = vld [vmem:[%s14051_s23 + $0x1b8] sm:$0xff]  ;;  %v883_v59 = vmax.f32 %v881_v48, %v787_v42  ;;  %v771_v61 = vld [vmem:[%s14051_s23 + $0x1c8] sm:$0xff]  ;;  %v790_v0 = vld [vmem:[%s14051_s23 + $0x260] sm:$0xff] }
 0x10f   : > { %v832_v19 = vmax.f32 %v830_v9, %v738_v62  ;;  %v833_v26 = vmax.f32 %v831_v13, %v739_v2  ;;  %v791_v1 = vld [vmem:[%s14051_s23 + $0x268] sm:$0xff]  ;;  %v772_v2 = vld [vmem:[%s14051_s23 + $0x1d0] sm:$0xff]  ;;  %v793_v5 = vld [vmem:[%s14051_s23 + $0x278] sm:$0xff]  ;;  %v884_v6 = vmax.f32 %v882_v58, %v788_v52 }
 0x110   : > { %v861_v62 = vmax.f32 %v859_v50, %v766_v45  ;;  %v862_v63 = vmax.f32 %v860_v51, %v767_v46  ;;  %v792_v4 = vld [vmem:[%s14051_s23 + $0x270] sm:$0xff]  ;;  %v885_v7 = vmax.f32 %v883_v59, %v789_v53  ;;  %v794_v11 = vld [vmem:[%s14051_s23 + $0x280] sm:$0xff]  ;;  %v795_v12 = vld [vmem:[%s14051_s23 + $0x288] sm:$0xff] }
 0x111   : > { %v834_v32 = vmax.f32 %v832_v19, %v740_v3  ;;  %v835_v38 = vmax.f32 %v833_v26, %v741_v8  ;;  %v773_v3 = vld [vmem:[%s14051_s23 + $0x1d8] sm:$0xff]  ;;  %v774_v14 = vld [vmem:[%s14051_s23 + $0x1e0] sm:$0xff]  ;;  %v775_v15 = vld [vmem:[%s14051_s23 + $0x1e8] sm:$0xff]  ;;  %v886_v16 = vmax.f32 %v884_v6, %v790_v0 }
 0x112   : > { %v863_v9 = vmax.f32 %v861_v62, %v768_v55  ;;  %v864_v10 = vmax.f32 %v862_v63, %v769_v56  ;;  %v12715_v13 = vld [vmem:[%s15741_s29 + $0x78] sm:$0xff]   ;;  %v887_v17 = vmax.f32 %v885_v7, %v791_v1  ;;  %v796_v21 = vld [vmem:[%s14051_s23 + $0x290] sm:$0xff]  ;;  %v802_v47 = vld [vmem:[%s14051_s23 + $0x2c0] sm:$0xff]  ;;  %s15743_s29 = sld [smem:[#allocation37_spill]] }
 0x113   : > { %v836_v44 = vmax.f32 %v834_v32, %v742_v25  ;;  %v837_v49 = vmax.f32 %v835_v38, %v743_v31  ;;  %v12716_v18 = vld [vmem:[%s15742_s24 + $0xf8] sm:$0xff]   ;;  %12028 = vmatprep.subr.bf16.mxu0 %v12715_v13  ;;  %v776_v24 = vld [vmem:[%s14051_s23 + $0x1f0] sm:$0xff]  ;;  %v888_v26 = vmax.f32 %v886_v16, %v792_v4  ;;  %v798_v31 = vld [vmem:[%s14051_s23 + $0x2a0] sm:$0xff] }
 0x114   : > { %v865_v19 = vmax.f32 %v863_v9, %v770_v57  ;;  %v866_v20 = vmax.f32 %v864_v10, %v771_v61  ;;  %v797_v22 = vld [vmem:[%s14051_s23 + $0x298] sm:$0xff]  ;;  %v889_v27 = vmax.f32 %v887_v17, %v793_v5  ;;  %12056 = vmatprep.subr.bf16.mxu1 %v12716_v18  ;;  %v799_v32 = vld [vmem:[%s14051_s23 + $0x2a8] sm:$0xff]  ;;  %v12719_v33 = vld [vmem:[%s15742_s24 + $0x70] sm:$0xff]  }
 0x115   : > { %v838_v54 = vmax.f32 %v836_v44, %v744_v37  ;;  %v839_v60 = vmax.f32 %v837_v49, %v745_v43  ;;  %v12717_v23 = vld [vmem:[%s15742_s24 + $0x38] sm:$0xff]   ;;  %v890_v34 = vmax.f32 %v888_v26, %v794_v11  ;;  %v12720_v36 = vld [vmem:[%s15742_s24 + $0xf0] sm:$0xff]   ;;  %v803_v48 = vld [vmem:[%s14051_s23 + $0x2c8] sm:$0xff] }
 0x116   : > { %v777_v25 = vld [vmem:[%s14051_s23 + $0x1f8] sm:$0xff]  ;;  %v867_v29 = vmax.f32 %v865_v19, %v772_v2  ;;  %v868_v30 = vmax.f32 %v866_v20, %v773_v3  ;;  %12029 = vmatpush3.bf16.msra.mxu0 %v12717_v23  ;;  %v891_v35 = vmax.f32 %v889_v27, %v795_v12  ;;  %v800_v39 = vld [vmem:[%s14051_s23 + $0x2b0] sm:$0xff]  ;;  %v12723_v56 = vld [vmem:[%s15742_s24 + $0x68] sm:$0xff]  }
 0x117   : > { %v840_v8 = vmax.f32 %v838_v54, %v839_v60  ;;  %v12718_v28 = vld [vmem:[%s15742_s24 + $0xb8] sm:$0xff]   ;;  %12030 = vmatprep.subr.bf16.mxu0 %v12719_v33  ;;  %v12721_v41 = vld [vmem:[%s15742_s24 + $0x30] sm:$0xff]   ;;  %v892_v42 = vmax.f32 %v890_v34, %v796_v21  ;;  %v12724_v57 = vld [vmem:[%s15742_s24 + $0xe8] sm:$0xff]  }
 0x118   : > { %12057 = vmatpush3.bf16.msra.mxu1 %v12718_v28  ;;  %v869_v37 = vmax.f32 %v867_v29, %v774_v14  ;;  %v870_v38 = vmax.f32 %v868_v30, %v775_v15  ;;  %v801_v40 = vld [vmem:[%s14051_s23 + $0x2b8] sm:$0xff]  ;;  %v893_v43 = vmax.f32 %v891_v35, %v797_v22  ;;  %v12722_v44 = vld [vmem:[%s15742_s24 + $0xb0] sm:$0xff]   ;;  %v12725_v58 = vld [vmem:[%s15742_s24 + $0x28] sm:$0xff]  }
 0x119   : > { %841 = vmax.xlane.f32.xlu0 %v840_v8  ;;  %12058 = vmatprep.subr.bf16.mxu1 %v12720_v36  ;;  %v894_v49 = vmax.f32 %v892_v42, %v798_v31  ;;  %v804_v52 = vld [vmem:[%s14051_s23 + $0x2d0] sm:$0xff]  ;;  %v805_v53 = vld [vmem:[%s14051_s23 + $0x2d8] sm:$0xff]  ;;  %v806_v59 = vld [vmem:[%s14051_s23 + $0x2e0] sm:$0xff] }
 0x11a   : > { %v871_v45 = vmax.f32 %v869_v37, %v776_v24  ;;  %v872_v46 = vmax.f32 %v870_v38, %v777_v25  ;;  %12031 = vmatpush3.bf16.msra.mxu0 %v12721_v41  ;;  %v895_v50 = vmax.f32 %v893_v43, %v799_v32  ;;  %v807_v60 = vld [vmem:[%s14051_s23 + $0x2e8] sm:$0xff]  ;;  %v808_v0 = vld [vmem:[%s14051_s23 + $0x2f0] sm:$0xff]  ;;  %v809_v1 = vld [vmem:[%s14051_s23 + $0x2f8] sm:$0xff] }
 0x11b   : > { %v896_v54 = vmax.f32 %v894_v49, %v800_v39  ;;  %v12726_v61 = vld [vmem:[%s15742_s24 + $0xa8] sm:$0xff]   ;;  %12032 = vmatprep.subr.bf16.mxu0 %v12723_v56  ;;  %v12727_v9 = vld [vmem:[%s15742_s24 + $0x60] sm:$0xff]   ;;  %v12731_v13 = vld [vmem:[%s15742_s24 + $0x58] sm:$0xff]  }
 0x11c   : > { %12059 = vmatpush3.bf16.msra.mxu1 %v12722_v44  ;;  %v873_v51 = vmax.f32 %v871_v45, %v872_v46  ;;  %v897_v55 = vmax.f32 %v895_v50, %v801_v40  ;;  %v12728_v10 = vld [vmem:[%s15742_s24 + $0xe0] sm:$0xff]   ;;  %v12732_v14 = vld [vmem:[%s15742_s24 + $0xd8] sm:$0xff]   ;;  %v12735_v17 = vld [vmem:[%s15742_s24 + $0x50] sm:$0xff]  }
 0x11d   : > { %v898_v62 = vmax.f32 %v896_v54, %v802_v47  ;;  %12060 = vmatprep.subr.bf16.mxu1 %v12724_v57  ;;  %v12729_v11 = vld [vmem:[%s15742_s24 + $0x20] sm:$0xff]   ;;  %v12733_v15 = vld [vmem:[%s15742_s24 + $0x18] sm:$0xff]   ;;  %v12736_v18 = vld [vmem:[%s15742_s24 + $0xd0] sm:$0xff]  }
 0x11e   : > { %874 = vmax.xlane.f32.xlu0 %v873_v51  ;;  %v899_v63 = vmax.f32 %v897_v55, %v803_v48  ;;  %12033 = vmatpush3.bf16.msra.mxu0 %v12725_v58  ;;  %v12730_v12 = vld [vmem:[%s15742_s24 + $0xa0] sm:$0xff]   ;;  %v12734_v16 = vld [vmem:[%s15742_s24 + $0x98] sm:$0xff]   ;;  %v12737_v19 = vld [vmem:[%s15742_s24 + $0x10] sm:$0xff]  }
 0x11f   : > { %v900_v2 = vmax.f32 %v898_v62, %v804_v52  ;;  %12034 = vmatprep.subr.bf16.mxu0 %v12727_v9  ;;  %v12738_v20 = vld [vmem:[%s15742_s24 + $0x90] sm:$0xff]   ;;  %v12739_v21 = vld [vmem:[%s15742_s24 + $0x48] sm:$0xff]   ;;  %v12743_v25 = vld [vmem:[%s15742_s24 + $0x40] sm:$0xff]  }
 0x120   : > { %12061 = vmatpush3.bf16.msra.mxu1 %v12726_v61  ;;  %v901_v3 = vmax.f32 %v899_v63, %v805_v53  ;;  %v12740_v22 = vld [vmem:[%s15742_s24 + $0xc8] sm:$0xff]   ;;  %v12744_v26 = vld [vmem:[%s15742_s24 + $0xc0] sm:$0xff]   ;;  %v12747_v29 = vld [vmem:[%s15742_s24 + $0x178] sm:$0xff]  }
 0x121   : > { %v902_v4 = vmax.f32 %v900_v2, %v806_v59  ;;  %12062 = vmatprep.subr.bf16.mxu1 %v12728_v10  ;;  %v12741_v23 = vld [vmem:[%s15742_s24 + $0x8] sm:$0xff]   ;;  %v12745_v27 = vld [vmem:[%s15742_s24] sm:$0xff]   ;;  %v12748_v30 = vld [vmem:[%s15742_s24 + $0x1f8] sm:$0xff]  }
 0x122   : > { %v903_v5 = vmax.f32 %v901_v3, %v807_v60  ;;  %12035 = vmatpush3.bf16.msra.mxu0 %v12729_v11  ;;  %v12742_v24 = vld [vmem:[%s15742_s24 + $0x88] sm:$0xff]   ;;  %v12746_v28 = vld [vmem:[%s15742_s24 + $0x80] sm:$0xff]   ;;  %v13236_v34 = vld [vmem:[%s14051_s23 + $0x18] sm:$0xff] }
 0x123   : > { %v904_v6 = vmax.f32 %v902_v4, %v808_v0  ;;  %12036 = vmatprep.subr.bf16.mxu0 %v12731_v13  ;;  %v13235_v32 = vld [vmem:[%s14051_s23 + $0x8] sm:$0xff]  ;;  %v13237_v36 = vld [vmem:[%s14051_s23] sm:$0xff]  ;;  %v13238_v39 = vld [vmem:[%s14051_s23 + $0x10] sm:$0xff] }
 0x124   : > { %v905_v7 = vmax.f32 %v903_v5, %v809_v1  ;;  %12063 = vmatpush3.bf16.msra.mxu1 %v12730_v12  ;;  %v13239_v45 = vld [vmem:[%s14051_s23 + $0x108] sm:$0xff]  ;;  %v13240_v47 = vld [vmem:[%s14051_s23 + $0x118] sm:$0xff]  ;;  %v13241_v49 = vld [vmem:[%s14051_s23 + $0x100] sm:$0xff] }
 0x125   : > { %12064 = vmatprep.subr.bf16.mxu1 %v12732_v14  ;;  %v13242_v51 = vld [vmem:[%s14051_s23 + $0x110] sm:$0xff]  ;;  %v13243_v57 = vld [vmem:[%s14051_s23 + $0x28] sm:$0xff]  ;;  %v13245_v61 = vld [vmem:[%s14051_s23 + $0x138] sm:$0xff] }
 0x126   : > { %v906_v8 = vmax.f32 %v904_v6, %v905_v7  ;;  %12037 = vmatpush3.bf16.msra.mxu0 %v12733_v15  ;;  %v13244_v59 = vld [vmem:[%s14051_s23 + $0x128] sm:$0xff]  ;;  %v13246_v2 = vld [vmem:[%s14051_s23 + $0x38] sm:$0xff]  ;;  %v13249_v9 = vld [vmem:[%s14051_s23 + $0x200] sm:$0xff] }
 0x127   : > { %12038 = vmatprep.subr.bf16.mxu0 %v12735_v17  ;;  %v13247_v5 = vld [vmem:[%s14051_s23 + $0x208] sm:$0xff]  ;;  %v13248_v7 = vld [vmem:[%s14051_s23 + $0x218] sm:$0xff]  ;;  %v13250_v11 = vld [vmem:[%s14051_s23 + $0x210] sm:$0xff] }
 0x128   : > { %907 = vmax.xlane.f32.xlu1 %v906_v8  ;;  %12065 = vmatpush3.bf16.msra.mxu1 %v12734_v16 }
 0x129   : > { %12066 = vmatprep.subr.bf16.mxu1 %v12736_v18 }
 0x12a   : > { %12039 = vmatpush3.bf16.msra.mxu0 %v12737_v19 }
 0x12b   : > { %12040 = vmatprep.subr.bf16.mxu0 %v12739_v21 }
 0x12c   : > { %12067 = vmatpush3.bf16.msra.mxu1 %v12738_v20 }
 0x12d   : > { %12068 = vmatprep.subr.bf16.mxu1 %v12740_v22 }
 0x12e   : > { %12041 = vmatpush3.bf16.msra.mxu0 %v12741_v23 }
 0x12f   : > { %12042 = vmatprep.subr.bf16.mxu0 %v12743_v25 }
 0x130   : > { %12069 = vmatpush3.bf16.msra.mxu1 %v12742_v24 }
 0x131   : > { %12070 = vmatprep.subr.bf16.mxu1 %v12744_v26 }
 0x132   : > { %12043 = vmatpush3.bf16.msra.mxu0 %v12745_v27  ;;  %v12749_v27 = vld [vmem:[%s15742_s24 + $0x138] sm:$0xff]  }
 0x133   : > { %12084 = vmatprep.subr.bf16.mxu0 %v12747_v29  ;;  %v12751_v29 = vld [vmem:[%s15742_s24 + $0x170] sm:$0xff]  }
 0x134   : > { %12071 = vmatpush3.bf16.msra.mxu1 %v12746_v28  ;;  %v12750_v28 = vld [vmem:[%s15742_s24 + $0x1b8] sm:$0xff]  }
 0x135   : > { %12112 = vmatprep.subr.bf16.mxu1 %v12748_v30 }
 0x1a2   : > { %v14285_v31 = vpop.xlane.xlu0 %841 }
 0x1a3   : > { %v910_v33 = vsub.f32 %v13235_v32, %v14285_v31  ;;  %v912_v35 = vsub.f32 %v13236_v34, %v14285_v31  ;;  %v909_v37 = vsub.f32 %v13237_v36, %v14285_v31  ;;  %v911_v40 = vsub.f32 %v13238_v39, %v14285_v31  ;;  %v12752_v34 = vld [vmem:[%s15742_s24 + $0x1f0] sm:$0xff]  }
 0x1a4   : > { %v914_v58 = vsub.f32 %v13243_v57, %v14285_v31  ;;  %v916_v3 = vsub.f32 %v13246_v2, %v14285_v31  ;;  %v12754_v36 = vld [vmem:[%s15742_s24 + $0x1b0] sm:$0xff]   ;;  %v13254_v57 = vld [vmem:[%s14051_s23 + $0x228] sm:$0xff]  ;;  %v13256_v2 = vld [vmem:[%s14051_s23 + $0x238] sm:$0xff] }
 0x1a5   : > { %v1007_v38 = vmul.f32 1.442695, %v910_v33  ;;  %v1011_v41 = vmul.f32 1.442695, %v912_v35  ;;  %v1005_v42 = vmul.f32 1.442695, %v909_v37 }
 0x1a6   : > { %v1009_v44 = vmul.f32 1.442695, %v911_v40  ;;  %v1015_v63 = vmul.f32 1.442695, %v914_v58  ;;  %v1019_v20 = vmul.f32 1.442695, %v916_v3 }
 0x1a7   : > { %v14295_v43 = vpop.xlane.xlu0 %874  ;;  %13035 = vpow2.f32 %v1007_v38  ;;  %v12753_v35 = vld [vmem:[%s15742_s24 + $0x130] sm:$0xff]   ;;  %v12755_v37 = vld [vmem:[%s15742_s24 + $0x168] sm:$0xff]   ;;  %v13251_v40 = vld [vmem:[%s14051_s23 + $0x20] sm:$0xff] }
 0x1a8   : > { %v942_v46 = vsub.f32 %v13239_v45, %v14295_v43  ;;  %v944_v48 = vsub.f32 %v13240_v47, %v14295_v43  ;;  %v941_v50 = vsub.f32 %v13241_v49, %v14295_v43  ;;  %v943_v52 = vsub.f32 %v13242_v51, %v14295_v43  ;;  %v12756_v38 = vld [vmem:[%s15742_s24 + $0x1e8] sm:$0xff]  }
 0x1a9   : > { %13037 = vpow2.f32 %v1011_v41  ;;  %v946_v60 = vsub.f32 %v13244_v59, %v14295_v43  ;;  %v948_v62 = vsub.f32 %v13245_v61, %v14295_v43  ;;  %v913_v41 = vsub.f32 %v13251_v40, %v14285_v31  ;;  %v12757_v45 = vld [vmem:[%s15742_s24 + $0x128] sm:$0xff]   ;;  %v12761_v61 = vld [vmem:[%s15742_s24 + $0x120] sm:$0xff]  }
 0x1aa   : > { %v1071_v53 = vmul.f32 1.442695, %v942_v46  ;;  %v1075_v54 = vmul.f32 1.442695, %v944_v48  ;;  %13039 = vpow2.f32 %v1005_v42  ;;  %v1069_v55 = vmul.f32 1.442695, %v941_v50 }
 0x1ab   : > { %13041 = vpow2.f32 %v1009_v44  ;;  %v1073_v56 = vmul.f32 1.442695, %v943_v52  ;;  %v1079_v0 = vmul.f32 1.442695, %v946_v60  ;;  %v1083_v4 = vmul.f32 1.442695, %v948_v62 }
 0x1ac   : > { %13043 = vpow2.f32 %v1071_v53  ;;  %v13252_v46 = vld [vmem:[%s14051_s23 + $0x120] sm:$0xff]  ;;  %v12758_v49 = vld [vmem:[%s15742_s24 + $0x1a8] sm:$0xff]   ;;  %v13253_v50 = vld [vmem:[%s14051_s23 + $0x130] sm:$0xff] }
 0x1ad   : > { %13045 = vpow2.f32 %v1075_v54  ;;  %v945_v47 = vsub.f32 %v13252_v46, %v14295_v43  ;;  %v947_v51 = vsub.f32 %v13253_v50, %v14295_v43  ;;  %v12759_v54 = vld [vmem:[%s15742_s24 + $0x160] sm:$0xff]  }
 0x1ae   : > { %13047 = vpow2.f32 %v1069_v55  ;;  %v12760_v55 = vld [vmem:[%s15742_s24 + $0x1e0] sm:$0xff]  }
 0x1af   : > { %13049 = vpow2.f32 %v1073_v56  ;;  %v1013_v56 = vmul.f32 1.442695, %v913_v41  ;;  %v12762_v62 = vld [vmem:[%s15742_s24 + $0x1a0] sm:$0xff]   ;;  %v12773_v41 = vld [vmem:[%s15742_s24 + $0x108] sm:$0xff]  }
 0x1b0   : > { %13051 = vpow2.f32 %v1015_v63  ;;  %v13255_v63 = vld [vmem:[%s14051_s23 + $0x30] sm:$0xff] }
 0x1b1   : > { %v14311_v1 = vpop.xlane.xlu1 %907  ;;  %13053 = vpow2.f32 %v1079_v0  ;;  %v915_v0 = vsub.f32 %v13255_v63, %v14285_v31  ;;  %v12783_v63 = vld [vmem:[%s15742_s24 + $0x270] sm:$0xff]  }
 0x1b2   : > { %v974_v6 = vsub.f32 %v13247_v5, %v14311_v1  ;;  %v976_v8 = vsub.f32 %v13248_v7, %v14311_v1  ;;  %v973_v10 = vsub.f32 %v13249_v9, %v14311_v1  ;;  %v975_v12 = vsub.f32 %v13250_v11, %v14311_v1  ;;  %v12764_v7 = vld [vmem:[%s15742_s24 + $0x1d8] sm:$0xff]  }
 0x1b3   : > { %13055 = vpow2.f32 %v1083_v4  ;;  %v978_v58 = vsub.f32 %v13254_v57, %v14311_v1  ;;  %v980_v3 = vsub.f32 %v13256_v2, %v14311_v1 }
 0x1b4   : > { %v13036_v13 = vpop.eup %13035  ;;  %v1135_v14 = vmul.f32 1.442695, %v974_v6  ;;  %v1139_v15 = vmul.f32 1.442695, %v976_v8  ;;  %v1133_v16 = vmul.f32 1.442695, %v973_v10 }
 0x1b5   : > { %v1137_v18 = vmul.f32 1.442695, %v975_v12  ;;  %v12763_v6 = vld [vmem:[%s15742_s24 + $0x158] sm:$0xff]   ;;  %v1077_v8 = vmul.f32 1.442695, %v945_v47 }
 0x1b6   : > { %v13038_v17 = vpop.eup %13037  ;;  %13057 = vpow2.f32 %v1135_v14  ;;  %v1081_v12 = vmul.f32 1.442695, %v947_v51  ;;  %v1143_v14 = vmul.f32 1.442695, %v978_v58  ;;  %v12778_v51 = vld [vmem:[%s15742_s24 + $0x180] sm:$0xff]   ;;  %v12781_v58 = vld [vmem:[%s15742_s24 + $0x238] sm:$0xff]  }
 0x1b7   : > { %v13040_v19 = vpop.eup %13039  ;;  %13059 = vpow2.f32 %v1139_v15  ;;  %v12765_v15 = vld [vmem:[%s15742_s24 + $0x118] sm:$0xff]  }
 0x1b8   : > { %v13042_v21 = vpop.eup %13041  ;;  %13061 = vpow2.f32 %v1133_v16  ;;  %v1017_v16 = vmul.f32 1.442695, %v915_v0 }
 0x1b9   : > { %v13044_v22 = vpop.eup %13043  ;;  %13063 = vpow2.f32 %v1137_v18  ;;  %v13257_v18 = vld [vmem:[%s14051_s23 + $0x220] sm:$0xff] }
 0x1ba   : > { %v13046_v23 = vpop.eup %13045  ;;  %v1198_v24 = vpack.c.bf16 %v13044_v22, %v13036_v13  ;;  %13065 = vpow2.f32 %v1019_v20  ;;  %v12766_v20 = vld [vmem:[%s15742_s24 + $0x198] sm:$0xff]  }
 0x1bb   : > { %v13048_v25 = vpop.eup %13047  ;;  %v1200_v26 = vpack.c.bf16 %v13046_v23, %v13038_v17  ;;  %13067 = vpow2.f32 %v1013_v56  ;;  %v1147_v17 = vmul.f32 1.442695, %v980_v3  ;;  %v12767_v23 = vld [vmem:[%s15742_s24 + $0x150] sm:$0xff]  }
 0x1bc   : > { %v13050_v30 = vpop.eup %13049  ;;  %3341 = vmatprep.mubr.bf16.mxu0 %v1198_v24  ;;  %v1197_v32 = vpack.c.bf16 %v13048_v25, %v13040_v19  ;;  %13069 = vpow2.f32 %v1077_v8  ;;  %v977_v19 = vsub.f32 %v13257_v18, %v14311_v1  ;;  %v12768_v24 = vld [vmem:[%s15742_s24 + $0x1d0] sm:$0xff]   ;;  %v13259_v25 = vld [vmem:[%s14051_s23 + $0x148] sm:$0xff] }
 0x1bd   : > { %3389 = vmatprep.mubr.bf16.mxu1 %v1200_v26  ;;  %v1199_v33 = vpack.c.bf16 %v13050_v30, %v13042_v21  ;;  %v13052_v39 = vpop.eup %13051  ;;  %13071 = vpow2.f32 %v1081_v12  ;;  %v13258_v21 = vld [vmem:[%s14051_s23 + $0x230] sm:$0xff]  ;;  %v950_v26 = vsub.f32 %v13259_v25, %v14295_v43  ;;  %v12787_v8 = vld [vmem:[%s15742_s24 + $0x268] sm:$0xff]   ;;  %v13263_v12 = vld [vmem:[%s14051_s23 + $0x40] sm:$0xff] }
 0x1be   : > { %3342 = vmatmul.mubr.bf16.vlgmr.msra.gmra.mxu0 %v1197_v32  ;;  %v13054_v42 = vpop.eup %13053  ;;  %v979_v22 = vsub.f32 %v13258_v21, %v14311_v1  ;;  %13073 = vpow2.f32 %v1143_v14  ;;  %v12771_v32 = vld [vmem:[%s15742_s24 + $0x148] sm:$0xff]   ;;  %v12784_v3 = vld [vmem:[%s15742_s24 + $0x2f0] sm:$0xff]  }
 0x1bf   : > { %3390 = vmatmul.mubr.bf16.vlgmr.msra.gmra.mxu1 %v1199_v33  ;;  %12085 = vmatpush3.bf16.msra.mxu0 %v12749_v27  ;;  %v1202_v11 = vpack.c.bf16 %v13054_v42, %v13052_v39  ;;  %v12769_v27 = vld [vmem:[%s15742_s24 + $0x110] sm:$0xff]   ;;  %13075 = vpow2.f32 %v1147_v17  ;;  %v12772_v33 = vld [vmem:[%s15742_s24 + $0x1c8] sm:$0xff]   ;;  %v1087_v40 = vmul.f32 1.442695, %v950_v26  ;;  %v13264_v17 = vld [vmem:[%s14051_s23 + $0x140] sm:$0xff] }
 0x1c0   : > { %12113 = vmatpush3.bf16.msra.mxu1 %v12750_v28  ;;  %12086 = vmatprep.subr.bf16.mxu0 %v12751_v29  ;;  %v13056_v44 = vpop.eup %13055  ;;  %v12770_v28 = vld [vmem:[%s15742_s24 + $0x190] sm:$0xff]   ;;  %v13260_v29 = vld [vmem:[%s14051_s23 + $0x158] sm:$0xff]  ;;  %13077 = vpow2.f32 %v1017_v16  ;;  %v12774_v42 = vld [vmem:[%s15742_s24 + $0x188] sm:$0xff]   ;;  %v949_v18 = vsub.f32 %v13264_v17, %v14295_v43 }
 0x1c1   : > { %12114 = vmatprep.subr.bf16.mxu1 %v12752_v34  ;;  %v952_v30 = vsub.f32 %v13260_v29, %v14295_v43  ;;  %v1141_v34 = vmul.f32 1.442695, %v977_v19  ;;  %v12790_v16 = vld [vmem:[%s15742_s24 + $0x2a8] sm:$0xff]   ;;  %v12791_v26 = vld [vmem:[%s15742_s24 + $0x260] sm:$0xff]   ;;  %v12811_v17 = vld [vmem:[%s15742_s24 + $0x378] sm:$0xff]  }
 0x1c3   : > { %12087 = vmatpush3.bf16.msra.mxu0 %v12753_v35  ;;  %v13058_v48 = vpop.eup %13057  ;;  %v13261_v35 = vld [vmem:[%s14051_s23 + $0x48] sm:$0xff]  ;;  %13079 = vpow2.f32 %v1141_v34  ;;  %v13267_v34 = vld [vmem:[%s14051_s23 + $0x258] sm:$0xff] }
 0x1c4   : > { %12115 = vmatpush3.bf16.msra.mxu1 %v12754_v36  ;;  %12088 = vmatprep.subr.bf16.mxu0 %v12755_v37  ;;  %v13060_v52 = vpop.eup %13059  ;;  %v1230_v53 = vpack.c.bf16 %v13058_v48, %v13058_v48  ;;  %v918_v36 = vsub.f32 %v13261_v35, %v14285_v31  ;;  %v1145_v37 = vmul.f32 1.442695, %v979_v22  ;;  %v12776_v48 = vld [vmem:[%s15742_s24 + $0x1c0] sm:$0xff]   ;;  %v13265_v22 = vld [vmem:[%s14051_s23 + $0x150] sm:$0xff]  ;;  %v984_v35 = vsub.f32 %v13267_v34, %v14311_v1 }
 0x1c5   : > { %12116 = vmatprep.subr.bf16.mxu1 %v12756_v38  ;;  %v13062_v59 = vpop.eup %13061  ;;  %v1232_v60 = vpack.c.bf16 %v13060_v52, %v13060_v52  ;;  %v13262_v38 = vld [vmem:[%s14051_s23 + $0x58] sm:$0xff]  ;;  %v12818_v34 = vld [vmem:[%s15742_s24 + $0x3b0] sm:$0xff]  }
 0x1c6   : > { %v13064_v4 = vpop.eup %13063  ;;  %3349 = vmatprep.mubr.bf16.mxu0 %v1230_v53  ;;  %v1229_v5 = vpack.c.bf16 %v13062_v59, %v13062_v59  ;;  %v920_v39 = vsub.f32 %v13262_v38, %v14285_v31  ;;  %v1023_v46 = vmul.f32 1.442695, %v918_v36  ;;  %13081 = vpow2.f32 %v1145_v37  ;;  %v12779_v53 = vld [vmem:[%s15742_s24 + $0x278] sm:$0xff]  }
 0x1c7   : > { %12089 = vmatpush3.bf16.msra.mxu0 %v12757_v45  ;;  %v13066_v9 = vpop.eup %13065  ;;  %3397 = vmatprep.mubr.bf16.mxu1 %v1232_v60  ;;  %v1231_v10 = vpack.c.bf16 %v13064_v4, %v13064_v4  ;;  %v12775_v45 = vld [vmem:[%s15742_s24 + $0x140] sm:$0xff]   ;;  %13083 = vpow2.f32 %v1087_v40  ;;  %v12782_v60 = vld [vmem:[%s15742_s24 + $0x2b8] sm:$0xff]   ;;  %v12785_v4 = vld [vmem:[%s15742_s24 + $0x230] sm:$0xff]   ;;  %v1085_v38 = vmul.f32 1.442695, %v949_v18 }
 0x1c8   : > { %12117 = vmatpush3.bf16.msra.mxu1 %v12758_v49  ;;  %3350 = vmatmul.mubr.bf16.gmra.mxu0 %v1229_v5  ;;  %v1204_v13 = vpack.c.bf16 %v13056_v44, %v13066_v9  ;;  %v1091_v44 = vmul.f32 1.442695, %v952_v30  ;;  %v1027_v47 = vmul.f32 1.442695, %v920_v39  ;;  %v12777_v49 = vld [vmem:[%s15742_s24 + $0x100] sm:$0xff]   ;;  %v13068_v50 = vpop.eup %13067  ;;  %v12795_v36 = vld [vmem:[%s15742_s24 + $0x258] sm:$0xff]  }
 0x1c9   : > { %12090 = vmatprep.subr.bf16.mxu0 %v12759_v54  ;;  %3398 = vmatmul.mubr.bf16.gmra.mxu1 %v1231_v10  ;;  %v13070_v52 = vpop.eup %13069  ;;  %v12788_v10 = vld [vmem:[%s15742_s24 + $0x2e8] sm:$0xff]   ;;  %v12793_v30 = vld [vmem:[%s15742_s24 + $0x220] sm:$0xff]   ;;  %v12796_v37 = vld [vmem:[%s15742_s24 + $0x2d8] sm:$0xff]  }
 0x1ca   : > { %3437 = vmatprep.mubr.bf16.mxu0 %v1202_v11  ;;  %3485 = vmatprep.mubr.bf16.mxu1 %v1204_v13  ;;  %13085 = vpow2.f32 %v1091_v44  ;;  %v13072_v54 = vpop.eup %13071  ;;  %v917_v13 = vsub.f32 %v13263_v12, %v14285_v31  ;;  %v13268_v39 = vld [vmem:[%s14051_s23 + $0x50] sm:$0xff]  ;;  %v12797_v44 = vld [vmem:[%s15742_s24 + $0x218] sm:$0xff]   ;;  %v12808_v12 = vld [vmem:[%s15742_s24 + $0x2c0] sm:$0xff]  }
 0x1cb   : > { %12118 = vmatprep.subr.bf16.mxu1 %v12760_v55  ;;  %12091 = vmatpush3.bf16.msra.mxu0 %v12761_v61  ;;  %13087 = vpow2.f32 %v1023_v46  ;;  %v12780_v55 = vld [vmem:[%s15742_s24 + $0x2f8] sm:$0xff]   ;;  %v13074_v56 = vpop.eup %13073  ;;  %v1201_v61 = vpack.c.bf16 %v13070_v52, %v13068_v50  ;;  %v919_v40 = vsub.f32 %v13268_v39, %v14285_v31  ;;  %v12799_v50 = vld [vmem:[%s15742_s24 + $0x250] sm:$0xff]   ;;  %v13275_v39 = vld [vmem:[%s14051_s23 + $0x60] sm:$0xff] }
 0x1cc   : > { %12119 = vmatpush3.bf16.msra.mxu1 %v12762_v62  ;;  %12092 = vmatprep.subr.bf16.mxu0 %v12763_v6  ;;  %13089 = vpow2.f32 %v1027_v47  ;;  %v13076_v57 = vpop.eup %13075  ;;  %v1234_v0 = vpack.c.bf16 %v13074_v56, %v13074_v56  ;;  %v12786_v6 = vld [vmem:[%s15742_s24 + $0x2b0] sm:$0xff]   ;;  %v13269_v47 = vld [vmem:[%s14051_s23 + $0x240] sm:$0xff]  ;;  %v13272_v56 = vld [vmem:[%s14051_s23 + $0x178] sm:$0xff] }
 0x1cd   : > { %12120 = vmatprep.subr.bf16.mxu1 %v12764_v7  ;;  %v13078_v59 = vpop.eup %13077  ;;  %v1236_v2 = vpack.c.bf16 %v13076_v57, %v13076_v57  ;;  %v1025_v46 = vmul.f32 1.442695, %v919_v40  ;;  %v956_v57 = vsub.f32 %v13272_v56, %v14295_v43  ;;  %v921_v40 = vsub.f32 %v13275_v39, %v14285_v31  ;;  %v12824_v56 = vld [vmem:[%s15742_s24 + $0x3e0] sm:$0xff]  }
 0x1ce   : > { %v1203_v62 = vpack.c.bf16 %v13072_v54, %v13078_v59  ;;  %v13271_v54 = vld [vmem:[%s14051_s23 + $0x168] sm:$0xff]  ;;  %v12802_v59 = vld [vmem:[%s15742_s24 + $0x290] sm:$0xff]  }
 0x1cf   : > { %12093 = vmatpush3.bf16.msra.mxu0 %v12765_v15  ;;  %v12789_v15 = vld [vmem:[%s15742_s24 + $0x228] sm:$0xff]  }
 0x1d0   : > { %12121 = vmatpush3.bf16.msra.mxu1 %v12766_v20  ;;  %12094 = vmatprep.subr.bf16.mxu0 %v12767_v23  ;;  %v13080_v5 = vpop.eup %13079  ;;  %v951_v23 = vsub.f32 %v13265_v22, %v14295_v43  ;;  %v12813_v22 = vld [vmem:[%s15742_s24 + $0x338] sm:$0xff]  }
 0x1d1   : > { %12122 = vmatprep.subr.bf16.mxu1 %v12768_v24  ;;  %v1233_v20 = vpack.c.bf16 %v13080_v5, %v13080_v5 }
 0x1d3   : > { %12095 = vmatpush3.bf16.msra.mxu0 %v12769_v27  ;;  %v13082_v7 = vpop.eup %13081  ;;  %v12792_v27 = vld [vmem:[%s15742_s24 + $0x2e0] sm:$0xff]  }
 0x1d4   : > { %12123 = vmatpush3.bf16.msra.mxu1 %v12770_v28  ;;  %12096 = vmatprep.subr.bf16.mxu0 %v12771_v32  ;;  %v13084_v9 = vpop.eup %13083  ;;  %v1235_v21 = vpack.c.bf16 %v13082_v7, %v13082_v7  ;;  %v13266_v28 = vld [vmem:[%s14051_s23 + $0x248] sm:$0xff]  ;;  %v12794_v32 = vld [vmem:[%s15742_s24 + $0x2a0] sm:$0xff]  }
 0x1d5   : > { %12124 = vmatprep.subr.bf16.mxu1 %v12772_v33  ;;  %v982_v29 = vsub.f32 %v13266_v28, %v14311_v1  ;;  %v1021_v33 = vmul.f32 1.442695, %v917_v13  ;;  %v12806_v7 = vld [vmem:[%s15742_s24 + $0x288] sm:$0xff]   ;;  %v12809_v13 = vld [vmem:[%s15742_s24 + $0x200] sm:$0xff]  }
 0x1d7   : > { %12097 = vmatpush3.bf16.msra.mxu0 %v12773_v41  ;;  %v13086_v11 = vpop.eup %13085  ;;  %v1089_v41 = vmul.f32 1.442695, %v951_v23  ;;  %13091 = vpow2.f32 %v1021_v33 }
 0x1d8   : > { %12125 = vmatpush3.bf16.msra.mxu1 %v12774_v42  ;;  %12098 = vmatprep.subr.bf16.mxu0 %v12775_v45  ;;  %v13088_v14 = vpop.eup %13087  ;;  %v1151_v42 = vmul.f32 1.442695, %v982_v29  ;;  %v1155_v45 = vmul.f32 1.442695, %v984_v35  ;;  %13093 = vpow2.f32 %v1085_v38  ;;  %v12820_v38 = vld [vmem:[%s15742_s24 + $0x3e8] sm:$0xff]  }
 0x1d9   : > { %12126 = vmatprep.subr.bf16.mxu1 %v12776_v48  ;;  %v13090_v19 = vpop.eup %13089  ;;  %v1206_v24 = vpack.c.bf16 %v13084_v9, %v13088_v14  ;;  %v981_v48 = vsub.f32 %v13269_v47, %v14311_v1  ;;  %13095 = vpow2.f32 %v1089_v41  ;;  %v12807_v9 = vld [vmem:[%s15742_s24 + $0x240] sm:$0xff]  }
 0x1da   : > { %v1208_v25 = vpack.c.bf16 %v13086_v11, %v13090_v19  ;;  %13097 = vpow2.f32 %v1151_v42  ;;  %v12812_v19 = vld [vmem:[%s15742_s24 + $0x3f8] sm:$0xff]  }
 0x1db   : > { %12099 = vmatpush3.bf16.msra.mxu0 %v12777_v49  ;;  %v12798_v49 = vld [vmem:[%s15742_s24 + $0x298] sm:$0xff]   ;;  %13099 = vpow2.f32 %v1155_v45 }
 0x1dc   : > { %12127 = vmatpush3.bf16.msra.mxu1 %v12778_v51  ;;  %12140 = vmatprep.subr.bf16.mxu0 %v12779_v53  ;;  %v13270_v51 = vld [vmem:[%s14051_s23 + $0x250] sm:$0xff]  ;;  %13101 = vpow2.f32 %v1025_v46 }
 0x1dd   : > { %12168 = vmatprep.subr.bf16.mxu1 %v12780_v55  ;;  %v983_v52 = vsub.f32 %v13270_v51, %v14311_v1  ;;  %v12800_v53 = vld [vmem:[%s15742_s24 + $0x2d0] sm:$0xff]   ;;  %v954_v55 = vsub.f32 %v13271_v54, %v14295_v43 }
 0x1de   : > { %3438 = vmatmul.mubr.bf16.vlgmr.msra.gmra.mxu0 %v1201_v61  ;;  %v13273_v61 = vld [vmem:[%s14051_s23 + $0x68] sm:$0xff]  ;;  %v13277_v51 = vld [vmem:[%s14051_s23 + $0x170] sm:$0xff] }
 0x1df   : > { %3486 = vmatmul.mubr.bf16.vlgmr.msra.gmra.mxu1 %v1203_v62  ;;  %3445 = vmatprep.mubr.bf16.mxu0 %v1234_v0  ;;  %v922_v62 = vsub.f32 %v13273_v61, %v14285_v31  ;;  %v13274_v0 = vld [vmem:[%s14051_s23 + $0x78] sm:$0xff]  ;;  %v1095_v5 = vmul.f32 1.442695, %v954_v55  ;;  %v12823_v55 = vld [vmem:[%s15742_s24 + $0x360] sm:$0xff]  }
 0x1e0   : > { %3493 = vmatprep.mubr.bf16.mxu1 %v1236_v2  ;;  %12141 = vmatpush3.bf16.msra.mxu0 %v12781_v58  ;;  %v12801_v58 = vld [vmem:[%s15742_s24 + $0x210] sm:$0xff]   ;;  %v924_v2 = vsub.f32 %v13274_v0, %v14285_v31  ;;  %v12826_v61 = vld [vmem:[%s15742_s24 + $0x3a0] sm:$0xff]   ;;  %v12827_v0 = vld [vmem:[%s15742_s24 + $0x358] sm:$0xff]  }
 0x1e1   : > { %12169 = vmatpush3.bf16.msra.mxu1 %v12782_v60  ;;  %12142 = vmatprep.subr.bf16.mxu0 %v12783_v63  ;;  %v1149_v60 = vmul.f32 1.442695, %v981_v48  ;;  %v1153_v63 = vmul.f32 1.442695, %v983_v52  ;;  %v955_v52 = vsub.f32 %v13277_v51, %v14295_v43  ;;  %v12845_v51 = vld [vmem:[%s15742_s24 + $0x438] sm:$0xff]  }
 0x1e2   : > { %12170 = vmatprep.subr.bf16.mxu1 %v12784_v3  ;;  %v12803_v3 = vld [vmem:[%s15742_s24 + $0x248] sm:$0xff]   ;;  %v1035_v11 = vmul.f32 1.442695, %v924_v2  ;;  %v12828_v2 = vld [vmem:[%s15742_s24 + $0x3d8] sm:$0xff]  }
 0x1e3   : > { %13103 = vpow2.f32 %v1149_v60  ;;  %v12825_v60 = vld [vmem:[%s15742_s24 + $0x320] sm:$0xff]  }
 0x1e4   : > { %12143 = vmatpush3.bf16.msra.mxu0 %v12785_v4  ;;  %v12804_v4 = vld [vmem:[%s15742_s24 + $0x2c8] sm:$0xff]   ;;  %13105 = vpow2.f32 %v1153_v63  ;;  %v13092_v14 = vpop.eup %13091 }
 0x1e5   : > { %12171 = vmatpush3.bf16.msra.mxu1 %v12786_v6  ;;  %12144 = vmatprep.subr.bf16.mxu0 %v12787_v8  ;;  %v12805_v6 = vld [vmem:[%s15742_s24 + $0x208] sm:$0xff]   ;;  %v1099_v8 = vmul.f32 1.442695, %v956_v57  ;;  %13107 = vpow2.f32 %v1095_v5  ;;  %v1029_v57 = vmul.f32 1.442695, %v921_v40  ;;  %v12840_v40 = vld [vmem:[%s15742_s24 + $0x3c0] sm:$0xff]  }
 0x1e6   : > { %12172 = vmatprep.subr.bf16.mxu1 %v12788_v10  ;;  %3446 = vmatmul.mubr.bf16.gmra.mxu0 %v1233_v20  ;;  %v1031_v10 = vmul.f32 1.442695, %v922_v62  ;;  %v13279_v62 = vld [vmem:[%s14051_s23 + $0x278] sm:$0xff] }
 0x1e7   : > { %3494 = vmatmul.mubr.bf16.gmra.mxu1 %v1235_v21  ;;  %3533 = vmatprep.mubr.bf16.mxu0 %v1206_v24  ;;  %13109 = vpow2.f32 %v1099_v8  ;;  %v12814_v24 = vld [vmem:[%s15742_s24 + $0x3b8] sm:$0xff]   ;;  %v988_v63 = vsub.f32 %v13279_v62, %v14311_v1  ;;  %v12850_v62 = vld [vmem:[%s15742_s24 + $0x4b0] sm:$0xff]  }
 0x1e8   : > { %3581 = vmatprep.mubr.bf16.mxu1 %v1208_v25  ;;  %12145 = vmatpush3.bf16.msra.mxu0 %v12789_v15  ;;  %v12810_v15 = vld [vmem:[%s15742_s24 + $0x280] sm:$0xff]   ;;  %13111 = vpow2.f32 %v1031_v10  ;;  %v12829_v8 = vld [vmem:[%s15742_s24 + $0x318] sm:$0xff]  }
 0x1e9   : > { %12173 = vmatpush3.bf16.msra.mxu1 %v12790_v16  ;;  %12146 = vmatprep.subr.bf16.mxu0 %v12791_v26  ;;  %v13094_v16 = vpop.eup %13093  ;;  %13113 = vpow2.f32 %v1035_v11  ;;  %v1163_v10 = vmul.f32 1.442695, %v988_v63 }
 0x1ea   : > { %12174 = vmatprep.subr.bf16.mxu1 %v12792_v27  ;;  %v13096_v18 = vpop.eup %13095  ;;  %v1205_v25 = vpack.c.bf16 %v13094_v16, %v13092_v14  ;;  %v12815_v27 = vld [vmem:[%s15742_s24 + $0x370] sm:$0xff]   ;;  %13115 = vpow2.f32 %v1029_v57 }
 0x1eb   : > { %v13098_v20 = vpop.eup %13097  ;;  %v12831_v14 = vld [vmem:[%s15742_s24 + $0x350] sm:$0xff]  }
 0x1ec   : > { %12147 = vmatpush3.bf16.msra.mxu0 %v12793_v30  ;;  %v13100_v21 = vpop.eup %13099  ;;  %v1238_v28 = vpack.c.bf16 %v13098_v20, %v13098_v20  ;;  %v12816_v30 = vld [vmem:[%s15742_s24 + $0x3f0] sm:$0xff]  }
 0x1ed   : > { %12175 = vmatpush3.bf16.msra.mxu1 %v12794_v32  ;;  %12148 = vmatprep.subr.bf16.mxu0 %v12795_v36  ;;  %v13102_v23 = vpop.eup %13101  ;;  %v1240_v29 = vpack.c.bf16 %v13100_v21, %v13100_v21  ;;  %v12817_v32 = vld [vmem:[%s15742_s24 + $0x330] sm:$0xff]   ;;  %v12819_v36 = vld [vmem:[%s15742_s24 + $0x368] sm:$0xff]  }
 0x1ee   : > { %12176 = vmatprep.subr.bf16.mxu1 %v12796_v37  ;;  %v1207_v26 = vpack.c.bf16 %v13096_v18, %v13102_v23  ;;  %v13283_v18 = vld [vmem:[%s14051_s23 + $0x188] sm:$0xff]  ;;  %v12833_v20 = vld [vmem:[%s15742_s24 + $0x310] sm:$0xff]  }
 0x1ef   : > { %v12834_v21 = vld [vmem:[%s15742_s24 + $0x390] sm:$0xff]  }
 0x1f0   : > { %12149 = vmatpush3.bf16.msra.mxu0 %v12797_v44  ;;  %v13104_v33 = vpop.eup %13103  ;;  %v13276_v44 = vld [vmem:[%s14051_s23 + $0x160] sm:$0xff] }
 0x1f1   : > { %12177 = vmatpush3.bf16.msra.mxu1 %v12798_v49  ;;  %12150 = vmatprep.subr.bf16.mxu0 %v12799_v50  ;;  %v13106_v35 = vpop.eup %13105  ;;  %v953_v45 = vsub.f32 %v13276_v44, %v14295_v43  ;;  %v1237_v47 = vpack.c.bf16 %v13104_v33, %v13104_v33  ;;  %v12821_v49 = vld [vmem:[%s15742_s24 + $0x328] sm:$0xff]   ;;  %v12842_v44 = vld [vmem:[%s15742_s24 + $0x380] sm:$0xff]  }
 0x1f2   : > { %12178 = vmatprep.subr.bf16.mxu1 %v12800_v53  ;;  %v13108_v37 = vpop.eup %13107  ;;  %v1239_v48 = vpack.c.bf16 %v13106_v35, %v13106_v35  ;;  %v12822_v50 = vld [vmem:[%s15742_s24 + $0x3a8] sm:$0xff]  }
 0x1f4   : > { %12151 = vmatpush3.bf16.msra.mxu0 %v12801_v58  ;;  %v13110_v41 = vpop.eup %13109  ;;  %v13278_v58 = vld [vmem:[%s14051_s23 + $0x268] sm:$0xff] }
 0x1f5   : > { %12179 = vmatpush3.bf16.msra.mxu1 %v12802_v59  ;;  %12152 = vmatprep.subr.bf16.mxu0 %v12803_v3  ;;  %v13112_v42 = vpop.eup %13111  ;;  %v986_v59 = vsub.f32 %v13278_v58, %v14311_v1  ;;  %v1093_v3 = vmul.f32 1.442695, %v953_v45 }
 0x1f6   : > { %12180 = vmatprep.subr.bf16.mxu1 %v12804_v4  ;;  %v13114_v46 = vpop.eup %13113  ;;  %v1210_v53 = vpack.c.bf16 %v13108_v37, %v13112_v42  ;;  %v13280_v4 = vld [vmem:[%s14051_s23 + $0x70] sm:$0xff]  ;;  %v12839_v37 = vld [vmem:[%s15742_s24 + $0x340] sm:$0xff]  }
 0x1f7   : > { %v1212_v54 = vpack.c.bf16 %v13110_v41, %v13114_v46  ;;  %v923_v5 = vsub.f32 %v13280_v4, %v14285_v31  ;;  %13117 = vpow2.f32 %v1093_v3  ;;  %v12841_v41 = vld [vmem:[%s15742_s24 + $0x300] sm:$0xff]   ;;  %v13116_v42 = vpop.eup %13115  ;;  %v12843_v46 = vld [vmem:[%s15742_s24 + $0x478] sm:$0xff]   ;;  %v12852_v3 = vld [vmem:[%s15742_s24 + $0x4e8] sm:$0xff]  }
 0x1f8   : > { %12153 = vmatpush3.bf16.msra.mxu0 %v12805_v6  ;;  %v1097_v6 = vmul.f32 1.442695, %v955_v52 }
 0x1f9   : > { %12181 = vmatpush3.bf16.msra.mxu1 %v12806_v7  ;;  %12154 = vmatprep.subr.bf16.mxu0 %v12807_v9  ;;  %v1159_v7 = vmul.f32 1.442695, %v986_v59  ;;  %v12830_v9 = vld [vmem:[%s15742_s24 + $0x398] sm:$0xff]   ;;  %v1033_v11 = vmul.f32 1.442695, %v923_v5  ;;  %v12848_v59 = vld [vmem:[%s15742_s24 + $0x4f0] sm:$0xff]  }
 0x1fa   : > { %12182 = vmatprep.subr.bf16.mxu1 %v12808_v12  ;;  %v13281_v12 = vld [vmem:[%s14051_s23 + $0x260] sm:$0xff]  ;;  %13119 = vpow2.f32 %v1097_v6  ;;  %v12853_v5 = vld [vmem:[%s15742_s24 + $0x428] sm:$0xff]  }
 0x1fb   : > { %13121 = vpow2.f32 %v1159_v7  ;;  %v13287_v6 = vld [vmem:[%s14051_s23 + $0x80] sm:$0xff] }
 0x1fc   : > { %12155 = vmatpush3.bf16.msra.mxu0 %v12809_v13  ;;  %v985_v13 = vsub.f32 %v13281_v12, %v14311_v1  ;;  %13123 = vpow2.f32 %v1163_v10  ;;  %v925_v7 = vsub.f32 %v13287_v6, %v14285_v31  ;;  %v13288_v10 = vld [vmem:[%s14051_s23 + $0x180] sm:$0xff] }
 0x1fd   : > { %12183 = vmatpush3.bf16.msra.mxu1 %v12810_v15  ;;  %12196 = vmatprep.subr.bf16.mxu0 %v12811_v17  ;;  %v13282_v15 = vld [vmem:[%s14051_s23 + $0x270] sm:$0xff]  ;;  %13125 = vpow2.f32 %v1033_v11  ;;  %v957_v11 = vsub.f32 %v13288_v10, %v14295_v43 }
 0x1fe   : > { %12224 = vmatprep.subr.bf16.mxu1 %v12812_v19  ;;  %v987_v16 = vsub.f32 %v13282_v15, %v14311_v1  ;;  %v12832_v17 = vld [vmem:[%s15742_s24 + $0x3d0] sm:$0xff]   ;;  %v958_v19 = vsub.f32 %v13283_v18, %v14295_v43  ;;  %v12855_v15 = vld [vmem:[%s15742_s24 + $0x460] sm:$0xff]  }
 0x1ff   : > { %3534 = vmatmul.mubr.bf16.vlgmr.msra.gmra.mxu0 %v1205_v25  ;;  %v13285_v25 = vld [vmem:[%s14051_s23 + $0x88] sm:$0xff] }
 0x200   : > { %3582 = vmatmul.mubr.bf16.vlgmr.msra.gmra.mxu1 %v1207_v26  ;;  %3541 = vmatprep.mubr.bf16.mxu0 %v1238_v28  ;;  %v926_v26 = vsub.f32 %v13285_v25, %v14285_v31  ;;  %v13286_v28 = vld [vmem:[%s14051_s23 + $0x98] sm:$0xff]  ;;  %v1103_v33 = vmul.f32 1.442695, %v958_v19 }
 0x201   : > { %3589 = vmatprep.mubr.bf16.mxu1 %v1240_v29  ;;  %12197 = vmatpush3.bf16.msra.mxu0 %v12813_v22  ;;  %v13284_v22 = vld [vmem:[%s14051_s23 + $0x198] sm:$0xff]  ;;  %v928_v29 = vsub.f32 %v13286_v28, %v14285_v31 }
 0x202   : > { %12225 = vmatpush3.bf16.msra.mxu1 %v12814_v24  ;;  %12198 = vmatprep.subr.bf16.mxu0 %v12815_v27  ;;  %v960_v23 = vsub.f32 %v13284_v22, %v14295_v43  ;;  %v1157_v24 = vmul.f32 1.442695, %v985_v13  ;;  %v1161_v27 = vmul.f32 1.442695, %v987_v16  ;;  %v13289_v16 = vld [vmem:[%s14051_s23 + $0x190] sm:$0xff] }
 0x203   : > { %12226 = vmatprep.subr.bf16.mxu1 %v12816_v30  ;;  %v12835_v30 = vld [vmem:[%s15742_s24 + $0x348] sm:$0xff]   ;;  %v1043_v39 = vmul.f32 1.442695, %v928_v29  ;;  %v12857_v29 = vld [vmem:[%s15742_s24 + $0x420] sm:$0xff]  }
 0x204   : > { %v1107_v35 = vmul.f32 1.442695, %v960_v23  ;;  %13127 = vpow2.f32 %v1157_v24  ;;  %v13118_v45 = vpop.eup %13117  ;;  %v1037_v23 = vmul.f32 1.442695, %v925_v7  ;;  %v13291_v24 = vld [vmem:[%s14051_s23 + $0x298] sm:$0xff] }
 0x205   : > { %12199 = vmatpush3.bf16.msra.mxu0 %v12817_v32  ;;  %v12836_v32 = vld [vmem:[%s15742_s24 + $0x3c8] sm:$0xff]   ;;  %13129 = vpow2.f32 %v1161_v27  ;;  %v992_v25 = vsub.f32 %v13291_v24, %v14311_v1  ;;  %v13292_v27 = vld [vmem:[%s14051_s23 + $0x90] sm:$0xff] }
 0x206   : > { %12227 = vmatpush3.bf16.msra.mxu1 %v12818_v34  ;;  %12200 = vmatprep.subr.bf16.mxu0 %v12819_v36  ;;  %v12837_v34 = vld [vmem:[%s15742_s24 + $0x308] sm:$0xff]   ;;  %13131 = vpow2.f32 %v1103_v33  ;;  %v927_v28 = vsub.f32 %v13292_v27, %v14285_v31  ;;  %v12859_v33 = vld [vmem:[%s15742_s24 + $0x458] sm:$0xff]  }
 0x207   : > { %12228 = vmatprep.subr.bf16.mxu1 %v12820_v38  ;;  %3542 = vmatmul.mubr.bf16.gmra.mxu0 %v1237_v47  ;;  %v12838_v36 = vld [vmem:[%s15742_s24 + $0x388] sm:$0xff]   ;;  %v1039_v38 = vmul.f32 1.442695, %v926_v26  ;;  %13133 = vpow2.f32 %v1107_v35  ;;  %v13120_v47 = vpop.eup %13119  ;;  %v1101_v26 = vmul.f32 1.442695, %v957_v11  ;;  %v12875_v11 = vld [vmem:[%s15742_s24 + $0x578] sm:$0xff]  }
 0x208   : > { %3590 = vmatmul.mubr.bf16.gmra.mxu1 %v1239_v48  ;;  %3629 = vmatprep.mubr.bf16.mxu0 %v1210_v53  ;;  %v12844_v48 = vld [vmem:[%s15742_s24 + $0x4f8] sm:$0xff]  }
 0x209   : > { %3677 = vmatprep.mubr.bf16.mxu1 %v1212_v54  ;;  %12201 = vmatpush3.bf16.msra.mxu0 %v12821_v49  ;;  %13135 = vpow2.f32 %v1039_v38  ;;  %v13122_v49 = vpop.eup %13121  ;;  %v12846_v53 = vld [vmem:[%s15742_s24 + $0x4b8] sm:$0xff]   ;;  %v1209_v54 = vpack.c.bf16 %v13118_v45, %v13116_v42  ;;  %v1171_v38 = vmul.f32 1.442695, %v992_v25  ;;  %v13294_v42 = vld [vmem:[%s14051_s23 + $0x290] sm:$0xff]  ;;  %v13295_v45 = vld [vmem:[%s14051_s23 + $0xa8] sm:$0xff] }
 0x20a   : > { %12229 = vmatpush3.bf16.msra.mxu1 %v12822_v50  ;;  %12202 = vmatprep.subr.bf16.mxu0 %v12823_v55  ;;  %13137 = vpow2.f32 %v1043_v39  ;;  %v13124_v50 = vpop.eup %13123  ;;  %v1242_v57 = vpack.c.bf16 %v13122_v49, %v13122_v49  ;;  %v1041_v39 = vmul.f32 1.442695, %v927_v28  ;;  %v12881_v25 = vld [vmem:[%s15742_s24 + $0x530] sm:$0xff]   ;;  %v12883_v28 = vld [vmem:[%s15742_s24 + $0x568] sm:$0xff]  }
 0x20b   : > { %12230 = vmatprep.subr.bf16.mxu1 %v12824_v56  ;;  %v13126_v52 = vpop.eup %13125  ;;  %v12847_v56 = vld [vmem:[%s15742_s24 + $0x470] sm:$0xff]   ;;  %v1244_v58 = vpack.c.bf16 %v13124_v50, %v13124_v50  ;;  %13139 = vpow2.f32 %v1037_v23  ;;  %v13296_v50 = vld [vmem:[%s14051_s23 + $0x1a8] sm:$0xff] }
 0x20c   : > { %v1211_v55 = vpack.c.bf16 %v13120_v47, %v13126_v52  ;;  %13141 = vpow2.f32 %v1101_v26  ;;  %v12863_v47 = vld [vmem:[%s15742_s24 + $0x450] sm:$0xff]   ;;  %v13297_v52 = vld [vmem:[%s14051_s23 + $0x1b8] sm:$0xff] }
 0x20d   : > { %12203 = vmatpush3.bf16.msra.mxu0 %v12825_v60  ;;  %v12849_v60 = vld [vmem:[%s15742_s24 + $0x430] sm:$0xff]  }
 0x20e   : > { %12231 = vmatpush3.bf16.msra.mxu1 %v12826_v61  ;;  %12204 = vmatprep.subr.bf16.mxu0 %v12827_v0  ;;  %v12851_v0 = vld [vmem:[%s15742_s24 + $0x468] sm:$0xff]   ;;  %v12882_v26 = vld [vmem:[%s15742_s24 + $0x5b0] sm:$0xff]  }
 0x20f   : > { %12232 = vmatprep.subr.bf16.mxu1 %v12828_v2 }
 0x211   : > { %12205 = vmatpush3.bf16.msra.mxu0 %v12829_v8  ;;  %v13128_v61 = vpop.eup %13127 }
 0x212   : > { %12233 = vmatpush3.bf16.msra.mxu1 %v12830_v9  ;;  %12206 = vmatprep.subr.bf16.mxu0 %v12831_v14  ;;  %v13130_v63 = vpop.eup %13129  ;;  %v12854_v9 = vld [vmem:[%s15742_s24 + $0x4a8] sm:$0xff]   ;;  %v1241_v13 = vpack.c.bf16 %v13128_v61, %v13128_v61 }
 0x213   : > { %12234 = vmatprep.subr.bf16.mxu1 %v12832_v17  ;;  %v13132_v2 = vpop.eup %13131  ;;  %v1243_v14 = vpack.c.bf16 %v13130_v63, %v13130_v63  ;;  %v959_v17 = vsub.f32 %v13289_v16, %v14295_v43  ;;  %v12877_v16 = vld [vmem:[%s15742_s24 + $0x538] sm:$0xff]  }
 0x214   : > { %v13134_v4 = vpop.eup %13133 }
 0x215   : > { %12207 = vmatpush3.bf16.msra.mxu0 %v12833_v20  ;;  %v12856_v20 = vld [vmem:[%s15742_s24 + $0x4e0] sm:$0xff]  }
 0x216   : > { %12235 = vmatpush3.bf16.msra.mxu1 %v12834_v21  ;;  %12208 = vmatprep.subr.bf16.mxu0 %v12835_v30  ;;  %v13136_v8 = vpop.eup %13135  ;;  %v13290_v21 = vld [vmem:[%s14051_s23 + $0x288] sm:$0xff]  ;;  %v12858_v30 = vld [vmem:[%s15742_s24 + $0x4a0] sm:$0xff]  }
 0x217   : > { %12236 = vmatprep.subr.bf16.mxu1 %v12836_v32  ;;  %v13138_v12 = vpop.eup %13137  ;;  %v1214_v18 = vpack.c.bf16 %v13132_v2, %v13136_v8  ;;  %v990_v22 = vsub.f32 %v13290_v21, %v14311_v1  ;;  %v1105_v32 = vmul.f32 1.442695, %v959_v17  ;;  %v12870_v2 = vld [vmem:[%s15742_s24 + $0x488] sm:$0xff]   ;;  %v12873_v8 = vld [vmem:[%s15742_s24 + $0x400] sm:$0xff]   ;;  %v12878_v17 = vld [vmem:[%s15742_s24 + $0x5b8] sm:$0xff]  }
 0x218   : > { %v1216_v19 = vpack.c.bf16 %v13134_v4, %v13138_v12  ;;  %v12871_v4 = vld [vmem:[%s15742_s24 + $0x440] sm:$0xff]   ;;  %v13140_v6 = vpop.eup %13139  ;;  %v12876_v12 = vld [vmem:[%s15742_s24 + $0x5f8] sm:$0xff]   ;;  %v12880_v21 = vld [vmem:[%s15742_s24 + $0x5f0] sm:$0xff]  }
 0x219   : > { %12209 = vmatpush3.bf16.msra.mxu0 %v12837_v34  ;;  %v12860_v34 = vld [vmem:[%s15742_s24 + $0x4d8] sm:$0xff]   ;;  %v1167_v35 = vmul.f32 1.442695, %v990_v22  ;;  %13143 = vpow2.f32 %v1105_v32  ;;  %v13142_v7 = vpop.eup %13141 }
 0x21a   : > { %12237 = vmatpush3.bf16.msra.mxu1 %v12838_v36  ;;  %12210 = vmatprep.subr.bf16.mxu0 %v12839_v37  ;;  %v13293_v36 = vld [vmem:[%s14051_s23 + $0x280] sm:$0xff] }
 0x21b   : > { %12238 = vmatprep.subr.bf16.mxu1 %v12840_v40  ;;  %v989_v37 = vsub.f32 %v13293_v36, %v14311_v1  ;;  %v12861_v40 = vld [vmem:[%s15742_s24 + $0x418] sm:$0xff]   ;;  %13145 = vpow2.f32 %v1167_v35  ;;  %v12885_v36 = vld [vmem:[%s15742_s24 + $0x528] sm:$0xff]  }
 0x21c   : > { %13147 = vpow2.f32 %v1171_v38  ;;  %v13300_v38 = vld [vmem:[%s14051_s23 + $0x1a0] sm:$0xff] }
 0x21d   : > { %12211 = vmatpush3.bf16.msra.mxu0 %v12841_v41  ;;  %v12862_v41 = vld [vmem:[%s15742_s24 + $0x498] sm:$0xff]   ;;  %v1165_v49 = vmul.f32 1.442695, %v989_v37  ;;  %13149 = vpow2.f32 %v1041_v39  ;;  %v12886_v37 = vld [vmem:[%s15742_s24 + $0x5a8] sm:$0xff]   ;;  %v961_v39 = vsub.f32 %v13300_v38, %v14295_v43 }
 0x21e   : > { %12239 = vmatpush3.bf16.msra.mxu1 %v12842_v44  ;;  %12252 = vmatprep.subr.bf16.mxu0 %v12843_v46  ;;  %v991_v44 = vsub.f32 %v13294_v42, %v14311_v1  ;;  %v930_v46 = vsub.f32 %v13295_v45, %v14285_v31  ;;  %v13302_v42 = vld [vmem:[%s14051_s23 + $0x2a8] sm:$0xff]  ;;  %v12907_v38 = vld [vmem:[%s15742_s24 + $0x678] sm:$0xff]  }
 0x21f   : > { %12280 = vmatprep.subr.bf16.mxu1 %v12844_v48  ;;  %v12864_v48 = vld [vmem:[%s15742_s24 + $0x4d0] sm:$0xff]   ;;  %13151 = vpow2.f32 %v1165_v49  ;;  %v12888_v49 = vld [vmem:[%s15742_s24 + $0x5e0] sm:$0xff]  }
 0x220   : > { %3630 = vmatmul.mubr.bf16.vlgmr.msra.gmra.mxu0 %v1209_v54  ;;  %v12865_v54 = vld [vmem:[%s15742_s24 + $0x410] sm:$0xff]  }
 0x221   : > { %3678 = vmatmul.mubr.bf16.vlgmr.msra.gmra.mxu1 %v1211_v55  ;;  %3637 = vmatprep.mubr.bf16.mxu0 %v1242_v57  ;;  %v12866_v55 = vld [vmem:[%s15742_s24 + $0x490] sm:$0xff]   ;;  %v12868_v57 = vld [vmem:[%s15742_s24 + $0x4c8] sm:$0xff]  }
 0x222   : > { %3685 = vmatprep.mubr.bf16.mxu1 %v1244_v58  ;;  %12253 = vmatpush3.bf16.msra.mxu0 %v12845_v51  ;;  %v962_v51 = vsub.f32 %v13296_v50, %v14295_v43  ;;  %v1169_v58 = vmul.f32 1.442695, %v991_v44  ;;  %v994_v44 = vsub.f32 %v13302_v42, %v14311_v1 }
 0x223   : > { %12281 = vmatpush3.bf16.msra.mxu1 %v12846_v53  ;;  %12254 = vmatprep.subr.bf16.mxu0 %v12847_v56  ;;  %v964_v53 = vsub.f32 %v13297_v52, %v14295_v43  ;;  %v12867_v56 = vld [vmem:[%s15742_s24 + $0x448] sm:$0xff]  }
 0x224   : > { %12282 = vmatprep.subr.bf16.mxu1 %v12848_v59  ;;  %v1047_v59 = vmul.f32 1.442695, %v930_v46  ;;  %13153 = vpow2.f32 %v1169_v58  ;;  %v12892_v58 = vld [vmem:[%s15742_s24 + $0x5d8] sm:$0xff]  }
 0x225   : > { %v1115_v63 = vmul.f32 1.442695, %v964_v53 }
 0x226   : > { %12255 = vmatpush3.bf16.msra.mxu0 %v12849_v60  ;;  %v13298_v60 = vld [vmem:[%s14051_s23 + $0xb8] sm:$0xff]  ;;  %v13144_v10 = vpop.eup %13143 }
 0x227   : > { %12283 = vmatpush3.bf16.msra.mxu1 %v12850_v62  ;;  %12256 = vmatprep.subr.bf16.mxu0 %v12851_v0  ;;  %v932_v61 = vsub.f32 %v13298_v60, %v14285_v31  ;;  %v1111_v62 = vmul.f32 1.442695, %v962_v51  ;;  %v12869_v0 = vld [vmem:[%s15742_s24 + $0x408] sm:$0xff]   ;;  %v13303_v51 = vld [vmem:[%s14051_s23 + $0x2b8] sm:$0xff]  ;;  %v13304_v60 = vld [vmem:[%s14051_s23 + $0xb0] sm:$0xff] }
 0x228   : > { %12284 = vmatprep.subr.bf16.mxu1 %v12852_v3  ;;  %3638 = vmatmul.mubr.bf16.gmra.mxu0 %v1241_v13  ;;  %v13146_v13 = vpop.eup %13145  ;;  %v996_v52 = vsub.f32 %v13303_v51, %v14311_v1 }
 0x229   : > { %3686 = vmatmul.mubr.bf16.gmra.mxu1 %v1243_v14  ;;  %3725 = vmatprep.mubr.bf16.mxu0 %v1214_v18  ;;  %v1051_v3 = vmul.f32 1.442695, %v932_v61  ;;  %13155 = vpow2.f32 %v1111_v62  ;;  %v13148_v14 = vpop.eup %13147  ;;  %v1213_v18 = vpack.c.bf16 %v13142_v7, %v13140_v6  ;;  %v1246_v22 = vpack.c.bf16 %v13146_v13, %v13146_v13  ;;  %v13306_v7 = vld [vmem:[%s14051_s23 + $0x2b0] sm:$0xff]  ;;  %v13308_v13 = vld [vmem:[%s14051_s23 + $0x1d8] sm:$0xff] }
 0x22a   : > { %3773 = vmatprep.mubr.bf16.mxu1 %v1216_v19  ;;  %12257 = vmatpush3.bf16.msra.mxu0 %v12853_v5  ;;  %v12872_v5 = vld [vmem:[%s15742_s24 + $0x4c0] sm:$0xff]   ;;  %13157 = vpow2.f32 %v1115_v63  ;;  %v1248_v23 = vpack.c.bf16 %v13148_v14, %v13148_v14  ;;  %v931_v61 = vsub.f32 %v13304_v60, %v14285_v31  ;;  %v1175_v63 = vmul.f32 1.442695, %v994_v44  ;;  %v12909_v44 = vld [vmem:[%s15742_s24 + $0x638] sm:$0xff]   ;;  %v12915_v60 = vld [vmem:[%s15742_s24 + $0x668] sm:$0xff]  }
 0x22b   : > { %12285 = vmatpush3.bf16.msra.mxu1 %v12854_v9  ;;  %12258 = vmatprep.subr.bf16.mxu0 %v12855_v15  ;;  %13159 = vpow2.f32 %v1047_v59  ;;  %v12874_v9 = vld [vmem:[%s15742_s24 + $0x480] sm:$0xff]   ;;  %v13150_v15 = vpop.eup %13149  ;;  %v1109_v59 = vmul.f32 1.442695, %v961_v39  ;;  %v968_v14 = vsub.f32 %v13308_v13, %v14295_v43  ;;  %v12908_v39 = vld [vmem:[%s15742_s24 + $0x6f8] sm:$0xff]  }
 0x22c   : > { %12286 = vmatprep.subr.bf16.mxu1 %v12856_v20  ;;  %13161 = vpow2.f32 %v1051_v3  ;;  %v1215_v19 = vpack.c.bf16 %v13144_v10, %v13150_v15  ;;  %v12879_v20 = vld [vmem:[%s15742_s24 + $0x570] sm:$0xff]   ;;  %v13152_v24 = vpop.eup %13151  ;;  %v12894_v3 = vld [vmem:[%s15742_s24 + $0x598] sm:$0xff]  }
 0x22d   : > { %v1245_v46 = vpack.c.bf16 %v13152_v24, %v13152_v24  ;;  %v12896_v10 = vld [vmem:[%s15742_s24 + $0x5d0] sm:$0xff]   ;;  %v13310_v24 = vld [vmem:[%s14051_s23 + $0xd8] sm:$0xff] }
 0x22e   : > { %12259 = vmatpush3.bf16.msra.mxu0 %v12857_v29  ;;  %v12884_v29 = vld [vmem:[%s15742_s24 + $0x5e8] sm:$0xff]   ;;  %v12897_v15 = vld [vmem:[%s15742_s24 + $0x510] sm:$0xff]  }
 0x22f   : > { %12287 = vmatpush3.bf16.msra.mxu1 %v12858_v30  ;;  %12260 = vmatprep.subr.bf16.mxu0 %v12859_v33  ;;  %v13299_v30 = vld [vmem:[%s14051_s23 + $0xa0] sm:$0xff] }
 0x230   : > { %12288 = vmatprep.subr.bf16.mxu1 %v12860_v34  ;;  %v929_v32 = vsub.f32 %v13299_v30, %v14285_v31  ;;  %v12903_v30 = vld [vmem:[%s15742_s24 + $0x540] sm:$0xff]  }
 0x231   : > { %v13154_v27 = vpop.eup %13153 }
 0x232   : > { %12261 = vmatpush3.bf16.msra.mxu0 %v12861_v40  ;;  %v13301_v40 = vld [vmem:[%s14051_s23 + $0x1b0] sm:$0xff]  ;;  %v1045_v50 = vmul.f32 1.442695, %v929_v32  ;;  %v12904_v32 = vld [vmem:[%s15742_s24 + $0x5c0] sm:$0xff]  }
 0x233   : > { %12289 = vmatpush3.bf16.msra.mxu1 %v12862_v41  ;;  %12262 = vmatprep.subr.bf16.mxu0 %v12863_v47  ;;  %v963_v41 = vsub.f32 %v13301_v40, %v14295_v43  ;;  %v1247_v47 = vpack.c.bf16 %v13154_v27, %v13154_v27  ;;  %v12901_v27 = vld [vmem:[%s15742_s24 + $0x508] sm:$0xff]  }
 0x234   : > { %12290 = vmatprep.subr.bf16.mxu1 %v12864_v48  ;;  %v12887_v48 = vld [vmem:[%s15742_s24 + $0x560] sm:$0xff]   ;;  %13163 = vpow2.f32 %v1045_v50 }
 0x235   : > { %v1113_v62 = vmul.f32 1.442695, %v963_v41  ;;  %13165 = vpow2.f32 %v1109_v59 }
 0x236   : > { %12263 = vmatpush3.bf16.msra.mxu0 %v12865_v54  ;;  %v13156_v33 = vpop.eup %13155 }
 0x237   : > { %12291 = vmatpush3.bf16.msra.mxu1 %v12866_v55  ;;  %12264 = vmatprep.subr.bf16.mxu0 %v12867_v56  ;;  %v13158_v34 = vpop.eup %13157  ;;  %v12889_v55 = vld [vmem:[%s15742_s24 + $0x520] sm:$0xff]   ;;  %13167 = vpow2.f32 %v1113_v62 }
 0x238   : > { %12292 = vmatprep.subr.bf16.mxu1 %v12868_v57  ;;  %v13160_v35 = vpop.eup %13159  ;;  %v12890_v56 = vld [vmem:[%s15742_s24 + $0x5a0] sm:$0xff]   ;;  %v12891_v57 = vld [vmem:[%s15742_s24 + $0x558] sm:$0xff]   ;;  %13169 = vpow2.f32 %v1175_v63  ;;  %v12917_v63 = vld [vmem:[%s15742_s24 + $0x628] sm:$0xff]  }
 0x239   : > { %v13162_v45 = vpop.eup %13161  ;;  %v1218_v53 = vpack.c.bf16 %v13156_v33, %v13160_v35  ;;  %v12905_v35 = vld [vmem:[%s15742_s24 + $0x500] sm:$0xff]  }
 0x23a   : > { %12265 = vmatpush3.bf16.msra.mxu0 %v12869_v0  ;;  %v1220_v54 = vpack.c.bf16 %v13158_v34, %v13162_v45  ;;  %v1179_v0 = vmul.f32 1.442695, %v996_v52  ;;  %v12910_v45 = vld [vmem:[%s15742_s24 + $0x6b8] sm:$0xff]  }
 0x23b   : > { %12293 = vmatpush3.bf16.msra.mxu1 %v12870_v2  ;;  %12266 = vmatprep.subr.bf16.mxu0 %v12871_v4  ;;  %v12893_v2 = vld [vmem:[%s15742_s24 + $0x518] sm:$0xff]   ;;  %v1049_v4 = vmul.f32 1.442695, %v931_v61  ;;  %v12916_v61 = vld [vmem:[%s15742_s24 + $0x6e8] sm:$0xff]  }
 0x23c   : > { %12294 = vmatprep.subr.bf16.mxu1 %v12872_v5  ;;  %v13305_v5 = vld [vmem:[%s14051_s23 + $0x2a0] sm:$0xff]  ;;  %13171 = vpow2.f32 %v1179_v0 }
 0x23d   : > { %v993_v6 = vsub.f32 %v13305_v5, %v14311_v1  ;;  %13173 = vpow2.f32 %v1049_v4  ;;  %v12920_v4 = vld [vmem:[%s15742_s24 + $0x6e0] sm:$0xff]  }
 0x23e   : > { %12267 = vmatpush3.bf16.msra.mxu0 %v12873_v8  ;;  %v995_v8 = vsub.f32 %v13306_v7, %v14311_v1  ;;  %v13312_v5 = vld [vmem:[%s14051_s23 + $0x1c0] sm:$0xff]  ;;  %v13313_v7 = vld [vmem:[%s14051_s23 + $0x1d0] sm:$0xff] }
 0x23f   : > { %12295 = vmatpush3.bf16.msra.mxu1 %v12874_v9  ;;  %12308 = vmatprep.subr.bf16.mxu0 %v12875_v11  ;;  %v12895_v9 = vld [vmem:[%s15742_s24 + $0x550] sm:$0xff]   ;;  %v13307_v11 = vld [vmem:[%s14051_s23 + $0x1c8] sm:$0xff] }
 0x240   : > { %12336 = vmatprep.subr.bf16.mxu1 %v12876_v12  ;;  %v966_v12 = vsub.f32 %v13307_v11, %v14295_v43 }
 0x241   : > { %3726 = vmatmul.mubr.bf16.vlgmr.msra.gmra.mxu0 %v1213_v18  ;;  %v12900_v18 = vld [vmem:[%s15742_s24 + $0x5c8] sm:$0xff]   ;;  %v13164_v34 = vpop.eup %13163 }
 0x242   : > { %3774 = vmatmul.mubr.bf16.vlgmr.msra.gmra.mxu1 %v1215_v19  ;;  %3733 = vmatprep.mubr.bf16.mxu0 %v1246_v22  ;;  %v1173_v19 = vmul.f32 1.442695, %v993_v6  ;;  %v965_v6 = vsub.f32 %v13312_v5, %v14295_v43  ;;  %v12940_v5 = vld [vmem:[%s15742_s24 + $0x7f8] sm:$0xff]  }
 0x243   : > { %3781 = vmatprep.mubr.bf16.mxu1 %v1248_v23  ;;  %12309 = vmatpush3.bf16.msra.mxu0 %v12877_v16  ;;  %v12898_v16 = vld [vmem:[%s15742_s24 + $0x590] sm:$0xff]   ;;  %v1119_v23 = vmul.f32 1.442695, %v966_v12 }
 0x244   : > { %12337 = vmatpush3.bf16.msra.mxu1 %v12878_v17  ;;  %12310 = vmatprep.subr.bf16.mxu0 %v12879_v20  ;;  %v12899_v17 = vld [vmem:[%s15742_s24 + $0x548] sm:$0xff]   ;;  %v1177_v20 = vmul.f32 1.442695, %v995_v8  ;;  %13175 = vpow2.f32 %v1173_v19  ;;  %v967_v8 = vsub.f32 %v13313_v7, %v14295_v43  ;;  %v12921_v19 = vld [vmem:[%s15742_s24 + $0x620] sm:$0xff]  }
 0x245   : > { %12338 = vmatprep.subr.bf16.mxu1 %v12880_v21  ;;  %v13309_v21 = vld [vmem:[%s14051_s23 + $0xc8] sm:$0xff] }
 0x246   : > { %v934_v22 = vsub.f32 %v13309_v21, %v14285_v31  ;;  %13177 = vpow2.f32 %v1177_v20  ;;  %v12922_v20 = vld [vmem:[%s15742_s24 + $0x6a0] sm:$0xff]   ;;  %v12923_v21 = vld [vmem:[%s15742_s24 + $0x658] sm:$0xff]  }
 0x247   : > { %12311 = vmatpush3.bf16.msra.mxu0 %v12881_v25  ;;  %v936_v25 = vsub.f32 %v13310_v24, %v14285_v31  ;;  %13179 = vpow2.f32 %v1119_v23  ;;  %v1117_v23 = vmul.f32 1.442695, %v965_v6  ;;  %v13316_v24 = vld [vmem:[%s14051_s23 + $0xd0] sm:$0xff] }
 0x248   : > { %12339 = vmatpush3.bf16.msra.mxu1 %v12882_v26  ;;  %12312 = vmatprep.subr.bf16.mxu0 %v12883_v28  ;;  %v1123_v26 = vmul.f32 1.442695, %v968_v14  ;;  %v12902_v28 = vld [vmem:[%s15742_s24 + $0x588] sm:$0xff]  }
 0x249   : > { %12340 = vmatprep.subr.bf16.mxu1 %v12884_v29  ;;  %3734 = vmatmul.mubr.bf16.gmra.mxu0 %v1245_v46  ;;  %v1055_v29 = vmul.f32 1.442695, %v934_v22  ;;  %v1059_v33 = vmul.f32 1.442695, %v936_v25  ;;  %v12924_v22 = vld [vmem:[%s15742_s24 + $0x6d8] sm:$0xff]   ;;  %v935_v25 = vsub.f32 %v13316_v24, %v14285_v31 }
 0x24a   : > { %3782 = vmatmul.mubr.bf16.gmra.mxu1 %v1247_v47  ;;  %3821 = vmatprep.mubr.bf16.mxu0 %v1218_v53  ;;  %13181 = vpow2.f32 %v1123_v26  ;;  %v12911_v47 = vld [vmem:[%s15742_s24 + $0x670] sm:$0xff]   ;;  %v1121_v26 = vmul.f32 1.442695, %v967_v8 }
 0x24b   : > { %3869 = vmatprep.mubr.bf16.mxu1 %v1220_v54  ;;  %12313 = vmatpush3.bf16.msra.mxu0 %v12885_v36  ;;  %v12906_v36 = vld [vmem:[%s15742_s24 + $0x580] sm:$0xff]   ;;  %13183 = vpow2.f32 %v1055_v29  ;;  %v12913_v53 = vld [vmem:[%s15742_s24 + $0x630] sm:$0xff]   ;;  %v1057_v29 = vmul.f32 1.442695, %v935_v25 }
 0x24c   : > { %12341 = vmatpush3.bf16.msra.mxu1 %v12886_v37  ;;  %12314 = vmatprep.subr.bf16.mxu0 %v12887_v48  ;;  %v13166_v37 = vpop.eup %13165  ;;  %13185 = vpow2.f32 %v1059_v33  ;;  %v12912_v48 = vld [vmem:[%s15742_s24 + $0x6f0] sm:$0xff]   ;;  %v12925_v33 = vld [vmem:[%s15742_s24 + $0x618] sm:$0xff]  }
 0x24d   : > { %12342 = vmatprep.subr.bf16.mxu1 %v12888_v49  ;;  %v13168_v40 = vpop.eup %13167  ;;  %v1217_v49 = vpack.c.bf16 %v13166_v37, %v13164_v34  ;;  %v12926_v34 = vld [vmem:[%s15742_s24 + $0x698] sm:$0xff]   ;;  %v12927_v37 = vld [vmem:[%s15742_s24 + $0x650] sm:$0xff]  }
 0x24e   : > { %v13170_v41 = vpop.eup %13169 }
 0x24f   : > { %12315 = vmatpush3.bf16.msra.mxu0 %v12889_v55  ;;  %v13172_v42 = vpop.eup %13171  ;;  %v1250_v51 = vpack.c.bf16 %v13170_v41, %v13170_v41  ;;  %v13320_v41 = vld [vmem:[%s14051_s23 + $0x1f8] sm:$0xff] }
 0x250   : > { %12343 = vmatpush3.bf16.msra.mxu1 %v12890_v56  ;;  %12316 = vmatprep.subr.bf16.mxu0 %v12891_v57  ;;  %v13174_v46 = vpop.eup %13173  ;;  %v1252_v52 = vpack.c.bf16 %v13172_v42, %v13172_v42  ;;  %v12914_v56 = vld [vmem:[%s15742_s24 + $0x6b0] sm:$0xff]   ;;  %v13311_v57 = vld [vmem:[%s14051_s23 + $0xc0] sm:$0xff]  ;;  %v972_v42 = vsub.f32 %v13320_v41, %v14295_v43 }
 0x251   : > { %12344 = vmatprep.subr.bf16.mxu1 %v12892_v58  ;;  %v1219_v50 = vpack.c.bf16 %v13168_v40, %v13174_v46  ;;  %v13176_v54 = vpop.eup %13175  ;;  %v933_v58 = vsub.f32 %v13311_v57, %v14285_v31  ;;  %v12933_v57 = vld [vmem:[%s15742_s24 + $0x608] sm:$0xff]  }
 0x252   : > { %v1249_v12 = vpack.c.bf16 %v13176_v54, %v13176_v54 }
 0x253   : > { %12317 = vmatpush3.bf16.msra.mxu0 %v12893_v2  ;;  %v13178_v55 = vpop.eup %13177  ;;  %v12918_v2 = vld [vmem:[%s15742_s24 + $0x6a8] sm:$0xff]   ;;  %v1053_v14 = vmul.f32 1.442695, %v933_v58 }
 0x254   : > { %12345 = vmatpush3.bf16.msra.mxu1 %v12894_v3  ;;  %12318 = vmatprep.subr.bf16.mxu0 %v12895_v9  ;;  %v13180_v59 = vpop.eup %13179  ;;  %v12919_v3 = vld [vmem:[%s15742_s24 + $0x660] sm:$0xff]   ;;  %v13314_v9 = vld [vmem:[%s14051_s23 + $0x2c8] sm:$0xff]  ;;  %v1251_v13 = vpack.c.bf16 %v13178_v55, %v13178_v55  ;;  %v1131_v55 = vmul.f32 1.442695, %v972_v42 }
 0x255   : > { %12346 = vmatprep.subr.bf16.mxu1 %v12896_v10  ;;  %v998_v10 = vsub.f32 %v13314_v9, %v14311_v1  ;;  %13187 = vpow2.f32 %v1053_v14  ;;  %v12934_v58 = vld [vmem:[%s15742_s24 + $0x688] sm:$0xff]  }
 0x256   : > { %13189 = vpow2.f32 %v1117_v23  ;;  %v12944_v23 = vld [vmem:[%s15742_s24 + $0x7f0] sm:$0xff]  }
 0x257   : > { %12319 = vmatpush3.bf16.msra.mxu0 %v12897_v15  ;;  %v13182_v62 = vpop.eup %13181  ;;  %v13315_v15 = vld [vmem:[%s14051_s23 + $0x2d8] sm:$0xff]  ;;  %13191 = vpow2.f32 %v1121_v26 }
 0x258   : > { %12347 = vmatpush3.bf16.msra.mxu1 %v12898_v16  ;;  %12320 = vmatprep.subr.bf16.mxu0 %v12899_v17  ;;  %v13184_v0 = vpop.eup %13183  ;;  %v1000_v16 = vsub.f32 %v13315_v15, %v14311_v1 }
 0x259   : > { %12348 = vmatprep.subr.bf16.mxu1 %v12900_v18  ;;  %v13186_v11 = vpop.eup %13185  ;;  %v1222_v17 = vpack.c.bf16 %v13180_v59, %v13184_v0  ;;  %v12937_v0 = vld [vmem:[%s15742_s24 + $0x600] sm:$0xff]  }
 0x25a   : > { %v1224_v18 = vpack.c.bf16 %v13182_v62, %v13186_v11 }
 0x25b   : > { %12321 = vmatpush3.bf16.msra.mxu0 %v12901_v27  ;;  %v1183_v27 = vmul.f32 1.442695, %v998_v10 }
 0x25c   : > { %12349 = vmatpush3.bf16.msra.mxu1 %v12902_v28  ;;  %12322 = vmatprep.subr.bf16.mxu0 %v12903_v30  ;;  %v1187_v28 = vmul.f32 1.442695, %v1000_v16  ;;  %v13317_v30 = vld [vmem:[%s14051_s23 + $0x2c0] sm:$0xff]  ;;  %v12941_v16 = vld [vmem:[%s15742_s24 + $0x738] sm:$0xff]  }
 0x25d   : > { %12350 = vmatprep.subr.bf16.mxu1 %v12904_v32  ;;  %v997_v32 = vsub.f32 %v13317_v30, %v14311_v1  ;;  %13193 = vpow2.f32 %v1183_v27 }
 0x25e   : > { %13195 = vpow2.f32 %v1187_v28 }
 0x25f   : > { %12323 = vmatpush3.bf16.msra.mxu0 %v12905_v35  ;;  %v13318_v35 = vld [vmem:[%s14051_s23 + $0x2d0] sm:$0xff]  ;;  %13197 = vpow2.f32 %v1057_v29 }
 0x260   : > { %12351 = vmatpush3.bf16.msra.mxu1 %v12906_v36  ;;  %12364 = vmatprep.subr.bf16.mxu0 %v12907_v38  ;;  %v999_v36 = vsub.f32 %v13318_v35, %v14311_v1  ;;  %v12928_v38 = vld [vmem:[%s15742_s24 + $0x6d0] sm:$0xff]  }
 0x261   : > { %12392 = vmatprep.subr.bf16.mxu1 %v12908_v39  ;;  %v13319_v39 = vld [vmem:[%s14051_s23 + $0x1e8] sm:$0xff] }
 0x262   : > { %3822 = vmatmul.mubr.bf16.vlgmr.msra.gmra.mxu0 %v1217_v49  ;;  %v970_v40 = vsub.f32 %v13319_v39, %v14295_v43  ;;  %v1185_v49 = vmul.f32 1.442695, %v999_v36  ;;  %v13188_v62 = vpop.eup %13187  ;;  %v12947_v36 = vld [vmem:[%s15742_s24 + $0x768] sm:$0xff]  }
 0x263   : > { %3870 = vmatmul.mubr.bf16.vlgmr.msra.gmra.mxu1 %v1219_v50  ;;  %3829 = vmatprep.mubr.bf16.mxu0 %v1250_v51  ;;  %v13322_v50 = vld [vmem:[%s14051_s23 + $0xf8] sm:$0xff] }
 0x264   : > { %3877 = vmatprep.mubr.bf16.mxu1 %v1252_v52  ;;  %12365 = vmatpush3.bf16.msra.mxu0 %v12909_v44  ;;  %v1181_v44 = vmul.f32 1.442695, %v997_v32  ;;  %v940_v51 = vsub.f32 %v13322_v50, %v14285_v31  ;;  %v12931_v52 = vld [vmem:[%s15742_s24 + $0x648] sm:$0xff]   ;;  %v1127_v54 = vmul.f32 1.442695, %v970_v40  ;;  %v12945_v32 = vld [vmem:[%s15742_s24 + $0x730] sm:$0xff]  }
 0x265   : > { %12393 = vmatpush3.bf16.msra.mxu1 %v12910_v45  ;;  %12366 = vmatprep.subr.bf16.mxu0 %v12911_v47  ;;  %v13321_v45 = vld [vmem:[%s14051_s23 + $0xe8] sm:$0xff]  ;;  %v12929_v47 = vld [vmem:[%s15742_s24 + $0x610] sm:$0xff]   ;;  %v13323_v40 = vld [vmem:[%s14051_s23 + $0xe0] sm:$0xff] }
 0x266   : > { %12394 = vmatprep.subr.bf16.mxu1 %v12912_v48  ;;  %v938_v46 = vsub.f32 %v13321_v45, %v14285_v31  ;;  %v12930_v48 = vld [vmem:[%s15742_s24 + $0x690] sm:$0xff]   ;;  %13199 = vpow2.f32 %v1181_v44  ;;  %v1067_v59 = vmul.f32 1.442695, %v940_v51  ;;  %v937_v41 = vsub.f32 %v13323_v40, %v14285_v31  ;;  %v13324_v45 = vld [vmem:[%s14051_s23 + $0x1e0] sm:$0xff]  ;;  %v12949_v50 = vld [vmem:[%s15742_s24 + $0x728] sm:$0xff]  }
 0x267   : > { %13201 = vpow2.f32 %v1185_v49  ;;  %v12950_v51 = vld [vmem:[%s15742_s24 + $0x7a8] sm:$0xff]  }
 0x268   : > { %12367 = vmatpush3.bf16.msra.mxu0 %v12913_v53  ;;  %v12932_v53 = vld [vmem:[%s15742_s24 + $0x6c8] sm:$0xff]   ;;  %13203 = vpow2.f32 %v1127_v54 }
 0x269   : > { %12395 = vmatpush3.bf16.msra.mxu1 %v12914_v56  ;;  %12368 = vmatprep.subr.bf16.mxu0 %v12915_v60  ;;  %v1063_v56 = vmul.f32 1.442695, %v938_v46  ;;  %v12935_v60 = vld [vmem:[%s15742_s24 + $0x640] sm:$0xff]   ;;  %13205 = vpow2.f32 %v1131_v55  ;;  %v969_v46 = vsub.f32 %v13324_v45, %v14295_v43  ;;  %v15149_v40 = vld [vmem:[#allocation10 + $0x1c0] sm:$0xff] }
 0x26a   : > { %12396 = vmatprep.subr.bf16.mxu1 %v12916_v61  ;;  %3830 = vmatmul.mubr.bf16.gmra.mxu0 %v1249_v12  ;;  %v12936_v61 = vld [vmem:[%s15742_s24 + $0x6c0] sm:$0xff]  }
 0x26b   : > { %3878 = vmatmul.mubr.bf16.gmra.mxu1 %v1251_v13  ;;  %3917 = vmatprep.mubr.bf16.mxu0 %v1222_v17  ;;  %13207 = vpow2.f32 %v1063_v56  ;;  %v12942_v17 = vld [vmem:[%s15742_s24 + $0x7b8] sm:$0xff]  }
 0x26c   : > { %3965 = vmatprep.mubr.bf16.mxu1 %v1224_v18  ;;  %12369 = vmatpush3.bf16.msra.mxu0 %v12917_v63  ;;  %v13190_v63 = vpop.eup %13189  ;;  %13209 = vpow2.f32 %v1067_v59 }
 0x26d   : > { %12397 = vmatpush3.bf16.msra.mxu1 %v12918_v2  ;;  %12370 = vmatprep.subr.bf16.mxu0 %v12919_v3  ;;  %v12938_v2 = vld [vmem:[%s15742_s24 + $0x680] sm:$0xff]   ;;  %v13192_v3 = vpop.eup %13191  ;;  %v1221_v14 = vpack.c.bf16 %v13190_v63, %v13188_v62  ;;  %v1061_v63 = vmul.f32 1.442695, %v937_v41  ;;  %v4352_v41 = vld [vmem:[#allocation10 + $0x1e0] sm:$0xff] }
 0x26e   : > { %12398 = vmatprep.subr.bf16.mxu1 %v12920_v4  ;;  %v12939_v4 = vld [vmem:[%s15742_s24 + $0x778] sm:$0xff]   ;;  %v13194_v7 = vpop.eup %13193 }
 0x26f   : > { %v13196_v9 = vpop.eup %13195  ;;  %13211 = vpow2.f32 %v1061_v63 }
 0x270   : > { %12371 = vmatpush3.bf16.msra.mxu0 %v12921_v19  ;;  %v13198_v11 = vpop.eup %13197 }
 0x271   : > { %12399 = vmatpush3.bf16.msra.mxu1 %v12922_v20  ;;  %12372 = vmatprep.subr.bf16.mxu0 %v12923_v21  ;;  %v1223_v15 = vpack.c.bf16 %v13192_v3, %v13198_v11  ;;  %v1254_v20 = vpack.c.bf16 %v13194_v7, %v13194_v7  ;;  %v1256_v21 = vpack.c.bf16 %v13196_v9, %v13196_v9  ;;  %v12954_v9 = vld [vmem:[%s15742_s24 + $0x7a0] sm:$0xff]  }
 0x272   : > { %12400 = vmatprep.subr.bf16.mxu1 %v12924_v22  ;;  %v12943_v22 = vld [vmem:[%s15742_s24 + $0x770] sm:$0xff]  }
 0x273   : > { %v13200_v27 = vpop.eup %13199 }
 0x274   : > { %12373 = vmatpush3.bf16.msra.mxu0 %v12925_v33  ;;  %v13202_v30 = vpop.eup %13201  ;;  %v12946_v33 = vld [vmem:[%s15742_s24 + $0x7b0] sm:$0xff]  }
 0x275   : > { %12401 = vmatpush3.bf16.msra.mxu1 %v12926_v34  ;;  %12374 = vmatprep.subr.bf16.mxu0 %v12927_v37  ;;  %v13204_v35 = vpop.eup %13203  ;;  %v12948_v37 = vld [vmem:[%s15742_s24 + $0x7e8] sm:$0xff]   ;;  %v1255_v49 = vpack.c.bf16 %v13202_v30, %v13202_v30 }
 0x276   : > { %12402 = vmatprep.subr.bf16.mxu1 %v12928_v38  ;;  %v13206_v38 = vpop.eup %13205 }
 0x278   : > { %12375 = vmatpush3.bf16.msra.mxu0 %v12929_v47  ;;  %v13208_v42 = vpop.eup %13207 }
 0x279   : > { %12403 = vmatpush3.bf16.msra.mxu1 %v12930_v48  ;;  %12376 = vmatprep.subr.bf16.mxu0 %v12931_v52  ;;  %v13210_v47 = vpop.eup %13209  ;;  %v1253_v48 = vpack.c.bf16 %v13200_v27, %v13200_v27  ;;  %v1226_v55 = vpack.c.bf16 %v13204_v35, %v13208_v42  ;;  %v12965_v35 = vld [vmem:[%s15742_s24 + $0x708] sm:$0xff]  }
 0x27a   : > { %12404 = vmatprep.subr.bf16.mxu1 %v12932_v53  ;;  %v13325_v53 = vld [vmem:[%s14051_s23 + $0x1f0] sm:$0xff]  ;;  %v1228_v56 = vpack.c.bf16 %v13206_v38, %v13210_v47  ;;  %v12968_v38 = vld [vmem:[%s15742_s24 + $0x7c0] sm:$0xff]  }
 0x27b   : > { %v971_v54 = vsub.f32 %v13325_v53, %v14295_v43  ;;  %v4476_v42 = vld [vmem:[#allocation10 + $0x5c0] sm:$0xff]  ;;  %v11249_v53 = vcombine.high %v15149_v40, %v4352_v41 }
 0x27c   : > { %12377 = vmatpush3.bf16.msra.mxu0 %v12933_v57  ;;  %v12951_v57 = vld [vmem:[%s15742_s24 + $0x760] sm:$0xff]   ;;  %v13212_v45 = vpop.eup %13211 }
 0x27d   : > { %12405 = vmatpush3.bf16.msra.mxu1 %v12934_v58  ;;  %12378 = vmatprep.subr.bf16.mxu0 %v12935_v60  ;;  %v12952_v58 = vld [vmem:[%s15742_s24 + $0x7e0] sm:$0xff]   ;;  %v13326_v60 = vld [vmem:[%s14051_s23 + $0x2e8] sm:$0xff]  ;;  %v1129_v11 = vmul.f32 1.442695, %v971_v54 }
 0x27e   : > { %12406 = vmatprep.subr.bf16.mxu1 %v12936_v61  ;;  %v12044_v6 = vpop.f32.mrf.mxu0  ;;  %v1002_v61 = vsub.f32 %v13326_v60, %v14311_v1 }
 0x27f   : > { %v12072_v8 = vpop.f32.mrf.mxu1 }
 0x280   : > { %v12045_v10 = vpop.f32.mrf.mxu0  ;;  %12379 = vmatpush3.bf16.msra.mxu0 %v12937_v0  ;;  %v13327_v0 = vld [vmem:[%s14051_s23 + $0x2f8] sm:$0xff] }
 0x281   : > { %12407 = vmatpush3.bf16.msra.mxu1 %v12938_v2  ;;  %v12046_v12 = vadd.f32 %v12045_v10, %v12044_v6  ;;  %v12073_v13 = vpop.f32.mrf.mxu1  ;;  %12420 = vmatprep.subr.bf16.mxu0 %v12939_v4  ;;  %v1004_v2 = vsub.f32 %v13327_v0, %v14311_v1  ;;  %v13328_v6 = vld [vmem:[%s14051_s23 + $0xf0] sm:$0xff] }
 0x282   : > { %12448 = vmatprep.subr.bf16.mxu1 %v12940_v5  ;;  %v12074_v18 = vadd.f32 %v12073_v13, %v12072_v8  ;;  %v12047_v19 = vpop.f32.mrf.mxu0  ;;  %v1125_v5 = vmul.f32 1.442695, %v969_v46  ;;  %v939_v7 = vsub.f32 %v13328_v6, %v14285_v31  ;;  %v12953_v8 = vld [vmem:[%s15742_s24 + $0x720] sm:$0xff]   ;;  %v12956_v31 = vld [vmem:[%s15742_s24 + $0x7d8] sm:$0xff]  }
 0x283   : > { %v12075_v24 = vpop.f32.mrf.mxu1  ;;  %3918 = vmatmul.mubr.bf16.vlgmr.msra.gmra.mxu0 %v1221_v14  ;;  %v15174_v6 = vld [vmem:[%s14065_s21] sm:$0xf]  ;;  %s15361_s21 = scalar_select %p701_p2, %s13810_s19, 1 }
 0x284   : > { %3966 = vmatmul.mubr.bf16.vlgmr.msra.gmra.mxu1 %v1223_v15  ;;  %v15055_v25 = vadd.f32 %v12074_v18, %v12046_v12  ;;  %v12048_v26 = vpop.f32.mrf.mxu0  ;;  %3925 = vmatprep.mubr.bf16.mxu0 %v1254_v20  ;;  %v12955_v12 = vld [vmem:[%s15742_s24 + $0x758] sm:$0xff]   ;;  %v1191_v15 = vmul.f32 1.442695, %v1002_v61  ;;  %13213 = vpow2.f32 %v1125_v5  ;;  %v1065_v18 = vmul.f32 1.442695, %v939_v7  ;;  %s13713_s19 = smov [#allocation19]  }
 0x285   : > { %3973 = vmatprep.mubr.bf16.mxu1 %v1256_v21  ;;  %v12049_v28 = vadd.f32 %v12048_v26, %v12047_v19  ;;  %v12076_v29 = vpop.f32.mrf.mxu1  ;;  %12421 = vmatpush3.bf16.msra.mxu0 %v12941_v16  ;;  %v12957_v19 = vld [vmem:[%s15742_s24 + $0x718] sm:$0xff]   ;;  %13215 = vpow2.f32 %v1129_v11  ;;  %v13329_v21 = vld [vmem:[%s14051_s23 + $0x2e0] sm:$0xff]  ;;  %v13330_v26 = vld [vmem:[%s14051_s23 + $0x2f0] sm:$0xff]  ;;  %s707_s23 = scalar_lea.vmem %s15743_s29, %s15361_s21  ;;  %s12567_s22 = smul.u32 24, %s15361_s21 }
 0x286   : > { %12449 = vmatpush3.bf16.msra.mxu1 %v12942_v17  ;;  %v12077_v34 = vadd.f32 %v12076_v29, %v12075_v24  ;;  %12422 = vmatprep.subr.bf16.mxu0 %v12943_v22  ;;  %v1195_v17 = vmul.f32 1.442695, %v1004_v2  ;;  %v12958_v20 = vld [vmem:[%s15742_s24 + $0x798] sm:$0xff]   ;;  %v1001_v22 = vsub.f32 %v13329_v21, %v14311_v1  ;;  %v12960_v24 = vld [vmem:[%s15742_s24 + $0x7d0] sm:$0xff]   ;;  %13217 = vpow2.f32 %v1191_v15  ;;  %s15747_s29 = sld [smem:[#allocation42_spill]]  ;;  %s13605_s26 = sshll.u32 %s13713_s19, 4  ;;  %s13606_s26 = int_to_ptr.vmem [resolvable:$false] %s13605_s26 }
 0x287   : > { %12450 = vmatprep.subr.bf16.mxu1 %v12944_v23  ;;  %v12959_v23 = vld [vmem:[%s15742_s24 + $0x750] sm:$0xff]   ;;  %v1003_v27 = vsub.f32 %v13330_v26, %v14311_v1  ;;  %v12964_v1 = vld [vmem:[%s15742_s24 + $0x7c8] sm:$0xff]   ;;  %s15540_s20 = scalar_lea.vmem %s15745_s0, %s12567_s22 }
 0x288   : > { %v15069_v39 = vadd.f32 %v12077_v34, %v12049_v28  ;;  %v12050_v44 = vpop.f32.mrf.mxu0  ;;  %13219 = vpow2.f32 %v1195_v17  ;;  %v12961_v28 = vld [vmem:[%s15742_s24 + $0x710] sm:$0xff]   ;;  %v1189_v30 = vmul.f32 1.442695, %v1001_v22  ;;  %v4123_v34 = vlaneseq }
 0x289   : > { %12423 = vmatpush3.bf16.msra.mxu0 %v12945_v32  ;;  %v12078_v52 = vpop.f32.mrf.mxu1  ;;  %13221 = vpow2.f32 %v1065_v18  ;;  %v12962_v29 = vld [vmem:[%s15742_s24 + $0x790] sm:$0xff]   ;;  %v12963_v32 = vld [vmem:[%s15742_s24 + $0x748] sm:$0xff]  }
 0x28a   : > { %12451 = vmatpush3.bf16.msra.mxu1 %v12946_v33  ;;  %12424 = vmatprep.subr.bf16.mxu0 %v12947_v36  ;;  %v12051_v59 = vpop.f32.mrf.mxu0  ;;  %v1193_v33 = vmul.f32 1.442695, %v1003_v27  ;;  %v12966_v36 = vld [vmem:[%s15742_s24 + $0x788] sm:$0xff]   ;;  %13223 = vpow2.f32 %v1189_v30  ;;  %v15151_v46 = vshrl.u32 %v4123_v34, 7 }
 0x28b   : > { %12452 = vmatprep.subr.bf16.mxu1 %v12948_v37  ;;  %3926 = vmatmul.mubr.bf16.gmra.mxu0 %v1253_v48  ;;  %v12052_v43 = vadd.f32 %v12051_v59, %v12050_v44  ;;  %v12079_v62 = vpop.f32.mrf.mxu1  ;;  %v12967_v37 = vld [vmem:[%s15742_s24 + $0x740] sm:$0xff]   ;;  %v4480_v44 = vld [vmem:[#allocation10 + $0x5e0] sm:$0xff]  ;;  %v11248_v59 = vcombine.low %v15149_v40, %v4352_v41 }
 0x28c   : > { %3974 = vmatmul.mubr.bf16.gmra.mxu1 %v1255_v49  ;;  %4013 = vmatprep.mubr.bf16.mxu0 %v1226_v55  ;;  %v12080_v3 = vadd.f32 %v12079_v62, %v12078_v52  ;;  %v12053_v4 = vpop.f32.mrf.mxu0  ;;  %13225 = vpow2.f32 %v1193_v33  ;;  %v12969_v48 = vld [vmem:[%s15742_s24 + $0x700] sm:$0xff]   ;;  %v11377_v54 = vcombine.high %v4476_v42, %v4480_v44  ;;  %v4472_v62 = vld [vmem:[#allocation10 + $0x5a0] sm:$0xff]  ;;  %v15168_v63 = vsub.s32 1, %v15151_v46 }
 0x28d   : > { %4061 = vmatprep.mubr.bf16.mxu1 %v1228_v56  ;;  %12425 = vmatpush3.bf16.msra.mxu0 %v12949_v50  ;;  %v12081_v10 = vpop.f32.mrf.mxu1  ;;  %v12970_v49 = vld [vmem:[%s15742_s24 + $0x780] sm:$0xff]   ;;  %v15160_v56 = vld [vmem:[#allocation10 + $0x180] sm:$0xff]  ;;  %v15171_v0 = vsub.s32 3, %v15151_v46 }
 0x28e   : > { %12453 = vmatpush3.bf16.msra.mxu1 %v12950_v51  ;;  %12426 = vmatprep.subr.bf16.mxu0 %v12951_v57  ;;  %v15107_v13 = vadd.f32 %v12080_v3, %v12052_v43  ;;  %v12054_v14 = vpop.f32.mrf.mxu0  ;;  %v15162_v57 = vld [vmem:[#allocation10 + $0x1a0] sm:$0xff]  ;;  %v11376_v3 = vcombine.low %v4476_v42, %v4480_v44  ;;  %v4275_v22 = vrot.slane %v15174_v6, %v15168_v63 }
 0x28f   : > { %12454 = vmatprep.subr.bf16.mxu1 %v12952_v58  ;;  %v12082_v16 = vpop.f32.mrf.mxu1  ;;  %v15165_v43 = vld [vmem:[#allocation10 + $0x580] sm:$0xff]  ;;  %v11241_v11 = vcombine.high %v15160_v56, %v15162_v57 }
 0x290   : > { %v11369_v15 = vcombine.high %v15165_v43, %v4472_v62  ;;  %v15180_v16 = vld [vmem:[#allocation10 + $0x140] sm:$0xff] }
 0x291   : > { %12427 = vmatpush3.bf16.msra.mxu0 %v12953_v8  ;;  %v13214_v47 = vpop.eup %13213  ;;  %v4464_v21 = vld [vmem:[#allocation10 + $0x560] sm:$0xff] }
 0x292   : > { %12455 = vmatpush3.bf16.msra.mxu1 %v12954_v9  ;;  %12428 = vmatprep.subr.bf16.mxu0 %v12955_v12  ;;  %v13216_v50 = vpop.eup %13215  ;;  %v1225_v7 = vpack.c.bf16 %v13214_v47, %v13212_v45  ;;  %v4328_v41 = vld [vmem:[#allocation10 + $0x120] sm:$0xff]  ;;  %v15194_v45 = vpack.c.bf16 %v4275_v22, %v4275_v22 }
 0x293   : > { %12456 = vmatprep.subr.bf16.mxu1 %v12956_v31  ;;  %v13218_v55 = vpop.eup %13217  ;;  %v4452_v42 = vld [vmem:[#allocation10 + $0x500] sm:$0xff] }
 0x294   : > { %v1258_v12 = vpack.c.bf16 %v13218_v55, %v13218_v55  ;;  %v4456_v44 = vld [vmem:[#allocation10 + $0x520] sm:$0xff] }
 0x295   : > { %12429 = vmatpush3.bf16.msra.mxu0 %v12957_v19  ;;  %v13220_v58 = vpop.eup %13219  ;;  %v4336_v19 = vld [vmem:[#allocation10 + $0x160] sm:$0xff] }
 0x296   : > { %12457 = vmatpush3.bf16.msra.mxu1 %v12958_v20  ;;  %12430 = vmatprep.subr.bf16.mxu0 %v12959_v23  ;;  %v13222_v2 = vpop.eup %13221  ;;  %v1260_v31 = vpack.c.bf16 %v13220_v58, %v13220_v58  ;;  %v4460_v20 = vld [vmem:[#allocation10 + $0x540] sm:$0xff]  ;;  %v4283_v23 = vrot.slane %v15174_v6, %v15171_v0  ;;  %v11233_v34 = vcombine.high %v15180_v16, %v4336_v19 }
 0x297   : > { %12458 = vmatprep.subr.bf16.mxu1 %v12960_v24  ;;  %v1227_v8 = vpack.c.bf16 %v13216_v50, %v13222_v2  ;;  %v13224_v27 = vpop.eup %13223  ;;  %v4316_v58 = vld [vmem:[#allocation10 + $0xc0] sm:$0xff] }
 0x298   : > { %v15198_v50 = vpack.c.bf16 %v4283_v23, %v4283_v23  ;;  %v4292_v23 = vld [vmem:[#allocation10] sm:$0xff] }
 0x299   : > { %12431 = vmatpush3.bf16.msra.mxu0 %v12961_v28  ;;  %v11240_v28 = vcombine.low %v15160_v56, %v15162_v57  ;;  %v11353_v57 = vcombine.high %v4452_v42, %v4456_v44 }
 0x29a   : > { %12459 = vmatpush3.bf16.msra.mxu1 %v12962_v29  ;;  %12432 = vmatprep.subr.bf16.mxu0 %v12963_v32  ;;  %v11368_v29 = vcombine.low %v15165_v43, %v4472_v62  ;;  %v4444_v43 = vld [vmem:[#allocation10 + $0x4c0] sm:$0xff] }
 0x29b   : > { %12460 = vmatprep.subr.bf16.mxu1 %v12964_v1  ;;  %v13226_v1 = vpop.eup %13225  ;;  %v4448_v62 = vld [vmem:[#allocation10 + $0x4e0] sm:$0xff] }
 0x29d   : > { %12433 = vmatpush3.bf16.msra.mxu0 %v12965_v35  ;;  %v11361_v35 = vcombine.high %v4460_v20, %v4464_v21 }
 0x29e   : > { %12461 = vmatpush3.bf16.msra.mxu1 %v12966_v36  ;;  %12434 = vmatprep.subr.bf16.mxu0 %v12967_v37  ;;  %v12100_v51 = vpop.f32.mrf.mxu0  ;;  %v4324_v36 = vld [vmem:[#allocation10 + $0x100] sm:$0xff]  ;;  %v11232_v37 = vcombine.low %v15180_v16, %v4336_v19 }
 0x29f   : > { %12462 = vmatprep.subr.bf16.mxu1 %v12968_v38  ;;  %v12128_v52 = vpop.f32.mrf.mxu1  ;;  %v11225_v56 = vcombine.high %v4324_v36, %v4328_v41  ;;  %v4304_v16 = vld [vmem:[#allocation10 + $0x60] sm:$0xff] }
 0x2a0   : > { %v12101_v60 = vpop.f32.mrf.mxu0 }
 0x2a1   : > { %v12129_v61 = vpop.f32.mrf.mxu1  ;;  %12435 = vmatpush3.bf16.msra.mxu0 %v12969_v48  ;;  %v12102_v4 = vadd.f32 %v12101_v60, %v12100_v51  ;;  %v1259_v51 = vpack.c.bf16 %v13226_v1, %v13226_v1  ;;  %v4412_v1 = vld [vmem:[#allocation10 + $0x3c0] sm:$0xff] }
 0x2a2   : > { %12463 = vmatpush3.bf16.msra.mxu1 %v12970_v49  ;;  %v12130_v5 = vadd.f32 %v12129_v61, %v12128_v52  ;;  %5870 = vmatprep.subr.bf16.mxu0 %v11249_v53  ;;  %v12103_v9 = vpop.f32.mrf.mxu0  ;;  %v11360_v52 = vcombine.low %v4460_v20, %v4464_v21  ;;  %v4320_v61 = vld [vmem:[#allocation10 + $0xe0] sm:$0xff] }
 0x2a3   : > { %5911 = vmatprep.subr.bf16.mxu1 %v11377_v54  ;;  %v12131_v10 = vpop.f32.mrf.mxu1  ;;  %v3440_v14 = vadd.f32 %v12102_v4, %v15055_v25  ;;  %v11217_v4 = vcombine.high %v4316_v58, %v4320_v61 }
 0x2a4   : > { %4014 = vmatmul.mubr.bf16.vlgmr.msra.gmra.mxu0 %v1225_v7  ;;  %v12104_v17 = vpop.f32.mrf.mxu0  ;;  %v4308_v7 = vld [vmem:[#allocation10 + $0x80] sm:$0xff] }
 0x2a5   : > { %4062 = vmatmul.mubr.bf16.vlgmr.msra.gmra.mxu1 %v1227_v8  ;;  %v12132_v18 = vpop.f32.mrf.mxu1  ;;  %4021 = vmatprep.mubr.bf16.mxu0 %v1258_v12  ;;  %v15186_v25 = vadd.f32 %v12130_v5, %v3440_v14  ;;  %v12105_v24 = vadd.f32 %v12104_v17, %v12103_v9  ;;  %v11345_v5 = vcombine.high %v4444_v43, %v4448_v62  ;;  %v4312_v8 = vld [vmem:[#allocation10 + $0xa0] sm:$0xff] }
 0x2a6   : > { %4069 = vmatprep.mubr.bf16.mxu1 %v1260_v31  ;;  %v12133_v26 = vadd.f32 %v12132_v18, %v12131_v10  ;;  %5871 = vmatpush1.bf16.msra.mxu0 %v11248_v59  ;;  %v12106_v30 = vpop.f32.mrf.mxu0  ;;  %v4436_v9 = vld [vmem:[#allocation10 + $0x480] sm:$0xff]  ;;  %v11344_v12 = vcombine.low %v4444_v43, %v4448_v62  ;;  %v11209_v31 = vcombine.high %v4308_v7, %v4312_v8 }
 0x2a7   : > { %5912 = vmatpush1.bf16.msra.mxu1 %v11376_v3  ;;  %v12134_v32 = vpop.f32.mrf.mxu1  ;;  %5872 = vmatprep.subr.bf16.mxu0 %v11241_v11  ;;  %v3443_v33 = vadd.f32 %v12105_v24, %v15069_v39  ;;  %v1257_v39 = vpack.c.bf16 %v13224_v27, %v13224_v27  ;;  %v11224_v3 = vcombine.low %v4324_v36, %v4328_v41  ;;  %v4440_v10 = vld [vmem:[#allocation10 + $0x4a0] sm:$0xff] }
 0x2a8   : > { %5913 = vmatprep.subr.bf16.mxu1 %v11369_v15  ;;  %v12107_v38 = vpop.f32.mrf.mxu0  ;;  %v11216_v11 = vcombine.low %v4316_v58, %v4320_v61  ;;  %v11337_v14 = vcombine.high %v4436_v9, %v4440_v10  ;;  %v4300_v15 = vld [vmem:[#allocation10 + $0x40] sm:$0xff]  ;;  %v11208_v19 = vcombine.low %v4308_v7, %v4312_v8  ;;  %v11336_v20 = vcombine.low %v4436_v9, %v4440_v10 }
 0x2a9   : > { %v12135_v40 = vpop.f32.mrf.mxu1  ;;  %v15196_v47 = vadd.f32 %v12133_v26, %v3443_v33  ;;  %v12108_v48 = vadd.f32 %v12107_v38, %v12106_v30  ;;  %v4428_v17 = vld [vmem:[#allocation10 + $0x440] sm:$0xff]  ;;  %v11201_v21 = vcombine.high %v4300_v15, %v4304_v16 }
 0x2aa   : > { %v12136_v49 = vadd.f32 %v12135_v40, %v12134_v32  ;;  %5873 = vmatpush1.bf16.msra.mxu0 %v11240_v28  ;;  %v12109_v53 = vpop.f32.mrf.mxu0  ;;  %v4432_v18 = vld [vmem:[#allocation10 + $0x460] sm:$0xff]  ;;  %v11200_v28 = vcombine.low %v4300_v15, %v4304_v16 }
 0x2ab   : > { %5914 = vmatpush1.bf16.msra.mxu1 %v11368_v29  ;;  %v12137_v54 = vpop.f32.mrf.mxu1  ;;  %5874 = vmatprep.subr.bf16.mxu0 %v11233_v34  ;;  %v3448_v55 = vadd.f32 %v12108_v48, %v15107_v13  ;;  %v11352_v13 = vcombine.low %v4452_v42, %v4456_v44  ;;  %v11329_v22 = vcombine.high %v4428_v17, %v4432_v18  ;;  %v4296_v24 = vld [vmem:[#allocation10 + $0x20] sm:$0xff] }
 0x2ac   : > { %5915 = vmatprep.subr.bf16.mxu1 %v11361_v35  ;;  %4022 = vmatmul.mubr.bf16.gmra.mxu0 %v1257_v39  ;;  %v12110_v59 = vpop.f32.mrf.mxu0  ;;  %v4420_v26 = vld [vmem:[#allocation10 + $0x400] sm:$0xff]  ;;  %v11328_v29 = vcombine.low %v4428_v17, %v4432_v18  ;;  %v11193_v30 = vcombine.high %v4292_v23, %v4296_v24  ;;  %v11192_v36 = vcombine.low %v4292_v23, %v4296_v24 }
 0x2ad   : > { %4070 = vmatmul.mubr.bf16.gmra.mxu1 %v1259_v51  ;;  %v12138_v60 = vpop.f32.mrf.mxu1  ;;  %v15201_v2 = vadd.f32 %v12136_v49, %v3448_v55  ;;  %5902 = vmatprep.mubr.bf16.mxu0 %v15194_v45  ;;  %v4424_v27 = vld [vmem:[#allocation10 + $0x420] sm:$0xff] }
 0x2ae   : > { %5943 = vmatprep.mubr.bf16.mxu1 %v15198_v50  ;;  %5875 = vmatpush1.bf16.msra.mxu0 %v11232_v37  ;;  %v11321_v32 = vcombine.high %v4420_v26, %v4424_v27  ;;  %v4416_v33 = vld [vmem:[#allocation10 + $0x3e0] sm:$0xff]  ;;  %v11320_v37 = vcombine.low %v4420_v26, %v4424_v27 }
 0x2af   : > { %5916 = vmatpush1.bf16.msra.mxu1 %v11360_v52  ;;  %5876 = vmatprep.subr.bf16.mxu0 %v11225_v56  ;;  %v4540_v34 = vld [vmem:[#allocation10 + $0x7c0] sm:$0xff]  ;;  %v11313_v41 = vcombine.high %v4412_v1, %v4416_v33  ;;  %v11312_v51 = vcombine.low %v4412_v1, %v4416_v33 }
 0x2b0   : > { %5917 = vmatprep.subr.bf16.mxu1 %v11353_v57  ;;  %v4544_v35 = vld [vmem:[#allocation10 + $0x7e0] sm:$0xff] }
 0x2b1   : > { %v11441_v42 = vcombine.high %v4540_v34, %v4544_v35  ;;  %v4404_v44 = vld [vmem:[#allocation10 + $0x380] sm:$0xff]  ;;  %v11440_v54 = vcombine.low %v4540_v34, %v4544_v35 }
 0x2b2   : > { %5877 = vmatpush1.bf16.msra.mxu0 %v11224_v3  ;;  %v4408_v48 = vld [vmem:[#allocation10 + $0x3a0] sm:$0xff] }
 0x2b3   : > { %5918 = vmatpush1.bf16.msra.mxu1 %v11352_v13  ;;  %5878 = vmatprep.subr.bf16.mxu0 %v11217_v4  ;;  %v4532_v49 = vld [vmem:[#allocation10 + $0x780] sm:$0xff]  ;;  %v11305_v59 = vcombine.high %v4404_v44, %v4408_v48  ;;  %v11304_v4 = vcombine.low %v4404_v44, %v4408_v48 }
 0x2b4   : > { %5919 = vmatprep.subr.bf16.mxu1 %v11345_v5  ;;  %v4536_v39 = vld [vmem:[#allocation10 + $0x7a0] sm:$0xff] }
 0x2b5   : > { %v11433_v60 = vcombine.high %v4532_v49, %v4536_v39  ;;  %v4396_v61 = vld [vmem:[#allocation10 + $0x340] sm:$0xff]  ;;  %v11432_v5 = vcombine.low %v4532_v49, %v4536_v39 }
 0x2b6   : > { %5879 = vmatpush1.bf16.msra.mxu0 %v11216_v11  ;;  %v4400_v62 = vld [vmem:[#allocation10 + $0x360] sm:$0xff] }
 0x2b7   : > { %5920 = vmatpush1.bf16.msra.mxu1 %v11344_v12  ;;  %5880 = vmatprep.subr.bf16.mxu0 %v11209_v31  ;;  %v4524_v3 = vld [vmem:[#allocation10 + $0x740] sm:$0xff] }
 0x2b8   : > { %5921 = vmatprep.subr.bf16.mxu1 %v11337_v14  ;;  %v4528_v13 = vld [vmem:[#allocation10 + $0x760] sm:$0xff]  ;;  %v11297_v14 = vcombine.high %v4396_v61, %v4400_v62 }
 0x2b9   : > { %v11425_v15 = vcombine.high %v4524_v3, %v4528_v13  ;;  %v4392_v17 = vld [vmem:[#allocation10 + $0x320] sm:$0xff] }
 0x2ba   : > { %5881 = vmatpush1.bf16.msra.mxu0 %v11208_v19  ;;  %v4516_v18 = vld [vmem:[#allocation10 + $0x700] sm:$0xff] }
 0x2bb   : > { %5922 = vmatpush1.bf16.msra.mxu1 %v11336_v20  ;;  %5882 = vmatprep.subr.bf16.mxu0 %v11201_v21  ;;  %v4520_v19 = vld [vmem:[#allocation10 + $0x720] sm:$0xff]  ;;  %v11296_v20 = vcombine.low %v4396_v61, %v4400_v62  ;;  %v11424_v21 = vcombine.low %v4524_v3, %v4528_v13 }
 0x2bc   : > { %5923 = vmatprep.subr.bf16.mxu1 %v11329_v22  ;;  %v4384_v33 = vld [vmem:[#allocation10 + $0x2e0] sm:$0xff] }
 0x2bd   : > { %v4508_v34 = vld [vmem:[#allocation10 + $0x6c0] sm:$0xff] }
 0x2be   : > { %5883 = vmatpush1.bf16.msra.mxu0 %v11200_v28  ;;  %v4512_v35 = vld [vmem:[#allocation10 + $0x6e0] sm:$0xff] }
 0x2bf   : > { %5924 = vmatpush1.bf16.msra.mxu1 %v11328_v29  ;;  %5884 = vmatprep.subr.bf16.mxu0 %v11193_v30  ;;  %v12156_v38 = vpop.f32.mrf.mxu0  ;;  %v11409_v44 = vcombine.high %v4508_v34, %v4512_v35  ;;  %v4372_v48 = vld [vmem:[#allocation10 + $0x280] sm:$0xff] }
 0x2c0   : > { %5925 = vmatprep.subr.bf16.mxu1 %v11321_v32  ;;  %v12184_v40 = vpop.f32.mrf.mxu1  ;;  %v11417_v32 = vcombine.high %v4516_v18, %v4520_v19  ;;  %v4376_v49 = vld [vmem:[#allocation10 + $0x2a0] sm:$0xff] }
 0x2c1   : > { %v12157_v52 = vpop.f32.mrf.mxu0  ;;  %v4500_v39 = vld [vmem:[#allocation10 + $0x680] sm:$0xff] }
 0x2c2   : > { %v12185_v53 = vpop.f32.mrf.mxu1  ;;  %5885 = vmatpush1.bf16.msra.mxu0 %v11192_v36  ;;  %v12158_v55 = vadd.f32 %v12157_v52, %v12156_v38  ;;  %v11408_v52 = vcombine.low %v4508_v34, %v4512_v35  ;;  %v4356_v62 = vld [vmem:[#allocation10 + $0x200] sm:$0xff]  ;;  %v4333_v35 = vld [vmem:[#allocation10 + $0x148] sm:$0xff] }
 0x2c3   : > { %5926 = vmatpush1.bf16.msra.mxu1 %v11320_v37  ;;  %v12186_v56 = vadd.f32 %v12185_v53, %v12184_v40  ;;  %5886 = vmatprep.subr.bf16.mxu0 %v11313_v41  ;;  %v12159_v57 = vpop.f32.mrf.mxu0  ;;  %v11416_v41 = vcombine.low %v4516_v18, %v4520_v19  ;;  %v11273_v53 = vcombine.high %v4372_v48, %v4376_v49  ;;  %v4360_v3 = vld [vmem:[#allocation10 + $0x220] sm:$0xff] }
 0x2c4   : > { %5927 = vmatprep.subr.bf16.mxu1 %v11441_v42  ;;  %v12187_v58 = vpop.f32.mrf.mxu1  ;;  %v3536_v43 = vadd.f32 %v12158_v55, %v15186_v25  ;;  %v4388_v25 = vld [vmem:[#allocation10 + $0x300] sm:$0xff]  ;;  %v11256_v18 = vcombine.low %v4356_v62, %v4360_v3 }
 0x2c5   : > { %v12160_v7 = vpop.f32.mrf.mxu0  ;;  %v11289_v30 = vcombine.high %v4388_v25, %v4392_v17  ;;  %v11288_v40 = vcombine.low %v4388_v25, %v4392_v17  ;;  %v4364_v55 = vld [vmem:[#allocation10 + $0x240] sm:$0xff]  ;;  %v4481_v25 = vld [vmem:[#allocation10 + $0x5e8] sm:$0xff] }
 0x2c6   : > { %v12188_v8 = vpop.f32.mrf.mxu1  ;;  %5887 = vmatpush2.bf16.msra.mxu0 %v11312_v51  ;;  %v15206_v9 = vadd.f32 %v12186_v56, %v3536_v43  ;;  %v12161_v10 = vadd.f32 %v12160_v7, %v12159_v57  ;;  %v4504_v51 = vld [vmem:[#allocation10 + $0x6a0] sm:$0xff]  ;;  %v15218_v7 = vsub.s32 2, %v15151_v46 }
 0x2c7   : > { %5928 = vmatpush2.bf16.msra.mxu1 %v11440_v54  ;;  %v12189_v11 = vadd.f32 %v12188_v8, %v12187_v58  ;;  %5888 = vmatprep.subr.bf16.mxu0 %v11305_v59  ;;  %v12162_v12 = vpop.f32.mrf.mxu0  ;;  %v11401_v54 = vcombine.high %v4500_v39, %v4504_v51  ;;  %v4368_v56 = vld [vmem:[#allocation10 + $0x260] sm:$0xff]  ;;  %v11272_v59 = vcombine.low %v4372_v48, %v4376_v49 }
 0x2c8   : > { %5929 = vmatprep.subr.bf16.mxu1 %v11433_v60  ;;  %v12190_v31 = vpop.f32.mrf.mxu1  ;;  %v3539_v16 = vadd.f32 %v12161_v10, %v15196_v47  ;;  %v4380_v47 = vld [vmem:[#allocation10 + $0x2c0] sm:$0xff]  ;;  %v11400_v60 = vcombine.low %v4500_v39, %v4504_v51  ;;  %v11265_v61 = vcombine.high %v4364_v55, %v4368_v56  ;;  %v11264_v8 = vcombine.low %v4364_v55, %v4368_v56  ;;  %v4325_v56 = vld [vmem:[#allocation10 + $0x108] sm:$0xff] }
 0x2c9   : > { %v12163_v22 = vpop.f32.mrf.mxu0  ;;  %v11281_v42 = vcombine.high %v4380_v47, %v4384_v33  ;;  %v4492_v57 = vld [vmem:[#allocation10 + $0x640] sm:$0xff]  ;;  %v4279_v17 = vrot.slane %v15174_v6, %v15218_v7 }
 0x2ca   : > { %v12191_v23 = vpop.f32.mrf.mxu1  ;;  %5889 = vmatpush2.bf16.msra.mxu0 %v11304_v4  ;;  %v15209_v24 = vadd.f32 %v12189_v11, %v3539_v16  ;;  %v12164_v26 = vadd.f32 %v12163_v22, %v12162_v12  ;;  %v4496_v58 = vld [vmem:[#allocation10 + $0x660] sm:$0xff]  ;;  %v11257_v11 = vcombine.high %v4356_v62, %v4360_v3  ;;  %v4341_v22 = vld [vmem:[#allocation10 + $0x188] sm:$0xff] }
 0x2cb   : > { %5930 = vmatpush2.bf16.msra.mxu1 %v11432_v5  ;;  %v12192_v27 = vadd.f32 %v12191_v23, %v12190_v31  ;;  %5890 = vmatprep.subr.bf16.mxu0 %v11297_v14  ;;  %v12165_v28 = vpop.f32.mrf.mxu0  ;;  %v11393_v43 = vcombine.high %v4492_v57, %v4496_v58  ;;  %v4484_v13 = vld [vmem:[#allocation10 + $0x600] sm:$0xff]  ;;  %v15215_v5 = vsub.s32 0, %v15151_v46  ;;  %v11392_v10 = vcombine.low %v4492_v57, %v4496_v58  ;;  %v4349_v31 = vld [vmem:[#allocation10 + $0x1c8] sm:$0xff] }
 0x2cc   : > { %5931 = vmatprep.subr.bf16.mxu1 %v11425_v15  ;;  %v12193_v29 = vpop.f32.mrf.mxu1  ;;  %v3544_v1 = vadd.f32 %v12164_v26, %v15201_v2  ;;  %v11280_v2 = vcombine.low %v4380_v47, %v4384_v33  ;;  %v4488_v4 = vld [vmem:[#allocation10 + $0x620] sm:$0xff]  ;;  %v4353_v14 = vld [vmem:[#allocation10 + $0x1e8] sm:$0xff] }
 0x2cd   : > { %v12166_v36 = vpop.f32.mrf.mxu0  ;;  %v11385_v12 = vcombine.high %v4484_v13, %v4488_v4  ;;  %v4477_v15 = vld [vmem:[#allocation10 + $0x5c8] sm:$0xff]  ;;  %v4271_v16 = vrot.slane %v15174_v6, %v15215_v5  ;;  %v11384_v19 = vcombine.low %v4484_v13, %v4488_v4  ;;  %v11250_v6 = vcombine.low %v4349_v31, %v4353_v14 }
 0x2ce   : > { %v12194_v37 = vpop.f32.mrf.mxu1  ;;  %5891 = vmatpush2.bf16.msra.mxu0 %v11296_v20  ;;  %v15212_v38 = vadd.f32 %v12192_v27, %v3544_v1  ;;  %v11251_v20 = vcombine.high %v4349_v31, %v4353_v14  ;;  %v4345_v23 = vld [vmem:[#allocation10 + $0x1a8] sm:$0xff]  ;;  %v11378_v47 = vcombine.low %v4477_v15, %v4481_v25 }
 0x2cf   : > { %5932 = vmatpush2.bf16.msra.mxu1 %v11424_v21  ;;  %5892 = vmatprep.subr.bf16.mxu0 %v11289_v30  ;;  %v11379_v21 = vcombine.high %v4477_v15, %v4481_v25  ;;  %v4469_v28 = vld [vmem:[#allocation10 + $0x588] sm:$0xff]  ;;  %v15224_v30 = vpack.c.bf16 %v4271_v16, %v4271_v16  ;;  %v11243_v34 = vcombine.high %v4341_v22, %v4345_v23 }
 0x2d0   : > { %5933 = vmatprep.subr.bf16.mxu1 %v11417_v32  ;;  %v4473_v29 = vld [vmem:[#allocation10 + $0x5a8] sm:$0xff]  ;;  %v15226_v32 = vpack.c.bf16 %v4279_v17, %v4279_v17  ;;  %v11242_v51 = vcombine.low %v4341_v22, %v4345_v23 }
 0x2d1   : > { %v4317_v25 = vld [vmem:[#allocation10 + $0xc8] sm:$0xff] }
 0x2d2   : > { %5893 = vmatpush2.bf16.msra.mxu0 %v11288_v40  ;;  %v11371_v40 = vcombine.high %v4469_v28, %v4473_v29 }
 0x2d3   : > { %5934 = vmatpush2.bf16.msra.mxu1 %v11416_v41  ;;  %5894 = vmatprep.subr.bf16.mxu0 %v11281_v42  ;;  %v4337_v41 = vld [vmem:[#allocation10 + $0x168] sm:$0xff] }
 0x2d4   : > { %5935 = vmatprep.subr.bf16.mxu1 %v11409_v44  ;;  %v4461_v42 = vld [vmem:[#allocation10 + $0x548] sm:$0xff]  ;;  %v11234_v13 = vcombine.low %v4333_v35, %v4337_v41 }
 0x2d5   : > { %v4465_v44 = vld [vmem:[#allocation10 + $0x568] sm:$0xff] }
 0x2d6   : > { %5895 = vmatpush2.bf16.msra.mxu0 %v11280_v2  ;;  %v11370_v2 = vcombine.low %v4469_v28, %v4473_v29  ;;  %v11363_v55 = vcombine.high %v4461_v42, %v4465_v44  ;;  %v11362_v4 = vcombine.low %v4461_v42, %v4465_v44  ;;  %v4433_v42 = vld [vmem:[#allocation10 + $0x468] sm:$0xff] }
 0x2d7   : > { %5936 = vmatpush2.bf16.msra.mxu1 %v11408_v52  ;;  %5896 = vmatprep.subr.bf16.mxu0 %v11273_v53 }
 0x2d8   : > { %5937 = vmatprep.subr.bf16.mxu1 %v11401_v54  ;;  %v11235_v54 = vcombine.high %v4333_v35, %v4337_v41  ;;  %v4429_v41 = vld [vmem:[#allocation10 + $0x448] sm:$0xff] }
 0x2da   : > { %5897 = vmatpush2.bf16.msra.mxu0 %v11272_v59 }
 0x2db   : > { %5938 = vmatpush2.bf16.msra.mxu1 %v11400_v60  ;;  %5898 = vmatprep.subr.bf16.mxu0 %v11265_v61  ;;  %v4329_v60 = vld [vmem:[#allocation10 + $0x128] sm:$0xff] }
 0x2dc   : > { %5939 = vmatprep.subr.bf16.mxu1 %v11393_v43  ;;  %v4453_v61 = vld [vmem:[#allocation10 + $0x508] sm:$0xff] }
 0x2dd   : > { %v4457_v43 = vld [vmem:[#allocation10 + $0x528] sm:$0xff] }
 0x2de   : > { %5899 = vmatpush2.bf16.msra.mxu0 %v11264_v8  ;;  %v11354_v22 = vcombine.low %v4453_v61, %v4457_v43 }
 0x2df   : > { %5940 = vmatpush2.bf16.msra.mxu1 %v11392_v10  ;;  %5900 = vmatprep.subr.bf16.mxu0 %v11257_v11  ;;  %v11227_v11 = vcombine.high %v4325_v56, %v4329_v60 }
 0x2e0   : > { %5941 = vmatprep.subr.bf16.mxu1 %v11385_v12  ;;  %v12212_v26 = vpop.f32.mrf.mxu0  ;;  %v11355_v12 = vcombine.high %v4453_v61, %v4457_v43  ;;  %v4541_v61 = vld [vmem:[#allocation10 + $0x7c8] sm:$0xff] }
 0x2e1   : > { %v12240_v27 = vpop.f32.mrf.mxu1  ;;  %v4545_v43 = vld [vmem:[#allocation10 + $0x7e8] sm:$0xff] }
 0x2e2   : > { %5901 = vmatpush2.bf16.msra.mxu0 %v11256_v18  ;;  %v12213_v1 = vpop.f32.mrf.mxu0  ;;  %v4321_v18 = vld [vmem:[#allocation10 + $0xe8] sm:$0xff] }
 0x2e3   : > { %5942 = vmatpush2.bf16.msra.mxu1 %v11384_v19  ;;  %v12241_v33 = vpop.f32.mrf.mxu1  ;;  %5952 = vmatprep.subr.bf16.mxu0 %v11251_v20  ;;  %v12214_v36 = vadd.f32 %v12213_v1, %v12212_v26  ;;  %v4445_v19 = vld [vmem:[#allocation10 + $0x4c8] sm:$0xff]  ;;  %v11219_v28 = vcombine.high %v4317_v25, %v4321_v18 }
 0x2e4   : > { %5993 = vmatprep.subr.bf16.mxu1 %v11379_v21  ;;  %v12242_v37 = vadd.f32 %v12241_v33, %v12240_v27  ;;  %v12215_v48 = vpop.f32.mrf.mxu0  ;;  %v11226_v21 = vcombine.low %v4325_v56, %v4329_v60  ;;  %v4437_v1 = vld [vmem:[#allocation10 + $0x488] sm:$0xff] }
 0x2e5   : > { %v12243_v49 = vpop.f32.mrf.mxu1  ;;  %5903 = vmatmul.mubr.bf16.vlgmr.msra.gmra.mxu0 %v15224_v30  ;;  %v3632_v39 = vadd.f32 %v12214_v36, %v15206_v9  ;;  %v4441_v33 = vld [vmem:[#allocation10 + $0x4a8] sm:$0xff] }
 0x2e6   : > { %5944 = vmatmul.mubr.bf16.vlgmr.msra.gmra.mxu1 %v15226_v32  ;;  %5953 = vmatpush1.bf16.msra.mxu0 %v11250_v6  ;;  %v12216_v52 = vpop.f32.mrf.mxu0  ;;  %v4309_v6 = vld [vmem:[#allocation10 + $0x88] sm:$0xff]  ;;  %v11339_v36 = vcombine.high %v4437_v1, %v4441_v33 }
 0x2e7   : > { %5994 = vmatpush1.bf16.msra.mxu1 %v11378_v47  ;;  %v12244_v53 = vpop.f32.mrf.mxu1  ;;  %v15231_v57 = vadd.f32 %v12242_v37, %v3632_v39  ;;  %5954 = vmatprep.subr.bf16.mxu0 %v11243_v34  ;;  %v12217_v58 = vadd.f32 %v12216_v52, %v12215_v48  ;;  %v4313_v47 = vld [vmem:[#allocation10 + $0xa8] sm:$0xff]  ;;  %v11218_v34 = vcombine.low %v4317_v25, %v4321_v18 }
 0x2e8   : > { %5995 = vmatprep.subr.bf16.mxu1 %v11371_v40  ;;  %v12245_v59 = vadd.f32 %v12244_v53, %v12243_v49  ;;  %v12218_v62 = vpop.f32.mrf.mxu0  ;;  %5984 = vmatprep.mubr.bf16.mxu0 %v15194_v45  ;;  %v11211_v35 = vcombine.high %v4309_v6, %v4313_v47  ;;  %v4301_v37 = vld [vmem:[#allocation10 + $0x48] sm:$0xff]  ;;  %v11210_v44 = vcombine.low %v4309_v6, %v4313_v47 }
 0x2e9   : > { %v12246_v9 = vpop.f32.mrf.mxu1  ;;  %6025 = vmatprep.mubr.bf16.mxu1 %v15198_v50  ;;  %v3635_v3 = vadd.f32 %v12217_v58, %v15209_v24  ;;  %v4449_v24 = vld [vmem:[#allocation10 + $0x4e8] sm:$0xff]  ;;  %v11338_v48 = vcombine.low %v4437_v1, %v4441_v33  ;;  %v11331_v39 = vcombine.high %v4429_v41, %v4433_v42 }
 0x2ea   : > { %5955 = vmatpush1.bf16.msra.mxu0 %v11242_v51  ;;  %v12219_v8 = vpop.f32.mrf.mxu0  ;;  %v11347_v29 = vcombine.high %v4445_v19, %v4449_v24  ;;  %v4305_v40 = vld [vmem:[#allocation10 + $0x68] sm:$0xff] }
 0x2eb   : > { %5996 = vmatpush1.bf16.msra.mxu1 %v11370_v2  ;;  %v12247_v10 = vpop.f32.mrf.mxu1  ;;  %v15236_v31 = vadd.f32 %v12245_v59, %v3635_v3  ;;  %5956 = vmatprep.subr.bf16.mxu0 %v11235_v54  ;;  %v12220_v14 = vadd.f32 %v12219_v8, %v12218_v62  ;;  %v11203_v49 = vcombine.high %v4301_v37, %v4305_v40  ;;  %v4293_v51 = vld [vmem:[#allocation10 + $0x8] sm:$0xff] }
 0x2ec   : > { %5997 = vmatprep.subr.bf16.mxu1 %v11363_v55  ;;  %v12248_v15 = vadd.f32 %v12247_v10, %v12246_v9  ;;  %v12221_v16 = vpop.f32.mrf.mxu0  ;;  %v4297_v2 = vld [vmem:[#allocation10 + $0x28] sm:$0xff]  ;;  %v11202_v54 = vcombine.low %v4301_v37, %v4305_v40  ;;  %v11330_v55 = vcombine.low %v4429_v41, %v4433_v42 }
 0x2ed   : > { %v12249_v17 = vpop.f32.mrf.mxu1  ;;  %v3640_v20 = vadd.f32 %v12220_v14, %v15212_v38  ;;  %v11346_v38 = vcombine.low %v4445_v19, %v4449_v24  ;;  %v4421_v52 = vld [vmem:[#allocation10 + $0x408] sm:$0xff]  ;;  %v11195_v56 = vcombine.high %v4293_v51, %v4297_v2  ;;  %v11194_v62 = vcombine.low %v4293_v51, %v4297_v2 }
 0x2ee   : > { %5957 = vmatpush1.bf16.msra.mxu0 %v11234_v13  ;;  %v12222_v23 = vpop.f32.mrf.mxu0  ;;  %v4425_v53 = vld [vmem:[#allocation10 + $0x428] sm:$0xff]  ;;  %v11443_v13 = vcombine.high %v4541_v61, %v4545_v43  ;;  %v11442_v16 = vcombine.low %v4541_v61, %v4545_v43 }
 0x2ef   : > { %5998 = vmatpush1.bf16.msra.mxu1 %v11362_v4  ;;  %v12250_v26 = vpop.f32.mrf.mxu1  ;;  %v15239_v27 = vadd.f32 %v12248_v15, %v3640_v20  ;;  %5958 = vmatprep.subr.bf16.mxu0 %v11227_v11  ;;  %v11323_v58 = vcombine.high %v4421_v52, %v4425_v53  ;;  %v4413_v59 = vld [vmem:[#allocation10 + $0x3c8] sm:$0xff]  ;;  %v11322_v9 = vcombine.low %v4421_v52, %v4425_v53 }
 0x2f0   : > { %5999 = vmatprep.subr.bf16.mxu1 %v11355_v12  ;;  %v4417_v60 = vld [vmem:[#allocation10 + $0x3e8] sm:$0xff]  ;;  %v13707_v12 = vmov 3  }
 0x2f1   : > { %v11315_v3 = vcombine.high %v4413_v59, %v4417_v60  ;;  %v4405_v4 = vld [vmem:[#allocation10 + $0x388] sm:$0xff]  ;;  %12702 = vset.pattern.permute.xlu1 %v13707_v12  ;;  %12703 = vset.pattern.permute.xlu0 %v13707_v12  ;;  %v11314_v25 = vcombine.low %v4413_v59, %v4417_v60 }
 0x2f2   : > { %5959 = vmatpush1.bf16.msra.mxu0 %v11226_v21  ;;  %v4409_v8 = vld [vmem:[#allocation10 + $0x3a8] sm:$0xff] }
 0x2f3   : > { %6000 = vmatpush1.bf16.msra.mxu1 %v11354_v22  ;;  %5960 = vmatprep.subr.bf16.mxu0 %v11219_v28  ;;  %v4533_v10 = vld [vmem:[#allocation10 + $0x788] sm:$0xff]  ;;  %v11307_v19 = vcombine.high %v4405_v4, %v4409_v8  ;;  %v11306_v1 = vcombine.low %v4405_v4, %v4409_v8 }
 0x2f4   : > { %6001 = vmatprep.subr.bf16.mxu1 %v11347_v29  ;;  %v4537_v11 = vld [vmem:[#allocation10 + $0x7a8] sm:$0xff] }
 0x2f5   : > { %v11435_v24 = vcombine.high %v4533_v10, %v4537_v11  ;;  %v4397_v20 = vld [vmem:[#allocation10 + $0x348] sm:$0xff]  ;;  %v11434_v33 = vcombine.low %v4533_v10, %v4537_v11 }
 0x2f6   : > { %5961 = vmatpush1.bf16.msra.mxu0 %v11218_v34  ;;  %v4401_v23 = vld [vmem:[#allocation10 + $0x368] sm:$0xff] }
 0x2f7   : > { %6002 = vmatpush1.bf16.msra.mxu1 %v11346_v38  ;;  %5962 = vmatprep.subr.bf16.mxu0 %v11211_v35  ;;  %v4525_v26 = vld [vmem:[#allocation10 + $0x748] sm:$0xff]  ;;  %v11299_v35 = vcombine.high %v4397_v20, %v4401_v23  ;;  %v11298_v2 = vcombine.low %v4397_v20, %v4401_v23 }
 0x2f8   : > { %6003 = vmatprep.subr.bf16.mxu1 %v11339_v36  ;;  %v4529_v28 = vld [vmem:[#allocation10 + $0x768] sm:$0xff] }
 0x2f9   : > { %v11427_v36 = vcombine.high %v4525_v26, %v4529_v28  ;;  %v4389_v37 = vld [vmem:[#allocation10 + $0x308] sm:$0xff]  ;;  %v11426_v52 = vcombine.low %v4525_v26, %v4529_v28 }
 0x2fa   : > { %5963 = vmatpush1.bf16.msra.mxu0 %v11210_v44  ;;  %v4393_v44 = vld [vmem:[#allocation10 + $0x328] sm:$0xff] }
 0x2fb   : > { %6004 = vmatpush1.bf16.msra.mxu1 %v11338_v48  ;;  %5964 = vmatprep.subr.bf16.mxu0 %v11203_v49  ;;  %v4517_v48 = vld [vmem:[#allocation10 + $0x708] sm:$0xff]  ;;  %v11290_v4 = vcombine.low %v4389_v37, %v4393_v44 }
 0x2fc   : > { %6005 = vmatprep.subr.bf16.mxu1 %v11331_v39  ;;  %v4521_v49 = vld [vmem:[#allocation10 + $0x728] sm:$0xff] }
 0x2fd   : > { %v4385_v43 = vld [vmem:[#allocation10 + $0x2e8] sm:$0xff]  ;;  %v11418_v8 = vcombine.low %v4517_v48, %v4521_v49 }
 0x2fe   : > { %5965 = vmatpush1.bf16.msra.mxu0 %v11202_v54  ;;  %v4493_v23 = vld [vmem:[#allocation10 + $0x648] sm:$0xff] }
 0x2ff   : > { %6006 = vmatpush1.bf16.msra.mxu1 %v11330_v55  ;;  %5966 = vmatprep.subr.bf16.mxu0 %v11195_v56  ;;  %v11291_v55 = vcombine.high %v4389_v37, %v4393_v44  ;;  %v11419_v56 = vcombine.high %v4517_v48, %v4521_v49  ;;  %v4497_v26 = vld [vmem:[#allocation10 + $0x668] sm:$0xff]  ;;  %v4354_v44 = vld [vmem:[#allocation10 + $0x1f0] sm:$0xff] }
 0x300   : > { %6007 = vmatprep.subr.bf16.mxu1 %v11323_v58  ;;  %v4381_v58 = vld [vmem:[#allocation10 + $0x2c8] sm:$0xff]  ;;  %v4478_v48 = vld [vmem:[#allocation10 + $0x5d0] sm:$0xff] }
 0x301   : > { %v12268_v14 = vpop.f32.mrf.mxu0  ;;  %v11283_v12 = vcombine.high %v4381_v58, %v4385_v43  ;;  %v4482_v49 = vld [vmem:[#allocation10 + $0x5f0] sm:$0xff] }
 0x302   : > { %v12296_v15 = vpop.f32.mrf.mxu1  ;;  %5967 = vmatpush1.bf16.msra.mxu0 %v11194_v62  ;;  %v4509_v62 = vld [vmem:[#allocation10 + $0x6c8] sm:$0xff] }
 0x303   : > { %6008 = vmatpush1.bf16.msra.mxu1 %v11322_v9  ;;  %5968 = vmatprep.subr.bf16.mxu0 %v11315_v3  ;;  %v12269_v17 = vpop.f32.mrf.mxu0  ;;  %v4513_v9 = vld [vmem:[#allocation10 + $0x6e8] sm:$0xff] }
 0x304   : > { %6009 = vmatprep.subr.bf16.mxu1 %v11443_v13  ;;  %v12297_v18 = vpop.f32.mrf.mxu1  ;;  %v12270_v21 = vadd.f32 %v12269_v17, %v12268_v14  ;;  %v11411_v14 = vcombine.high %v4509_v62, %v4513_v9  ;;  %v4501_v17 = vld [vmem:[#allocation10 + $0x688] sm:$0xff] }
 0x305   : > { %v12298_v22 = vadd.f32 %v12297_v18, %v12296_v15  ;;  %v12271_v29 = vpop.f32.mrf.mxu0  ;;  %v4373_v15 = vld [vmem:[#allocation10 + $0x288] sm:$0xff] }
 0x306   : > { %v12299_v6 = vpop.f32.mrf.mxu1  ;;  %5969 = vmatpush2.bf16.msra.mxu0 %v11314_v25  ;;  %v3728_v47 = vadd.f32 %v12270_v21, %v15231_v57  ;;  %v4505_v18 = vld [vmem:[#allocation10 + $0x6a8] sm:$0xff] }
 0x307   : > { %6010 = vmatpush2.bf16.msra.mxu1 %v11442_v16  ;;  %5970 = vmatprep.subr.bf16.mxu0 %v11307_v19  ;;  %v12272_v34 = vpop.f32.mrf.mxu0  ;;  %v4377_v16 = vld [vmem:[#allocation10 + $0x2a8] sm:$0xff]  ;;  %v11282_v19 = vcombine.low %v4381_v58, %v4385_v43  ;;  %v11403_v20 = vcombine.high %v4501_v17, %v4505_v18 }
 0x308   : > { %6011 = vmatprep.subr.bf16.mxu1 %v11435_v24  ;;  %v12300_v38 = vpop.f32.mrf.mxu1  ;;  %v15242_v40 = vadd.f32 %v12298_v22, %v3728_v47  ;;  %v12273_v41 = vadd.f32 %v12272_v34, %v12271_v29  ;;  %v11410_v24 = vcombine.low %v4509_v62, %v4513_v9  ;;  %v4365_v21 = vld [vmem:[#allocation10 + $0x248] sm:$0xff]  ;;  %v11274_v28 = vcombine.low %v4373_v15, %v4377_v16  ;;  %v4334_v9 = vld [vmem:[#allocation10 + $0x150] sm:$0xff] }
 0x309   : > { %v12301_v42 = vadd.f32 %v12300_v38, %v12299_v6  ;;  %v12274_v39 = vpop.f32.mrf.mxu0  ;;  %v4369_v22 = vld [vmem:[#allocation10 + $0x268] sm:$0xff]  ;;  %v11402_v29 = vcombine.low %v4501_v17, %v4505_v18  ;;  %v11395_v47 = vcombine.high %v4493_v23, %v4497_v26  ;;  %v4326_v17 = vld [vmem:[#allocation10 + $0x110] sm:$0xff] }
 0x30a   : > { %v12302_v51 = vpop.f32.mrf.mxu1  ;;  %5971 = vmatpush2.bf16.msra.mxu0 %v11306_v1  ;;  %v3731_v57 = vadd.f32 %v12273_v41, %v15236_v31  ;;  %v11267_v6 = vcombine.high %v4365_v21, %v4369_v22  ;;  %v4357_v1 = vld [vmem:[#allocation10 + $0x208] sm:$0xff] }
 0x30b   : > { %6012 = vmatpush2.bf16.msra.mxu1 %v11434_v33  ;;  %5972 = vmatprep.subr.bf16.mxu0 %v11299_v35  ;;  %v12275_v53 = vpop.f32.mrf.mxu0  ;;  %v4361_v33 = vld [vmem:[#allocation10 + $0x228] sm:$0xff]  ;;  %v11266_v35 = vcombine.low %v4365_v21, %v4369_v22 }
 0x30c   : > { %6013 = vmatprep.subr.bf16.mxu1 %v11427_v36  ;;  %v12303_v54 = vpop.f32.mrf.mxu1  ;;  %v15245_v59 = vadd.f32 %v12301_v42, %v3731_v57  ;;  %v12276_v60 = vadd.f32 %v12275_v53, %v12274_v39  ;;  %v4485_v34 = vld [vmem:[#allocation10 + $0x608] sm:$0xff]  ;;  %v11394_v36 = vcombine.low %v4493_v23, %v4497_v26  ;;  %v11259_v37 = vcombine.high %v4357_v1, %v4361_v33  ;;  %v4350_v42 = vld [vmem:[#allocation10 + $0x1d0] sm:$0xff] }
 0x30d   : > { %v12304_v61 = vadd.f32 %v12303_v54, %v12302_v51  ;;  %v12277_v3 = vpop.f32.mrf.mxu0  ;;  %v4489_v38 = vld [vmem:[#allocation10 + $0x628] sm:$0xff]  ;;  %v11258_v39 = vcombine.low %v4357_v1, %v4361_v33  ;;  %v11253_v57 = vcombine.high %v4350_v42, %v4354_v44  ;;  %v4346_v53 = vld [vmem:[#allocation10 + $0x1b0] sm:$0xff] }
 0x30e   : > { %v12305_v13 = vpop.f32.mrf.mxu1  ;;  %5973 = vmatpush2.bf16.msra.mxu0 %v11298_v2  ;;  %v3736_v31 = vadd.f32 %v12276_v60, %v15239_v27  ;;  %v11275_v27 = vcombine.high %v4373_v15, %v4377_v16  ;;  %v11387_v41 = vcombine.high %v4485_v34, %v4489_v38  ;;  %v11386_v51 = vcombine.low %v4485_v34, %v4489_v38  ;;  %v4470_v54 = vld [vmem:[#allocation10 + $0x590] sm:$0xff] }
 0x30f   : > { %6014 = vmatpush2.bf16.msra.mxu1 %v11426_v52  ;;  %5974 = vmatprep.subr.bf16.mxu0 %v11291_v55  ;;  %v12278_v10 = vpop.f32.mrf.mxu0  ;;  %v11381_v2 = vcombine.high %v4478_v48, %v4482_v49  ;;  %v4342_v52 = vld [vmem:[#allocation10 + $0x190] sm:$0xff]  ;;  %v11252_v60 = vcombine.low %v4350_v42, %v4354_v44 }
 0x310   : > { %6015 = vmatprep.subr.bf16.mxu1 %v11419_v56  ;;  %v12306_v11 = vpop.f32.mrf.mxu1  ;;  %v15248_v25 = vadd.f32 %v12304_v61, %v3736_v31  ;;  %v4474_v55 = vld [vmem:[#allocation10 + $0x5b0] sm:$0xff]  ;;  %v11380_v61 = vcombine.low %v4478_v48, %v4482_v49  ;;  %v11245_v43 = vcombine.high %v4342_v52, %v4346_v53 }
 0x311   : > { %v11373_v62 = vcombine.high %v4470_v54, %v4474_v55  ;;  %v4338_v31 = vld [vmem:[#allocation10 + $0x170] sm:$0xff] }
 0x312   : > { %5975 = vmatpush2.bf16.msra.mxu0 %v11290_v4  ;;  %v4462_v4 = vld [vmem:[#allocation10 + $0x550] sm:$0xff]  ;;  %v11237_v15 = vcombine.high %v4334_v9, %v4338_v31  ;;  %v11236_v23 = vcombine.low %v4334_v9, %v4338_v31 }
 0x313   : > { %6016 = vmatpush2.bf16.msra.mxu1 %v11418_v8  ;;  %5976 = vmatprep.subr.bf16.mxu0 %v11283_v12  ;;  %v4466_v8 = vld [vmem:[#allocation10 + $0x570] sm:$0xff]  ;;  %v11244_v12 = vcombine.low %v4342_v52, %v4346_v53 }
 0x314   : > { %6017 = vmatprep.subr.bf16.mxu1 %v11411_v14  ;;  %v11372_v14 = vcombine.low %v4470_v54, %v4474_v55  ;;  %v11365_v16 = vcombine.high %v4462_v4, %v4466_v8  ;;  %v11364_v26 = vcombine.low %v4462_v4, %v4466_v8  ;;  %v4322_v33 = vld [vmem:[#allocation10 + $0xf0] sm:$0xff] }
 0x315   : > { %v4446_v34 = vld [vmem:[#allocation10 + $0x4d0] sm:$0xff] }
 0x316   : > { %5977 = vmatpush2.bf16.msra.mxu0 %v11282_v19  ;;  %v4450_v38 = vld [vmem:[#allocation10 + $0x4f0] sm:$0xff] }
 0x317   : > { %6018 = vmatpush2.bf16.msra.mxu1 %v11410_v24  ;;  %5978 = vmatprep.subr.bf16.mxu0 %v11275_v27  ;;  %v4330_v24 = vld [vmem:[#allocation10 + $0x130] sm:$0xff]  ;;  %v11349_v44 = vcombine.high %v4446_v34, %v4450_v38  ;;  %v11348_v53 = vcombine.low %v4446_v34, %v4450_v38 }
 0x318   : > { %6019 = vmatprep.subr.bf16.mxu1 %v11403_v20  ;;  %v4454_v27 = vld [vmem:[#allocation10 + $0x510] sm:$0xff] }
 0x319   : > { %v4458_v20 = vld [vmem:[#allocation10 + $0x530] sm:$0xff] }
 0x31a   : > { %5979 = vmatpush2.bf16.msra.mxu0 %v11274_v28  ;;  %v11229_v28 = vcombine.high %v4326_v17, %v4330_v24  ;;  %v4310_v48 = vld [vmem:[#allocation10 + $0x90] sm:$0xff] }
 0x31b   : > { %6020 = vmatpush2.bf16.msra.mxu1 %v11402_v29  ;;  %5980 = vmatprep.subr.bf16.mxu0 %v11267_v6  ;;  %v11357_v29 = vcombine.high %v4454_v27, %v4458_v20  ;;  %v4318_v6 = vld [vmem:[#allocation10 + $0xd0] sm:$0xff] }
 0x31c   : > { %6021 = vmatprep.subr.bf16.mxu1 %v11395_v47  ;;  %v11221_v42 = vcombine.high %v4318_v6, %v4322_v33  ;;  %v11220_v52 = vcombine.low %v4318_v6, %v4322_v33 }
 0x31e   : > { %5981 = vmatpush2.bf16.msra.mxu0 %v11266_v35 }
 0x31f   : > { %6022 = vmatpush2.bf16.msra.mxu1 %v11394_v36  ;;  %5982 = vmatprep.subr.bf16.mxu0 %v11259_v37  ;;  %v11228_v37 = vcombine.low %v4326_v17, %v4330_v24 }
 0x320   : > { %6023 = vmatprep.subr.bf16.mxu1 %v11387_v41  ;;  %v11356_v41 = vcombine.low %v4454_v27, %v4458_v20 }
 0x322   : > { %5983 = vmatpush2.bf16.msra.mxu0 %v11258_v39  ;;  %v15250_v56 = vpop.f32.mrf.mxu0 }
 0x323   : > { %6024 = vmatpush2.bf16.msra.mxu1 %v11386_v51  ;;  %v15252_v58 = vpop.f32.mrf.mxu1  ;;  %6034 = vmatprep.subr.bf16.mxu0 %v11253_v57  ;;  %v4314_v51 = vld [vmem:[#allocation10 + $0xb0] sm:$0xff] }
 0x324   : > { %6075 = vmatprep.subr.bf16.mxu1 %v11381_v2  ;;  %v15254_v3 = vpop.f32.mrf.mxu0  ;;  %v4438_v57 = vld [vmem:[#allocation10 + $0x490] sm:$0xff]  ;;  %v11213_v54 = vcombine.high %v4310_v48, %v4314_v51  ;;  %v11212_v9 = vcombine.low %v4310_v48, %v4314_v51 }
 0x325   : > { %v15256_v13 = vpop.f32.mrf.mxu1  ;;  %5985 = vmatmul.mubr.bf16.vlgmr.msra.gmra.mxu0 %v15224_v30  ;;  %v4442_v2 = vld [vmem:[#allocation10 + $0x4b0] sm:$0xff] }
 0x326   : > { %6026 = vmatmul.mubr.bf16.vlgmr.msra.gmra.mxu1 %v15226_v32  ;;  %6035 = vmatpush1.bf16.msra.mxu0 %v11252_v60  ;;  %v15260_v10 = vpop.f32.mrf.mxu0  ;;  %v11341_v55 = vcombine.high %v4438_v57, %v4442_v2  ;;  %v4302_v60 = vld [vmem:[#allocation10 + $0x50] sm:$0xff]  ;;  %v11340_v31 = vcombine.low %v4438_v57, %v4442_v2 }
 0x327   : > { %6076 = vmatpush1.bf16.msra.mxu1 %v11380_v61  ;;  %v15262_v11 = vpop.f32.mrf.mxu1  ;;  %6036 = vmatprep.subr.bf16.mxu0 %v11245_v43  ;;  %v4306_v61 = vld [vmem:[#allocation10 + $0x70] sm:$0xff] }
 0x328   : > { %6077 = vmatprep.subr.bf16.mxu1 %v11373_v62  ;;  %v15264_v18 = vpop.f32.mrf.mxu0  ;;  %6066 = vmatprep.mubr.bf16.mxu0 %v15194_v45  ;;  %v4430_v43 = vld [vmem:[#allocation10 + $0x450] sm:$0xff]  ;;  %v11205_v4 = vcombine.high %v4302_v60, %v4306_v61  ;;  %v11204_v17 = vcombine.low %v4302_v60, %v4306_v61 }
 0x329   : > { %v15266_v19 = vpop.f32.mrf.mxu1  ;;  %6107 = vmatprep.mubr.bf16.mxu1 %v15198_v50  ;;  %v4434_v62 = vld [vmem:[#allocation10 + $0x470] sm:$0xff] }
 0x32a   : > { %6037 = vmatpush1.bf16.msra.mxu0 %v11244_v12  ;;  %v15270_v21 = vpop.f32.mrf.mxu0  ;;  %v11333_v8 = vcombine.high %v4430_v43, %v4434_v62  ;;  %v4294_v12 = vld [vmem:[#allocation10 + $0x10] sm:$0xff]  ;;  %v11332_v24 = vcombine.low %v4430_v43, %v4434_v62 }
 0x32b   : > { %6078 = vmatpush1.bf16.msra.mxu1 %v11372_v14  ;;  %v15272_v22 = vpop.f32.mrf.mxu1  ;;  %6038 = vmatprep.subr.bf16.mxu0 %v11237_v15  ;;  %v4298_v14 = vld [vmem:[#allocation10 + $0x30] sm:$0xff] }
 0x32c   : > { %6079 = vmatprep.subr.bf16.mxu1 %v11365_v16  ;;  %v15274_v47 = vpop.f32.mrf.mxu0  ;;  %v4422_v15 = vld [vmem:[#allocation10 + $0x410] sm:$0xff]  ;;  %v11197_v27 = vcombine.high %v4294_v12, %v4298_v14  ;;  %v11196_v6 = vcombine.low %v4294_v12, %v4298_v14 }
 0x32d   : > { %v15276_v1 = vpop.f32.mrf.mxu1  ;;  %v4426_v16 = vld [vmem:[#allocation10 + $0x430] sm:$0xff] }
 0x32e   : > { %6039 = vmatpush1.bf16.msra.mxu0 %v11236_v23  ;;  %v12333_v35 = vpop.f32.mrf.mxu0  ;;  %v11325_v20 = vcombine.high %v4422_v15, %v4426_v16  ;;  %v4414_v23 = vld [vmem:[#allocation10 + $0x3d0] sm:$0xff]  ;;  %v11324_v33 = vcombine.low %v4422_v15, %v4426_v16 }
 0x32f   : > { %6080 = vmatpush1.bf16.msra.mxu1 %v11364_v26  ;;  %v12361_v36 = vpop.f32.mrf.mxu1  ;;  %6040 = vmatprep.subr.bf16.mxu0 %v11229_v28  ;;  %v4418_v26 = vld [vmem:[#allocation10 + $0x3f0] sm:$0xff] }
 0x330   : > { %6081 = vmatprep.subr.bf16.mxu1 %v11357_v29  ;;  %v12334_v49 = vpop.f32.mrf.mxu0  ;;  %v4542_v28 = vld [vmem:[#allocation10 + $0x7d0] sm:$0xff]  ;;  %v11317_v34 = vcombine.high %v4414_v23, %v4418_v26 }
 0x331   : > { %v12362_v39 = vpop.f32.mrf.mxu1  ;;  %v4546_v29 = vld [vmem:[#allocation10 + $0x7f0] sm:$0xff] }
 0x332   : > { %6041 = vmatpush1.bf16.msra.mxu0 %v11228_v37  ;;  %v11445_v38 = vcombine.high %v4542_v28, %v4546_v29  ;;  %v4406_v35 = vld [vmem:[#allocation10 + $0x390] sm:$0xff] }
 0x333   : > { %6082 = vmatpush1.bf16.msra.mxu1 %v11356_v41  ;;  %6042 = vmatprep.subr.bf16.mxu0 %v11221_v42  ;;  %v4410_v36 = vld [vmem:[#allocation10 + $0x3b0] sm:$0xff]  ;;  %v11316_v42 = vcombine.low %v4414_v23, %v4418_v26 }
 0x334   : > { %6083 = vmatprep.subr.bf16.mxu1 %v11349_v44  ;;  %v4534_v37 = vld [vmem:[#allocation10 + $0x790] sm:$0xff]  ;;  %v11444_v44 = vcombine.low %v4542_v28, %v4546_v29  ;;  %v11309_v39 = vcombine.high %v4406_v35, %v4410_v36  ;;  %v11308_v60 = vcombine.low %v4406_v35, %v4410_v36 }
 0x335   : > { %v4538_v41 = vld [vmem:[#allocation10 + $0x7b0] sm:$0xff] }
 0x336   : > { %6043 = vmatpush1.bf16.msra.mxu0 %v11220_v52  ;;  %v11437_v51 = vcombine.high %v4534_v37, %v4538_v41  ;;  %v4398_v57 = vld [vmem:[#allocation10 + $0x350] sm:$0xff]  ;;  %v11436_v61 = vcombine.low %v4534_v37, %v4538_v41 }
 0x337   : > { %6084 = vmatpush1.bf16.msra.mxu1 %v11348_v53  ;;  %6044 = vmatprep.subr.bf16.mxu0 %v11213_v54  ;;  %v4402_v2 = vld [vmem:[#allocation10 + $0x370] sm:$0xff] }
 0x338   : > { %6085 = vmatprep.subr.bf16.mxu1 %v11341_v55  ;;  %v4526_v52 = vld [vmem:[#allocation10 + $0x750] sm:$0xff] }
 0x339   : > { %v4530_v53 = vld [vmem:[#allocation10 + $0x770] sm:$0xff] }
 0x33a   : > { %6045 = vmatpush1.bf16.msra.mxu0 %v11212_v9  ;;  %v11301_v9 = vcombine.high %v4398_v57, %v4402_v2  ;;  %v4518_v12 = vld [vmem:[#allocation10 + $0x710] sm:$0xff] }
 0x33b   : > { %6086 = vmatpush1.bf16.msra.mxu1 %v11340_v31  ;;  %6046 = vmatprep.subr.bf16.mxu0 %v11205_v4  ;;  %v11429_v31 = vcombine.high %v4526_v52, %v4530_v53  ;;  %v4390_v4 = vld [vmem:[#allocation10 + $0x310] sm:$0xff] }
 0x33c   : > { %6087 = vmatprep.subr.bf16.mxu1 %v11333_v8  ;;  %v4394_v8 = vld [vmem:[#allocation10 + $0x330] sm:$0xff] }
 0x33d   : > { %v4522_v14 = vld [vmem:[#allocation10 + $0x730] sm:$0xff]  ;;  %v11293_v23 = vcombine.high %v4390_v4, %v4394_v8  ;;  %v11292_v35 = vcombine.low %v4390_v4, %v4394_v8 }
 0x33e   : > { %6047 = vmatpush1.bf16.msra.mxu0 %v11204_v17  ;;  %v11300_v17 = vcombine.low %v4398_v57, %v4402_v2  ;;  %v11421_v26 = vcombine.high %v4518_v12, %v4522_v14  ;;  %v4382_v28 = vld [vmem:[#allocation10 + $0x2d0] sm:$0xff]  ;;  %v11420_v36 = vcombine.low %v4518_v12, %v4522_v14 }
 0x33f   : > { %6088 = vmatpush1.bf16.msra.mxu1 %v11332_v24  ;;  %6048 = vmatprep.subr.bf16.mxu0 %v11197_v27  ;;  %v11428_v24 = vcombine.low %v4526_v52, %v4530_v53  ;;  %v4386_v29 = vld [vmem:[#allocation10 + $0x2f0] sm:$0xff] }
 0x340   : > { %6089 = vmatprep.subr.bf16.mxu1 %v11325_v20  ;;  %v4502_v57 = vld [vmem:[#allocation10 + $0x690] sm:$0xff] }
 0x341   : > { %v4506_v2 = vld [vmem:[#allocation10 + $0x6b0] sm:$0xff] }
 0x342   : > { %6049 = vmatpush1.bf16.msra.mxu0 %v11196_v6  ;;  %v4510_v6 = vld [vmem:[#allocation10 + $0x6d0] sm:$0xff] }
 0x343   : > { %6090 = vmatpush1.bf16.msra.mxu1 %v11324_v33  ;;  %v15278_v48 = vpop.f32.mrf.mxu0  ;;  %6050 = vmatprep.subr.bf16.mxu0 %v11317_v34  ;;  %v4514_v33 = vld [vmem:[#allocation10 + $0x6f0] sm:$0xff] }
 0x344   : > { %v15280_v49 = vpop.f32.mrf.mxu1  ;;  %6091 = vmatprep.subr.bf16.mxu1 %v11445_v38  ;;  %v4366_v4 = vld [vmem:[#allocation10 + $0x250] sm:$0xff] }
 0x345   : > { %v15282_v54 = vpop.f32.mrf.mxu0  ;;  %v4370_v8 = vld [vmem:[#allocation10 + $0x270] sm:$0xff] }
 0x346   : > { %v15284_v55 = vpop.f32.mrf.mxu1  ;;  %6051 = vmatpush2.bf16.msra.mxu0 %v11316_v42  ;;  %v11285_v42 = vcombine.high %v4382_v28, %v4386_v29  ;;  %v4494_v12 = vld [vmem:[#allocation10 + $0x650] sm:$0xff] }
 0x347   : > { %6092 = vmatpush2.bf16.msra.mxu1 %v11444_v44  ;;  %v15286_v43 = vpop.f32.mrf.mxu0  ;;  %6052 = vmatprep.subr.bf16.mxu0 %v11309_v39  ;;  %v11413_v44 = vcombine.high %v4510_v6, %v4514_v33  ;;  %v4374_v39 = vld [vmem:[#allocation10 + $0x290] sm:$0xff] }
 0x348   : > { %v15288_v62 = vpop.f32.mrf.mxu1  ;;  %6093 = vmatprep.subr.bf16.mxu1 %v11437_v51  ;;  %v4378_v51 = vld [vmem:[#allocation10 + $0x2b0] sm:$0xff] }
 0x349   : > { %v15290_v15 = vpop.f32.mrf.mxu0  ;;  %v4498_v14 = vld [vmem:[#allocation10 + $0x670] sm:$0xff] }
 0x34a   : > { %v15292_v16 = vpop.f32.mrf.mxu1  ;;  %6053 = vmatpush2.bf16.msra.mxu0 %v11308_v60  ;;  %v11284_v60 = vcombine.low %v4382_v28, %v4386_v29  ;;  %v4486_v28 = vld [vmem:[#allocation10 + $0x610] sm:$0xff] }
 0x34b   : > { %6094 = vmatpush2.bf16.msra.mxu1 %v11436_v61  ;;  %v15294_v27 = vpop.f32.mrf.mxu0  ;;  %6054 = vmatprep.subr.bf16.mxu0 %v11301_v9  ;;  %v11412_v61 = vcombine.low %v4510_v6, %v4514_v33  ;;  %v11277_v9 = vcombine.high %v4374_v39, %v4378_v51  ;;  %v4490_v29 = vld [vmem:[#allocation10 + $0x630] sm:$0xff]  ;;  %v12326_v6 = vadd.f32 %v15254_v3, %v15250_v56 }
 0x34c   : > { %v15296_v20 = vpop.f32.mrf.mxu1  ;;  %6095 = vmatprep.subr.bf16.mxu1 %v11429_v31  ;;  %v11405_v31 = vcombine.high %v4502_v57, %v4506_v2  ;;  %v11268_v33 = vcombine.low %v4366_v4, %v4370_v8  ;;  %v11388_v3 = vcombine.low %v4486_v28, %v4490_v29 }
 0x34d   : > { %v15298_v34 = vpop.f32.mrf.mxu0 }
 0x34e   : > { %v15300_v38 = vpop.f32.mrf.mxu1  ;;  %6055 = vmatpush2.bf16.msra.mxu0 %v11300_v17  ;;  %v11276_v17 = vcombine.low %v4374_v39, %v4378_v51  ;;  %v4355_v39 = vld [vmem:[#allocation10 + $0x1f8] sm:$0xff]  ;;  %v12329_v51 = vadd.f32 %v15264_v18, %v15260_v10 }
 0x34f   : > { %6096 = vmatpush2.bf16.msra.mxu1 %v11428_v24  ;;  %v12389_v37 = vpop.f32.mrf.mxu0  ;;  %6056 = vmatprep.subr.bf16.mxu0 %v11293_v23  ;;  %v11404_v24 = vcombine.low %v4502_v57, %v4506_v2  ;;  %v11269_v23 = vcombine.high %v4366_v4, %v4370_v8  ;;  %v4479_v57 = vld [vmem:[#allocation10 + $0x5d8] sm:$0xff] }
 0x350   : > { %v12417_v41 = vpop.f32.mrf.mxu1  ;;  %6097 = vmatprep.subr.bf16.mxu1 %v11421_v26  ;;  %v11397_v26 = vcombine.high %v4494_v12, %v4498_v14  ;;  %v11396_v37 = vcombine.low %v4494_v12, %v4498_v14  ;;  %v4483_v2 = vld [vmem:[#allocation10 + $0x5f8] sm:$0xff]  ;;  %v3827_v10 = vadd.f32 %v12329_v51, %v15245_v59  ;;  %v12332_v12 = vadd.f32 %v15274_v47, %v15270_v21 }
 0x351   : > { %v12390_v52 = vpop.f32.mrf.mxu0  ;;  %v4347_v18 = vld [vmem:[#allocation10 + $0x1b8] sm:$0xff] }
 0x352   : > { %v12418_v53 = vpop.f32.mrf.mxu1  ;;  %6057 = vmatpush2.bf16.msra.mxu0 %v11292_v35  ;;  %v4358_v35 = vld [vmem:[#allocation10 + $0x210] sm:$0xff]  ;;  %v3824_v52 = vadd.f32 %v12326_v6, %v15242_v40  ;;  %v4471_v4 = vld [vmem:[#allocation10 + $0x598] sm:$0xff] }
 0x353   : > { %6098 = vmatpush2.bf16.msra.mxu1 %v11420_v36  ;;  %6058 = vmatprep.subr.bf16.mxu0 %v11285_v42  ;;  %v4362_v36 = vld [vmem:[#allocation10 + $0x230] sm:$0xff]  ;;  %v11389_v42 = vcombine.high %v4486_v28, %v4490_v29  ;;  %v4475_v40 = vld [vmem:[#allocation10 + $0x5b8] sm:$0xff]  ;;  %v12360_v29 = vadd.f32 %v15276_v1, %v15272_v22  ;;  %v12413_v22 = vadd.f32 %v15292_v16, %v15288_v62 }
 0x354   : > { %6099 = vmatprep.subr.bf16.mxu1 %v11413_v44  ;;  %v11261_v41 = vcombine.high %v4358_v35, %v4362_v36  ;;  %v4351_v44 = vld [vmem:[#allocation10 + $0x1d8] sm:$0xff]  ;;  %v11260_v56 = vcombine.low %v4358_v35, %v4362_v36  ;;  %v11374_v36 = vcombine.low %v4471_v4, %v4475_v40 }
 0x355   : > { %v11255_v53 = vcombine.high %v4351_v44, %v4355_v39  ;;  %v11254_v14 = vcombine.low %v4351_v44, %v4355_v39  ;;  %v15320_v59 = vld [vmem:[#allocation10 + $0x178] sm:$0xff] }
 0x356   : > { %6059 = vmatpush2.bf16.msra.mxu0 %v11284_v60  ;;  %v12354_v60 = vadd.f32 %v15256_v13, %v15252_v58  ;;  %v12357_v58 = vadd.f32 %v15266_v19, %v15262_v11  ;;  %v12385_v13 = vadd.f32 %v15290_v15, %v15286_v43  ;;  %v4463_v21 = vld [vmem:[#allocation10 + $0x558] sm:$0xff]  ;;  %v3832_v43 = vadd.f32 %v12332_v12, %v15248_v25 }
 0x357   : > { %6100 = vmatpush2.bf16.msra.mxu1 %v11412_v61  ;;  %6060 = vmatprep.subr.bf16.mxu0 %v11277_v9  ;;  %v12382_v61 = vadd.f32 %v15282_v54, %v15278_v48  ;;  %v11383_v9 = vcombine.high %v4479_v57, %v4483_v2  ;;  %v11382_v48 = vcombine.low %v4479_v57, %v4483_v2  ;;  %v15318_v54 = vld [vmem:[#allocation10 + $0x158] sm:$0xff] }
 0x358   : > { %6101 = vmatprep.subr.bf16.mxu1 %v11405_v31  ;;  %v4343_v31 = vld [vmem:[#allocation10 + $0x198] sm:$0xff]  ;;  %v3872_v8 = vadd.f32 %v12354_v60, %v3824_v52  ;;  %v12410_v15 = vadd.f32 %v15284_v55, %v15280_v49  ;;  %v11239_v28 = vcombine.high %v15318_v54, %v15320_v59  ;;  %v12388_v49 = vadd.f32 %v15298_v34, %v15294_v27 }
 0x359   : > { %v4467_v47 = vld [vmem:[#allocation10 + $0x578] sm:$0xff]  ;;  %v11246_v19 = vcombine.low %v4343_v31, %v4347_v18  ;;  %v11238_v2 = vcombine.low %v15318_v54, %v15320_v59  ;;  %v3880_v52 = vadd.f32 %v12360_v29, %v3832_v43  ;;  %v12416_v12 = vadd.f32 %v15300_v38, %v15296_v20 }
 0x35a   : > { %6061 = vmatpush2.bf16.msra.mxu0 %v11276_v17  ;;  %v3920_v17 = vadd.f32 %v12382_v61, %v3872_v8  ;;  %v15331_v25 = vld [vmem:[#allocation10 + $0x118] sm:$0xff] }
 0x35b   : > { %6102 = vmatpush2.bf16.msra.mxu1 %v11404_v24  ;;  %6062 = vmatprep.subr.bf16.mxu0 %v11269_v23  ;;  %v11247_v24 = vcombine.high %v4343_v31, %v4347_v18  ;;  %v11375_v23 = vcombine.high %v4471_v4, %v4475_v40  ;;  %v4331_v44 = vld [vmem:[#allocation10 + $0x138] sm:$0xff] }
 0x35c   : > { %6103 = vmatprep.subr.bf16.mxu1 %v11397_v26  ;;  %v3875_v26 = vadd.f32 %v12357_v58, %v3827_v10  ;;  %v4455_v39 = vld [vmem:[#allocation10 + $0x518] sm:$0xff]  ;;  %v11231_v62 = vcombine.high %v15331_v25, %v4331_v44  ;;  %v11230_v8 = vcombine.low %v15331_v25, %v4331_v44 }
 0x35d   : > { %v4459_v51 = vld [vmem:[#allocation10 + $0x538] sm:$0xff] }
 0x35e   : > { %6063 = vmatpush2.bf16.msra.mxu0 %v11268_v33  ;;  %v3923_v6 = vadd.f32 %v12385_v13, %v3875_v26  ;;  %v11359_v16 = vcombine.high %v4455_v39, %v4459_v51  ;;  %v4319_v61 = vld [vmem:[#allocation10 + $0xd8] sm:$0xff]  ;;  %v11358_v54 = vcombine.low %v4455_v39, %v4459_v51 }
 0x35f   : > { %6104 = vmatpush2.bf16.msra.mxu1 %v11396_v37  ;;  %6064 = vmatprep.subr.bf16.mxu0 %v11261_v41  ;;  %v11367_v41 = vcombine.high %v4463_v21, %v4467_v47  ;;  %v4451_v18 = vld [vmem:[#allocation10 + $0x4f8] sm:$0xff] }
 0x360   : > { %6105 = vmatprep.subr.bf16.mxu1 %v11389_v42  ;;  %v3968_v42 = vadd.f32 %v12410_v15, %v3920_v17  ;;  %v4315_v38 = vld [vmem:[#allocation10 + $0xb8] sm:$0xff] }
 0x361   : > { %v4307_v25 = vld [vmem:[#allocation10 + $0x78] sm:$0xff] }
 0x362   : > { %6065 = vmatpush2.bf16.msra.mxu0 %v11260_v56  ;;  %v11366_v56 = vcombine.low %v4463_v21, %v4467_v47  ;;  %v4311_v47 = vld [vmem:[#allocation10 + $0x98] sm:$0xff] }
 0x363   : > { %6106 = vmatpush2.bf16.msra.mxu1 %v11388_v3  ;;  %6116 = vmatprep.subr.bf16.mxu0 %v11255_v53  ;;  %v3971_v3 = vadd.f32 %v12413_v22, %v3923_v6  ;;  %v4295_v22 = vld [vmem:[#allocation10 + $0x18] sm:$0xff] }
 0x364   : > { %6157 = vmatprep.subr.bf16.mxu1 %v11383_v9  ;;  %v12436_v35 = vpop.f32.mrf.mxu0  ;;  %v3928_v9 = vadd.f32 %v12388_v49, %v3880_v52  ;;  %v4435_v49 = vld [vmem:[#allocation10 + $0x478] sm:$0xff] }
 0x365   : > { %v12464_v11 = vpop.f32.mrf.mxu1  ;;  %6067 = vmatmul.mubr.bf16.vlgmr.msra.gmra.mxu0 %v15224_v30 }
 0x366   : > { %6108 = vmatmul.mubr.bf16.vlgmr.msra.gmra.mxu1 %v15226_v32  ;;  %6117 = vmatpush1.bf16.msra.mxu0 %v11254_v14  ;;  %v12437_v33 = vpop.f32.mrf.mxu0 }
 0x367   : > { %6158 = vmatpush1.bf16.msra.mxu1 %v11382_v48  ;;  %v12465_v37 = vpop.f32.mrf.mxu1  ;;  %v12438_v55 = vadd.f32 %v12437_v33, %v12436_v35  ;;  %6118 = vmatprep.subr.bf16.mxu0 %v11247_v24  ;;  %v3976_v24 = vadd.f32 %v12416_v12, %v3928_v9  ;;  %v4439_v35 = vld [vmem:[#allocation10 + $0x498] sm:$0xff]  ;;  %v11215_v33 = vcombine.high %v4311_v47, %v4315_v38 }
 0x368   : > { %6159 = vmatprep.subr.bf16.mxu1 %v11375_v23  ;;  %v12439_v1 = vpop.f32.mrf.mxu0  ;;  %6148 = vmatprep.mubr.bf16.mxu0 %v15194_v45  ;;  %v12466_v34 = vadd.f32 %v12465_v37, %v12464_v11  ;;  %v4323_v45 = vld [vmem:[#allocation10 + $0xf8] sm:$0xff] }
 0x369   : > { %v12467_v57 = vpop.f32.mrf.mxu1  ;;  %6189 = vmatprep.mubr.bf16.mxu1 %v15198_v50  ;;  %v4016_v27 = vadd.f32 %v12438_v55, %v3968_v42  ;;  %v4447_v50 = vld [vmem:[#allocation10 + $0x4d8] sm:$0xff]  ;;  %v11223_v59 = vcombine.high %v4319_v61, %v4323_v45  ;;  %v11214_v55 = vcombine.low %v4311_v47, %v4315_v38 }
 0x36a   : > { %6119 = vmatpush1.bf16.msra.mxu0 %v11246_v19  ;;  %v12440_v53 = vpop.f32.mrf.mxu0  ;;  %v11351_v17 = vcombine.high %v4447_v50, %v4451_v18  ;;  %v4443_v11 = vld [vmem:[#allocation10 + $0x4b8] sm:$0xff]  ;;  %v11350_v29 = vcombine.low %v4447_v50, %v4451_v18 }
 0x36b   : > { %6160 = vmatpush1.bf16.msra.mxu1 %v11374_v36  ;;  %v12468_v60 = vpop.f32.mrf.mxu1  ;;  %v15342_v31 = vadd.f32 %v12466_v34, %v4016_v27  ;;  %v12441_v10 = vadd.f32 %v12440_v53, %v12439_v1  ;;  %6120 = vmatprep.subr.bf16.mxu0 %v11239_v28  ;;  %v11222_v28 = vcombine.low %v4319_v61, %v4323_v45  ;;  %v4431_v42 = vld [vmem:[#allocation10 + $0x458] sm:$0xff] }
 0x36c   : > { %6161 = vmatprep.subr.bf16.mxu1 %v11367_v41  ;;  %v12442_v4 = vpop.f32.mrf.mxu0  ;;  %v12469_v58 = vadd.f32 %v12468_v60, %v12467_v57  ;;  %v11343_v37 = vcombine.high %v4439_v35, %v4443_v11  ;;  %v4303_v41 = vld [vmem:[#allocation10 + $0x58] sm:$0xff]  ;;  %v11342_v44 = vcombine.low %v4439_v35, %v4443_v11  ;;  %v11335_v51 = vcombine.high %v4431_v42, %v4435_v49 }
 0x36d   : > { %v12470_v40 = vpop.f32.mrf.mxu1  ;;  %13227 = vrcp.f32 %v15342_v31  ;;  %v4019_v14 = vadd.f32 %v12441_v10, %v3971_v3  ;;  %v11207_v39 = vcombine.high %v4303_v41, %v4307_v25  ;;  %v4299_v1 = vld [vmem:[#allocation10 + $0x38] sm:$0xff]  ;;  %v11206_v27 = vcombine.low %v4303_v41, %v4307_v25 }
 0x36e   : > { %6121 = vmatpush1.bf16.msra.mxu0 %v11238_v2  ;;  %v12443_v13 = vpop.f32.mrf.mxu0  ;;  %v4423_v57 = vld [vmem:[#allocation10 + $0x418] sm:$0xff]  ;;  %v11334_v34 = vcombine.low %v4431_v42, %v4435_v49  ;;  %v11198_v45 = vcombine.low %v4295_v22, %v4299_v1  ;;  %v13708_v42 = vmov 1  }
 0x36f   : > { %6162 = vmatpush1.bf16.msra.mxu1 %v11366_v56  ;;  %v12471_v48 = vpop.f32.mrf.mxu1  ;;  %v15348_v23 = vadd.f32 %v12469_v58, %v4019_v14  ;;  %v12444_v21 = vadd.f32 %v12443_v13, %v12442_v4  ;;  %6122 = vmatprep.subr.bf16.mxu0 %v11231_v62  ;;  %v4427_v2 = vld [vmem:[#allocation10 + $0x438] sm:$0xff]  ;;  %v11199_v56 = vcombine.high %v4295_v22, %v4299_v1 }
 0x370   : > { %6163 = vmatprep.subr.bf16.mxu1 %v11359_v16  ;;  %v12445_v26 = vpop.f32.mrf.mxu0  ;;  %v12472_v36 = vadd.f32 %v12471_v48, %v12470_v40  ;;  %v11327_v3 = vcombine.high %v4423_v57, %v4427_v2  ;;  %v4415_v60 = vld [vmem:[#allocation10 + $0x3d8] sm:$0xff]  ;;  %v11326_v50 = vcombine.low %v4423_v57, %v4427_v2 }
 0x371   : > { %v12473_v20 = vpop.f32.mrf.mxu1  ;;  %13229 = vrcp.f32 %v15348_v23  ;;  %v4024_v19 = vadd.f32 %v12444_v21, %v3976_v24  ;;  %v4419_v62 = vld [vmem:[#allocation10 + $0x3f8] sm:$0xff] }
 0x372   : > { %6123 = vmatpush1.bf16.msra.mxu0 %v11230_v8  ;;  %v12446_v43 = vpop.f32.mrf.mxu0  ;;  %v4543_v16 = vld [vmem:[#allocation10 + $0x7d8] sm:$0xff]  ;;  %v11319_v18 = vcombine.high %v4415_v60, %v4419_v62 }
 0x373   : > { %6164 = vmatpush1.bf16.msra.mxu1 %v11358_v54  ;;  %v12474_v15 = vpop.f32.mrf.mxu1  ;;  %v15351_v6 = vadd.f32 %v12472_v36, %v4024_v19  ;;  %6124 = vmatprep.subr.bf16.mxu0 %v11223_v59  ;;  %v4547_v61 = vld [vmem:[#allocation10 + $0x7f8] sm:$0xff]  ;;  %v11318_v59 = vcombine.low %v4415_v60, %v4419_v62 }
 0x374   : > { %6165 = vmatprep.subr.bf16.mxu1 %v11351_v17  ;;  %v11447_v40 = vcombine.high %v4543_v16, %v4547_v61  ;;  %v4407_v12 = vld [vmem:[#allocation10 + $0x398] sm:$0xff]  ;;  %v11446_v17 = vcombine.low %v4543_v16, %v4547_v61  ;;  %v13710_v16 = vmov 0  }
 0x375   : > { %13231 = vrcp.f32 %v15351_v6  ;;  %v4411_v14 = vld [vmem:[#allocation10 + $0x3b8] sm:$0xff] }
 0x376   : > { %6125 = vmatpush1.bf16.msra.mxu0 %v11222_v28  ;;  %v4535_v58 = vld [vmem:[#allocation10 + $0x798] sm:$0xff]  ;;  %v11311_v24 = vcombine.high %v4407_v12, %v4411_v14  ;;  %v11310_v36 = vcombine.low %v4407_v12, %v4411_v14 }
 0x377   : > { %6166 = vmatpush1.bf16.msra.mxu1 %v11350_v29  ;;  %6126 = vmatprep.subr.bf16.mxu0 %v11215_v33  ;;  %v4539_v13 = vld [vmem:[#allocation10 + $0x7b8] sm:$0xff] }
 0x378   : > { %6167 = vmatprep.subr.bf16.mxu1 %v11343_v37  ;;  %v11439_v47 = vcombine.high %v4535_v58, %v4539_v13  ;;  %v4399_v20 = vld [vmem:[#allocation10 + $0x358] sm:$0xff]  ;;  %v11438_v43 = vcombine.low %v4535_v58, %v4539_v13 }
 0x379   : > { %v4403_v38 = vld [vmem:[#allocation10 + $0x378] sm:$0xff] }
 0x37a   : > { %v13228_v52 = vpop.eup %13227  ;;  %6127 = vmatpush1.bf16.msra.mxu0 %v11214_v55  ;;  %v4527_v35 = vld [vmem:[#allocation10 + $0x758] sm:$0xff]  ;;  %v11303_v28 = vcombine.high %v4399_v20, %v4403_v38  ;;  %v11302_v49 = vcombine.low %v4399_v20, %v4403_v38  ;;  %v6266_v20 = vld [vmem:[#allocation13 + $0x1e0] sm:$0xff] }
 0x37b   : > { %6168 = vmatpush1.bf16.msra.mxu1 %v11342_v44  ;;  %6128 = vmatprep.subr.bf16.mxu0 %v11207_v39  ;;  %v4080_v53 = vmul.f32 %v13228_v52, %v15342_v31  ;;  %v4531_v11 = vld [vmem:[#allocation10 + $0x778] sm:$0xff]  ;;  %v11190_v44 = vld [vmem:[%s707_s23] ss:$0 sm:$0xff]  ;;  %v6390_v38 = vld [vmem:[#allocation13 + $0x5c0] sm:$0xff]  ;;  %s15748_s23 = smov %s15747_s29 }
 0x37c   : > { %6169 = vmatprep.subr.bf16.mxu1 %v11335_v51  ;;  %v11431_v29 = vcombine.high %v4527_v35, %v4531_v11  ;;  %v4391_v33 = vld [vmem:[#allocation10 + $0x318] sm:$0xff]  ;;  %v11430_v55 = vcombine.low %v4527_v35, %v4531_v11  ;;  %v6394_v35 = vld [vmem:[#allocation13 + $0x5e0] sm:$0xff] }
 0x37d   : > { %v4083_v9 = vsub.f32 2.0, %v4080_v53  ;;  %v4395_v37 = vld [vmem:[#allocation10 + $0x338] sm:$0xff] }
 0x37e   : > { %v13230_v10 = vpop.eup %13229  ;;  %6129 = vmatpush1.bf16.msra.mxu0 %v11206_v27  ;;  %v4519_v41 = vld [vmem:[#allocation10 + $0x718] sm:$0xff]  ;;  %v11295_v39 = vcombine.high %v4391_v33, %v4395_v37 }
 0x37f   : > { %6170 = vmatpush1.bf16.msra.mxu1 %v11334_v34  ;;  %6130 = vmatprep.subr.bf16.mxu0 %v11199_v56  ;;  %v4086_v4 = vmul.f32 %v13228_v52, %v4083_v9  ;;  %v4081_v8 = vmul.f32 %v13230_v10, %v15348_v23  ;;  %v4523_v25 = vld [vmem:[#allocation10 + $0x738] sm:$0xff]  ;;  %v11294_v52 = vcombine.low %v4391_v33, %v4395_v37  ;;  %v6386_v33 = vld [vmem:[#allocation13 + $0x5a0] sm:$0xff]  ;;  %v15369_v37 = vld [vmem:[#allocation11] sm:$0xff] }
 0x380   : > { %6171 = vmatprep.subr.bf16.mxu1 %v11327_v3  ;;  %v11423_v51 = vcombine.high %v4519_v41, %v4523_v25  ;;  %v4383_v22 = vld [vmem:[#allocation10 + $0x2d8] sm:$0xff]  ;;  %v11422_v27 = vcombine.low %v4519_v41, %v4523_v25  ;;  %v11632_v25 = vcombine.low %v6390_v38, %v6394_v35 }
 0x381   : > { %4091 = vperm.xlu1 %12702, %v4086_v4   ;;  %v4084_v48 = vsub.f32 2.0, %v4081_v8  ;;  %v4387_v1 = vld [vmem:[#allocation10 + $0x2f8] sm:$0xff] }
 0x382   : > { %v13232_v54 = vpop.eup %13231  ;;  %6131 = vmatpush1.bf16.msra.mxu0 %v11198_v45  ;;  %v4511_v57 = vld [vmem:[#allocation10 + $0x6d8] sm:$0xff]  ;;  %v11287_v34 = vcombine.high %v4383_v22, %v4387_v1  ;;  %v11286_v61 = vcombine.low %v4383_v22, %v4387_v1  ;;  %v6374_v22 = vld [vmem:[#allocation13 + $0x540] sm:$0xff] }
 0x383   : > { %6172 = vmatpush1.bf16.msra.mxu1 %v11326_v50  ;;  %6132 = vmatprep.subr.bf16.mxu0 %v11319_v18  ;;  %v4087_v21 = vmul.f32 %v13230_v10, %v4084_v48  ;;  %v4082_v26 = vmul.f32 %v13232_v54, %v15351_v6  ;;  %v4515_v2 = vld [vmem:[#allocation10 + $0x6f8] sm:$0xff]  ;;  %v6378_v1 = vld [vmem:[#allocation13 + $0x560] sm:$0xff] }
 0x384   : > { %6173 = vmatprep.subr.bf16.mxu1 %v11447_v40  ;;  %v11415_v56 = vcombine.high %v4511_v57, %v4515_v2  ;;  %v4375_v3 = vld [vmem:[#allocation10 + $0x298] sm:$0xff]  ;;  %v11414_v9 = vcombine.low %v4511_v57, %v4515_v2 }
 0x385   : > { %4096 = vperm.xlu0 %12703, %v4087_v21   ;;  %v4085_v19 = vsub.f32 2.0, %v4082_v26  ;;  %v4379_v53 = vld [vmem:[#allocation10 + $0x2b8] sm:$0xff]  ;;  %v6262_v26 = vld [vmem:[#allocation13 + $0x1c0] sm:$0xff] }
 0x386   : > { %6133 = vmatpush2.bf16.msra.mxu0 %v11318_v59  ;;  %v4503_v60 = vld [vmem:[#allocation10 + $0x698] sm:$0xff]  ;;  %v11279_v10 = vcombine.high %v4375_v3, %v4379_v53  ;;  %v11278_v8 = vcombine.low %v4375_v3, %v4379_v53  ;;  %v11504_v41 = vcombine.low %v6262_v26, %v6266_v20  ;;  %v11617_v53 = vcombine.high %v6374_v22, %v6378_v1 }
 0x387   : > { %6174 = vmatpush2.bf16.msra.mxu1 %v11446_v17  ;;  %6134 = vmatprep.subr.bf16.mxu0 %v11311_v24  ;;  %v4088_v15 = vmul.f32 %v13232_v54, %v4085_v19  ;;  %v4507_v62 = vld [vmem:[#allocation10 + $0x6b8] sm:$0xff] }
 0x388   : > { %6175 = vmatprep.subr.bf16.mxu1 %v11439_v47  ;;  %v11407_v45 = vcombine.high %v4503_v60, %v4507_v62  ;;  %v4367_v50 = vld [vmem:[#allocation10 + $0x258] sm:$0xff]  ;;  %v11406_v12 = vcombine.low %v4503_v60, %v4507_v62  ;;  %v6238_v62 = vld [vmem:[#allocation13 + $0x100] sm:$0xff] }
 0x389   : > { %4101 = vperm.xlu1 %12702, %v4088_v15   ;;  %12711 = vset.pattern.permute.xlu0 %v13708_v42  ;;  %v4371_v18 = vld [vmem:[#allocation10 + $0x278] sm:$0xff]  ;;  %v11633_v15 = vcombine.high %v6390_v38, %v6394_v35  ;;  %v6354_v38 = vld [vmem:[#allocation13 + $0x4a0] sm:$0xff] }
 0x38a   : > { %6135 = vmatpush2.bf16.msra.mxu0 %v11310_v36  ;;  %v4495_v4 = vld [vmem:[#allocation10 + $0x658] sm:$0xff]  ;;  %v11271_v14 = vcombine.high %v4367_v50, %v4371_v18  ;;  %v11270_v17 = vcombine.low %v4367_v50, %v4371_v18  ;;  %v11505_v36 = vcombine.high %v6262_v26, %v6266_v20  ;;  %v6370_v50 = vld [vmem:[#allocation13 + $0x520] sm:$0xff] }
 0x38b   : > { %6176 = vmatpush2.bf16.msra.mxu1 %v11438_v43  ;;  %6136 = vmatprep.subr.bf16.mxu0 %v11303_v28  ;;  %v4499_v40 = vld [vmem:[#allocation10 + $0x678] sm:$0xff]  ;;  %v6254_v43 = vld [vmem:[#allocation13 + $0x180] sm:$0xff] }
 0x38c   : > { %6177 = vmatprep.subr.bf16.mxu1 %v11431_v29  ;;  %v11399_v58 = vcombine.high %v4495_v4, %v4499_v40  ;;  %v4359_v13 = vld [vmem:[#allocation10 + $0x218] sm:$0xff]  ;;  %v11398_v24 = vcombine.low %v4495_v4, %v4499_v40  ;;  %v6258_v28 = vld [vmem:[#allocation13 + $0x1a0] sm:$0xff] }
 0x38d   : > { %4191 = vrot.lane.b32.xlu1 %v11190_v44, %s13709_s18  ;;  %v4363_v48 = vld [vmem:[#allocation10 + $0x238] sm:$0xff]  ;;  %v6382_v29 = vld [vmem:[#allocation13 + $0x580] sm:$0xff]  ;;  %s15627_s18 = scalar_lea.hbm %s15747_s29, %s12024_s5 }
 0x38e   : > { %6137 = vmatpush2.bf16.msra.mxu0 %v11302_v49  ;;  %12704 = vset.pattern.permute.xlu1 %v13710_v16  ;;  %v4487_v54 = vld [vmem:[#allocation10 + $0x618] sm:$0xff]  ;;  %v11263_v21 = vcombine.high %v4359_v13, %v4363_v48  ;;  %v11262_v11 = vcombine.low %v4359_v13, %v4363_v48  ;;  %v11497_v49 = vcombine.high %v6254_v43, %v6258_v28  ;;  %v6358_v48 = vld [vmem:[#allocation13 + $0x4c0] sm:$0xff] }
 0x38f   : > { %6178 = vmatpush2.bf16.msra.mxu1 %v11430_v55  ;;  %6138 = vmatprep.subr.bf16.mxu0 %v11295_v39  ;;  %v4491_v59 = vld [vmem:[#allocation10 + $0x638] sm:$0xff]  ;;  %v6246_v55 = vld [vmem:[#allocation13 + $0x140] sm:$0xff]  ;;  %v5837_v39 = vrot.slane %v15369_v37, %v15168_v63 }
 0x390   : > { %6179 = vmatprep.subr.bf16.mxu1 %v11423_v51  ;;  %v11391_v47 = vcombine.high %v4487_v54, %v4491_v59  ;;  %v11390_v19 = vcombine.low %v4487_v54, %v4491_v59  ;;  %v6250_v51 = vld [vmem:[#allocation13 + $0x160] sm:$0xff] }
 0x391   : > { %4228 = vperm.xlu1 %12704, %v11190_v44   ;;  %v11625_v44 = vcombine.high %v6382_v29, %v6386_v33  ;;  %v11489_v3 = vcombine.high %v6246_v55, %v6250_v51  ;;  %v6362_v54 = vld [vmem:[#allocation13 + $0x4e0] sm:$0xff] }
 0x392   : > { %6139 = vmatpush2.bf16.msra.mxu0 %v11294_v52  ;;  %v11496_v52 = vcombine.low %v6254_v43, %v6258_v28  ;;  %v11601_v26 = vcombine.high %v6358_v48, %v6362_v54  ;;  %v6350_v20 = vld [vmem:[#allocation13 + $0x480] sm:$0xff] }
 0x393   : > { %6180 = vmatpush2.bf16.msra.mxu1 %v11422_v27  ;;  %6140 = vmatprep.subr.bf16.mxu0 %v11287_v34  ;;  %v11624_v27 = vcombine.low %v6382_v29, %v6386_v33  ;;  %v6218_v43 = vld [vmem:[#allocation13 + $0x60] sm:$0xff] }
 0x394   : > { %6181 = vmatprep.subr.bf16.mxu1 %v11415_v56  ;;  %v6342_v28 = vld [vmem:[#allocation13 + $0x440] sm:$0xff] }
 0x395   : > { %v6346_v29 = vld [vmem:[#allocation13 + $0x460] sm:$0xff] }
 0x396   : > { %6141 = vmatpush2.bf16.msra.mxu0 %v11286_v61  ;;  %v6242_v61 = vld [vmem:[#allocation13 + $0x120] sm:$0xff] }
 0x397   : > { %6182 = vmatpush2.bf16.msra.mxu1 %v11414_v9  ;;  %6142 = vmatprep.subr.bf16.mxu0 %v11279_v10  ;;  %v11481_v40 = vcombine.high %v6238_v62, %v6242_v61  ;;  %v11480_v59 = vcombine.low %v6238_v62, %v6242_v61 }
 0x398   : > { %6183 = vmatprep.subr.bf16.mxu1 %v11407_v45  ;;  %v6366_v45 = vld [vmem:[#allocation13 + $0x500] sm:$0xff] }
 0x399   : > { %v11609_v13 = vcombine.high %v6366_v45, %v6370_v50 }
 0x39a   : > { %6143 = vmatpush2.bf16.msra.mxu0 %v11278_v8  ;;  %v11616_v8 = vcombine.low %v6374_v22, %v6378_v1 }
 0x39b   : > { %6184 = vmatpush2.bf16.msra.mxu1 %v11406_v12  ;;  %6144 = vmatprep.subr.bf16.mxu0 %v11271_v14  ;;  %v6230_v14 = vld [vmem:[#allocation13 + $0xc0] sm:$0xff] }
 0x39c   : > { %6185 = vmatprep.subr.bf16.mxu1 %v11399_v58  ;;  %v6234_v58 = vld [vmem:[#allocation13 + $0xe0] sm:$0xff] }
 0x39d   : > { %v11472_v35 = vcombine.low %v6230_v14, %v6234_v58 }
 0x39e   : > { %6145 = vmatpush2.bf16.msra.mxu0 %v11270_v17  ;;  %v11473_v17 = vcombine.high %v6230_v14, %v6234_v58  ;;  %v6438_v58 = vld [vmem:[#allocation13 + $0x740] sm:$0xff] }
 0x39f   : > { %6186 = vmatpush2.bf16.msra.mxu1 %v11398_v24  ;;  %6146 = vmatprep.subr.bf16.mxu0 %v11263_v21  ;;  %v11608_v24 = vcombine.low %v6366_v45, %v6370_v50  ;;  %v6222_v21 = vld [vmem:[#allocation13 + $0x80] sm:$0xff] }
 0x3a0   : > { %6187 = vmatprep.subr.bf16.mxu1 %v11391_v47  ;;  %v6226_v47 = vld [vmem:[#allocation13 + $0xa0] sm:$0xff] }
 0x3a1   : > { %v11464_v33 = vcombine.low %v6222_v21, %v6226_v47  ;;  %v6446_v50 = vld [vmem:[#allocation13 + $0x780] sm:$0xff] }
 0x3a2   : > { %6147 = vmatpush2.bf16.msra.mxu0 %v11262_v11  ;;  %v11465_v11 = vcombine.high %v6222_v21, %v6226_v47  ;;  %v6430_v47 = vld [vmem:[#allocation13 + $0x700] sm:$0xff] }
 0x3a3   : > { %6188 = vmatpush2.bf16.msra.mxu1 %v11390_v19  ;;  %9320 = vmatprep.subr.bf16.mxu0 %v11505_v36  ;;  %v11600_v19 = vcombine.low %v6358_v48, %v6362_v54  ;;  %v6214_v36 = vld [vmem:[#allocation13 + $0x40] sm:$0xff] }
 0x3a4   : > { %9361 = vmatprep.subr.bf16.mxu1 %v11633_v15  ;;  %v11593_v15 = vcombine.high %v6350_v20, %v6354_v38  ;;  %v11456_v22 = vcombine.low %v6214_v36, %v6218_v43 }
 0x3a5   : > { %v15373_v57 = vpop.f32.mrf.mxu0  ;;  %6149 = vmatmul.mubr.bf16.vlgmr.msra.gmra.mxu0 %v15224_v30 }
 0x3a6   : > { %v15375_v2 = vpop.f32.mrf.mxu1  ;;  %6190 = vmatmul.mubr.bf16.vlgmr.msra.gmra.mxu1 %v15226_v32  ;;  %9321 = vmatpush1.bf16.msra.mxu0 %v11504_v41  ;;  %v11488_v32 = vcombine.low %v6246_v55, %v6250_v51  ;;  %v11457_v41 = vcombine.high %v6214_v36, %v6218_v43  ;;  %v6210_v55 = vld [vmem:[#allocation13 + $0x20] sm:$0xff] }
 0x3a7   : > { %9362 = vmatpush1.bf16.msra.mxu1 %v11632_v25  ;;  %v5906_v34 = vpop.f32.mrf.mxu0  ;;  %9322 = vmatprep.subr.bf16.mxu0 %v11497_v49  ;;  %v11592_v25 = vcombine.low %v6350_v20, %v6354_v38  ;;  %v6206_v49 = vld [vmem:[#allocation13] sm:$0xff] }
 0x3a8   : > { %v5947_v56 = vpop.f32.mrf.mxu1  ;;  %9363 = vmatprep.subr.bf16.mxu1 %v11625_v44  ;;  %v5907_v60 = vadd.f32 %v5906_v34, %v5837_v39  ;;  %v11585_v44 = vcombine.high %v6342_v28, %v6346_v29  ;;  %v6334_v39 = vld [vmem:[#allocation13 + $0x400] sm:$0xff]  ;;  %v11449_v1 = vcombine.high %v6206_v49, %v6210_v55 }
 0x3a9   : > { %v5908_v9 = vpop.f32.mrf.mxu0  ;;  %v6338_v51 = vld [vmem:[#allocation13 + $0x420] sm:$0xff] }
 0x3aa   : > { %v5949_v10 = vpop.f32.mrf.mxu1  ;;  %v5948_v30 = vadd.f32 %v5947_v56, %v5907_v60  ;;  %9323 = vmatpush1.bf16.msra.mxu0 %v11496_v52  ;;  %v11584_v52 = vcombine.low %v6342_v28, %v6346_v29  ;;  %v6330_v34 = vld [vmem:[#allocation13 + $0x3e0] sm:$0xff]  ;;  %v11577_v56 = vcombine.high %v6334_v39, %v6338_v51  ;;  %v11448_v60 = vcombine.low %v6206_v49, %v6210_v55 }
 0x3ab   : > { %9364 = vmatpush1.bf16.msra.mxu1 %v11624_v27  ;;  %v5909_v18 = vpop.f32.mrf.mxu0  ;;  %9324 = vmatprep.subr.bf16.mxu0 %v11489_v3  ;;  %v6326_v27 = vld [vmem:[#allocation13 + $0x3c0] sm:$0xff]  ;;  %v11576_v61 = vcombine.low %v6334_v39, %v6338_v51 }
 0x3ac   : > { %v5950_v4 = vpop.f32.mrf.mxu1  ;;  %9365 = vmatprep.subr.bf16.mxu1 %v11617_v53  ;;  %v15379_v12 = vpack.c.bf16 %v5948_v30, %v5948_v30  ;;  %v6454_v3 = vld [vmem:[#allocation13 + $0x7c0] sm:$0xff]  ;;  %v11569_v62 = vcombine.high %v6326_v27, %v6330_v34 }
 0x3ad   : > { %v6458_v53 = vld [vmem:[#allocation13 + $0x7e0] sm:$0xff] }
 0x3ae   : > { %9325 = vmatpush1.bf16.msra.mxu0 %v11488_v32  ;;  %9352 = vmatprep.mubr.bf16.mxu0 %v15379_v12  ;;  %v6318_v9 = vld [vmem:[#allocation13 + $0x380] sm:$0xff]  ;;  %v11697_v45 = vcombine.high %v6454_v3, %v6458_v53  ;;  %v11568_v32 = vcombine.low %v6326_v27, %v6330_v34  ;;  %v11696_v4 = vcombine.low %v6454_v3, %v6458_v53 }
 0x3af   : > { %9326 = vmatprep.subr.bf16.mxu0 %v11481_v40  ;;  %9366 = vmatpush1.bf16.msra.mxu1 %v11616_v8  ;;  %v6322_v10 = vld [vmem:[#allocation13 + $0x3a0] sm:$0xff]  ;;  %v5833_v53 = vrot.slane %v15369_v37, %v15215_v5 }
 0x3b0   : > { %9367 = vmatprep.subr.bf16.mxu1 %v11609_v13  ;;  %v6450_v30 = vld [vmem:[#allocation13 + $0x7a0] sm:$0xff]  ;;  %v11561_v18 = vcombine.high %v6318_v9, %v6322_v10  ;;  %v11560_v48 = vcombine.low %v6318_v9, %v6322_v10 }
 0x3b1   : > { %v6310_v40 = vld [vmem:[#allocation13 + $0x340] sm:$0xff]  ;;  %v11689_v14 = vcombine.high %v6446_v50, %v6450_v30 }
 0x3b2   : > { %9327 = vmatpush1.bf16.msra.mxu0 %v11480_v59  ;;  %v6314_v8 = vld [vmem:[#allocation13 + $0x360] sm:$0xff]  ;;  %v11688_v59 = vcombine.low %v6446_v50, %v6450_v30 }
 0x3b3   : > { %9328 = vmatprep.subr.bf16.mxu0 %v11473_v17  ;;  %9368 = vmatpush1.bf16.msra.mxu1 %v11608_v24  ;;  %v6442_v13 = vld [vmem:[#allocation13 + $0x760] sm:$0xff]  ;;  %v11553_v54 = vcombine.high %v6310_v40, %v6314_v8  ;;  %v11552_v20 = vcombine.low %v6310_v40, %v6314_v8 }
 0x3b4   : > { %9369 = vmatprep.subr.bf16.mxu1 %v11601_v26  ;;  %v6302_v17 = vld [vmem:[#allocation13 + $0x300] sm:$0xff]  ;;  %v11681_v21 = vcombine.high %v6438_v58, %v6442_v13 }
 0x3b5   : > { %v6306_v24 = vld [vmem:[#allocation13 + $0x320] sm:$0xff] }
 0x3b6   : > { %9329 = vmatpush1.bf16.msra.mxu0 %v11472_v35  ;;  %v6434_v26 = vld [vmem:[#allocation13 + $0x720] sm:$0xff]  ;;  %v11545_v38 = vcombine.high %v6302_v17, %v6306_v24  ;;  %v11680_v35 = vcombine.low %v6438_v58, %v6442_v13  ;;  %v11544_v28 = vcombine.low %v6302_v17, %v6306_v24 }
 0x3b7   : > { %9330 = vmatprep.subr.bf16.mxu0 %v11465_v11  ;;  %9370 = vmatpush1.bf16.msra.mxu1 %v11600_v19  ;;  %v6294_v11 = vld [vmem:[#allocation13 + $0x2c0] sm:$0xff]  ;;  %v11673_v36 = vcombine.high %v6430_v47, %v6434_v26 }
 0x3b8   : > { %9371 = vmatprep.subr.bf16.mxu1 %v11593_v15  ;;  %v6298_v19 = vld [vmem:[#allocation13 + $0x2e0] sm:$0xff] }
 0x3b9   : > { %v6422_v43 = vld [vmem:[#allocation13 + $0x6c0] sm:$0xff]  ;;  %v11537_v29 = vcombine.high %v6294_v11, %v6298_v19  ;;  %v11536_v39 = vcombine.low %v6294_v11, %v6298_v19 }
 0x3ba   : > { %9331 = vmatpush1.bf16.msra.mxu0 %v11464_v33  ;;  %v6426_v15 = vld [vmem:[#allocation13 + $0x6e0] sm:$0xff]  ;;  %v11672_v33 = vcombine.low %v6430_v47, %v6434_v26  ;;  %v5841_v47 = vrot.slane %v15369_v37, %v15218_v7 }
 0x3bb   : > { %9332 = vmatprep.subr.bf16.mxu0 %v11457_v41  ;;  %9372 = vmatpush1.bf16.msra.mxu1 %v11592_v25  ;;  %v6286_v41 = vld [vmem:[#allocation13 + $0x280] sm:$0xff]  ;;  %v11665_v49 = vcombine.high %v6422_v43, %v6426_v15 }
 0x3bc   : > { %9373 = vmatprep.subr.bf16.mxu1 %v11585_v44  ;;  %v6290_v25 = vld [vmem:[#allocation13 + $0x2a0] sm:$0xff] }
 0x3bd   : > { %v6414_v55 = vld [vmem:[#allocation13 + $0x680] sm:$0xff]  ;;  %v11529_v51 = vcombine.high %v6286_v41, %v6290_v25  ;;  %v11528_v3 = vcombine.low %v6286_v41, %v6290_v25 }
 0x3be   : > { %9333 = vmatpush1.bf16.msra.mxu0 %v11456_v22  ;;  %v6418_v44 = vld [vmem:[#allocation13 + $0x6a0] sm:$0xff]  ;;  %v11664_v22 = vcombine.low %v6422_v43, %v6426_v15 }
 0x3bf   : > { %9334 = vmatprep.subr.bf16.mxu0 %v11449_v1  ;;  %9374 = vmatpush1.bf16.msra.mxu1 %v11584_v52  ;;  %v6278_v1 = vld [vmem:[#allocation13 + $0x240] sm:$0xff]  ;;  %v11657_v27 = vcombine.high %v6414_v55, %v6418_v44 }
 0x3c0   : > { %9375 = vmatprep.subr.bf16.mxu1 %v11577_v56  ;;  %v6282_v52 = vld [vmem:[#allocation13 + $0x260] sm:$0xff] }
 0x3c1   : > { %v6406_v34 = vld [vmem:[#allocation13 + $0x640] sm:$0xff]  ;;  %v11520_v30 = vcombine.low %v6278_v1, %v6282_v52 }
 0x3c2   : > { %9335 = vmatpush1.bf16.msra.mxu0 %v11448_v60  ;;  %v6410_v56 = vld [vmem:[#allocation13 + $0x660] sm:$0xff]  ;;  %v11521_v60 = vcombine.high %v6278_v1, %v6282_v52 }
 0x3c3   : > { %9336 = vmatprep.subr.bf16.mxu0 %v11569_v62  ;;  %9376 = vmatpush1.bf16.msra.mxu1 %v11576_v61  ;;  %v11656_v62 = vcombine.low %v6414_v55, %v6418_v44  ;;  %v6270_v61 = vld [vmem:[#allocation13 + $0x200] sm:$0xff]  ;;  %v11649_v10 = vcombine.high %v6406_v34, %v6410_v56 }
 0x3c4   : > { %9377 = vmatprep.subr.bf16.mxu1 %v11697_v45  ;;  %v6274_v9 = vld [vmem:[#allocation13 + $0x220] sm:$0xff] }
 0x3c5   : > { %v6398_v45 = vld [vmem:[#allocation13 + $0x600] sm:$0xff] }
 0x3c6   : > { %9337 = vmatpush2.bf16.msra.mxu0 %v11568_v32  ;;  %v6402_v50 = vld [vmem:[#allocation13 + $0x620] sm:$0xff]  ;;  %v5905_v32 = vadd.f32 %v15373_v57, %v5833_v53 }
 0x3c7   : > { %9338 = vmatprep.subr.bf16.mxu0 %v11561_v18  ;;  %9378 = vmatpush2.bf16.msra.mxu1 %v11696_v4  ;;  %v11513_v18 = vcombine.high %v6270_v61, %v6274_v9  ;;  %v11648_v4 = vcombine.low %v6406_v34, %v6410_v56  ;;  %v11641_v40 = vcombine.high %v6398_v45, %v6402_v50  ;;  %v6518_v8 = vld [vmem:[#allocation13 + $0x9c0] sm:$0xff] }
 0x3c8   : > { %9379 = vmatprep.subr.bf16.mxu1 %v11689_v14  ;;  %v6522_v14 = vld [vmem:[#allocation13 + $0x9e0] sm:$0xff] }
 0x3c9   : > { %v15385_v58 = vld [vmem:[#allocation13 + $0xdc0] sm:$0xff]  ;;  %v11761_v57 = vcombine.high %v6518_v8, %v6522_v14  ;;  %v11760_v26 = vcombine.low %v6518_v8, %v6522_v14 }
 0x3ca   : > { %9339 = vmatpush2.bf16.msra.mxu0 %v11560_v48  ;;  %v15387_v13 = vld [vmem:[#allocation13 + $0xde0] sm:$0xff]  ;;  %v11512_v48 = vcombine.low %v6270_v61, %v6274_v9 }
 0x3cb   : > { %9340 = vmatprep.subr.bf16.mxu0 %v11553_v54  ;;  %9380 = vmatpush2.bf16.msra.mxu1 %v11688_v59  ;;  %v5946_v54 = vadd.f32 %v15375_v2, %v5905_v32  ;;  %v11640_v59 = vcombine.low %v6398_v45, %v6402_v50  ;;  %v6510_v17 = vld [vmem:[#allocation13 + $0x980] sm:$0xff]  ;;  %v15407_v32 = vld [vmem:[#allocation13 + $0x5c8] sm:$0xff] }
 0x3cc   : > { %9381 = vmatprep.subr.bf16.mxu1 %v11681_v21  ;;  %v6514_v24 = vld [vmem:[#allocation13 + $0x9a0] sm:$0xff]  ;;  %v11889_v21 = vcombine.high %v15385_v58, %v15387_v13 }
 0x3cd   : > { %v11753_v2 = vcombine.high %v6510_v17, %v6514_v24  ;;  %v6506_v11 = vld [vmem:[#allocation13 + $0x960] sm:$0xff]  ;;  %v11752_v15 = vcombine.low %v6510_v17, %v6514_v24 }
 0x3ce   : > { %9341 = vmatpush2.bf16.msra.mxu0 %v11552_v20  ;;  %v15394_v20 = vpack.c.bf16 %v5946_v54, %v5946_v54  ;;  %v6494_v25 = vld [vmem:[#allocation13 + $0x900] sm:$0xff] }
 0x3cf   : > { %9342 = vmatprep.subr.bf16.mxu0 %v11545_v38  ;;  %9382 = vmatpush2.bf16.msra.mxu1 %v11680_v35  ;;  %v5845_v38 = vrot.slane %v15369_v37, %v15171_v0  ;;  %v6502_v35 = vld [vmem:[#allocation13 + $0x940] sm:$0xff] }
 0x3d0   : > { %9383 = vmatprep.subr.bf16.mxu1 %v11673_v36  ;;  %v6638_v1 = vld [vmem:[#allocation13 + $0xd80] sm:$0xff] }
 0x3d1   : > { %v6642_v52 = vld [vmem:[#allocation13 + $0xda0] sm:$0xff] }
 0x3d2   : > { %9343 = vmatpush2.bf16.msra.mxu0 %v11544_v28  ;;  %v6486_v53 = vld [vmem:[#allocation13 + $0x8c0] sm:$0xff]  ;;  %v11881_v9 = vcombine.high %v6638_v1, %v6642_v52  ;;  %v11880_v8 = vcombine.low %v6638_v1, %v6642_v52 }
 0x3d3   : > { %9344 = vmatprep.subr.bf16.mxu0 %v11537_v29  ;;  %9384 = vmatpush2.bf16.msra.mxu1 %v11672_v33  ;;  %v11745_v33 = vcombine.high %v6502_v35, %v6506_v11  ;;  %v6630_v45 = vld [vmem:[#allocation13 + $0xd40] sm:$0xff] }
 0x3d4   : > { %9385 = vmatprep.subr.bf16.mxu1 %v11665_v49  ;;  %v6498_v49 = vld [vmem:[#allocation13 + $0x920] sm:$0xff] }
 0x3d5   : > { %v11737_v56 = vcombine.high %v6494_v25, %v6498_v49  ;;  %v6634_v50 = vld [vmem:[#allocation13 + $0xd60] sm:$0xff] }
 0x3d6   : > { %9345 = vmatpush2.bf16.msra.mxu0 %v11536_v39  ;;  %v6626_v54 = vld [vmem:[#allocation13 + $0xd20] sm:$0xff]  ;;  %v11872_v24 = vcombine.low %v6630_v45, %v6634_v50 }
 0x3d7   : > { %9346 = vmatprep.subr.bf16.mxu0 %v11529_v51  ;;  %9386 = vmatpush2.bf16.msra.mxu1 %v11664_v22  ;;  %v11744_v22 = vcombine.low %v6502_v35, %v6506_v11  ;;  %v6474_v17 = vld [vmem:[#allocation13 + $0x860] sm:$0xff] }
 0x3d8   : > { %9387 = vmatprep.subr.bf16.mxu1 %v11657_v27  ;;  %v6462_v35 = vld [vmem:[#allocation13 + $0x800] sm:$0xff] }
 0x3d9   : > { %v6466_v11 = vld [vmem:[#allocation13 + $0x820] sm:$0xff] }
 0x3da   : > { %9347 = vmatpush2.bf16.msra.mxu0 %v11528_v3  ;;  %v6574_v52 = vld [vmem:[#allocation13 + $0xb80] sm:$0xff] }
 0x3db   : > { %9348 = vmatprep.subr.bf16.mxu0 %v11521_v60  ;;  %9388 = vmatpush2.bf16.msra.mxu1 %v11656_v62  ;;  %v6490_v60 = vld [vmem:[#allocation13 + $0x8e0] sm:$0xff]  ;;  %v11888_v62 = vcombine.low %v15385_v58, %v15387_v13  ;;  %v11873_v58 = vcombine.high %v6630_v45, %v6634_v50 }
 0x3dc   : > { %9389 = vmatprep.subr.bf16.mxu1 %v11649_v10  ;;  %v11736_v10 = vcombine.low %v6494_v25, %v6498_v49  ;;  %v11728_v13 = vcombine.low %v6486_v53, %v6490_v60  ;;  %v6586_v25 = vld [vmem:[#allocation13 + $0xbe0] sm:$0xff] }
 0x3dd   : > { %v6570_v45 = vld [vmem:[#allocation13 + $0xb60] sm:$0xff] }
 0x3de   : > { %9349 = vmatpush2.bf16.msra.mxu0 %v11520_v30  ;;  %v11729_v30 = vcombine.high %v6486_v53, %v6490_v60  ;;  %v6594_v60 = vld [vmem:[#allocation13 + $0xc20] sm:$0xff] }
 0x3df   : > { %9350 = vmatprep.subr.bf16.mxu0 %v11513_v18  ;;  %9390 = vmatpush2.bf16.msra.mxu1 %v11648_v4  ;;  %v15409_v18 = vld [vmem:[#allocation13 + $0x5e8] sm:$0xff]  ;;  %v6478_v4 = vld [vmem:[#allocation13 + $0x880] sm:$0xff] }
 0x3e0   : > { %9391 = vmatprep.subr.bf16.mxu1 %v11641_v40  ;;  %v6482_v40 = vld [vmem:[#allocation13 + $0x8a0] sm:$0xff]  ;;  %v11634_v14 = vcombine.low %v15407_v32, %v15409_v18 }
 0x3e2   : > { %9351 = vmatpush2.bf16.msra.mxu0 %v11512_v48  ;;  %v6622_v48 = vld [vmem:[#allocation13 + $0xd00] sm:$0xff] }
 0x3e3   : > { %9392 = vmatpush2.bf16.msra.mxu1 %v11640_v59  ;;  %9402 = vmatprep.subr.bf16.mxu0 %v11761_v57  ;;  %v11721_v59 = vcombine.high %v6478_v4, %v6482_v40  ;;  %v6470_v57 = vld [vmem:[#allocation13 + $0x840] sm:$0xff] }
 0x3e4   : > { %9443 = vmatprep.subr.bf16.mxu1 %v11889_v21  ;;  %v11865_v21 = vcombine.high %v6622_v48, %v6626_v54 }
 0x3e5   : > { %v5986_v19 = vpop.f32.mrf.mxu0  ;;  %9353 = vmatmul.mubr.bf16.vlgmr.msra.gmra.mxu0 %v15394_v20 }
 0x3e6   : > { %v6027_v36 = vpop.f32.mrf.mxu1  ;;  %v5987_v43 = vadd.f32 %v5986_v19, %v5841_v47  ;;  %9403 = vmatpush1.bf16.msra.mxu0 %v11760_v26  ;;  %v11720_v47 = vcombine.low %v6478_v4, %v6482_v40  ;;  %v6614_v26 = vld [vmem:[#allocation13 + $0xcc0] sm:$0xff]  ;;  %v11864_v19 = vcombine.low %v6622_v48, %v6626_v54  ;;  %v13711_v48 = vmov 2  }
 0x3e7   : > { %v5988_v28 = vpop.f32.mrf.mxu0  ;;  %9404 = vmatprep.subr.bf16.mxu0 %v11753_v2  ;;  %v6618_v2 = vld [vmem:[#allocation13 + $0xce0] sm:$0xff] }
 0x3e8   : > { %v6029_v29 = vpop.f32.mrf.mxu1  ;;  %v5989_v41 = vadd.f32 %v5988_v28, %v5845_v38  ;;  %v6028_v55 = vadd.f32 %v6027_v36, %v5987_v43  ;;  %v11713_v38 = vcombine.high %v6470_v57, %v6474_v17  ;;  %v11857_v36 = vcombine.high %v6614_v26, %v6618_v2  ;;  %v6610_v28 = vld [vmem:[#allocation13 + $0xca0] sm:$0xff] }
 0x3e9   : > { %v5990_v44 = vpop.f32.mrf.mxu0  ;;  %v11712_v43 = vcombine.low %v6470_v57, %v6474_v17  ;;  %v11856_v49 = vcombine.low %v6614_v26, %v6618_v2  ;;  %v6562_v57 = vld [vmem:[#allocation13 + $0xb20] sm:$0xff] }
 0x3ea   : > { %v6031_v39 = vpop.f32.mrf.mxu1  ;;  %v6030_v51 = vadd.f32 %v6029_v29, %v5989_v41  ;;  %9405 = vmatpush1.bf16.msra.mxu0 %v11752_v15  ;;  %v15403_v61 = vpack.c.bf16 %v6028_v55, %v6028_v55  ;;  %v6606_v15 = vld [vmem:[#allocation13 + $0xc80] sm:$0xff]  ;;  %v11705_v29 = vcombine.high %v6462_v35, %v6466_v11 }
 0x3eb   : > { %v5991_v27 = vpop.f32.mrf.mxu0  ;;  %9406 = vmatprep.subr.bf16.mxu0 %v11745_v33  ;;  %v6582_v41 = vld [vmem:[#allocation13 + $0xbc0] sm:$0xff]  ;;  %v11849_v44 = vcombine.high %v6606_v15, %v6610_v28  ;;  %v11704_v39 = vcombine.low %v6462_v35, %v6466_v11 }
 0x3ec   : > { %v6032_v34 = vpop.f32.mrf.mxu1  ;;  %v15399_v3 = vpack.c.bf16 %v6030_v51, %v6030_v51  ;;  %v6598_v51 = vld [vmem:[#allocation13 + $0xc40] sm:$0xff]  ;;  %v11825_v1 = vcombine.high %v6582_v41, %v6586_v25  ;;  %v11824_v53 = vcombine.low %v6582_v41, %v6586_v25 }
 0x3ed   : > { %v6578_v27 = vld [vmem:[#allocation13 + $0xba0] sm:$0xff]  ;;  %v11848_v34 = vcombine.low %v6606_v15, %v6610_v28 }
 0x3ee   : > { %9393 = vmatprep.mubr.bf16.mxu1 %v15399_v3  ;;  %9407 = vmatpush1.bf16.msra.mxu0 %v11744_v22  ;;  %v6602_v22 = vld [vmem:[#allocation13 + $0xc60] sm:$0xff]  ;;  %v11816_v40 = vcombine.low %v6574_v52, %v6578_v27 }
 0x3ef   : > { %9394 = vmatmul.mubr.bf16.vlgmr.msra.gmra.mxu1 %v15403_v61  ;;  %9408 = vmatprep.subr.bf16.mxu0 %v11737_v56  ;;  %v11841_v56 = vcombine.high %v6598_v51, %v6602_v22  ;;  %v11840_v50 = vcombine.low %v6598_v51, %v6602_v22  ;;  %v6702_v26 = vld [vmem:[#allocation13 + $0xf80] sm:$0xff] }
 0x3f0   : > { %9444 = vmatpush1.bf16.msra.mxu1 %v11888_v62  ;;  %v11817_v62 = vcombine.high %v6574_v52, %v6578_v27  ;;  %v6706_v2 = vld [vmem:[#allocation13 + $0xfa0] sm:$0xff] }
 0x3f1   : > { %9445 = vmatprep.subr.bf16.mxu1 %v11881_v9  ;;  %v11945_v15 = vcombine.high %v6702_v26, %v6706_v2  ;;  %v6698_v41 = vld [vmem:[#allocation13 + $0xf60] sm:$0xff] }
 0x3f2   : > { %9409 = vmatpush1.bf16.msra.mxu0 %v11736_v10  ;;  %v6566_v10 = vld [vmem:[#allocation13 + $0xb40] sm:$0xff] }
 0x3f3   : > { %9410 = vmatprep.subr.bf16.mxu0 %v11729_v30  ;;  %v6542_v25 = vld [vmem:[#allocation13 + $0xa80] sm:$0xff] }
 0x3f4   : > { %9446 = vmatpush1.bf16.msra.mxu1 %v11880_v8  ;;  %v6710_v8 = vld [vmem:[#allocation13 + $0xfc0] sm:$0xff] }
 0x3f5   : > { %9447 = vmatprep.subr.bf16.mxu1 %v11873_v58  ;;  %v6714_v58 = vld [vmem:[#allocation13 + $0xfe0] sm:$0xff] }
 0x3f6   : > { %9411 = vmatpush1.bf16.msra.mxu0 %v11728_v13  ;;  %v11809_v13 = vcombine.high %v6566_v10, %v6570_v45  ;;  %v6686_v22 = vld [vmem:[#allocation13 + $0xf00] sm:$0xff] }
 0x3f7   : > { %9412 = vmatprep.subr.bf16.mxu0 %v11721_v59  ;;  %v6558_v59 = vld [vmem:[#allocation13 + $0xb00] sm:$0xff] }
 0x3f8   : > { %9448 = vmatpush1.bf16.msra.mxu1 %v11872_v24  ;;  %v11953_v24 = vcombine.high %v6710_v8, %v6714_v58  ;;  %v11801_v35 = vcombine.high %v6558_v59, %v6562_v57  ;;  %v6534_v27 = vld [vmem:[#allocation13 + $0xa40] sm:$0xff] }
 0x3f9   : > { %9449 = vmatprep.subr.bf16.mxu1 %v11865_v21 }
 0x3fa   : > { %9413 = vmatpush1.bf16.msra.mxu0 %v11720_v47  ;;  %v11808_v47 = vcombine.low %v6566_v10, %v6570_v45  ;;  %v6530_v10 = vld [vmem:[#allocation13 + $0xa20] sm:$0xff] }
 0x3fb   : > { %9414 = vmatprep.subr.bf16.mxu0 %v11713_v38  ;;  %v15432_v38 = vld [vmem:[%s599_s1] ss:$0 sm:$0xff]  ;;  %s10931_s1 = sshll.u32 %s15361_s21, 2  ;;  %s10679_s21 = sshll.u32 %s700_s15, 4  ;;  %s10680_s21 = int_to_ptr.vmem [resolvable:$true] %s10679_s21 }
 0x3fc   : > { %v4092_v33 = vpop.permute.xlu1 %4091  ;;  %9450 = vmatpush1.bf16.msra.mxu1 %v11864_v19  ;;  %v6550_v19 = vld [vmem:[#allocation13 + $0xac0] sm:$0xff]  ;;  %s704_s10 = scalar_lea.vmem %s15744_s14, %s10931_s1  ;;  %s10664_s1 = scalar_lea.sflag [#allocation4], %s14047_s7 }
 0x3fd   : > { %v15414_v55 = vmul.f32 %v4092_v33, %v15342_v31  ;;  %9451 = vmatprep.subr.bf16.mxu1 %v11857_v36  ;;  %v6590_v31 = vld [vmem:[#allocation13 + $0xc00] sm:$0xff]  ;;  %s13601_s17 = scalar_lea.vmem %s10680_s21, 16  ;;  %s13607_s14 = scalar_lea.vmem %s13606_s26, 32 }
 0x3fe   : > { %9415 = vmatpush1.bf16.msra.mxu0 %v11712_v43  ;;  %v11833_v4 = vcombine.high %v6590_v31, %v6594_v60  ;;  %v6554_v36 = vld [vmem:[#allocation13 + $0xae0] sm:$0xff]  ;;  %v11952_v43 = vcombine.low %v6710_v8, %v6714_v58  ;;  %p13602_p5 = scmp.ne.s32.totalorder %s10680_s21, %s13601_s17  ;;  %p13608_p11 = scmp.lt.s32.totalorder %s10680_s21, %s13606_s26 }
 0x3ff   : > { %4110 = vperm.xlu1 %12704, %v15414_v55   ;;  %9416 = vmatprep.subr.bf16.mxu0 %v11705_v29  ;;  %v11800_v29 = vcombine.low %v6558_v59, %v6562_v57  ;;  %v6694_v33 = vld [vmem:[#allocation13 + $0xf40] sm:$0xff]  ;;  %v11792_v51 = vcombine.low %v6550_v19, %v6554_v36  ;;  %v15449_v59 = vld [vmem:[#allocation13 + $0x1c8] sm:$0xff]  ;;  %p13609_p12 = scmp.lt.s32.totalorder %s13607_s14, %s13601_s17 }
 0x400   : > { %9452 = vmatpush1.bf16.msra.mxu1 %v11856_v49  ;;  %v4097_v17 = vpop.permute.xlu0 %4096  ;;  %v6546_v49 = vld [vmem:[#allocation13 + $0xaa0] sm:$0xff]  ;;  %v6267_v57 = vld [vmem:[#allocation13 + $0x1e8] sm:$0xff]  ;;  %p13603_p6 = pnand %p13602_p5, %p15749_p0 }
 0x401   : > { %9453 = vmatprep.subr.bf16.mxu1 %v11849_v44  ;;  %v15435_v11 = vmul.f32 %v4097_v17, %v15348_v23  ;;  %v11793_v23 = vcombine.high %v6550_v19, %v6554_v36  ;;  %v11944_v44 = vcombine.low %v6702_v26, %v6706_v2  ;;  %v11785_v52 = vcombine.high %v6542_v25, %v6546_v49  ;;  %v6674_v8 = vld [vmem:[#allocation13 + $0xea0] sm:$0xff]  ;;  %p13610_p9 = por %p13609_p12, %p13608_p11 }
 0x402   : > { %9417 = vmatpush1.bf16.msra.mxu0 %v11704_v39  ;;  %v11937_v39 = vcombine.high %v6694_v33, %v6698_v41  ;;  %v6666_v26 = vld [vmem:[#allocation13 + $0xe60] sm:$0xff]  ;;  %v11507_v2 = vcombine.high %v15449_v59, %v6267_v57  ;;  %v5852_v19 = vsub.s32 5, %v15151_v46  ;;  %p13604_p7 = pneg %p13603_p6 }
 0x403   : > { %12705 = vset.pattern.permute.xlu1 %v13708_v42  ;;  %9418 = vmatprep.subr.bf16.mxu0 %v11825_v1  ;;  %v6690_v1 = vld [vmem:[#allocation13 + $0xf20] sm:$0xff] }
 0x404   : > { %4131 = vperm.xlu1 %12705, %v15414_v55   ;;  %v4102_v9 = vpop.permute.xlu1 %4101  ;;  %9454 = vmatpush1.bf16.msra.mxu1 %v11848_v34  ;;  %v6538_v34 = vld [vmem:[#allocation13 + $0xa60] sm:$0xff]  ;;  %v11928_v45 = vcombine.low %v6686_v22, %v6690_v1  ;;  %p13611_p10 = pnand %p13610_p9, %p13604_p7 }
 0x405   : > { %v15420_v30 = vmul.f32 %v4102_v9, %v15351_v6  ;;  %9455 = vmatprep.subr.bf16.mxu1 %v11841_v56  ;;  %v11832_v6 = vcombine.low %v6590_v31, %v6594_v60  ;;  %v11936_v56 = vcombine.low %v6694_v33, %v6698_v41  ;;  %v11784_v31 = vcombine.low %v6542_v25, %v6546_v49  ;;  %v6678_v60 = vld [vmem:[#allocation13 + $0xec0] sm:$0xff] }
 0x406   : > { %9419 = vmatpush2.bf16.msra.mxu0 %v11824_v53  ;;  %v11929_v53 = vcombine.high %v6686_v22, %v6690_v1  ;;  %v6526_v9 = vld [vmem:[#allocation13 + $0xa00] sm:$0xff] }
 0x407   : > { %4139 = vperm.xlu0 %12711, %v15420_v30   ;;  %9420 = vmatprep.subr.bf16.mxu0 %v11817_v62  ;;  %v11777_v62 = vcombine.high %v6534_v27, %v6538_v34  ;;  %v11769_v58 = vcombine.high %v6526_v9, %v6530_v10 }
 0x408   : > { %12706 = vset.pattern.permute.xlu1 %v13711_v48  ;;  %v15424_v54 = vpop.permute.xlu1 %4191  ;;  %9456 = vmatpush1.bf16.msra.mxu1 %v11840_v50 }
 0x409   : > { %4153 = vperm.xlu1 %12706, %v15414_v55   ;;  %9457 = vmatprep.subr.bf16.mxu1 %v11833_v4  ;;  %v4196_v21 = vmul.f32 %v15424_v54, %v15420_v30  ;;  %v11776_v4 = vcombine.low %v6534_v27, %v6538_v34 }
 0x40a   : > { %9421 = vmatpush2.bf16.msra.mxu0 %v11816_v40  ;;  %v6670_v40 = vld [vmem:[#allocation13 + $0xe80] sm:$0xff] }
 0x40b   : > { %12712 = vset.pattern.permute.xlu0 %v13711_v48  ;;  %9422 = vmatprep.subr.bf16.mxu0 %v11809_v13  ;;  %v4205_v28 = vadd.f32 %v15432_v38, %v4196_v21  ;;  %v4194_v13 = vmul.f32 %v15424_v54, %v15414_v55  ;;  %v11913_v17 = vcombine.high %v6670_v40, %v6674_v8 }
 0x40c   : > { %4161 = vperm.xlu0 %12712, %v15420_v30   ;;  %9458 = vmatpush1.bf16.msra.mxu1 %v11832_v6  ;;  %v11768_v21 = vcombine.low %v6526_v9, %v6530_v10  ;;  %v11912_v36 = vcombine.low %v6670_v40, %v6674_v8  ;;  %v6239_v8 = vld [vmem:[#allocation13 + $0x108] sm:$0xff] }
 0x40d   : > { %12707 = vset.pattern.permute.xlu1 %v13710_v16  ;;  %9459 = vmatprep.subr.bf16.mxu1 %v11953_v24  ;;  %v5848_v24 = vsub.s32 4, %v15151_v46 }
 0x40e   : > { %4115 = vperm.xlu1 %12707, %v15435_v11   ;;  %9423 = vmatpush2.bf16.msra.mxu0 %v11808_v47  ;;  %v6662_v47 = vld [vmem:[#allocation13 + $0xe40] sm:$0xff] }
 0x40f   : > { %9424 = vmatprep.subr.bf16.mxu0 %v11801_v35  ;;  %v4203_v35 = vadd.f32 %v15432_v38, %v4194_v13  ;;  %v11904_v41 = vcombine.low %v6662_v47, %v6666_v26 }
 0x410   : > { %4218 = vperm.xlu0 %12712, %v4205_v28   ;;  %9460 = vmatpush2.bf16.msra.mxu1 %v11952_v43  ;;  %v11905_v43 = vcombine.high %v6662_v47, %v6666_v26  ;;  %v6654_v28 = vld [vmem:[#allocation13 + $0xe00] sm:$0xff]  ;;  %v6223_v47 = vld [vmem:[#allocation13 + $0x88] sm:$0xff] }
 0x411   : > { %9461 = vmatprep.subr.bf16.mxu1 %v11945_v15  ;;  %v5849_v15 = vrot.slane %v15369_v37, %v5848_v24  ;;  %v6227_v26 = vld [vmem:[#allocation13 + $0xa8] sm:$0xff] }
 0x412   : > { %12708 = vset.pattern.permute.xlu1 %v13708_v42  ;;  %9425 = vmatpush2.bf16.msra.mxu0 %v11800_v29  ;;  %v6682_v42 = vld [vmem:[#allocation13 + $0xee0] sm:$0xff] }
 0x413   : > { %4135 = vperm.xlu1 %12708, %v15435_v11   ;;  %9426 = vmatprep.subr.bf16.mxu0 %v11793_v23  ;;  %v11921_v50 = vcombine.high %v6678_v60, %v6682_v42  ;;  %v11920_v6 = vcombine.low %v6678_v60, %v6682_v42  ;;  %v6658_v29 = vld [vmem:[#allocation13 + $0xe20] sm:$0xff] }
 0x414   : > { %9462 = vmatpush2.bf16.msra.mxu1 %v11944_v44  ;;  %12714 = vset.pattern.permute.xlu0 %v13710_v16  ;;  %v11897_v25 = vcombine.high %v6654_v28, %v6658_v29  ;;  %v11896_v22 = vcombine.low %v6654_v28, %v6658_v29  ;;  %v6207_v28 = vld [vmem:[#allocation13 + $0x8] sm:$0xff] }
 0x415   : > { %9463 = vmatprep.subr.bf16.mxu1 %v11937_v39  ;;  %v6211_v29 = vld [vmem:[#allocation13 + $0x28] sm:$0xff] }
 0x416   : > { %9427 = vmatpush2.bf16.msra.mxu0 %v11792_v51 }
 0x417   : > { %12709 = vset.pattern.permute.xlu1 %v13711_v48  ;;  %9428 = vmatprep.subr.bf16.mxu0 %v11785_v52 }
 0x418   : > { %4157 = vperm.xlu1 %12709, %v15435_v11   ;;  %9464 = vmatpush2.bf16.msra.mxu1 %v11936_v56  ;;  %v6255_v56 = vld [vmem:[#allocation13 + $0x188] sm:$0xff] }
 0x419   : > { %9465 = vmatprep.subr.bf16.mxu1 %v11929_v53  ;;  %v6259_v53 = vld [vmem:[#allocation13 + $0x1a8] sm:$0xff] }
 0x41a   : > { %9429 = vmatpush2.bf16.msra.mxu0 %v11784_v31  ;;  %v11499_v10 = vcombine.high %v6255_v56, %v6259_v53 }
 0x41b   : > { %9430 = vmatprep.subr.bf16.mxu0 %v11777_v62  ;;  %v11506_v62 = vcombine.low %v15449_v59, %v6267_v57  ;;  %v6231_v57 = vld [vmem:[#allocation13 + $0xc8] sm:$0xff] }
 0x41c   : > { %12710 = vset.pattern.permute.xlu1 %v13710_v16  ;;  %9466 = vmatpush2.bf16.msra.mxu1 %v11928_v45  ;;  %v4195_v16 = vmul.f32 %v15424_v54, %v15435_v11  ;;  %v5853_v54 = vrot.slane %v15369_v37, %v5852_v19  ;;  %v11635_v37 = vcombine.high %v15407_v32, %v15409_v18  ;;  %v6247_v45 = vld [vmem:[#allocation13 + $0x148] sm:$0xff]  ;;  %v15494_v18 = vpop.permute.xlu1 %4228 }
 0x41d   : > { %4120 = vperm.xlu1 %12710, %v15420_v30   ;;  %9467 = vmatprep.subr.bf16.mxu1 %v11921_v50  ;;  %v6251_v50 = vld [vmem:[#allocation13 + $0x168] sm:$0xff]  ;;  %13233 = vrcp.f32 %v15494_v18 }
 0x41e   : > { %9431 = vmatpush2.bf16.msra.mxu0 %v11776_v4  ;;  %v4204_v33 = vadd.f32 %v15432_v38, %v4195_v16  ;;  %v11498_v4 = vcombine.low %v6255_v56, %v6259_v53  ;;  %v11491_v40 = vcombine.high %v6247_v45, %v6251_v50  ;;  %v11490_v13 = vcombine.low %v6247_v45, %v6251_v50  ;;  %v6287_v45 = vld [vmem:[#allocation13 + $0x288] sm:$0xff] }
 0x41f   : > { %9432 = vmatprep.subr.bf16.mxu0 %v11769_v58  ;;  %v6243_v58 = vld [vmem:[#allocation13 + $0x128] sm:$0xff]  ;;  %v11467_v16 = vcombine.high %v6223_v47, %v6227_v26 }
 0x420   : > { %9468 = vmatpush2.bf16.msra.mxu1 %v11920_v6  ;;  %v11483_v59 = vcombine.high %v6239_v8, %v6243_v58  ;;  %v6235_v6 = vld [vmem:[#allocation13 + $0xe8] sm:$0xff] }
 0x421   : > { %12713 = vset.pattern.permute.xlu1 %v13711_v48  ;;  %9469 = vmatprep.subr.bf16.mxu1 %v11913_v17  ;;  %v11482_v17 = vcombine.low %v6239_v8, %v6243_v58  ;;  %v6291_v50 = vld [vmem:[#allocation13 + $0x2a8] sm:$0xff]  ;;  %v5856_v8 = vsub.s32 6, %v15151_v46 }
 0x422   : > { %4208 = vperm.xlu1 %12713, %v4203_v35   ;;  %9433 = vmatpush2.bf16.msra.mxu0 %v11768_v21  ;;  %v11475_v21 = vcombine.high %v6231_v57, %v6235_v6  ;;  %v6215_v35 = vld [vmem:[#allocation13 + $0x48] sm:$0xff] }
 0x423   : > { %9484 = vmatprep.subr.bf16.mxu0 %v11507_v2  ;;  %v11474_v2 = vcombine.low %v6231_v57, %v6235_v6  ;;  %v6279_v58 = vld [vmem:[#allocation13 + $0x248] sm:$0xff]  ;;  %v5860_v57 = vsub.s32 7, %v15151_v46 }
 0x424   : > { %9470 = vmatpush2.bf16.msra.mxu1 %v11912_v36  ;;  %v6219_v36 = vld [vmem:[#allocation13 + $0x68] sm:$0xff] }
 0x425   : > { %v6068_v48 = vpop.f32.mrf.mxu0  ;;  %9471 = vmatprep.subr.bf16.mxu1 %v11905_v43  ;;  %v11466_v43 = vcombine.low %v6223_v47, %v6227_v26  ;;  %v6271_v47 = vld [vmem:[#allocation13 + $0x208] sm:$0xff] }
 0x426   : > { %v6109_v23 = vpop.f32.mrf.mxu1  ;;  %v6069_v49 = vadd.f32 %v6068_v48, %v5849_v15  ;;  %4213 = vperm.xlu1 %12713, %v4204_v33   ;;  %v11459_v15 = vcombine.high %v6215_v35, %v6219_v36  ;;  %v11451_v33 = vcombine.high %v6207_v28, %v6211_v29  ;;  %v6331_v48 = vld [vmem:[#allocation13 + $0x3e8] sm:$0xff] }
 0x427   : > { %v6070_v44 = vpop.f32.mrf.mxu0  ;;  %v6275_v26 = vld [vmem:[#allocation13 + $0x228] sm:$0xff] }
 0x428   : > { %v6111_v39 = vpop.f32.mrf.mxu1  ;;  %v6071_v51 = vadd.f32 %v6070_v44, %v5853_v54  ;;  %9472 = vmatpush2.bf16.msra.mxu1 %v11904_v41  ;;  %v6110_v1 = vadd.f32 %v6109_v23, %v6069_v49  ;;  %v11458_v54 = vcombine.low %v6215_v35, %v6219_v36  ;;  %v6327_v41 = vld [vmem:[#allocation13 + $0x3c8] sm:$0xff]  ;;  %v11450_v23 = vcombine.low %v6207_v28, %v6211_v29 }
 0x429   : > { %v6072_v52 = vpop.f32.mrf.mxu0  ;;  %9473 = vmatprep.subr.bf16.mxu1 %v11897_v25  ;;  %v11571_v25 = vcombine.high %v6327_v41, %v6331_v48  ;;  %v6319_v49 = vld [vmem:[#allocation13 + $0x388] sm:$0xff] }
 0x42a   : > { %v6113_v27 = vpop.f32.mrf.mxu1  ;;  %v6112_v34 = vadd.f32 %v6111_v39, %v6071_v51  ;;  %v15471_v9 = vpack.c.bf16 %v6110_v1, %v6110_v1  ;;  %v6323_v44 = vld [vmem:[#allocation13 + $0x3a8] sm:$0xff]  ;;  %v11570_v39 = vcombine.low %v6327_v41, %v6331_v48  ;;  %v11514_v48 = vcombine.low %v6271_v47, %v6275_v26 }
 0x42b   : > { %v6073_v31 = vpop.f32.mrf.mxu0  ;;  %v11563_v51 = vcombine.high %v6319_v49, %v6323_v44  ;;  %v6315_v1 = vld [vmem:[#allocation13 + $0x368] sm:$0xff]  ;;  %v11562_v52 = vcombine.low %v6319_v49, %v6323_v44 }
 0x42c   : > { %v6114_v60 = vpop.f32.mrf.mxu1  ;;  %v15468_v42 = vpack.c.bf16 %v6112_v34, %v6112_v34  ;;  %9474 = vmatpush2.bf16.msra.mxu1 %v11896_v22  ;;  %v6311_v22 = vld [vmem:[#allocation13 + $0x348] sm:$0xff] }
 0x42d   : > { %9525 = vmatprep.subr.bf16.mxu1 %v11635_v37  ;;  %v11555_v27 = vcombine.high %v6311_v22, %v6315_v1  ;;  %v6303_v37 = vld [vmem:[#allocation13 + $0x308] sm:$0xff]  ;;  %v11554_v56 = vcombine.low %v6311_v22, %v6315_v1 }
 0x42e   : > { %9434 = vmatprep.mubr.bf16.mxu0 %v15468_v42  ;;  %v6307_v34 = vld [vmem:[#allocation13 + $0x328] sm:$0xff] }
 0x42f   : > { %9435 = vmatmul.mubr.bf16.vlgmr.msra.gmra.mxu0 %v15471_v9  ;;  %v11547_v53 = vcombine.high %v6303_v37, %v6307_v34  ;;  %v6295_v31 = vld [vmem:[#allocation13 + $0x2c8] sm:$0xff] }
 0x430   : > { %9485 = vmatpush1.bf16.msra.mxu0 %v11506_v62  ;;  %9516 = vmatprep.mubr.bf16.mxu0 %v15379_v12  ;;  %v6299_v60 = vld [vmem:[#allocation13 + $0x2e8] sm:$0xff]  ;;  %v11546_v62 = vcombine.low %v6303_v37, %v6307_v34 }
 0x431   : > { %9486 = vmatprep.subr.bf16.mxu0 %v11499_v10  ;;  %v11539_v10 = vcombine.high %v6295_v31, %v6299_v60  ;;  %v6519_v28 = vld [vmem:[#allocation13 + $0x9c8] sm:$0xff] }
 0x432   : > { %v6523_v29 = vld [vmem:[#allocation13 + $0x9e8] sm:$0xff] }
 0x433   : > { %v11763_v44 = vcombine.high %v6519_v28, %v6523_v29  ;;  %v6515_v37 = vld [vmem:[#allocation13 + $0x9a8] sm:$0xff] }
 0x434   : > { %9487 = vmatpush1.bf16.msra.mxu0 %v11498_v4  ;;  %v11538_v4 = vcombine.low %v6295_v31, %v6299_v60  ;;  %v6375_v31 = vld [vmem:[#allocation13 + $0x548] sm:$0xff] }
 0x435   : > { %9488 = vmatprep.subr.bf16.mxu0 %v11491_v40  ;;  %v11531_v40 = vcombine.high %v6287_v45, %v6291_v50 }
 0x438   : > { %9489 = vmatpush1.bf16.msra.mxu0 %v11490_v13  ;;  %v6283_v13 = vld [vmem:[#allocation13 + $0x268] sm:$0xff] }
 0x439   : > { %9490 = vmatprep.subr.bf16.mxu0 %v11483_v59  ;;  %v11530_v59 = vcombine.low %v6287_v45, %v6291_v50  ;;  %v11523_v6 = vcombine.high %v6279_v58, %v6283_v13  ;;  %v6503_v45 = vld [vmem:[#allocation13 + $0x948] sm:$0xff] }
 0x43a   : > { %v6507_v50 = vld [vmem:[#allocation13 + $0x968] sm:$0xff] }
 0x43b   : > { %v11746_v32 = vcombine.low %v6503_v45, %v6507_v50 }
 0x43c   : > { %9491 = vmatpush1.bf16.msra.mxu0 %v11482_v17  ;;  %v13331_v17 = vld [vmem:[#allocation11] sm:$0xff] }
 0x43d   : > { %9492 = vmatprep.subr.bf16.mxu0 %v11475_v21  ;;  %v5857_v21 = vrot.slane %v13331_v17, %v5856_v8 }
 0x440   : > { %9493 = vmatpush1.bf16.msra.mxu0 %v11474_v2  ;;  %v11522_v2 = vcombine.low %v6279_v58, %v6283_v13  ;;  %v11747_v13 = vcombine.high %v6503_v45, %v6507_v50  ;;  %v6463_v45 = vld [vmem:[#allocation13 + $0x808] sm:$0xff] }
 0x441   : > { %9494 = vmatprep.subr.bf16.mxu0 %v11467_v16  ;;  %v5861_v16 = vrot.slane %v13331_v17, %v5860_v57  ;;  %v6495_v17 = vld [vmem:[#allocation13 + $0x908] sm:$0xff] }
 0x442   : > { %v6467_v50 = vld [vmem:[#allocation13 + $0x828] sm:$0xff] }
 0x444   : > { %9495 = vmatpush1.bf16.msra.mxu0 %v11466_v43  ;;  %v11515_v43 = vcombine.high %v6271_v47, %v6275_v26 }
 0x445   : > { %9496 = vmatprep.subr.bf16.mxu0 %v11459_v15 }
 0x448   : > { %9497 = vmatpush1.bf16.msra.mxu0 %v11458_v54 }
 0x449   : > { %9498 = vmatprep.subr.bf16.mxu0 %v11451_v33 }
 0x44c   : > { %9499 = vmatpush1.bf16.msra.mxu0 %v11450_v23 }
 0x44d   : > { %9500 = vmatprep.subr.bf16.mxu0 %v11571_v25 }
 0x450   : > { %9501 = vmatpush2.bf16.msra.mxu0 %v11570_v39 }
 0x451   : > { %9502 = vmatprep.subr.bf16.mxu0 %v11563_v51  ;;  %v6383_v51 = vld [vmem:[#allocation13 + $0x588] sm:$0xff] }
 0x454   : > { %9503 = vmatpush2.bf16.msra.mxu0 %v11562_v52  ;;  %v6387_v52 = vld [vmem:[#allocation13 + $0x5a8] sm:$0xff] }
 0x455   : > { %9504 = vmatprep.subr.bf16.mxu0 %v11555_v27  ;;  %v6511_v27 = vld [vmem:[#allocation13 + $0x988] sm:$0xff]  ;;  %v11627_v60 = vcombine.high %v6383_v51, %v6387_v52 }
 0x458   : > { %9505 = vmatpush2.bf16.msra.mxu0 %v11554_v56  ;;  %v11762_v56 = vcombine.low %v6519_v28, %v6523_v29 }
 0x459   : > { %9506 = vmatprep.subr.bf16.mxu0 %v11547_v53 }
 0x45c   : > { %9507 = vmatpush2.bf16.msra.mxu0 %v11546_v62  ;;  %v11755_v62 = vcombine.high %v6511_v27, %v6515_v37 }
 0x45d   : > { %9508 = vmatprep.subr.bf16.mxu0 %v11539_v10  ;;  %v6379_v10 = vld [vmem:[#allocation13 + $0x568] sm:$0xff] }
 0x45e   : > { %v11619_v58 = vcombine.high %v6375_v31, %v6379_v10  ;;  %v11618_v47 = vcombine.low %v6375_v31, %v6379_v10  ;;  %v6339_v10 = vld [vmem:[#allocation13 + $0x428] sm:$0xff] }
 0x460   : > { %9509 = vmatpush2.bf16.msra.mxu0 %v11538_v4  ;;  %v11626_v4 = vcombine.low %v6383_v51, %v6387_v52  ;;  %v6343_v51 = vld [vmem:[#allocation13 + $0x448] sm:$0xff] }
 0x461   : > { %9510 = vmatprep.subr.bf16.mxu0 %v11531_v40  ;;  %v11754_v40 = vcombine.low %v6511_v27, %v6515_v37  ;;  %v6475_v52 = vld [vmem:[#allocation13 + $0x868] sm:$0xff] }
 0x464   : > { %9511 = vmatpush2.bf16.msra.mxu0 %v11530_v59  ;;  %v6367_v59 = vld [vmem:[#allocation13 + $0x508] sm:$0xff] }
 0x465   : > { %v6150_v35 = vpop.f32.mrf.mxu0  ;;  %9512 = vmatprep.subr.bf16.mxu0 %v11523_v6  ;;  %v6371_v6 = vld [vmem:[#allocation13 + $0x528] sm:$0xff] }
 0x466   : > { %v6191_v36 = vpop.f32.mrf.mxu1  ;;  %v6151_v15 = vadd.f32 %v6150_v35, %v5857_v21  ;;  %v6499_v21 = vld [vmem:[#allocation13 + $0x928] sm:$0xff] }
 0x467   : > { %v6152_v54 = vpop.f32.mrf.mxu0  ;;  %v11739_v26 = vcombine.high %v6495_v17, %v6499_v21  ;;  %v6487_v35 = vld [vmem:[#allocation13 + $0x8c8] sm:$0xff] }
 0x468   : > { %v6193_v33 = vpop.f32.mrf.mxu1  ;;  %v6153_v41 = vadd.f32 %v6152_v54, %v5861_v16  ;;  %9513 = vmatpush2.bf16.msra.mxu0 %v11522_v2  ;;  %v6192_v23 = vadd.f32 %v6191_v36, %v6151_v15  ;;  %v6359_v2 = vld [vmem:[#allocation13 + $0x4c8] sm:$0xff]  ;;  %v11738_v15 = vcombine.low %v6495_v17, %v6499_v21 }
 0x469   : > { %v6154_v25 = vpop.f32.mrf.mxu0  ;;  %9514 = vmatprep.subr.bf16.mxu0 %v11515_v43  ;;  %v6363_v16 = vld [vmem:[#allocation13 + $0x4e8] sm:$0xff]  ;;  %v11610_v43 = vcombine.low %v6367_v59, %v6371_v6 }
 0x46a   : > { %v6195_v49 = vpop.f32.mrf.mxu1  ;;  %v6194_v39 = vadd.f32 %v6193_v33, %v6153_v41  ;;  %v15484_v53 = vpack.c.bf16 %v6192_v23, %v6192_v23  ;;  %v6491_v36 = vld [vmem:[#allocation13 + $0x8e8] sm:$0xff]  ;;  %v11603_v28 = vcombine.high %v6359_v2, %v6363_v16  ;;  %v11602_v25 = vcombine.low %v6359_v2, %v6363_v16 }
 0x46b   : > { %v6155_v22 = vpop.f32.mrf.mxu0  ;;  %v11731_v29 = vcombine.high %v6487_v35, %v6491_v36  ;;  %v6351_v54 = vld [vmem:[#allocation13 + $0x488] sm:$0xff]  ;;  %v11730_v49 = vcombine.low %v6487_v35, %v6491_v36 }
 0x46c   : > { %v6196_v1 = vpop.f32.mrf.mxu1  ;;  %v15482_v34 = vpack.c.bf16 %v6194_v39, %v6194_v39  ;;  %9515 = vmatpush2.bf16.msra.mxu0 %v11514_v48  ;;  %v6355_v41 = vld [vmem:[#allocation13 + $0x4a8] sm:$0xff] }
 0x46d   : > { %9566 = vmatprep.subr.bf16.mxu0 %v11763_v44  ;;  %v6479_v48 = vld [vmem:[#allocation13 + $0x888] sm:$0xff]  ;;  %v11595_v44 = vcombine.high %v6351_v54, %v6355_v41  ;;  %v11594_v37 = vcombine.low %v6351_v54, %v6355_v41 }
 0x46e   : > { %9475 = vmatprep.mubr.bf16.mxu1 %v15482_v34  ;;  %v6483_v23 = vld [vmem:[#allocation13 + $0x8a8] sm:$0xff] }
 0x46f   : > { %9517 = vmatmul.mubr.bf16.vlgmr.msra.gmra.mxu0 %v15394_v20  ;;  %9476 = vmatmul.mubr.bf16.vlgmr.msra.gmra.mxu1 %v15484_v53  ;;  %v11723_v39 = vcombine.high %v6479_v48, %v6483_v23  ;;  %v6347_v22 = vld [vmem:[#allocation13 + $0x468] sm:$0xff] }
 0x470   : > { %9526 = vmatpush1.bf16.msra.mxu1 %v11634_v14  ;;  %9567 = vmatpush1.bf16.msra.mxu0 %v11762_v56  ;;  %v11611_v14 = vcombine.high %v6367_v59, %v6371_v6  ;;  %v6471_v1 = vld [vmem:[#allocation13 + $0x848] sm:$0xff]  ;;  %v11722_v56 = vcombine.low %v6479_v48, %v6483_v23  ;;  %v11587_v31 = vcombine.high %v6343_v51, %v6347_v22 }
 0x471   : > { %9598 = vmatprep.mubr.bf16.mxu0 %v15468_v42  ;;  %9557 = vmatprep.mubr.bf16.mxu1 %v15399_v3  ;;  %v11707_v59 = vcombine.high %v6463_v45, %v6467_v50  ;;  %v6455_v6 = vld [vmem:[#allocation13 + $0x7c8] sm:$0xff] }
 0x472   : > { %9527 = vmatprep.subr.bf16.mxu1 %v11627_v60  ;;  %9568 = vmatprep.subr.bf16.mxu0 %v11755_v62  ;;  %v11715_v60 = vcombine.high %v6471_v1, %v6475_v52  ;;  %v6335_v62 = vld [vmem:[#allocation13 + $0x408] sm:$0xff] }
 0x473   : > { %v6459_v17 = vld [vmem:[#allocation13 + $0x7e8] sm:$0xff] }
 0x474   : > { %9528 = vmatpush1.bf16.msra.mxu1 %v11626_v4  ;;  %9569 = vmatpush1.bf16.msra.mxu0 %v11754_v40  ;;  %v11586_v40 = vcombine.low %v6343_v51, %v6347_v22  ;;  %v6583_v21 = vld [vmem:[#allocation13 + $0xbc8] sm:$0xff]  ;;  %v11699_v2 = vcombine.high %v6455_v6, %v6459_v17 }
 0x475   : > { %9529 = vmatprep.subr.bf16.mxu1 %v11619_v58  ;;  %9570 = vmatprep.subr.bf16.mxu0 %v11747_v13  ;;  %v11714_v58 = vcombine.low %v6471_v1, %v6475_v52  ;;  %v11579_v13 = vcombine.high %v6335_v62, %v6339_v10  ;;  %v6447_v35 = vld [vmem:[#allocation13 + $0x788] sm:$0xff] }
 0x476   : > { %v6451_v36 = vld [vmem:[#allocation13 + $0x7a8] sm:$0xff] }
 0x477   : > { %v11691_v41 = vcombine.high %v6447_v35, %v6451_v36  ;;  %v6439_v23 = vld [vmem:[#allocation13 + $0x748] sm:$0xff]  ;;  %v11690_v52 = vcombine.low %v6447_v35, %v6451_v36 }
 0x478   : > { %9530 = vmatpush1.bf16.msra.mxu1 %v11618_v47  ;;  %9571 = vmatpush1.bf16.msra.mxu0 %v11746_v32  ;;  %v6587_v47 = vld [vmem:[#allocation13 + $0xbe8] sm:$0xff]  ;;  %v11578_v32 = vcombine.low %v6335_v62, %v6339_v10 }
 0x479   : > { %9531 = vmatprep.subr.bf16.mxu1 %v11611_v14  ;;  %9572 = vmatprep.subr.bf16.mxu0 %v11739_v26  ;;  %v11706_v14 = vcombine.low %v6463_v45, %v6467_v50  ;;  %v11827_v16 = vcombine.high %v6583_v21, %v6587_v47  ;;  %v11826_v54 = vcombine.low %v6583_v21, %v6587_v47  ;;  %v6571_v51 = vld [vmem:[#allocation13 + $0xb68] sm:$0xff] }
 0x47a   : > { %v15496_v33 = vpop.permute.xlu1 %4110  ;;  %v6435_v45 = vld [vmem:[#allocation13 + $0x728] sm:$0xff] }
 0x47b   : > { %v6559_v50 = vld [vmem:[#allocation13 + $0xb08] sm:$0xff] }
 0x47c   : > { %9532 = vmatpush1.bf16.msra.mxu1 %v11610_v43  ;;  %9573 = vmatpush1.bf16.msra.mxu0 %v11738_v15  ;;  %v6575_v43 = vld [vmem:[#allocation13 + $0xb88] sm:$0xff] }
 0x47d   : > { %9533 = vmatprep.subr.bf16.mxu1 %v11603_v28  ;;  %9574 = vmatprep.subr.bf16.mxu0 %v11731_v29  ;;  %v6579_v15 = vld [vmem:[#allocation13 + $0xba8] sm:$0xff]  ;;  %v11698_v29 = vcombine.low %v6455_v6, %v6459_v17 }
 0x47e   : > { %v4107_v28 = vld [vmem:[%s704_s10] sm:$0x7]  ;;  %v11819_v48 = vcombine.high %v6575_v43, %v6579_v15 }
 0x47f   : > { %v15498_v27 = vpop.permute.xlu1 %4131  ;;  %v4126_v22 = vrot.slane %v4107_v28, %v15215_v5  ;;  %v4167_v1 = vrot.slane %v4107_v28, %v15218_v7  ;;  %v6423_v21 = vld [vmem:[#allocation13 + $0x6c8] sm:$0xff] }
 0x480   : > { %9534 = vmatpush1.bf16.msra.mxu1 %v11602_v25  ;;  %9575 = vmatpush1.bf16.msra.mxu0 %v11730_v49  ;;  %v4145_v25 = vrot.slane %v4107_v28, %v15168_v63  ;;  %v6427_v47 = vld [vmem:[#allocation13 + $0x6e8] sm:$0xff] }
 0x481   : > { %9535 = vmatprep.subr.bf16.mxu1 %v11595_v44  ;;  %9576 = vmatprep.subr.bf16.mxu0 %v11723_v39  ;;  %v6443_v44 = vld [vmem:[#allocation13 + $0x768] sm:$0xff] }
 0x482   : > { %v6567_v39 = vld [vmem:[#allocation13 + $0xb48] sm:$0xff]  ;;  %v4146_v62 = vmul.f32 %v4145_v25, %v15498_v27  ;;  %v4140_v10 = vpop.permute.xlu0 %4139 }
 0x483   : > { %v11810_v17 = vcombine.low %v6567_v39, %v6571_v51 }
 0x484   : > { %9536 = vmatpush1.bf16.msra.mxu1 %v11594_v37  ;;  %9577 = vmatpush1.bf16.msra.mxu0 %v11722_v56  ;;  %v4154_v4 = vpop.permute.xlu1 %4153  ;;  %v11818_v37 = vcombine.low %v6575_v43, %v6579_v15  ;;  %v11683_v56 = vcombine.high %v6439_v23, %v6443_v44  ;;  %v11667_v43 = vcombine.high %v6423_v21, %v6427_v47 }
 0x485   : > { %9537 = vmatprep.subr.bf16.mxu1 %v11587_v31  ;;  %9578 = vmatprep.subr.bf16.mxu0 %v11715_v60  ;;  %v11811_v31 = vcombine.high %v6567_v39, %v6571_v51  ;;  %v6431_v60 = vld [vmem:[#allocation13 + $0x708] sm:$0xff]  ;;  %v4168_v6 = vmul.f32 %v4167_v1, %v4154_v4 }
 0x486   : > { %v11674_v35 = vcombine.low %v6431_v60, %v6435_v45  ;;  %v6419_v39 = vld [vmem:[#allocation13 + $0x6a8] sm:$0xff] }
 0x487   : > { %v6543_v51 = vld [vmem:[#allocation13 + $0xa88] sm:$0xff] }
 0x488   : > { %9538 = vmatpush1.bf16.msra.mxu1 %v11586_v40  ;;  %9579 = vmatpush1.bf16.msra.mxu0 %v11714_v58  ;;  %v6563_v40 = vld [vmem:[#allocation13 + $0xb28] sm:$0xff] }
 0x489   : > { %9539 = vmatprep.subr.bf16.mxu1 %v11579_v13  ;;  %9580 = vmatprep.subr.bf16.mxu0 %v11707_v59  ;;  %v4116_v26 = vpop.permute.xlu1 %4115  ;;  %v11682_v13 = vcombine.low %v6439_v23, %v6443_v44  ;;  %v4127_v59 = vmul.f32 %v4126_v22, %v15496_v33  ;;  %v11803_v18 = vcombine.high %v6559_v50, %v6563_v40  ;;  %v4162_v33 = vpop.permute.xlu0 %4161  ;;  %v11189_v23 = vld [vmem:[%s591_s2] ss:$0 sm:$0xff]  ;;  %s13712_s2 = smov 3  }
 0x48a   : > { %v11802_v36 = vcombine.low %v6559_v50, %v6563_v40  ;;  %v4128_v4 = vmul.f32 %v4126_v22, %v4116_v26  ;;  %v6407_v50 = vld [vmem:[#allocation13 + $0x648] sm:$0xff] }
 0x48c   : > { %9540 = vmatpush1.bf16.msra.mxu1 %v11578_v32  ;;  %9581 = vmatpush1.bf16.msra.mxu0 %v11706_v14  ;;  %v11675_v32 = vcombine.high %v6431_v60, %v6435_v45  ;;  %v4149_v14 = vadd.f32 %v4146_v62, %v4127_v59  ;;  %v6539_v59 = vld [vmem:[#allocation13 + $0xa68] sm:$0xff] }
 0x48d   : > { %9541 = vmatprep.subr.bf16.mxu1 %v11699_v2  ;;  %9582 = vmatprep.subr.bf16.mxu0 %v11827_v16  ;;  %v6551_v2 = vld [vmem:[#allocation13 + $0xac8] sm:$0xff] }
 0x48e   : > { %v4136_v49 = vpop.permute.xlu1 %4135  ;;  %v6555_v16 = vld [vmem:[#allocation13 + $0xae8] sm:$0xff]  ;;  %v4171_v15 = vadd.f32 %v4168_v6, %v4149_v14  ;;  %v13234_v6 = vpop.eup %13233 }
 0x48f   : > { %v4147_v27 = vmul.f32 %v4145_v25, %v4136_v49  ;;  %v6415_v49 = vld [vmem:[#allocation13 + $0x688] sm:$0xff]  ;;  %v11794_v60 = vcombine.low %v6551_v2, %v6555_v16 }
 0x490   : > { %9542 = vmatpush2.bf16.msra.mxu1 %v11698_v29  ;;  %9583 = vmatpush2.bf16.msra.mxu0 %v11826_v54  ;;  %v4148_v54 = vmul.f32 %v4145_v25, %v4140_v10  ;;  %v4181_v62 = vadd.f32 %v11189_v23, %v4171_v15  ;;  %v11659_v10 = vcombine.high %v6415_v49, %v6419_v39  ;;  %v6403_v15 = vld [vmem:[#allocation13 + $0x628] sm:$0xff] }
 0x491   : > { %9543 = vmatprep.subr.bf16.mxu1 %v11691_v41  ;;  %9584 = vmatprep.subr.bf16.mxu0 %v11819_v48  ;;  %v11795_v48 = vcombine.high %v6551_v2, %v6555_v16  ;;  %v4150_v44 = vadd.f32 %v4147_v27, %v4128_v4  ;;  %v6527_v4 = vld [vmem:[#allocation13 + $0xa08] sm:$0xff] }
 0x493   : > { %v4158_v58 = vpop.permute.xlu1 %4157 }
 0x494   : > { %9544 = vmatpush2.bf16.msra.mxu1 %v11690_v52  ;;  %9585 = vmatpush2.bf16.msra.mxu0 %v11818_v37  ;;  %v4169_v28 = vmul.f32 %v4167_v1, %v4158_v58  ;;  %v6547_v52 = vld [vmem:[#allocation13 + $0xaa8] sm:$0xff]  ;;  %v4170_v37 = vmul.f32 %v4167_v1, %v4162_v33 }
 0x495   : > { %9545 = vmatprep.subr.bf16.mxu1 %v11683_v56  ;;  %9586 = vmatprep.subr.bf16.mxu0 %v11811_v31  ;;  %v11666_v31 = vcombine.low %v6423_v21, %v6427_v47  ;;  %v11787_v45 = vcombine.high %v6543_v51, %v6547_v52  ;;  %v6411_v58 = vld [vmem:[#allocation13 + $0x668] sm:$0xff]  ;;  %v4219_v21 = vpop.permute.xlu0 %4218 }
 0x496   : > { %v4172_v26 = vadd.f32 %v4169_v28, %v4150_v44  ;;  %v11651_v2 = vcombine.high %v6407_v50, %v6411_v58  ;;  %v11650_v33 = vcombine.low %v6407_v50, %v6411_v58  ;;  %v6531_v28 = vld [vmem:[#allocation13 + $0xa28] sm:$0xff] }
 0x497   : > { %v6639_v58 = vld [vmem:[#allocation13 + $0xd88] sm:$0xff] }
 0x498   : > { %9546 = vmatpush2.bf16.msra.mxu1 %v11682_v13  ;;  %9587 = vmatpush2.bf16.msra.mxu0 %v11810_v17  ;;  %v4121_v29 = vpop.permute.xlu1 %4120  ;;  %v6535_v13 = vld [vmem:[#allocation13 + $0xa48] sm:$0xff]  ;;  %v11658_v17 = vcombine.low %v6415_v49, %v6419_v39 }
 0x499   : > { %v4129_v41 = vmul.f32 %v4126_v22, %v4121_v29  ;;  %9547 = vmatprep.subr.bf16.mxu1 %v11675_v32  ;;  %9588 = vmatprep.subr.bf16.mxu0 %v11803_v18  ;;  %v11786_v32 = vcombine.low %v6543_v51, %v6547_v52  ;;  %v4182_v18 = vadd.f32 %v11189_v23, %v4172_v26  ;;  %v6647_v52 = vld [vmem:[#allocation13 + $0xdc8] sm:$0xff] }
 0x49a   : > { %v11779_v16 = vcombine.high %v6535_v13, %v6539_v59  ;;  %v11771_v51 = vcombine.high %v6527_v4, %v6531_v28 }
 0x49b   : > { %v4151_v56 = vadd.f32 %v4148_v54, %v4129_v41 }
 0x49c   : > { %9548 = vmatpush2.bf16.msra.mxu1 %v11674_v35  ;;  %9589 = vmatpush2.bf16.msra.mxu0 %v11802_v36 }
 0x49d   : > { %v4173_v25 = vadd.f32 %v4170_v37, %v4151_v56  ;;  %9549 = vmatprep.subr.bf16.mxu1 %v11667_v43  ;;  %9590 = vmatprep.subr.bf16.mxu0 %v11795_v48  ;;  %v4209_v22 = vpop.permute.xlu1 %4208  ;;  %v6399_v43 = vld [vmem:[#allocation13 + $0x608] sm:$0xff]  ;;  %v11778_v48 = vcombine.low %v6535_v13, %v6539_v59  ;;  %v6718_v56 = vld [vmem:[#allocation14] sm:$0xff] }
 0x49e   : > { %v4221_v40 = vmul.f32 %v4209_v22, %v4181_v62  ;;  %v11643_v49 = vcombine.high %v6399_v43, %v6403_v15  ;;  %v6651_v37 = vld [vmem:[#allocation13 + $0xde8] sm:$0xff]  ;;  %v6268_v62 = vld [vmem:[#allocation13 + $0x1f0] sm:$0xff]  ;;  %v9283_v50 = vrot.slane %v6718_v56, %v15215_v5 }
 0x49f   : > { %v4183_v1 = vadd.f32 %v11189_v23, %v4173_v25  ;;  %v11770_v25 = vcombine.low %v6527_v4, %v6531_v28 }
 0x4a0   : > { %v4224_v47 = vsub.f32 %v4221_v40, %v15432_v38  ;;  %9550 = vmatpush2.bf16.msra.mxu1 %v11666_v31  ;;  %9591 = vmatpush2.bf16.msra.mxu0 %v11794_v60  ;;  %v6264_v60 = vld [vmem:[#allocation13 + $0x1d0] sm:$0xff] }
 0x4a1   : > { %v4223_v14 = vmul.f32 %v4219_v21, %v4183_v1  ;;  %9551 = vmatprep.subr.bf16.mxu1 %v11659_v10  ;;  %9592 = vmatprep.subr.bf16.mxu0 %v11787_v45  ;;  %v4214_v27 = vpop.permute.xlu1 %4213  ;;  %v11891_v45 = vcombine.high %v6647_v52, %v6651_v37  ;;  %v11509_v40 = vcombine.high %v6264_v60, %v6268_v62  ;;  %v6256_v1 = vld [vmem:[#allocation13 + $0x190] sm:$0xff] }
 0x4a2   : > { %v4232_v35 = vmul.f32 %v13234_v6, %v4224_v47  ;;  %v4222_v36 = vmul.f32 %v4214_v27, %v4182_v18  ;;  %v9287_v21 = vrot.slane %v6718_v56, %v15168_v63  ;;  %v11890_v47 = vcombine.low %v6647_v52, %v6651_v37  ;;  %v6631_v27 = vld [vmem:[#allocation13 + $0xd48] sm:$0xff] }
 0x4a3   : > { %v4226_v29 = vsub.f32 %v4223_v14, %v15432_v38 }
 0x4a4   : > { %v4238_v54 = vrot.slane %v4232_v35, %v15215_v5  ;;  %v4225_v41 = vsub.f32 %v4222_v36, %v15432_v38  ;;  %9552 = vmatpush2.bf16.msra.mxu1 %v11658_v17  ;;  %9593 = vmatpush2.bf16.msra.mxu0 %v11786_v32  ;;  %v11642_v38 = vcombine.low %v6399_v43, %v6403_v15  ;;  %v6260_v17 = vld [vmem:[#allocation13 + $0x1b0] sm:$0xff] }
 0x4a5   : > { %v9354_v23 = vpop.f32.mrf.mxu0  ;;  %9553 = vmatprep.subr.bf16.mxu1 %v11651_v2  ;;  %9594 = vmatprep.subr.bf16.mxu0 %v11779_v16  ;;  %v4234_v26 = vmul.f32 %v13234_v6, %v4226_v29  ;;  %v11508_v32 = vcombine.low %v6264_v60, %v6268_v62  ;;  %v11501_v14 = vcombine.high %v6256_v1, %v6260_v17  ;;  %v6635_v2 = vld [vmem:[#allocation13 + $0xd68] sm:$0xff]  ;;  %v6252_v36 = vld [vmem:[#allocation13 + $0x170] sm:$0xff] }
 0x4a6   : > { %v4233_v44 = vmul.f32 %v13234_v6, %v4225_v41  ;;  %v4239_v39 = vsub.f32 %v4232_v35, %v4238_v54  ;;  %v6643_v6 = vld [vmem:[#allocation13 + $0xda8] sm:$0xff]  ;;  %v9355_v18 = vadd.f32 %v9354_v23, %v9283_v50  ;;  %v6248_v35 = vld [vmem:[#allocation13 + $0x150] sm:$0xff]  ;;  %v11500_v4 = vcombine.low %v6256_v1, %v6260_v17 }
 0x4a7   : > { %v9356_v31 = vpop.f32.mrf.mxu0  ;;  %v4241_v59 = vsub.f32 %v4234_v26, %v4238_v54  ;;  %v11883_v5 = vcombine.high %v6639_v58, %v6643_v6  ;;  %v11882_v15 = vcombine.low %v6639_v58, %v6643_v6  ;;  %v11875_v28 = vcombine.high %v6631_v27, %v6635_v2  ;;  %v6623_v41 = vld [vmem:[#allocation13 + $0xd08] sm:$0xff]  ;;  %v6232_v60 = vld [vmem:[#allocation13 + $0xd0] sm:$0xff] }
 0x4a8   : > { %9554 = vmatpush2.bf16.msra.mxu1 %v11650_v33  ;;  %9595 = vmatpush2.bf16.msra.mxu0 %v11778_v48  ;;  %v4240_v22 = vsub.f32 %v4233_v44, %v4238_v54  ;;  %v9357_v63 = vadd.f32 %v9356_v31, %v9287_v21  ;;  %v11493_v54 = vcombine.high %v6248_v35, %v6252_v36  ;;  %v6627_v48 = vld [vmem:[#allocation13 + $0xd28] sm:$0xff]  ;;  %v6244_v44 = vld [vmem:[#allocation13 + $0x130] sm:$0xff] }
 0x4a9   : > { %v9358_v10 = vpop.f32.mrf.mxu0  ;;  %4245 = vrot.lane.b32.xlu1 %v4239_v39, %s13712_s2  ;;  %9555 = vmatprep.subr.bf16.mxu1 %v11643_v49  ;;  %v6240_v49 = vld [vmem:[#allocation13 + $0x110] sm:$0xff]  ;;  %v11874_v39 = vcombine.low %v6631_v27, %v6635_v2  ;;  %v11492_v52 = vcombine.low %v6248_v35, %v6252_v36  ;;  %v11867_v37 = vcombine.high %v6623_v41, %v6627_v48  ;;  %v6615_v31 = vld [vmem:[#allocation13 + $0xcc8] sm:$0xff] }
 0x4aa   : > { %9596 = vmatprep.subr.bf16.mxu0 %v11771_v51  ;;  %4247 = vrot.lane.b32.xlu0 %v4240_v22, %s13712_s2  ;;  %v11485_v56 = vcombine.high %v6240_v49, %v6244_v44  ;;  %v6619_v26 = vld [vmem:[#allocation13 + $0xce8] sm:$0xff]  ;;  %v6236_v62 = vld [vmem:[#allocation13 + $0xf0] sm:$0xff] }
 0x4ab   : > { %v9359_v13 = vpop.f32.mrf.mxu0  ;;  %v11859_v22 = vcombine.high %v6615_v31, %v6619_v26  ;;  %v11477_v10 = vcombine.high %v6232_v60, %v6236_v62  ;;  %v6611_v50 = vld [vmem:[#allocation13 + $0xca8] sm:$0xff]  ;;  %v6228_v58 = vld [vmem:[#allocation13 + $0xb0] sm:$0xff] }
 0x4ac   : > { %9556 = vmatpush2.bf16.msra.mxu1 %v11642_v38  ;;  %9597 = vmatpush2.bf16.msra.mxu0 %v11770_v25  ;;  %v11866_v38 = vcombine.low %v6623_v41, %v6627_v48  ;;  %v11484_v25 = vcombine.low %v6240_v49, %v6244_v44  ;;  %v11858_v13 = vcombine.low %v6615_v31, %v6619_v26  ;;  %v6599_v17 = vld [vmem:[#allocation13 + $0xc48] sm:$0xff]  ;;  %v6208_v35 = vld [vmem:[#allocation13 + $0x10] sm:$0xff] }
 0x4ad   : > { %4249 = vrot.lane.b32.xlu1 %v4241_v59, %s13712_s2  ;;  %9607 = vmatprep.subr.bf16.mxu1 %v11891_v45  ;;  %v6607_v45 = vld [vmem:[#allocation13 + $0xc88] sm:$0xff]  ;;  %v11476_v59 = vcombine.low %v6232_v60, %v6236_v62  ;;  %v6212_v36 = vld [vmem:[#allocation13 + $0x30] sm:$0xff] }
 0x4ae   : > { %9648 = vmatprep.subr.bf16.mxu0 %v11509_v40  ;;  %v6224_v40 = vld [vmem:[#allocation13 + $0x90] sm:$0xff]  ;;  %v11851_v6 = vcombine.high %v6607_v45, %v6611_v50  ;;  %v6603_v21 = vld [vmem:[#allocation13 + $0xc68] sm:$0xff]  ;;  %v11452_v49 = vcombine.low %v6208_v35, %v6212_v36 }
 0x4af   : > { %9558 = vmatmul.mubr.bf16.vlgmr.msra.gmra.mxu1 %v15403_v61  ;;  %9599 = vmatmul.mubr.bf16.vlgmr.msra.gmra.mxu0 %v15471_v9  ;;  %v9395_v16 = vpop.f32.mrf.mxu1  ;;  %v11469_v1 = vcombine.high %v6224_v40, %v6228_v58  ;;  %v6591_v2 = vld [vmem:[#allocation13 + $0xc08] sm:$0xff]  ;;  %v6328_v41 = vld [vmem:[#allocation13 + $0x3d0] sm:$0xff] }
 0x4b0   : > { %v15520_v43 = vadd.f32 %v9395_v16, %v9355_v18  ;;  %9608 = vmatpush1.bf16.msra.mxu1 %v11890_v47  ;;  %9639 = vmatprep.mubr.bf16.mxu1 %v15482_v34  ;;  %v6216_v47 = vld [vmem:[#allocation13 + $0x50] sm:$0xff]  ;;  %v11850_v18 = vcombine.low %v6607_v45, %v6611_v50  ;;  %v6595_v16 = vld [vmem:[#allocation13 + $0xc28] sm:$0xff] }
 0x4b1   : > { %9649 = vmatpush1.bf16.msra.mxu0 %v11508_v32  ;;  %9680 = vmatprep.mubr.bf16.mxu0 %v15379_v12  ;;  %v9397_v33 = vpop.f32.mrf.mxu1  ;;  %v6220_v32 = vld [vmem:[#allocation13 + $0x70] sm:$0xff] }
 0x4b2   : > { %v15524_v29 = vadd.f32 %v9397_v33, %v9357_v63  ;;  %9609 = vmatprep.subr.bf16.mxu1 %v11883_v5  ;;  %9650 = vmatprep.subr.bf16.mxu0 %v11501_v14  ;;  %v11468_v5 = vcombine.low %v6224_v40, %v6228_v58  ;;  %v11843_v14 = vcombine.high %v6599_v17, %v6603_v21  ;;  %v6332_v48 = vld [vmem:[#allocation13 + $0x3f0] sm:$0xff] }
 0x4b3   : > { %v9399_v23 = vpop.f32.mrf.mxu1  ;;  %v11461_v27 = vcombine.high %v6216_v47, %v6220_v32  ;;  %v11842_v63 = vcombine.low %v6599_v17, %v6603_v21  ;;  %v11835_v33 = vcombine.high %v6591_v2, %v6595_v16  ;;  %v11572_v26 = vcombine.low %v6328_v41, %v6332_v48 }
 0x4b4   : > { %9610 = vmatpush1.bf16.msra.mxu1 %v11882_v15  ;;  %v11460_v15 = vcombine.low %v6216_v47, %v6220_v32  ;;  %v11834_v23 = vcombine.low %v6591_v2, %v6595_v16 }
 0x4b5   : > { %9651 = vmatpush1.bf16.msra.mxu0 %v11500_v4  ;;  %v9400_v51 = vpop.f32.mrf.mxu1  ;;  %9611 = vmatprep.subr.bf16.mxu1 %v11875_v28  ;;  %v11453_v4 = vcombine.high %v6208_v35, %v6212_v36  ;;  %v6711_v28 = vld [vmem:[#allocation13 + $0xfc8] sm:$0xff] }
 0x4b6   : > { %9652 = vmatprep.subr.bf16.mxu0 %v11493_v54  ;;  %v6715_v54 = vld [vmem:[#allocation13 + $0xfe8] sm:$0xff] }
 0x4b7   : > { %v11955_v44 = vcombine.high %v6711_v28, %v6715_v54  ;;  %v6703_v51 = vld [vmem:[#allocation13 + $0xf88] sm:$0xff]  ;;  %v11954_v31 = vcombine.low %v6711_v28, %v6715_v54 }
 0x4b8   : > { %9612 = vmatpush1.bf16.msra.mxu1 %v11874_v39  ;;  %v11573_v39 = vcombine.high %v6328_v41, %v6332_v48 }
 0x4b9   : > { %9653 = vmatpush1.bf16.msra.mxu0 %v11492_v52  ;;  %9613 = vmatprep.subr.bf16.mxu1 %v11867_v37  ;;  %v6707_v52 = vld [vmem:[#allocation13 + $0xfa8] sm:$0xff]  ;;  %v6320_v37 = vld [vmem:[#allocation13 + $0x390] sm:$0xff] }
 0x4ba   : > { %9654 = vmatprep.subr.bf16.mxu0 %v11485_v56  ;;  %v6324_v56 = vld [vmem:[#allocation13 + $0x3b0] sm:$0xff]  ;;  %v11947_v60 = vcombine.high %v6703_v51, %v6707_v52  ;;  %v11946_v45 = vcombine.low %v6703_v51, %v6707_v52 }
 0x4bb   : > { %v11565_v62 = vcombine.high %v6320_v37, %v6324_v56  ;;  %v11564_v50 = vcombine.low %v6320_v37, %v6324_v56 }
 0x4bc   : > { %9614 = vmatpush1.bf16.msra.mxu1 %v11866_v38  ;;  %v6695_v38 = vld [vmem:[#allocation13 + $0xf48] sm:$0xff] }
 0x4bd   : > { %9655 = vmatpush1.bf16.msra.mxu0 %v11484_v25  ;;  %9615 = vmatprep.subr.bf16.mxu1 %v11859_v22  ;;  %v6699_v25 = vld [vmem:[#allocation13 + $0xf68] sm:$0xff]  ;;  %v6312_v22 = vld [vmem:[#allocation13 + $0x350] sm:$0xff] }
 0x4be   : > { %9656 = vmatprep.subr.bf16.mxu0 %v11477_v10  ;;  %v6316_v10 = vld [vmem:[#allocation13 + $0x370] sm:$0xff]  ;;  %v11939_v40 = vcombine.high %v6695_v38, %v6699_v25  ;;  %v11938_v17 = vcombine.low %v6695_v38, %v6699_v25 }
 0x4bf   : > { %v11557_v58 = vcombine.high %v6312_v22, %v6316_v10  ;;  %v11556_v21 = vcombine.low %v6312_v22, %v6316_v10 }
 0x4c0   : > { %9616 = vmatpush1.bf16.msra.mxu1 %v11858_v13  ;;  %v6687_v13 = vld [vmem:[#allocation13 + $0xf08] sm:$0xff] }
 0x4c1   : > { %9657 = vmatpush1.bf16.msra.mxu0 %v11476_v59  ;;  %9617 = vmatprep.subr.bf16.mxu1 %v11851_v6  ;;  %v6691_v59 = vld [vmem:[#allocation13 + $0xf28] sm:$0xff]  ;;  %v6304_v6 = vld [vmem:[#allocation13 + $0x310] sm:$0xff] }
 0x4c2   : > { %9658 = vmatprep.subr.bf16.mxu0 %v11469_v1  ;;  %v6308_v1 = vld [vmem:[#allocation13 + $0x330] sm:$0xff]  ;;  %v11931_v47 = vcombine.high %v6687_v13, %v6691_v59  ;;  %v11930_v2 = vcombine.low %v6687_v13, %v6691_v59 }
 0x4c3   : > { %v11549_v32 = vcombine.high %v6304_v6, %v6308_v1  ;;  %v11548_v16 = vcombine.low %v6304_v6, %v6308_v1 }
 0x4c4   : > { %9618 = vmatpush1.bf16.msra.mxu1 %v11850_v18  ;;  %v6679_v18 = vld [vmem:[#allocation13 + $0xec8] sm:$0xff] }
 0x4c5   : > { %9659 = vmatpush1.bf16.msra.mxu0 %v11468_v5  ;;  %9619 = vmatprep.subr.bf16.mxu1 %v11843_v14  ;;  %v6683_v5 = vld [vmem:[#allocation13 + $0xee8] sm:$0xff]  ;;  %v6296_v14 = vld [vmem:[#allocation13 + $0x2d0] sm:$0xff] }
 0x4c6   : > { %9660 = vmatprep.subr.bf16.mxu0 %v11461_v27  ;;  %v6300_v27 = vld [vmem:[#allocation13 + $0x2f0] sm:$0xff]  ;;  %v11923_v35 = vcombine.high %v6679_v18, %v6683_v5  ;;  %v11922_v28 = vcombine.low %v6679_v18, %v6683_v5 }
 0x4c7   : > { %v11541_v36 = vcombine.high %v6296_v14, %v6300_v27  ;;  %v11540_v54 = vcombine.low %v6296_v14, %v6300_v27  ;;  %v6516_v18 = vld [vmem:[#allocation13 + $0x9b0] sm:$0xff] }
 0x4c8   : > { %9620 = vmatpush1.bf16.msra.mxu1 %v11842_v63  ;;  %v6671_v63 = vld [vmem:[#allocation13 + $0xe88] sm:$0xff]  ;;  %v6376_v27 = vld [vmem:[#allocation13 + $0x550] sm:$0xff] }
 0x4c9   : > { %9661 = vmatpush1.bf16.msra.mxu0 %v11460_v15  ;;  %9621 = vmatprep.subr.bf16.mxu1 %v11835_v33  ;;  %v6675_v15 = vld [vmem:[#allocation13 + $0xea8] sm:$0xff]  ;;  %v6288_v33 = vld [vmem:[#allocation13 + $0x290] sm:$0xff] }
 0x4ca   : > { %9662 = vmatprep.subr.bf16.mxu0 %v11453_v4  ;;  %v6292_v4 = vld [vmem:[#allocation13 + $0x2b0] sm:$0xff]  ;;  %v11915_v41 = vcombine.high %v6671_v63, %v6675_v15  ;;  %v11914_v51 = vcombine.low %v6671_v63, %v6675_v15 }
 0x4cb   : > { %v11533_v48 = vcombine.high %v6288_v33, %v6292_v4  ;;  %v11532_v52 = vcombine.low %v6288_v33, %v6292_v4  ;;  %v6508_v63 = vld [vmem:[#allocation13 + $0x970] sm:$0xff] }
 0x4cc   : > { %9622 = vmatpush1.bf16.msra.mxu1 %v11834_v23  ;;  %v6663_v23 = vld [vmem:[#allocation13 + $0xe48] sm:$0xff] }
 0x4cd   : > { %9663 = vmatpush1.bf16.msra.mxu0 %v11452_v49  ;;  %9623 = vmatprep.subr.bf16.mxu1 %v11955_v44  ;;  %v6667_v49 = vld [vmem:[#allocation13 + $0xe68] sm:$0xff]  ;;  %v6280_v44 = vld [vmem:[#allocation13 + $0x250] sm:$0xff] }
 0x4ce   : > { %9664 = vmatprep.subr.bf16.mxu0 %v11573_v39  ;;  %v6284_v39 = vld [vmem:[#allocation13 + $0x270] sm:$0xff]  ;;  %v11907_v37 = vcombine.high %v6663_v23, %v6667_v49  ;;  %v11906_v38 = vcombine.low %v6663_v23, %v6667_v49 }
 0x4cf   : > { %v11525_v56 = vcombine.high %v6280_v44, %v6284_v39  ;;  %v11524_v25 = vcombine.low %v6280_v44, %v6284_v39  ;;  %v6368_v23 = vld [vmem:[#allocation13 + $0x510] sm:$0xff] }
 0x4d0   : > { %9624 = vmatpush2.bf16.msra.mxu1 %v11954_v31  ;;  %v6655_v31 = vld [vmem:[#allocation13 + $0xe08] sm:$0xff]  ;;  %v6372_v49 = vld [vmem:[#allocation13 + $0x530] sm:$0xff] }
 0x4d1   : > { %9665 = vmatpush2.bf16.msra.mxu0 %v11572_v26  ;;  %9625 = vmatprep.subr.bf16.mxu1 %v11947_v60  ;;  %v6659_v26 = vld [vmem:[#allocation13 + $0xe28] sm:$0xff]  ;;  %v6272_v60 = vld [vmem:[#allocation13 + $0x210] sm:$0xff] }
 0x4d2   : > { %9666 = vmatprep.subr.bf16.mxu0 %v11565_v62  ;;  %v6276_v62 = vld [vmem:[#allocation13 + $0x230] sm:$0xff]  ;;  %v11899_v22 = vcombine.high %v6655_v31, %v6659_v26  ;;  %v11898_v13 = vcombine.low %v6655_v31, %v6659_v26 }
 0x4d3   : > { %v11517_v10 = vcombine.high %v6272_v60, %v6276_v62  ;;  %v11516_v59 = vcombine.low %v6272_v60, %v6276_v62  ;;  %v6496_v44 = vld [vmem:[#allocation13 + $0x910] sm:$0xff] }
 0x4d4   : > { %9626 = vmatpush2.bf16.msra.mxu1 %v11946_v45  ;;  %v6392_v45 = vld [vmem:[#allocation13 + $0x5d0] sm:$0xff] }
 0x4d5   : > { %9667 = vmatpush2.bf16.msra.mxu0 %v11564_v50  ;;  %9627 = vmatprep.subr.bf16.mxu1 %v11939_v40  ;;  %v6396_v50 = vld [vmem:[#allocation13 + $0x5f0] sm:$0xff] }
 0x4d6   : > { %9668 = vmatprep.subr.bf16.mxu0 %v11557_v58  ;;  %v6520_v40 = vld [vmem:[#allocation13 + $0x9d0] sm:$0xff]  ;;  %v11637_v6 = vcombine.high %v6392_v45, %v6396_v50 }
 0x4d7   : > { %v6524_v58 = vld [vmem:[#allocation13 + $0x9f0] sm:$0xff] }
 0x4d8   : > { %9628 = vmatpush2.bf16.msra.mxu1 %v11938_v17  ;;  %v11765_v1 = vcombine.high %v6520_v40, %v6524_v58  ;;  %v6384_v17 = vld [vmem:[#allocation13 + $0x590] sm:$0xff]  ;;  %v11764_v5 = vcombine.low %v6520_v40, %v6524_v58 }
 0x4d9   : > { %9669 = vmatpush2.bf16.msra.mxu0 %v11556_v21  ;;  %9629 = vmatprep.subr.bf16.mxu1 %v11931_v47  ;;  %v6388_v21 = vld [vmem:[#allocation13 + $0x5b0] sm:$0xff]  ;;  %v11636_v47 = vcombine.low %v6392_v45, %v6396_v50 }
 0x4da   : > { %9670 = vmatprep.subr.bf16.mxu0 %v11549_v32  ;;  %v6512_v32 = vld [vmem:[#allocation13 + $0x990] sm:$0xff]  ;;  %v11629_v14 = vcombine.high %v6384_v17, %v6388_v21  ;;  %v11628_v33 = vcombine.low %v6384_v17, %v6388_v21 }
 0x4db   : > { %v6500_v39 = vld [vmem:[#allocation13 + $0x930] sm:$0xff] }
 0x4dc   : > { %9630 = vmatpush2.bf16.msra.mxu1 %v11930_v2  ;;  %v6380_v2 = vld [vmem:[#allocation13 + $0x570] sm:$0xff]  ;;  %v11741_v31 = vcombine.high %v6496_v44, %v6500_v39 }
 0x4dd   : > { %9671 = vmatpush2.bf16.msra.mxu0 %v11548_v16  ;;  %9631 = vmatprep.subr.bf16.mxu1 %v11923_v35  ;;  %v11757_v35 = vcombine.high %v6512_v32, %v6516_v18  ;;  %v6360_v26 = vld [vmem:[#allocation13 + $0x4d0] sm:$0xff] }
 0x4de   : > { %9672 = vmatprep.subr.bf16.mxu0 %v11541_v36  ;;  %v6504_v36 = vld [vmem:[#allocation13 + $0x950] sm:$0xff] }
 0x4df   : > { %v6488_v60 = vld [vmem:[#allocation13 + $0x8d0] sm:$0xff] }
 0x4e0   : > { %9632 = vmatpush2.bf16.msra.mxu1 %v11922_v28  ;;  %v11756_v28 = vcombine.low %v6512_v32, %v6516_v18  ;;  %v6492_v62 = vld [vmem:[#allocation13 + $0x8f0] sm:$0xff] }
 0x4e1   : > { %9673 = vmatpush2.bf16.msra.mxu0 %v11540_v54  ;;  %9633 = vmatprep.subr.bf16.mxu1 %v11915_v41  ;;  %v11621_v54 = vcombine.high %v6376_v27, %v6380_v2  ;;  %v6352_v45 = vld [vmem:[#allocation13 + $0x490] sm:$0xff] }
 0x4e2   : > { %9674 = vmatprep.subr.bf16.mxu0 %v11533_v48  ;;  %v11749_v48 = vcombine.high %v6504_v36, %v6508_v63  ;;  %v6356_v50 = vld [vmem:[#allocation13 + $0x4b0] sm:$0xff] }
 0x4e3   : > { %v6480_v40 = vld [vmem:[#allocation13 + $0x890] sm:$0xff]  ;;  %v11596_v18 = vcombine.low %v6352_v45, %v6356_v50 }
 0x4e4   : > { %9634 = vmatpush2.bf16.msra.mxu1 %v11914_v51  ;;  %v11620_v51 = vcombine.low %v6376_v27, %v6380_v2  ;;  %v6484_v58 = vld [vmem:[#allocation13 + $0x8b0] sm:$0xff] }
 0x4e5   : > { %9675 = vmatpush2.bf16.msra.mxu0 %v11532_v52  ;;  %9635 = vmatprep.subr.bf16.mxu1 %v11907_v37  ;;  %v11748_v37 = vcombine.low %v6504_v36, %v6508_v63  ;;  %v6344_v17 = vld [vmem:[#allocation13 + $0x450] sm:$0xff] }
 0x4e6   : > { %9676 = vmatprep.subr.bf16.mxu0 %v11525_v56  ;;  %v11613_v56 = vcombine.high %v6368_v23, %v6372_v49  ;;  %v6348_v21 = vld [vmem:[#allocation13 + $0x470] sm:$0xff] }
 0x4e7   : > { %v6476_v32 = vld [vmem:[#allocation13 + $0x870] sm:$0xff]  ;;  %v11588_v63 = vcombine.low %v6344_v17, %v6348_v21 }
 0x4e8   : > { %9636 = vmatpush2.bf16.msra.mxu1 %v11906_v38  ;;  %v11612_v38 = vcombine.low %v6368_v23, %v6372_v49  ;;  %v6336_v2 = vld [vmem:[#allocation13 + $0x410] sm:$0xff] }
 0x4e9   : > { %9677 = vmatpush2.bf16.msra.mxu0 %v11524_v25  ;;  %9637 = vmatprep.subr.bf16.mxu1 %v11899_v22  ;;  %v11740_v25 = vcombine.low %v6496_v44, %v6500_v39  ;;  %v6468_v36 = vld [vmem:[#allocation13 + $0x830] sm:$0xff] }
 0x4ea   : > { %9678 = vmatprep.subr.bf16.mxu0 %v11517_v10  ;;  %v11733_v10 = vcombine.high %v6488_v60, %v6492_v62  ;;  %v6584_v23 = vld [vmem:[#allocation13 + $0xbd0] sm:$0xff] }
 0x4eb   : > { %v6588_v49 = vld [vmem:[#allocation13 + $0xbf0] sm:$0xff] }
 0x4ec   : > { %9638 = vmatpush2.bf16.msra.mxu1 %v11898_v13 }
 0x4ed   : > { %9679 = vmatpush2.bf16.msra.mxu0 %v11516_v59  ;;  %9689 = vmatprep.subr.bf16.mxu1 %v11637_v6  ;;  %v11732_v59 = vcombine.low %v6488_v60, %v6492_v62  ;;  %v11597_v6 = vcombine.high %v6352_v45, %v6356_v50 }
 0x4ee   : > { %9730 = vmatprep.subr.bf16.mxu0 %v11765_v1  ;;  %v11725_v1 = vcombine.high %v6480_v40, %v6484_v58 }
 0x4ef   : > { %9640 = vmatmul.mubr.bf16.vlgmr.msra.gmra.mxu1 %v15484_v53  ;;  %v9436_v16 = vpop.f32.mrf.mxu0 }
 0x4f0   : > { %9681 = vmatmul.mubr.bf16.vlgmr.msra.gmra.mxu0 %v15394_v20  ;;  %v15529_v15 = vadd.f32 %v9436_v16, %v15520_v43  ;;  %9690 = vmatpush1.bf16.msra.mxu1 %v11636_v47  ;;  %v6472_v47 = vld [vmem:[#allocation13 + $0x850] sm:$0xff] }
 0x4f1   : > { %9721 = vmatprep.mubr.bf16.mxu1 %v15399_v3  ;;  %9731 = vmatpush1.bf16.msra.mxu0 %v11764_v5  ;;  %v9438_v4 = vpop.f32.mrf.mxu0  ;;  %v11724_v5 = vcombine.low %v6480_v40, %v6484_v58  ;;  %v11717_v27 = vcombine.high %v6472_v47, %v6476_v32  ;;  %v6340_v16 = vld [vmem:[#allocation13 + $0x430] sm:$0xff] }
 0x4f2   : > { %9762 = vmatprep.mubr.bf16.mxu0 %v15468_v42  ;;  %v15534_v41 = vadd.f32 %v9438_v4, %v15524_v29  ;;  %9691 = vmatprep.subr.bf16.mxu1 %v11629_v14  ;;  %v6364_v29 = vld [vmem:[#allocation13 + $0x4f0] sm:$0xff]  ;;  %v11589_v14 = vcombine.high %v6344_v17, %v6348_v21  ;;  %v11581_v4 = vcombine.high %v6336_v2, %v6340_v16 }
 0x4f3   : > { %9732 = vmatprep.subr.bf16.mxu0 %v11757_v35  ;;  %v9440_v43 = vpop.f32.mrf.mxu0  ;;  %v11605_v22 = vcombine.high %v6360_v26, %v6364_v29  ;;  %v11604_v13 = vcombine.low %v6360_v26, %v6364_v29  ;;  %v6464_v35 = vld [vmem:[#allocation13 + $0x810] sm:$0xff]  ;;  %v11828_v29 = vcombine.low %v6584_v23, %v6588_v49 }
 0x4f4   : > { %9692 = vmatpush1.bf16.msra.mxu1 %v11628_v33  ;;  %v11716_v33 = vcombine.low %v6472_v47, %v6476_v32  ;;  %v11580_v43 = vcombine.low %v6336_v2, %v6340_v16  ;;  %v11708_v44 = vcombine.low %v6464_v35, %v6468_v36 }
 0x4f5   : > { %9733 = vmatpush1.bf16.msra.mxu0 %v11756_v28  ;;  %v9441_v52 = vpop.f32.mrf.mxu0  ;;  %9693 = vmatprep.subr.bf16.mxu1 %v11621_v54  ;;  %v11709_v28 = vcombine.high %v6464_v35, %v6468_v36  ;;  %v6456_v54 = vld [vmem:[#allocation13 + $0x7d0] sm:$0xff] }
 0x4f6   : > { %9734 = vmatprep.subr.bf16.mxu0 %v11749_v48  ;;  %v6460_v48 = vld [vmem:[#allocation13 + $0x7f0] sm:$0xff] }
 0x4f7   : > { %v11701_v39 = vcombine.high %v6456_v54, %v6460_v48  ;;  %v6448_v52 = vld [vmem:[#allocation13 + $0x790] sm:$0xff]  ;;  %v11700_v26 = vcombine.low %v6456_v54, %v6460_v48 }
 0x4f8   : > { %9694 = vmatpush1.bf16.msra.mxu1 %v11620_v51  ;;  %v11829_v51 = vcombine.high %v6584_v23, %v6588_v49  ;;  %v6548_v54 = vld [vmem:[#allocation13 + $0xab0] sm:$0xff] }
 0x4f9   : > { %9735 = vmatpush1.bf16.msra.mxu0 %v11748_v37  ;;  %9695 = vmatprep.subr.bf16.mxu1 %v11613_v56  ;;  %v6452_v37 = vld [vmem:[#allocation13 + $0x7b0] sm:$0xff] }
 0x4fa   : > { %9736 = vmatprep.subr.bf16.mxu0 %v11741_v31  ;;  %v6576_v56 = vld [vmem:[#allocation13 + $0xb90] sm:$0xff]  ;;  %v11693_v60 = vcombine.high %v6448_v52, %v6452_v37  ;;  %v11692_v45 = vcombine.low %v6448_v52, %v6452_v37 }
 0x4fb   : > { %v6580_v31 = vld [vmem:[#allocation13 + $0xbb0] sm:$0xff] }
 0x4fc   : > { %9696 = vmatpush1.bf16.msra.mxu1 %v11612_v38  ;;  %v11821_v62 = vcombine.high %v6576_v56, %v6580_v31  ;;  %v6440_v38 = vld [vmem:[#allocation13 + $0x750] sm:$0xff]  ;;  %v11820_v50 = vcombine.low %v6576_v56, %v6580_v31 }
 0x4fd   : > { %9737 = vmatpush1.bf16.msra.mxu0 %v11740_v25  ;;  %9697 = vmatprep.subr.bf16.mxu1 %v11605_v22  ;;  %v6444_v25 = vld [vmem:[#allocation13 + $0x770] sm:$0xff] }
 0x4fe   : > { %9738 = vmatprep.subr.bf16.mxu0 %v11733_v10  ;;  %v6568_v22 = vld [vmem:[#allocation13 + $0xb50] sm:$0xff]  ;;  %v11685_v40 = vcombine.high %v6440_v38, %v6444_v25  ;;  %v11684_v17 = vcombine.low %v6440_v38, %v6444_v25 }
 0x4ff   : > { %v6572_v10 = vld [vmem:[#allocation13 + $0xb70] sm:$0xff] }
 0x500   : > { %9698 = vmatpush1.bf16.msra.mxu1 %v11604_v13  ;;  %v11813_v58 = vcombine.high %v6568_v22, %v6572_v10  ;;  %v6432_v13 = vld [vmem:[#allocation13 + $0x710] sm:$0xff]  ;;  %v11812_v21 = vcombine.low %v6568_v22, %v6572_v10 }
 0x501   : > { %9739 = vmatpush1.bf16.msra.mxu0 %v11732_v59  ;;  %9699 = vmatprep.subr.bf16.mxu1 %v11597_v6  ;;  %v6436_v59 = vld [vmem:[#allocation13 + $0x730] sm:$0xff] }
 0x502   : > { %9740 = vmatprep.subr.bf16.mxu0 %v11725_v1  ;;  %v6560_v6 = vld [vmem:[#allocation13 + $0xb10] sm:$0xff]  ;;  %v11677_v47 = vcombine.high %v6432_v13, %v6436_v59  ;;  %v11676_v2 = vcombine.low %v6432_v13, %v6436_v59 }
 0x503   : > { %v6564_v1 = vld [vmem:[#allocation13 + $0xb30] sm:$0xff] }
 0x504   : > { %9700 = vmatpush1.bf16.msra.mxu1 %v11596_v18  ;;  %v11805_v32 = vcombine.high %v6560_v6, %v6564_v1  ;;  %v6424_v18 = vld [vmem:[#allocation13 + $0x6d0] sm:$0xff]  ;;  %v11804_v16 = vcombine.low %v6560_v6, %v6564_v1 }
 0x505   : > { %9741 = vmatpush1.bf16.msra.mxu0 %v11724_v5  ;;  %9701 = vmatprep.subr.bf16.mxu1 %v11589_v14  ;;  %v6428_v5 = vld [vmem:[#allocation13 + $0x6f0] sm:$0xff] }
 0x506   : > { %9742 = vmatprep.subr.bf16.mxu0 %v11717_v27  ;;  %v6552_v14 = vld [vmem:[#allocation13 + $0xad0] sm:$0xff]  ;;  %v11669_v35 = vcombine.high %v6424_v18, %v6428_v5  ;;  %v11668_v49 = vcombine.low %v6424_v18, %v6428_v5 }
 0x507   : > { %v6556_v27 = vld [vmem:[#allocation13 + $0xaf0] sm:$0xff] }
 0x508   : > { %9702 = vmatpush1.bf16.msra.mxu1 %v11588_v63  ;;  %v11797_v36 = vcombine.high %v6552_v14, %v6556_v27  ;;  %v6416_v63 = vld [vmem:[#allocation13 + $0x690] sm:$0xff] }
 0x509   : > { %9743 = vmatpush1.bf16.msra.mxu0 %v11716_v33  ;;  %9703 = vmatprep.subr.bf16.mxu1 %v11581_v4  ;;  %v6420_v33 = vld [vmem:[#allocation13 + $0x6b0] sm:$0xff] }
 0x50a   : > { %9744 = vmatprep.subr.bf16.mxu0 %v11709_v28  ;;  %v6544_v28 = vld [vmem:[#allocation13 + $0xa90] sm:$0xff] }
 0x50b   : > { %v11789_v37 = vcombine.high %v6544_v28, %v6548_v54  ;;  %v6408_v56 = vld [vmem:[#allocation13 + $0x650] sm:$0xff]  ;;  %v11788_v38 = vcombine.low %v6544_v28, %v6548_v54 }
 0x50c   : > { %9704 = vmatpush1.bf16.msra.mxu1 %v11580_v43  ;;  %v6400_v10 = vld [vmem:[#allocation13 + $0x610] sm:$0xff] }
 0x50d   : > { %9745 = vmatpush1.bf16.msra.mxu0 %v11708_v44  ;;  %9705 = vmatprep.subr.bf16.mxu1 %v11701_v39  ;;  %v11796_v39 = vcombine.low %v6552_v14, %v6556_v27  ;;  %v6648_v6 = vld [vmem:[#allocation13 + $0xdd0] sm:$0xff] }
 0x50e   : > { %9746 = vmatprep.subr.bf16.mxu0 %v11829_v51  ;;  %v11661_v51 = vcombine.high %v6416_v63, %v6420_v33  ;;  %v6652_v1 = vld [vmem:[#allocation13 + $0xdf0] sm:$0xff] }
 0x50f   : > { %v11893_v18 = vcombine.high %v6648_v6, %v6652_v1  ;;  %v6640_v14 = vld [vmem:[#allocation13 + $0xd90] sm:$0xff] }
 0x510   : > { %9706 = vmatpush2.bf16.msra.mxu1 %v11700_v26  ;;  %v6536_v26 = vld [vmem:[#allocation13 + $0xa50] sm:$0xff] }
 0x511   : > { %9747 = vmatpush2.bf16.msra.mxu0 %v11828_v29  ;;  %9707 = vmatprep.subr.bf16.mxu1 %v11693_v60  ;;  %v6540_v29 = vld [vmem:[#allocation13 + $0xa70] sm:$0xff]  ;;  %v11660_v60 = vcombine.low %v6416_v63, %v6420_v33 }
 0x512   : > { %9748 = vmatprep.subr.bf16.mxu0 %v11821_v62  ;;  %v11781_v22 = vcombine.high %v6536_v26, %v6540_v29  ;;  %v6644_v27 = vld [vmem:[#allocation13 + $0xdb0] sm:$0xff] }
 0x513   : > { %v11885_v63 = vcombine.high %v6640_v14, %v6644_v27  ;;  %v6632_v33 = vld [vmem:[#allocation13 + $0xd50] sm:$0xff] }
 0x514   : > { %9708 = vmatpush2.bf16.msra.mxu1 %v11692_v45  ;;  %v6404_v45 = vld [vmem:[#allocation13 + $0x630] sm:$0xff] }
 0x515   : > { %9749 = vmatpush2.bf16.msra.mxu0 %v11820_v50  ;;  %9709 = vmatprep.subr.bf16.mxu1 %v11685_v40  ;;  %v6528_v50 = vld [vmem:[#allocation13 + $0xa10] sm:$0xff]  ;;  %v11645_v13 = vcombine.high %v6400_v10, %v6404_v45 }
 0x516   : > { %9750 = vmatprep.subr.bf16.mxu0 %v11813_v58  ;;  %v6532_v40 = vld [vmem:[#allocation13 + $0xa30] sm:$0xff] }
 0x517   : > { %v11773_v59 = vcombine.high %v6528_v50, %v6532_v40 }
 0x518   : > { %9710 = vmatpush2.bf16.msra.mxu1 %v11684_v17  ;;  %v6265_v17 = vld [vmem:[#allocation13 + $0x1d8] sm:$0xff] }
 0x519   : > { %9751 = vmatpush2.bf16.msra.mxu0 %v11812_v21  ;;  %9711 = vmatprep.subr.bf16.mxu1 %v11677_v47  ;;  %v6269_v21 = vld [vmem:[#allocation13 + $0x1f8] sm:$0xff]  ;;  %v11644_v47 = vcombine.low %v6400_v10, %v6404_v45  ;;  %v6616_v10 = vld [vmem:[#allocation13 + $0xcd0] sm:$0xff] }
 0x51a   : > { %9752 = vmatprep.subr.bf16.mxu0 %v11805_v32  ;;  %v11772_v32 = vcombine.low %v6528_v50, %v6532_v40  ;;  %v11511_v5 = vcombine.high %v6265_v17, %v6269_v21  ;;  %v6620_v45 = vld [vmem:[#allocation13 + $0xcf0] sm:$0xff]  ;;  %v6233_v50 = vld [vmem:[#allocation13 + $0xd8] sm:$0xff] }
 0x51b   : > { %v4246_v4 = vpop.permute.xlu1 %4245  ;;  %v6237_v40 = vld [vmem:[#allocation13 + $0xf8] sm:$0xff] }
 0x51c   : > { %9712 = vmatpush2.bf16.msra.mxu1 %v11676_v2  ;;  %v4255_v48 = vsel %vm4254_vm0, %v15414_v55, %v4246_v4  ;;  %v4248_v23 = vpop.permute.xlu0 %4247  ;;  %v6412_v55 = vld [vmem:[#allocation13 + $0x670] sm:$0xff]  ;;  %v11892_v2 = vcombine.low %v6648_v6, %v6652_v1 }
 0x51d   : > { %9753 = vmatpush2.bf16.msra.mxu0 %v11804_v16  ;;  %v4259_v43 = vsel %vm4258_vm1, %v4255_v48, 0.0  ;;  %v4256_v44 = vsel %vm4254_vm0, %v15435_v11, %v4248_v23  ;;  %9713 = vmatprep.subr.bf16.mxu1 %v11669_v35  ;;  %v11653_v25 = vcombine.high %v6408_v56, %v6412_v55  ;;  %v11652_v58 = vcombine.low %v6408_v56, %v6412_v55  ;;  %v6257_v16 = vld [vmem:[#allocation13 + $0x198] sm:$0xff]  ;;  %v6636_v4 = vld [vmem:[#allocation13 + $0xd70] sm:$0xff] }
 0x51e   : > { %4263 = vst.msk [vmem:[%s15540_s20] sm:$0xff] %vm4262_vm2, %v4259_v43  ;;  %v4260_v52 = vsel %vm4258_vm1, %v4256_v44, 0.0  ;;  %9754 = vmatprep.subr.bf16.mxu0 %v11797_v36  ;;  %v6261_v35 = vld [vmem:[#allocation13 + $0x1b8] sm:$0xff]  ;;  %v11510_v36 = vcombine.low %v6265_v17, %v6269_v21  ;;  %v11884_v44 = vcombine.low %v6640_v14, %v6644_v27  ;;  %v6608_v6 = vld [vmem:[#allocation13 + $0xc90] sm:$0xff] }
 0x51f   : > { %4264 = vst.msk [vmem:[%s15540_s20 + $0x8] sm:$0xff] %vm4262_vm2, %v4260_v52  ;;  %v4250_v31 = vpop.permute.xlu1 %4249  ;;  %v11503_v48 = vcombine.high %v6257_v16, %v6261_v35  ;;  %v6249_v23 = vld [vmem:[#allocation13 + $0x158] sm:$0xff]  ;;  %v11502_v52 = vcombine.low %v6257_v16, %v6261_v35  ;;  %v6612_v1 = vld [vmem:[#allocation13 + $0xcb0] sm:$0xff] }
 0x520   : > { %9714 = vmatpush2.bf16.msra.mxu1 %v11668_v49  ;;  %v4257_v11 = vsel %vm4254_vm0, %v15420_v30, %v4250_v31  ;;  %v11780_v30 = vcombine.low %v6536_v26, %v6540_v29  ;;  %v6253_v49 = vld [vmem:[#allocation13 + $0x178] sm:$0xff]  ;;  %v6624_v31 = vld [vmem:[#allocation13 + $0xd10] sm:$0xff]  ;;  %v11852_v35 = vcombine.low %v6608_v6, %v6612_v1 }
 0x521   : > { %9755 = vmatpush2.bf16.msra.mxu0 %v11796_v39  ;;  %v4261_v62 = vsel %vm4258_vm1, %v4257_v11, 0.0  ;;  %9715 = vmatprep.subr.bf16.mxu1 %v11661_v51  ;;  %v11495_v55 = vcombine.high %v6249_v23, %v6253_v49  ;;  %v6241_v11 = vld [vmem:[#allocation13 + $0x118] sm:$0xff]  ;;  %v6600_v14 = vld [vmem:[#allocation13 + $0xc50] sm:$0xff] }
 0x522   : > { %4265 = vst.msk [vmem:[%s15540_s20 + $0x10] sm:$0xff] %vm4262_vm2, %v4261_v62  ;;  %9756 = vmatprep.subr.bf16.mxu0 %v11789_v37  ;;  %v11877_v37 = vcombine.high %v6632_v33, %v6636_v4  ;;  %v11876_v62 = vcombine.low %v6632_v33, %v6636_v4  ;;  %v6225_v17 = vld [vmem:[#allocation13 + $0x98] sm:$0xff]  ;;  %v6604_v27 = vld [vmem:[#allocation13 + $0xc70] sm:$0xff] }
 0x523   : > { %v6229_v21 = vld [vmem:[#allocation13 + $0xb8] sm:$0xff]  ;;  %v6592_v4 = vld [vmem:[#allocation13 + $0xc10] sm:$0xff] }
 0x524   : > { %9716 = vmatpush2.bf16.msra.mxu1 %v11660_v60  ;;  %v6245_v60 = vld [vmem:[#allocation13 + $0x138] sm:$0xff] }
 0x525   : > { %9757 = vmatpush2.bf16.msra.mxu0 %v11788_v38  ;;  %9717 = vmatprep.subr.bf16.mxu1 %v11653_v25  ;;  %v6221_v16 = vld [vmem:[#allocation13 + $0x78] sm:$0xff] }
 0x526   : > { %9758 = vmatprep.subr.bf16.mxu0 %v11781_v22  ;;  %v11494_v22 = vcombine.low %v6249_v23, %v6253_v49  ;;  %v6213_v23 = vld [vmem:[#allocation13 + $0x38] sm:$0xff]  ;;  %v11844_v49 = vcombine.low %v6600_v14, %v6604_v27 }
 0x528   : > { %9718 = vmatpush2.bf16.msra.mxu1 %v11652_v58 }
 0x529   : > { %9759 = vmatpush2.bf16.msra.mxu0 %v11780_v30  ;;  %9719 = vmatprep.subr.bf16.mxu1 %v11645_v13  ;;  %v11486_v30 = vcombine.low %v6241_v11, %v6245_v60  ;;  %v11861_v13 = vcombine.high %v6616_v10, %v6620_v45 }
 0x52a   : > { %9760 = vmatprep.subr.bf16.mxu0 %v11773_v59  ;;  %v11479_v59 = vcombine.high %v6233_v50, %v6237_v40 }
 0x52c   : > { %9720 = vmatpush2.bf16.msra.mxu1 %v11644_v47  ;;  %v11860_v47 = vcombine.low %v6616_v10, %v6620_v45 }
 0x52d   : > { %9761 = vmatpush2.bf16.msra.mxu0 %v11772_v32  ;;  %9771 = vmatprep.subr.bf16.mxu1 %v11893_v18  ;;  %v11478_v32 = vcombine.low %v6233_v50, %v6237_v40  ;;  %v11853_v18 = vcombine.high %v6608_v6, %v6612_v1  ;;  %v6696_v50 = vld [vmem:[#allocation13 + $0xf50] sm:$0xff] }
 0x52e   : > { %9812 = vmatprep.subr.bf16.mxu0 %v11511_v5  ;;  %v11471_v5 = vcombine.high %v6225_v17, %v6229_v21  ;;  %v6700_v40 = vld [vmem:[#allocation13 + $0xf70] sm:$0xff] }
 0x52f   : > { %v15557_v28 = vpop.f32.mrf.mxu0  ;;  %9722 = vmatmul.mubr.bf16.vlgmr.msra.gmra.mxu1 %v15403_v61  ;;  %v9477_v54 = vpop.f32.mrf.mxu1  ;;  %v11941_v6 = vcombine.high %v6696_v50, %v6700_v40 }
 0x530   : > { %9763 = vmatmul.mubr.bf16.vlgmr.msra.gmra.mxu0 %v15471_v9  ;;  %v15562_v43 = vadd.f32 %v9477_v54, %v15529_v15  ;;  %9772 = vmatpush1.bf16.msra.mxu1 %v11892_v2  ;;  %v6628_v15 = vld [vmem:[#allocation13 + $0xd30] sm:$0xff]  ;;  %v6217_v2 = vld [vmem:[#allocation13 + $0x58] sm:$0xff] }
 0x531   : > { %9803 = vmatprep.mubr.bf16.mxu1 %v15482_v34  ;;  %9813 = vmatpush1.bf16.msra.mxu0 %v11510_v36  ;;  %v15565_v39 = vpop.f32.mrf.mxu0  ;;  %v9479_v51 = vpop.f32.mrf.mxu1  ;;  %v11868_v58 = vcombine.low %v6624_v31, %v6628_v15  ;;  %v11470_v36 = vcombine.low %v6225_v17, %v6229_v21  ;;  %v11463_v33 = vcombine.high %v6217_v2, %v6221_v16  ;;  %v6596_v54 = vld [vmem:[#allocation13 + $0xc30] sm:$0xff] }
 0x532   : > { %9844 = vmatprep.mubr.bf16.mxu0 %v15379_v12  ;;  %v15569_v56 = vadd.f32 %v9479_v51, %v15534_v41  ;;  %9773 = vmatprep.subr.bf16.mxu1 %v11885_v63  ;;  %v11869_v12 = vcombine.high %v6624_v31, %v6628_v15  ;;  %v11487_v41 = vcombine.high %v6241_v11, %v6245_v60  ;;  %v6329_v31 = vld [vmem:[#allocation13 + $0x3d8] sm:$0xff]  ;;  %v6688_v17 = vld [vmem:[#allocation13 + $0xf10] sm:$0xff] }
 0x533   : > { %v9522_v26 = vpop.f32.mrf.mxu0  ;;  %9814 = vmatprep.subr.bf16.mxu0 %v11503_v48  ;;  %v9481_v29 = vpop.f32.mrf.mxu1  ;;  %v11845_v63 = vcombine.high %v6600_v14, %v6604_v27  ;;  %v6209_v48 = vld [vmem:[#allocation13 + $0x18] sm:$0xff]  ;;  %v11837_v51 = vcombine.high %v6592_v4, %v6596_v54  ;;  %v6692_v21 = vld [vmem:[#allocation13 + $0xf30] sm:$0xff] }
 0x534   : > { %9774 = vmatpush1.bf16.msra.mxu1 %v11884_v44  ;;  %v11462_v44 = vcombine.low %v6217_v2, %v6221_v16  ;;  %v6333_v15 = vld [vmem:[#allocation13 + $0x3f8] sm:$0xff]  ;;  %v11836_v26 = vcombine.low %v6592_v4, %v6596_v54  ;;  %v11454_v29 = vcombine.low %v6209_v48, %v6213_v23  ;;  %v11933_v14 = vcombine.high %v6688_v17, %v6692_v21  ;;  %v6680_v2 = vld [vmem:[#allocation13 + $0xed0] sm:$0xff] }
 0x535   : > { %9815 = vmatpush1.bf16.msra.mxu0 %v11502_v52  ;;  %v9523_v38 = vpop.f32.mrf.mxu0  ;;  %v9482_v25 = vpop.f32.mrf.mxu1  ;;  %9775 = vmatprep.subr.bf16.mxu1 %v11877_v37  ;;  %v11455_v52 = vcombine.high %v6209_v48, %v6213_v23  ;;  %v6712_v37 = vld [vmem:[#allocation13 + $0xfd0] sm:$0xff]  ;;  %v11575_v60 = vcombine.high %v6329_v31, %v6333_v15 }
 0x536   : > { %9816 = vmatprep.subr.bf16.mxu0 %v11495_v55  ;;  %v6716_v55 = vld [vmem:[#allocation13 + $0xff0] sm:$0xff]  ;;  %v6321_v25 = vld [vmem:[#allocation13 + $0x398] sm:$0xff] }
 0x537   : > { %v11957_v11 = vcombine.high %v6712_v37, %v6716_v55  ;;  %v6708_v38 = vld [vmem:[#allocation13 + $0xfb0] sm:$0xff] }
 0x538   : > { %9776 = vmatpush1.bf16.msra.mxu1 %v11876_v62  ;;  %v6704_v62 = vld [vmem:[#allocation13 + $0xf90] sm:$0xff] }
 0x539   : > { %9817 = vmatpush1.bf16.msra.mxu0 %v11494_v22  ;;  %9777 = vmatprep.subr.bf16.mxu1 %v11869_v12  ;;  %v6325_v22 = vld [vmem:[#allocation13 + $0x3b8] sm:$0xff]  ;;  %v11956_v12 = vcombine.low %v6712_v37, %v6716_v55  ;;  %v11949_v10 = vcombine.high %v6704_v62, %v6708_v38  ;;  %v6684_v16 = vld [vmem:[#allocation13 + $0xef0] sm:$0xff] }
 0x53a   : > { %9818 = vmatprep.subr.bf16.mxu0 %v11487_v41  ;;  %v11574_v41 = vcombine.low %v6329_v31, %v6333_v15  ;;  %v11567_v45 = vcombine.high %v6321_v25, %v6325_v22  ;;  %v11925_v4 = vcombine.high %v6680_v2, %v6684_v16  ;;  %v6672_v48 = vld [vmem:[#allocation13 + $0xe90] sm:$0xff] }
 0x53b   : > { %v6676_v23 = vld [vmem:[#allocation13 + $0xeb0] sm:$0xff] }
 0x53c   : > { %9778 = vmatpush1.bf16.msra.mxu1 %v11868_v58  ;;  %v6313_v58 = vld [vmem:[#allocation13 + $0x358] sm:$0xff]  ;;  %v11917_v37 = vcombine.high %v6672_v48, %v6676_v23  ;;  %v6664_v31 = vld [vmem:[#allocation13 + $0xe50] sm:$0xff] }
 0x53d   : > { %9819 = vmatpush1.bf16.msra.mxu0 %v11486_v30  ;;  %9779 = vmatprep.subr.bf16.mxu1 %v11861_v13  ;;  %v6317_v30 = vld [vmem:[#allocation13 + $0x378] sm:$0xff]  ;;  %v11948_v13 = vcombine.low %v6704_v62, %v6708_v38  ;;  %v6668_v15 = vld [vmem:[#allocation13 + $0xe70] sm:$0xff] }
 0x53e   : > { %9820 = vmatprep.subr.bf16.mxu0 %v11479_v59  ;;  %v11566_v59 = vcombine.low %v6321_v25, %v6325_v22  ;;  %v11559_v1 = vcombine.high %v6313_v58, %v6317_v30  ;;  %v11909_v62 = vcombine.high %v6664_v31, %v6668_v15  ;;  %v6656_v25 = vld [vmem:[#allocation13 + $0xe10] sm:$0xff] }
 0x53f   : > { %v6660_v22 = vld [vmem:[#allocation13 + $0xe30] sm:$0xff] }
 0x540   : > { %9780 = vmatpush1.bf16.msra.mxu1 %v11860_v47  ;;  %v6305_v47 = vld [vmem:[#allocation13 + $0x318] sm:$0xff] }
 0x541   : > { %9821 = vmatpush1.bf16.msra.mxu0 %v11478_v32  ;;  %9781 = vmatprep.subr.bf16.mxu1 %v11853_v18  ;;  %v6309_v32 = vld [vmem:[#allocation13 + $0x338] sm:$0xff]  ;;  %v11940_v18 = vcombine.low %v6696_v50, %v6700_v40  ;;  %v11901_v50 = vcombine.high %v6656_v25, %v6660_v22 }
 0x542   : > { %9822 = vmatprep.subr.bf16.mxu0 %v11471_v5  ;;  %v11558_v5 = vcombine.low %v6313_v58, %v6317_v30  ;;  %v11551_v27 = vcombine.high %v6305_v47, %v6309_v32  ;;  %v6393_v58 = vld [vmem:[#allocation13 + $0x5d8] sm:$0xff] }
 0x543   : > { %v6397_v30 = vld [vmem:[#allocation13 + $0x5f8] sm:$0xff] }
 0x544   : > { %9782 = vmatpush1.bf16.msra.mxu1 %v11852_v35  ;;  %v6297_v35 = vld [vmem:[#allocation13 + $0x2d8] sm:$0xff] }
 0x545   : > { %9823 = vmatpush1.bf16.msra.mxu0 %v11470_v36  ;;  %9783 = vmatprep.subr.bf16.mxu1 %v11845_v63  ;;  %v6301_v36 = vld [vmem:[#allocation13 + $0x2f8] sm:$0xff]  ;;  %v11932_v63 = vcombine.low %v6688_v17, %v6692_v21  ;;  %v11639_v17 = vcombine.high %v6393_v58, %v6397_v30  ;;  %v15571_v21 = vld [vmem:[#allocation14] sm:$0xff] }
 0x546   : > { %9824 = vmatprep.subr.bf16.mxu0 %v11463_v33  ;;  %v11550_v33 = vcombine.low %v6305_v47, %v6309_v32  ;;  %v11543_v54 = vcombine.high %v6297_v35, %v6301_v36  ;;  %v9291_v47 = vrot.slane %v15571_v21, %v15218_v7  ;;  %v6381_v7 = vld [vmem:[#allocation13 + $0x578] sm:$0xff] }
 0x548   : > { %9784 = vmatpush1.bf16.msra.mxu1 %v11844_v49  ;;  %v6289_v49 = vld [vmem:[#allocation13 + $0x298] sm:$0xff] }
 0x549   : > { %9825 = vmatpush1.bf16.msra.mxu0 %v11462_v44  ;;  %9785 = vmatprep.subr.bf16.mxu1 %v11837_v51  ;;  %v6293_v44 = vld [vmem:[#allocation13 + $0x2b8] sm:$0xff]  ;;  %v11924_v51 = vcombine.low %v6680_v2, %v6684_v16 }
 0x54a   : > { %9826 = vmatprep.subr.bf16.mxu0 %v11455_v52  ;;  %v11542_v52 = vcombine.low %v6297_v35, %v6301_v36  ;;  %v11535_v55 = vcombine.high %v6289_v49, %v6293_v44  ;;  %v6513_v2 = vld [vmem:[#allocation13 + $0x998] sm:$0xff]  ;;  %v9519_v36 = vadd.f32 %v15557_v28, %v9291_v47 }
 0x54b   : > { %v6517_v16 = vld [vmem:[#allocation13 + $0x9b8] sm:$0xff] }
 0x54c   : > { %9786 = vmatpush1.bf16.msra.mxu1 %v11836_v26  ;;  %v6281_v26 = vld [vmem:[#allocation13 + $0x258] sm:$0xff] }
 0x54d   : > { %9827 = vmatpush1.bf16.msra.mxu0 %v11454_v29  ;;  %9787 = vmatprep.subr.bf16.mxu1 %v11957_v11  ;;  %v6285_v29 = vld [vmem:[#allocation13 + $0x278] sm:$0xff]  ;;  %v11916_v11 = vcombine.low %v6672_v48, %v6676_v23  ;;  %v11759_v48 = vcombine.high %v6513_v2, %v6517_v16 }
 0x54e   : > { %9828 = vmatprep.subr.bf16.mxu0 %v11575_v60  ;;  %v11534_v60 = vcombine.low %v6289_v49, %v6293_v44  ;;  %v11527_v38 = vcombine.high %v6281_v26, %v6285_v29  ;;  %v6505_v23 = vld [vmem:[#allocation13 + $0x958] sm:$0xff] }
 0x54f   : > { %v6485_v47 = vld [vmem:[#allocation13 + $0x8b8] sm:$0xff] }
 0x550   : > { %9788 = vmatpush2.bf16.msra.mxu1 %v11956_v12  ;;  %v6273_v12 = vld [vmem:[#allocation13 + $0x218] sm:$0xff] }
 0x551   : > { %9829 = vmatpush2.bf16.msra.mxu0 %v11574_v41  ;;  %9789 = vmatprep.subr.bf16.mxu1 %v11949_v10  ;;  %v6277_v41 = vld [vmem:[#allocation13 + $0x238] sm:$0xff]  ;;  %v11908_v10 = vcombine.low %v6664_v31, %v6668_v15 }
 0x552   : > { %9830 = vmatprep.subr.bf16.mxu0 %v11567_v45  ;;  %v11526_v45 = vcombine.low %v6281_v26, %v6285_v29  ;;  %v11519_v40 = vcombine.high %v6273_v12, %v6277_v41  ;;  %v6373_v29 = vld [vmem:[#allocation13 + $0x538] sm:$0xff] }
 0x554   : > { %9790 = vmatpush2.bf16.msra.mxu1 %v11948_v13  ;;  %v6521_v13 = vld [vmem:[#allocation13 + $0x9d8] sm:$0xff] }
 0x555   : > { %9831 = vmatpush2.bf16.msra.mxu0 %v11566_v59  ;;  %9791 = vmatprep.subr.bf16.mxu1 %v11941_v6  ;;  %v6525_v59 = vld [vmem:[#allocation13 + $0x9f8] sm:$0xff]  ;;  %v11900_v6 = vcombine.low %v6656_v25, %v6660_v22 }
 0x556   : > { %9832 = vmatprep.subr.bf16.mxu0 %v11559_v1  ;;  %v11518_v1 = vcombine.low %v6273_v12, %v6277_v41  ;;  %v11767_v32 = vcombine.high %v6521_v13, %v6525_v59  ;;  %v11766_v35 = vcombine.low %v6521_v13, %v6525_v59 }
 0x558   : > { %9792 = vmatpush2.bf16.msra.mxu1 %v11940_v18  ;;  %v6385_v18 = vld [vmem:[#allocation13 + $0x598] sm:$0xff] }
 0x559   : > { %9833 = vmatpush2.bf16.msra.mxu0 %v11558_v5  ;;  %9793 = vmatprep.subr.bf16.mxu1 %v11933_v14  ;;  %v6389_v5 = vld [vmem:[#allocation13 + $0x5b8] sm:$0xff]  ;;  %v9295_v14 = vrot.slane %v15571_v21, %v15171_v0 }
 0x55a   : > { %9834 = vmatprep.subr.bf16.mxu0 %v11551_v27  ;;  %v11638_v27 = vcombine.low %v6393_v58, %v6397_v30  ;;  %v6509_v0 = vld [vmem:[#allocation13 + $0x978] sm:$0xff] }
 0x55b   : > { %v9521_v49 = vadd.f32 %v15565_v39, %v9295_v14  ;;  %v11751_v26 = vcombine.high %v6505_v23, %v6509_v0  ;;  %v6369_v39 = vld [vmem:[#allocation13 + $0x518] sm:$0xff]  ;;  %v11750_v12 = vcombine.low %v6505_v23, %v6509_v0 }
 0x55c   : > { %9794 = vmatpush2.bf16.msra.mxu1 %v11932_v63  ;;  %v11631_v63 = vcombine.high %v6385_v18, %v6389_v5  ;;  %v11614_v58 = vcombine.low %v6369_v39, %v6373_v29  ;;  %v6469_v23 = vld [vmem:[#allocation13 + $0x838] sm:$0xff] }
 0x55d   : > { %9835 = vmatpush2.bf16.msra.mxu0 %v11550_v33  ;;  %9795 = vmatprep.subr.bf16.mxu1 %v11925_v4  ;;  %v6377_v33 = vld [vmem:[#allocation13 + $0x558] sm:$0xff] }
 0x55e   : > { %9836 = vmatprep.subr.bf16.mxu0 %v11543_v54 }
 0x560   : > { %9796 = vmatpush2.bf16.msra.mxu1 %v11924_v51  ;;  %v11630_v51 = vcombine.low %v6385_v18, %v6389_v5 }
 0x561   : > { %9837 = vmatpush2.bf16.msra.mxu0 %v11542_v52  ;;  %9797 = vmatprep.subr.bf16.mxu1 %v11917_v37  ;;  %v11758_v37 = vcombine.low %v6513_v2, %v6517_v16  ;;  %v6349_v2 = vld [vmem:[#allocation13 + $0x478] sm:$0xff] }
 0x562   : > { %9838 = vmatprep.subr.bf16.mxu0 %v11535_v55  ;;  %v11623_v55 = vcombine.high %v6377_v33, %v6381_v7  ;;  %v6473_v16 = vld [vmem:[#allocation13 + $0x858] sm:$0xff] }
 0x564   : > { %9798 = vmatpush2.bf16.msra.mxu1 %v11916_v11 }
 0x565   : > { %9839 = vmatpush2.bf16.msra.mxu0 %v11534_v60  ;;  %9799 = vmatprep.subr.bf16.mxu1 %v11909_v62  ;;  %v6497_v60 = vld [vmem:[#allocation13 + $0x918] sm:$0xff] }
 0x566   : > { %9840 = vmatprep.subr.bf16.mxu0 %v11527_v38  ;;  %v6501_v62 = vld [vmem:[#allocation13 + $0x938] sm:$0xff]  ;;  %v11622_v38 = vcombine.low %v6377_v33, %v6381_v7 }
 0x567   : > { %v11743_v41 = vcombine.high %v6497_v60, %v6501_v62  ;;  %v11742_v30 = vcombine.low %v6497_v60, %v6501_v62  ;;  %v6577_v60 = vld [vmem:[#allocation13 + $0xb98] sm:$0xff] }
 0x568   : > { %9800 = vmatpush2.bf16.msra.mxu1 %v11908_v10  ;;  %v6361_v10 = vld [vmem:[#allocation13 + $0x4d8] sm:$0xff] }
 0x569   : > { %9841 = vmatpush2.bf16.msra.mxu0 %v11526_v45  ;;  %9801 = vmatprep.subr.bf16.mxu1 %v11901_v50  ;;  %v6365_v45 = vld [vmem:[#allocation13 + $0x4f8] sm:$0xff] }
 0x56a   : > { %9842 = vmatprep.subr.bf16.mxu0 %v11519_v40  ;;  %v6489_v50 = vld [vmem:[#allocation13 + $0x8d8] sm:$0xff]  ;;  %v11607_v13 = vcombine.high %v6361_v10, %v6365_v45 }
 0x56b   : > { %v6493_v40 = vld [vmem:[#allocation13 + $0x8f8] sm:$0xff] }
 0x56c   : > { %9802 = vmatpush2.bf16.msra.mxu1 %v11900_v6  ;;  %v11735_v59 = vcombine.high %v6489_v50, %v6493_v40  ;;  %v6353_v6 = vld [vmem:[#allocation13 + $0x498] sm:$0xff]  ;;  %v11734_v18 = vcombine.low %v6489_v50, %v6493_v40 }
 0x56d   : > { %9843 = vmatpush2.bf16.msra.mxu0 %v11518_v1  ;;  %9853 = vmatprep.subr.bf16.mxu1 %v11639_v17  ;;  %v6357_v1 = vld [vmem:[#allocation13 + $0x4b8] sm:$0xff] }
 0x56e   : > { %9894 = vmatprep.subr.bf16.mxu0 %v11767_v32  ;;  %v6481_v17 = vld [vmem:[#allocation13 + $0x898] sm:$0xff]  ;;  %v11606_v32 = vcombine.low %v6361_v10, %v6365_v45  ;;  %v11599_v5 = vcombine.high %v6353_v6, %v6357_v1 }
 0x56f   : > { %v9559_v4 = vpop.f32.mrf.mxu1  ;;  %v9600_v54 = vpop.f32.mrf.mxu0  ;;  %9804 = vmatmul.mubr.bf16.vlgmr.msra.gmra.mxu1 %v15484_v53  ;;  %v11727_v14 = vcombine.high %v6481_v17, %v6485_v47  ;;  %v6581_v62 = vld [vmem:[#allocation13 + $0xbb8] sm:$0xff] }
 0x570   : > { %v9560_v44 = vadd.f32 %v9559_v4, %v9519_v36  ;;  %9845 = vmatmul.mubr.bf16.vlgmr.msra.gmra.mxu0 %v15394_v20  ;;  %9854 = vmatpush1.bf16.msra.mxu1 %v11638_v27  ;;  %v6345_v27 = vld [vmem:[#allocation13 + $0x458] sm:$0xff]  ;;  %v11598_v36 = vcombine.low %v6353_v6, %v6357_v1  ;;  %v11822_v40 = vcombine.low %v6577_v60, %v6581_v62 }
 0x571   : > { %9885 = vmatprep.mubr.bf16.mxu1 %v15399_v3  ;;  %9895 = vmatpush1.bf16.msra.mxu0 %v11766_v35  ;;  %v9561_v28 = vpop.f32.mrf.mxu1  ;;  %v9602_v52 = vpop.f32.mrf.mxu0  ;;  %v6477_v35 = vld [vmem:[#allocation13 + $0x878] sm:$0xff]  ;;  %v11591_v33 = vcombine.high %v6345_v27, %v6349_v2  ;;  %v11590_v0 = vcombine.low %v6345_v27, %v6349_v2 }
 0x572   : > { %v15582_v31 = vadd.f32 %v9600_v54, %v9560_v44  ;;  %9926 = vmatprep.mubr.bf16.mxu0 %v15468_v42  ;;  %v9562_v15 = vadd.f32 %v9561_v28, %v9521_v49  ;;  %9855 = vmatprep.subr.bf16.mxu1 %v11631_v63  ;;  %v11615_v42 = vcombine.high %v6369_v39, %v6373_v29  ;;  %v6337_v4 = vld [vmem:[#allocation13 + $0x418] sm:$0xff] }
 0x573   : > { %v9563_v11 = vpop.f32.mrf.mxu1  ;;  %v9604_v20 = vpop.f32.mrf.mxu0  ;;  %9896 = vmatprep.subr.bf16.mxu0 %v11759_v48  ;;  %v11726_v63 = vcombine.low %v6481_v17, %v6485_v47  ;;  %v11719_v7 = vcombine.high %v6473_v16, %v6477_v35  ;;  %v6341_v54 = vld [vmem:[#allocation13 + $0x438] sm:$0xff]  ;;  %v11718_v49 = vcombine.low %v6473_v16, %v6477_v35 }
 0x574   : > { %v15585_v3 = vadd.f32 %v9602_v52, %v9562_v15  ;;  %9856 = vmatpush1.bf16.msra.mxu1 %v11630_v51  ;;  %v6465_v48 = vld [vmem:[#allocation13 + $0x818] sm:$0xff]  ;;  %v11583_v44 = vcombine.high %v6337_v4, %v6341_v54  ;;  %v11582_v15 = vcombine.low %v6337_v4, %v6341_v54 }
 0x575   : > { %9897 = vmatpush1.bf16.msra.mxu0 %v11758_v37  ;;  %v9564_v25 = vpop.f32.mrf.mxu1  ;;  %v9605_v22 = vpop.f32.mrf.mxu0  ;;  %9857 = vmatprep.subr.bf16.mxu1 %v11623_v55  ;;  %v11711_v51 = vcombine.high %v6465_v48, %v6469_v23  ;;  %v6457_v28 = vld [vmem:[#allocation13 + $0x7d8] sm:$0xff] }
 0x576   : > { %9898 = vmatprep.subr.bf16.mxu0 %v11751_v26  ;;  %v6461_v52 = vld [vmem:[#allocation13 + $0x7f8] sm:$0xff]  ;;  %v11710_v26 = vcombine.low %v6465_v48, %v6469_v23 }
 0x577   : > { %v6585_v37 = vld [vmem:[#allocation13 + $0xbd8] sm:$0xff]  ;;  %v11703_v39 = vcombine.high %v6457_v28, %v6461_v52 }
 0x578   : > { %9858 = vmatpush1.bf16.msra.mxu1 %v11622_v38  ;;  %v6589_v55 = vld [vmem:[#allocation13 + $0xbf8] sm:$0xff]  ;;  %v11702_v38 = vcombine.low %v6457_v28, %v6461_v52 }
 0x579   : > { %9899 = vmatpush1.bf16.msra.mxu0 %v11750_v12  ;;  %9859 = vmatprep.subr.bf16.mxu1 %v11615_v42  ;;  %v11831_v29 = vcombine.high %v6585_v37, %v6589_v55  ;;  %v6449_v11 = vld [vmem:[#allocation13 + $0x798] sm:$0xff]  ;;  %v11830_v25 = vcombine.low %v6585_v37, %v6589_v55  ;;  %v11823_v12 = vcombine.high %v6577_v60, %v6581_v62 }
 0x57a   : > { %9900 = vmatprep.subr.bf16.mxu0 %v11743_v41  ;;  %v6453_v20 = vld [vmem:[#allocation13 + $0x7b8] sm:$0xff] }
 0x57b   : > { %v11695_v22 = vcombine.high %v6449_v11, %v6453_v20  ;;  %v6441_v42 = vld [vmem:[#allocation13 + $0x758] sm:$0xff]  ;;  %v11694_v50 = vcombine.low %v6449_v11, %v6453_v20 }
 0x57c   : > { %9860 = vmatpush1.bf16.msra.mxu1 %v11614_v58  ;;  %v6445_v41 = vld [vmem:[#allocation13 + $0x778] sm:$0xff] }
 0x57d   : > { %9901 = vmatpush1.bf16.msra.mxu0 %v11742_v30  ;;  %9861 = vmatprep.subr.bf16.mxu1 %v11607_v13  ;;  %v6569_v10 = vld [vmem:[#allocation13 + $0xb58] sm:$0xff]  ;;  %v11687_v58 = vcombine.high %v6441_v42, %v6445_v41  ;;  %v11686_v17 = vcombine.low %v6441_v42, %v6445_v41 }
 0x57e   : > { %9902 = vmatprep.subr.bf16.mxu0 %v11735_v59  ;;  %v6573_v45 = vld [vmem:[#allocation13 + $0xb78] sm:$0xff] }
 0x57f   : > { %v11815_v30 = vcombine.high %v6569_v10, %v6573_v45  ;;  %v6433_v13 = vld [vmem:[#allocation13 + $0x718] sm:$0xff]  ;;  %v11814_v47 = vcombine.low %v6569_v10, %v6573_v45  ;;  %v12971_v45 = vld [vmem:[#allocation16 + $0x78] sm:$0xff]  }
 0x580   : > { %9862 = vmatpush1.bf16.msra.mxu1 %v11606_v32  ;;  %v6437_v59 = vld [vmem:[#allocation13 + $0x738] sm:$0xff] }
 0x581   : > { %9903 = vmatpush1.bf16.msra.mxu0 %v11734_v18  ;;  %9863 = vmatprep.subr.bf16.mxu1 %v11599_v5  ;;  %v6561_v6 = vld [vmem:[#allocation13 + $0xb18] sm:$0xff]  ;;  %v11679_v32 = vcombine.high %v6433_v13, %v6437_v59  ;;  %v11678_v16 = vcombine.low %v6433_v13, %v6437_v59 }
 0x582   : > { %9904 = vmatprep.subr.bf16.mxu0 %v11727_v14  ;;  %v6565_v1 = vld [vmem:[#allocation13 + $0xb38] sm:$0xff] }
 0x583   : > { %v11807_v18 = vcombine.high %v6561_v6, %v6565_v1  ;;  %v6425_v5 = vld [vmem:[#allocation13 + $0x6d8] sm:$0xff]  ;;  %v11806_v35 = vcombine.low %v6561_v6, %v6565_v1 }
 0x584   : > { %9864 = vmatpush1.bf16.msra.mxu1 %v11598_v36  ;;  %v6429_v14 = vld [vmem:[#allocation13 + $0x6f8] sm:$0xff] }
 0x585   : > { %9905 = vmatpush1.bf16.msra.mxu0 %v11726_v63  ;;  %9865 = vmatprep.subr.bf16.mxu1 %v11591_v33  ;;  %v6553_v27 = vld [vmem:[#allocation13 + $0xad8] sm:$0xff]  ;;  %v11671_v36 = vcombine.high %v6425_v5, %v6429_v14  ;;  %v11670_v48 = vcombine.low %v6425_v5, %v6429_v14 }
 0x586   : > { %9906 = vmatprep.subr.bf16.mxu0 %v11719_v7  ;;  %v6557_v2 = vld [vmem:[#allocation13 + $0xaf8] sm:$0xff] }
 0x587   : > { %v11799_v63 = vcombine.high %v6553_v27, %v6557_v2  ;;  %v6417_v33 = vld [vmem:[#allocation13 + $0x698] sm:$0xff]  ;;  %v11798_v23 = vcombine.low %v6553_v27, %v6557_v2 }
 0x588   : > { %9866 = vmatpush1.bf16.msra.mxu1 %v11590_v0  ;;  %v6421_v7 = vld [vmem:[#allocation13 + $0x6b8] sm:$0xff] }
 0x589   : > { %9907 = vmatpush1.bf16.msra.mxu0 %v11718_v49  ;;  %9867 = vmatprep.subr.bf16.mxu1 %v11583_v44  ;;  %v6545_v4 = vld [vmem:[#allocation13 + $0xa98] sm:$0xff]  ;;  %v11663_v0 = vcombine.high %v6417_v33, %v6421_v7  ;;  %v11662_v37 = vcombine.low %v6417_v33, %v6421_v7 }
 0x58a   : > { %9908 = vmatprep.subr.bf16.mxu0 %v11711_v51  ;;  %v6549_v54 = vld [vmem:[#allocation13 + $0xab8] sm:$0xff] }
 0x58b   : > { %v11791_v49 = vcombine.high %v6545_v4, %v6549_v54  ;;  %v6409_v44 = vld [vmem:[#allocation13 + $0x658] sm:$0xff]  ;;  %v11790_v55 = vcombine.low %v6545_v4, %v6549_v54  ;;  %v12977_v4 = vld [vmem:[#allocation16 + $0x60] sm:$0xff]  }
 0x58c   : > { %9868 = vmatpush1.bf16.msra.mxu1 %v11582_v15  ;;  %v6413_v51 = vld [vmem:[#allocation13 + $0x678] sm:$0xff] }
 0x58d   : > { %9909 = vmatpush1.bf16.msra.mxu0 %v11710_v26  ;;  %9869 = vmatprep.subr.bf16.mxu1 %v11703_v39  ;;  %v6537_v28 = vld [vmem:[#allocation13 + $0xa58] sm:$0xff]  ;;  %v11655_v15 = vcombine.high %v6409_v44, %v6413_v51  ;;  %v11654_v60 = vcombine.low %v6409_v44, %v6413_v51  ;;  %v12979_v44 = vld [vmem:[#allocation16 + $0x58] sm:$0xff]  }
 0x58e   : > { %9910 = vmatprep.subr.bf16.mxu0 %v11831_v29  ;;  %v6541_v52 = vld [vmem:[#allocation13 + $0xa78] sm:$0xff] }
 0x58f   : > { %v11783_v26 = vcombine.high %v6537_v28, %v6541_v52  ;;  %v6401_v39 = vld [vmem:[#allocation13 + $0x618] sm:$0xff]  ;;  %v11782_v62 = vcombine.low %v6537_v28, %v6541_v52 }
 0x590   : > { %9870 = vmatpush2.bf16.msra.mxu1 %v11702_v38  ;;  %v6405_v29 = vld [vmem:[#allocation13 + $0x638] sm:$0xff] }
 0x591   : > { %9911 = vmatpush2.bf16.msra.mxu0 %v11830_v25  ;;  %9871 = vmatprep.subr.bf16.mxu1 %v11695_v22  ;;  %v6529_v11 = vld [vmem:[#allocation13 + $0xa18] sm:$0xff]  ;;  %v11647_v38 = vcombine.high %v6401_v39, %v6405_v29  ;;  %v11646_v42 = vcombine.low %v6401_v39, %v6405_v29 }
 0x592   : > { %9912 = vmatprep.subr.bf16.mxu0 %v11823_v12  ;;  %v6533_v20 = vld [vmem:[#allocation13 + $0xa38] sm:$0xff] }
 0x593   : > { %v11775_v25 = vcombine.high %v6529_v11, %v6533_v20  ;;  %v6649_v22 = vld [vmem:[#allocation13 + $0xdd8] sm:$0xff]  ;;  %v11774_v41 = vcombine.low %v6529_v11, %v6533_v20 }
 0x594   : > { %9872 = vmatpush2.bf16.msra.mxu1 %v11694_v50  ;;  %v6653_v12 = vld [vmem:[#allocation13 + $0xdf8] sm:$0xff] }
 0x595   : > { %9913 = vmatpush2.bf16.msra.mxu0 %v11822_v40  ;;  %9873 = vmatprep.subr.bf16.mxu1 %v11687_v58  ;;  %v11895_v10 = vcombine.high %v6649_v22, %v6653_v12  ;;  %v6641_v50 = vld [vmem:[#allocation13 + $0xd98] sm:$0xff]  ;;  %v11894_v58 = vcombine.low %v6649_v22, %v6653_v12  ;;  %v12984_v22 = vld [vmem:[#allocation16 + $0x8] sm:$0xff]  }
 0x596   : > { %9914 = vmatprep.subr.bf16.mxu0 %v11815_v30  ;;  %v6645_v40 = vld [vmem:[#allocation13 + $0xdb8] sm:$0xff]  ;;  %v12972_v30 = vld [vmem:[#allocation16 + $0x38] sm:$0xff]  }
 0x597   : > { %v11887_v13 = vcombine.high %v6641_v50, %v6645_v40  ;;  %v6633_v59 = vld [vmem:[#allocation13 + $0xd58] sm:$0xff]  ;;  %v11886_v5 = vcombine.low %v6641_v50, %v6645_v40  ;;  %v12986_v50 = vld [vmem:[#allocation16] sm:$0xff]  }
 0x598   : > { %9874 = vmatpush2.bf16.msra.mxu1 %v11686_v17  ;;  %v6637_v6 = vld [vmem:[#allocation13 + $0xd78] sm:$0xff] }
 0x599   : > { %9915 = vmatpush2.bf16.msra.mxu0 %v11814_v47  ;;  %9875 = vmatprep.subr.bf16.mxu1 %v11679_v32  ;;  %v12973_v17 = vld [vmem:[#allocation16 + $0x70] sm:$0xff]   ;;  %v9977_v47 = vpack.c.bf16 %v15569_v56, %v15569_v56  ;;  %v12975_v56 = vld [vmem:[#allocation16 + $0x68] sm:$0xff]  }
 0x59a   : > { %9916 = vmatprep.subr.bf16.mxu0 %v11807_v18  ;;  %v12974_v27 = vld [vmem:[#allocation16 + $0x30] sm:$0xff]  }
 0x59b   : > { %v6617_v54 = vld [vmem:[#allocation13 + $0xcd8] sm:$0xff] }
 0x59c   : > { %9876 = vmatpush2.bf16.msra.mxu1 %v11678_v16  ;;  %v6629_v16 = vld [vmem:[#allocation13 + $0xd38] sm:$0xff] }
 0x59d   : > { %9917 = vmatpush2.bf16.msra.mxu0 %v11806_v35  ;;  %9877 = vmatprep.subr.bf16.mxu1 %v11671_v36  ;;  %v6609_v51 = vld [vmem:[#allocation13 + $0xc98] sm:$0xff] }
 0x59e   : > { %9918 = vmatprep.subr.bf16.mxu0 %v11799_v63  ;;  %v6613_v28 = vld [vmem:[#allocation13 + $0xcb8] sm:$0xff] }
 0x59f   : > { %v6605_v39 = vld [vmem:[#allocation13 + $0xc78] sm:$0xff]  ;;  %v11854_v29 = vcombine.low %v6609_v51, %v6613_v28 }
 0x5a0   : > { %9878 = vmatpush2.bf16.msra.mxu1 %v11670_v48  ;;  %v6621_v48 = vld [vmem:[#allocation13 + $0xcf8] sm:$0xff] }
 0x5a1   : > { %9919 = vmatpush2.bf16.msra.mxu0 %v11798_v23  ;;  %9879 = vmatprep.subr.bf16.mxu1 %v11663_v0  ;;  %v12978_v0 = vld [vmem:[#allocation16 + $0x20] sm:$0xff]   ;;  %v11862_v52 = vcombine.low %v6617_v54, %v6621_v48  ;;  %v12982_v11 = vld [vmem:[#allocation16 + $0x10] sm:$0xff]  }
 0x5a2   : > { %9920 = vmatprep.subr.bf16.mxu0 %v11791_v49  ;;  %v11863_v49 = vcombine.high %v6617_v54, %v6621_v48  ;;  %v13010_v48 = vld [vmem:[#allocation16 + $0x120] sm:$0xff]  }
 0x5a4   : > { %9880 = vmatpush2.bf16.msra.mxu1 %v11662_v37  ;;  %v12980_v37 = vld [vmem:[#allocation16 + $0x18] sm:$0xff]  }
 0x5a5   : > { %9921 = vmatpush2.bf16.msra.mxu0 %v11790_v55  ;;  %9881 = vmatprep.subr.bf16.mxu1 %v11655_v15  ;;  %v11855_v55 = vcombine.high %v6609_v51, %v6613_v28  ;;  %v12981_v15 = vld [vmem:[#allocation16 + $0x50] sm:$0xff]   ;;  %v13012_v28 = vld [vmem:[#allocation16 + $0x118] sm:$0xff]  }
 0x5a6   : > { %9922 = vmatprep.subr.bf16.mxu0 %v11783_v26  ;;  %v6601_v26 = vld [vmem:[#allocation13 + $0xc58] sm:$0xff] }
 0x5a7   : > { %v11847_v20 = vcombine.high %v6601_v26, %v6605_v39 }
 0x5a8   : > { %9882 = vmatpush2.bf16.msra.mxu1 %v11654_v60  ;;  %v12983_v60 = vld [vmem:[#allocation16 + $0x48] sm:$0xff]  }
 0x5a9   : > { %9923 = vmatpush2.bf16.msra.mxu0 %v11782_v62  ;;  %9883 = vmatprep.subr.bf16.mxu1 %v11647_v38  ;;  %v6593_v62 = vld [vmem:[#allocation13 + $0xc18] sm:$0xff] }
 0x5aa   : > { %9924 = vmatprep.subr.bf16.mxu0 %v11775_v25  ;;  %v6597_v38 = vld [vmem:[#allocation13 + $0xc38] sm:$0xff]  ;;  %v11846_v25 = vcombine.low %v6601_v26, %v6605_v39 }
 0x5ab   : > { %v11839_v12 = vcombine.high %v6593_v62, %v6597_v38  ;;  %v13014_v39 = vld [vmem:[#allocation16 + $0x110] sm:$0xff]  }
 0x5ac   : > { %9884 = vmatpush2.bf16.msra.mxu1 %v11646_v42  ;;  %v12985_v42 = vld [vmem:[#allocation16 + $0x40] sm:$0xff]  }
 0x5ad   : > { %9925 = vmatpush2.bf16.msra.mxu0 %v11774_v41  ;;  %9935 = vmatprep.subr.bf16.mxu1 %v11895_v10  ;;  %v6713_v41 = vld [vmem:[#allocation13 + $0xfd8] sm:$0xff] }
 0x5ae   : > { %12476 = vmatprep.subr.bf16.mxu0 %v12971_v45  ;;  %v6717_v10 = vld [vmem:[#allocation13 + $0xff8] sm:$0xff]  ;;  %v11838_v45 = vcombine.low %v6593_v62, %v6597_v38  ;;  %v13016_v38 = vld [vmem:[#allocation16 + $0x108] sm:$0xff]  }
 0x5af   : > { %v9641_v1 = vpop.f32.mrf.mxu1  ;;  %9886 = vmatmul.mubr.bf16.vlgmr.msra.gmra.mxu1 %v15403_v61  ;;  %v11879_v61 = vcombine.high %v6633_v59, %v6637_v6  ;;  %v11959_v40 = vcombine.high %v6713_v41, %v6717_v10 }
 0x5b0   : > { %v15591_v32 = vadd.f32 %v9641_v1, %v15582_v31  ;;  %v15593_v18 = vpop.f32.mrf.mxu0  ;;  %9927 = vmatmul.mubr.bf16.vlgmr.msra.gmra.mxu0 %v15471_v9  ;;  %9936 = vmatpush1.bf16.msra.mxu1 %v11894_v58  ;;  %v6625_v31 = vld [vmem:[#allocation13 + $0xd18] sm:$0xff]  ;;  %v11878_v9 = vcombine.low %v6633_v59, %v6637_v6  ;;  %v11958_v59 = vcombine.low %v6713_v41, %v6717_v10  ;;  %v13004_v1 = vld [vmem:[#allocation16 + $0x138] sm:$0xff]  }
 0x5b1   : > { %9967 = vmatprep.mubr.bf16.mxu1 %v15482_v34  ;;  %12477 = vmatpush3.bf16.msra.mxu0 %v12972_v30  ;;  %v15597_v14 = vpop.f32.mrf.mxu1  ;;  %v12976_v34 = vld [vmem:[#allocation16 + $0x28] sm:$0xff]   ;;  %v11871_v33 = vcombine.high %v6625_v31, %v6629_v16  ;;  %v11870_v23 = vcombine.low %v6625_v31, %v6629_v16  ;;  %v6705_v58 = vld [vmem:[#allocation13 + $0xf98] sm:$0xff]  ;;  %v9299_v41 = vrot.slane %v15571_v21, %v5848_v24 }
 0x5b2   : > { %10529 = vmatprep.mubr.bf16.mxu0 %v9977_v47  ;;  %v15599_v2 = vpop.f32.mrf.mxu0  ;;  %9937 = vmatprep.subr.bf16.mxu1 %v11887_v13  ;;  %v6709_v30 = vld [vmem:[#allocation13 + $0xfb8] sm:$0xff]  ;;  %v13003_v13 = vld [vmem:[#allocation16 + $0x178] sm:$0xff]   ;;  %v9644_v10 = vadd.f32 %v15597_v14, %v15585_v3  ;;  %v12991_v3 = vld [vmem:[#allocation16 + $0xe8] sm:$0xff]  }
 0x5b3   : > { %v9645_v35 = vpop.f32.mrf.mxu1  ;;  %12478 = vmatprep.subr.bf16.mxu0 %v12973_v17  ;;  %v11951_v6 = vcombine.high %v6705_v58, %v6709_v30  ;;  %v9976_v17 = vpack.c.bf16 %v15562_v43, %v15562_v43  ;;  %v6697_v47 = vld [vmem:[#allocation13 + $0xf58] sm:$0xff]  ;;  %v13008_v43 = vld [vmem:[#allocation16 + $0x128] sm:$0xff]  }
 0x5b4   : > { %v9686_v36 = vpop.f32.mrf.mxu0  ;;  %9938 = vmatpush1.bf16.msra.mxu1 %v11886_v5  ;;  %v6701_v5 = vld [vmem:[#allocation13 + $0xf78] sm:$0xff] }
 0x5b5   : > { %12479 = vmatpush3.bf16.msra.mxu0 %v12974_v27  ;;  %v9646_v63 = vpop.f32.mrf.mxu1  ;;  %9939 = vmatprep.subr.bf16.mxu1 %v11879_v61  ;;  %v13005_v27 = vld [vmem:[#allocation16 + $0x170] sm:$0xff]   ;;  %v11950_v61 = vcombine.low %v6705_v58, %v6709_v30  ;;  %v13007_v36 = vld [vmem:[#allocation16 + $0x168] sm:$0xff]   ;;  %v9979_v58 = vpack.c.bf16 %v9644_v10, %v9644_v10 }
 0x5b6   : > { %v9687_v7 = vpop.f32.mrf.mxu0  ;;  %12480 = vmatprep.subr.bf16.mxu0 %v12975_v56  ;;  %v11943_v56 = vcombine.high %v6697_v47, %v6701_v5  ;;  %v13006_v31 = vld [vmem:[#allocation16 + $0x130] sm:$0xff]  }
 0x5b7   : > { %v6689_v16 = vld [vmem:[#allocation13 + $0xf18] sm:$0xff]  ;;  %v13009_v7 = vld [vmem:[#allocation16 + $0x160] sm:$0xff]  }
 0x5b8   : > { %9940 = vmatpush1.bf16.msra.mxu1 %v11878_v9  ;;  %v6693_v35 = vld [vmem:[#allocation13 + $0xf38] sm:$0xff]  ;;  %v11942_v9 = vcombine.low %v6697_v47, %v6701_v5  ;;  %v12992_v5 = vld [vmem:[#allocation16 + $0xa8] sm:$0xff]  }
 0x5b9   : > { %12481 = vmatpush3.bf16.msra.mxu0 %v12976_v34  ;;  %9941 = vmatprep.subr.bf16.mxu1 %v11871_v33  ;;  %v11935_v63 = vcombine.high %v6689_v16, %v6693_v35  ;;  %v6681_v34 = vld [vmem:[#allocation13 + $0xed8] sm:$0xff] }
 0x5ba   : > { %12482 = vmatprep.subr.bf16.mxu0 %v12977_v4  ;;  %v6685_v33 = vld [vmem:[#allocation13 + $0xef8] sm:$0xff]  ;;  %v11934_v4 = vcombine.low %v6689_v16, %v6693_v35 }
 0x5bb   : > { %v11927_v54 = vcombine.high %v6681_v34, %v6685_v33  ;;  %v12990_v24 = vld [vmem:[#allocation16 + $0xb0] sm:$0xff]  }
 0x5bc   : > { %9942 = vmatpush1.bf16.msra.mxu1 %v11870_v23  ;;  %v6673_v23 = vld [vmem:[#allocation13 + $0xe98] sm:$0xff] }
 0x5bd   : > { %12483 = vmatpush3.bf16.msra.mxu0 %v12978_v0  ;;  %9943 = vmatprep.subr.bf16.mxu1 %v11863_v49  ;;  %v6677_v0 = vld [vmem:[#allocation13 + $0xeb8] sm:$0xff]  ;;  %v13011_v49 = vld [vmem:[#allocation16 + $0x158] sm:$0xff]  }
 0x5be   : > { %12484 = vmatprep.subr.bf16.mxu0 %v12979_v44  ;;  %v11926_v44 = vcombine.low %v6681_v34, %v6685_v33  ;;  %v11919_v51 = vcombine.high %v6673_v23, %v6677_v0  ;;  %v12997_v16 = vld [vmem:[#allocation16 + $0xd0] sm:$0xff]   ;;  %v9978_v34 = vpack.c.bf16 %v15591_v32, %v15591_v32  ;;  %v13019_v33 = vld [vmem:[#allocation16 + $0x1f8] sm:$0xff]   ;;  %v9303_v32 = vrot.slane %v15571_v21, %v5852_v19 }
 0x5bf   : > { %v12998_v35 = vld [vmem:[#allocation16 + $0x90] sm:$0xff]  }
 0x5c0   : > { %9944 = vmatpush1.bf16.msra.mxu1 %v11862_v52  ;;  %v6665_v52 = vld [vmem:[#allocation13 + $0xe58] sm:$0xff] }
 0x5c1   : > { %12485 = vmatpush3.bf16.msra.mxu0 %v12980_v37  ;;  %9945 = vmatprep.subr.bf16.mxu1 %v11855_v55  ;;  %v6669_v37 = vld [vmem:[#allocation13 + $0xe78] sm:$0xff] }
 0x5c2   : > { %12486 = vmatprep.subr.bf16.mxu0 %v12981_v15  ;;  %v13013_v55 = vld [vmem:[#allocation16 + $0x150] sm:$0xff]   ;;  %v11918_v15 = vcombine.low %v6673_v23, %v6677_v0  ;;  %v11911_v26 = vcombine.high %v6665_v52, %v6669_v37  ;;  %v13024_v23 = vld [vmem:[#allocation16 + $0x1a8] sm:$0xff]   ;;  %v13025_v0 = vld [vmem:[#allocation16 + $0x1e0] sm:$0xff]  }
 0x5c4   : > { %9946 = vmatpush1.bf16.msra.mxu1 %v11854_v29  ;;  %v6657_v29 = vld [vmem:[#allocation13 + $0xe18] sm:$0xff] }
 0x5c5   : > { %12487 = vmatpush3.bf16.msra.mxu0 %v12982_v11  ;;  %9947 = vmatprep.subr.bf16.mxu1 %v11847_v20  ;;  %v6661_v11 = vld [vmem:[#allocation13 + $0xe38] sm:$0xff]  ;;  %v13015_v20 = vld [vmem:[#allocation16 + $0x148] sm:$0xff]  }
 0x5c6   : > { %12488 = vmatprep.subr.bf16.mxu0 %v12983_v60  ;;  %v11910_v60 = vcombine.low %v6665_v52, %v6669_v37  ;;  %v11903_v62 = vcombine.high %v6657_v29, %v6661_v11  ;;  %v13030_v52 = vld [vmem:[#allocation16 + $0x190] sm:$0xff]   ;;  %v9685_v37 = vadd.f32 %v15599_v2, %v9303_v32  ;;  %v13034_v2 = vld [vmem:[#allocation16 + $0x180] sm:$0xff]  }
 0x5c8   : > { %9948 = vmatpush1.bf16.msra.mxu1 %v11846_v25  ;;  %v13017_v25 = vld [vmem:[#allocation16 + $0x140] sm:$0xff]  }
 0x5c9   : > { %12489 = vmatpush3.bf16.msra.mxu0 %v12984_v22  ;;  %9949 = vmatprep.subr.bf16.mxu1 %v11839_v12  ;;  %v11902_v22 = vcombine.low %v6657_v29, %v6661_v11  ;;  %v12987_v12 = vld [vmem:[#allocation16 + $0xf8] sm:$0xff]  }
 0x5ca   : > { %12490 = vmatprep.subr.bf16.mxu0 %v12985_v42  ;;  %v13018_v42 = vld [vmem:[#allocation16 + $0x100] sm:$0xff]  }
 0x5cc   : > { %9950 = vmatpush1.bf16.msra.mxu1 %v11838_v45  ;;  %v12988_v45 = vld [vmem:[#allocation16 + $0xb8] sm:$0xff]  }
 0x5cd   : > { %12491 = vmatpush3.bf16.msra.mxu0 %v12986_v50  ;;  %9951 = vmatprep.subr.bf16.mxu1 %v11959_v40  ;;  %v12989_v50 = vld [vmem:[#allocation16 + $0xf0] sm:$0xff]   ;;  %v9683_v40 = vadd.f32 %v15593_v18, %v9299_v41  ;;  %v12993_v18 = vld [vmem:[#allocation16 + $0xe0] sm:$0xff]  }
 0x5ce   : > { %12520 = vmatprep.subr.bf16.mxu0 %v13003_v13 }
 0x5d0   : > { %10530 = vmatmul.mubr.bf16.vlgmr.msra.gmra.mxu0 %v9976_v17  ;;  %9952 = vmatpush2.bf16.msra.mxu1 %v11958_v59 }
 0x5d1   : > { %9953 = vmatprep.subr.bf16.mxu1 %v11951_v6  ;;  %12521 = vmatpush3.bf16.msra.mxu0 %v13004_v1 }
 0x5d2   : > { %12522 = vmatprep.subr.bf16.mxu0 %v13005_v27 }
 0x5d4   : > { %9954 = vmatpush2.bf16.msra.mxu1 %v11950_v61 }
 0x5d5   : > { %9955 = vmatprep.subr.bf16.mxu1 %v11943_v56  ;;  %12523 = vmatpush3.bf16.msra.mxu0 %v13006_v31  ;;  %v12995_v56 = vld [vmem:[#allocation16 + $0xd8] sm:$0xff]  }
 0x5d6   : > { %12524 = vmatprep.subr.bf16.mxu0 %v13007_v36  ;;  %v12996_v31 = vld [vmem:[#allocation16 + $0x98] sm:$0xff]   ;;  %v12999_v36 = vld [vmem:[#allocation16 + $0xc8] sm:$0xff]  }
 0x5d8   : > { %9956 = vmatpush2.bf16.msra.mxu1 %v11942_v9  ;;  %v13000_v9 = vld [vmem:[#allocation16 + $0x88] sm:$0xff]  }
 0x5d9   : > { %9957 = vmatprep.subr.bf16.mxu1 %v11935_v63  ;;  %12525 = vmatpush3.bf16.msra.mxu0 %v13008_v43  ;;  %v13001_v63 = vld [vmem:[#allocation16 + $0xc0] sm:$0xff]  }
 0x5da   : > { %12526 = vmatprep.subr.bf16.mxu0 %v13009_v7  ;;  %v13002_v43 = vld [vmem:[#allocation16 + $0x80] sm:$0xff]   ;;  %v13020_v7 = vld [vmem:[#allocation16 + $0x1b8] sm:$0xff]  }
 0x5dc   : > { %9958 = vmatpush2.bf16.msra.mxu1 %v11934_v4  ;;  %v13021_v4 = vld [vmem:[#allocation16 + $0x1f0] sm:$0xff]  }
 0x5dd   : > { %9959 = vmatprep.subr.bf16.mxu1 %v11927_v54  ;;  %12527 = vmatpush3.bf16.msra.mxu0 %v13010_v48  ;;  %v13022_v54 = vld [vmem:[#allocation16 + $0x1b0] sm:$0xff]   ;;  %v13023_v48 = vld [vmem:[#allocation16 + $0x1e8] sm:$0xff]  }
 0x5de   : > { %12528 = vmatprep.subr.bf16.mxu0 %v13011_v49  ;;  %v13026_v49 = vld [vmem:[#allocation16 + $0x1a0] sm:$0xff]  }
 0x5e0   : > { %9960 = vmatpush2.bf16.msra.mxu1 %v11926_v44  ;;  %v13027_v44 = vld [vmem:[#allocation16 + $0x1d8] sm:$0xff]  }
 0x5e1   : > { %9961 = vmatprep.subr.bf16.mxu1 %v11919_v51  ;;  %12529 = vmatpush3.bf16.msra.mxu0 %v13012_v28  ;;  %v13028_v51 = vld [vmem:[#allocation16 + $0x198] sm:$0xff]   ;;  %v13029_v28 = vld [vmem:[#allocation16 + $0x1d0] sm:$0xff]  }
 0x5e2   : > { %12530 = vmatprep.subr.bf16.mxu0 %v13013_v55 }
 0x5e4   : > { %9962 = vmatpush2.bf16.msra.mxu1 %v11918_v15 }
 0x5e5   : > { %9963 = vmatprep.subr.bf16.mxu1 %v11911_v26  ;;  %12531 = vmatpush3.bf16.msra.mxu0 %v13014_v39 }
 0x5e6   : > { %12532 = vmatprep.subr.bf16.mxu0 %v13015_v20 }
 0x5e8   : > { %9964 = vmatpush2.bf16.msra.mxu1 %v11910_v60 }
 0x5e9   : > { %9965 = vmatprep.subr.bf16.mxu1 %v11903_v62  ;;  %12533 = vmatpush3.bf16.msra.mxu0 %v13016_v38  ;;  %v13031_v62 = vld [vmem:[#allocation16 + $0x1c8] sm:$0xff]  }
 0x5ea   : > { %12534 = vmatprep.subr.bf16.mxu0 %v13017_v25  ;;  %v13032_v38 = vld [vmem:[#allocation16 + $0x188] sm:$0xff]  }
 0x5ec   : > { %9966 = vmatpush2.bf16.msra.mxu1 %v11902_v22 }
 0x5ed   : > { %12498 = vmatprep.subr.bf16.mxu1 %v12987_v12  ;;  %12535 = vmatpush3.bf16.msra.mxu0 %v13018_v42  ;;  %v13033_v12 = vld [vmem:[#allocation16 + $0x1c0] sm:$0xff]  }
 0x5ef   : > { %v9723_v30 = vpop.f32.mrf.mxu1  ;;  %9968 = vmatmul.mubr.bf16.vlgmr.msra.gmra.mxu1 %v15484_v53  ;;  %v12994_v53 = vld [vmem:[#allocation16 + $0xa0] sm:$0xff]  }
 0x5f0   : > { %v9724_v13 = vadd.f32 %v9723_v30, %v9683_v40  ;;  %v9764_v59 = vpop.f32.mrf.mxu0  ;;  %12499 = vmatpush3.bf16.msra.mxu1 %v12988_v45  ;;  %10569 = vmatprep.mubr.bf16.mxu1 %v9979_v58  ;;  %v9307_v45 = vrot.slane %v15571_v21, %v5856_v8  ;;  %v9311_v8 = vrot.slane %v15571_v21, %v5860_v57 }
 0x5f1   : > { %v9725_v6 = vpop.f32.mrf.mxu1  ;;  %12500 = vmatprep.subr.bf16.mxu1 %v12989_v50 }
 0x5f2   : > { %v9765_v14 = vadd.f32 %v9764_v59, %v9724_v13  ;;  %v9766_v1 = vpop.f32.mrf.mxu0  ;;  %v9726_v55 = vadd.f32 %v9725_v6, %v9685_v37 }
 0x5f3   : > { %v9727_v17 = vpop.f32.mrf.mxu1 }
 0x5f4   : > { %v9768_v47 = vpop.f32.mrf.mxu0  ;;  %12501 = vmatpush3.bf16.msra.mxu1 %v12990_v24  ;;  %v9767_v26 = vadd.f32 %v9766_v1, %v9726_v55 }
 0x5f5   : > { %v9728_v27 = vpop.f32.mrf.mxu1  ;;  %12502 = vmatprep.subr.bf16.mxu1 %v12991_v3 }
 0x5f6   : > { %v9769_v61 = vpop.f32.mrf.mxu0 }
 0x5f8   : > { %12503 = vmatpush3.bf16.msra.mxu1 %v12992_v5 }
 0x5f9   : > { %12504 = vmatprep.subr.bf16.mxu1 %v12993_v18 }
 0x5fc   : > { %12505 = vmatpush3.bf16.msra.mxu1 %v12994_v53 }
 0x5fd   : > { %12506 = vmatprep.subr.bf16.mxu1 %v12995_v56 }
 0x600   : > { %12507 = vmatpush3.bf16.msra.mxu1 %v12996_v31 }
 0x601   : > { %12508 = vmatprep.subr.bf16.mxu1 %v12997_v16 }
 0x604   : > { %12509 = vmatpush3.bf16.msra.mxu1 %v12998_v35 }
 0x605   : > { %12510 = vmatprep.subr.bf16.mxu1 %v12999_v36 }
 0x608   : > { %12511 = vmatpush3.bf16.msra.mxu1 %v13000_v9 }
 0x609   : > { %12512 = vmatprep.subr.bf16.mxu1 %v13001_v63 }
 0x60c   : > { %12513 = vmatpush3.bf16.msra.mxu1 %v13002_v43 }
 0x60d   : > { %12542 = vmatprep.subr.bf16.mxu1 %v13019_v33  ;;  %v10112_v33 = vld [vmem:[#allocation17] sm:$0x1] }
 0x60f   : > { %10570 = vmatmul.mubr.bf16.vlgmr.msra.gmra.mxu1 %v9978_v34 }
 0x610   : > { %12543 = vmatpush3.bf16.msra.mxu1 %v13020_v7 }
 0x611   : > { %12544 = vmatprep.subr.bf16.mxu1 %v13021_v4 }
 0x614   : > { %12545 = vmatpush3.bf16.msra.mxu1 %v13022_v54 }
 0x615   : > { %12546 = vmatprep.subr.bf16.mxu1 %v13023_v48 }
 0x618   : > { %12547 = vmatpush3.bf16.msra.mxu1 %v13024_v23 }
 0x619   : > { %12548 = vmatprep.subr.bf16.mxu1 %v13025_v0 }
 0x61c   : > { %12549 = vmatpush3.bf16.msra.mxu1 %v13026_v49 }
 0x61d   : > { %12550 = vmatprep.subr.bf16.mxu1 %v13027_v44 }
 0x620   : > { %12551 = vmatpush3.bf16.msra.mxu1 %v13028_v51 }
 0x621   : > { %12552 = vmatprep.subr.bf16.mxu1 %v13029_v28 }
 0x624   : > { %12553 = vmatpush3.bf16.msra.mxu1 %v13030_v52 }
 0x625   : > { %12554 = vmatprep.subr.bf16.mxu1 %v13031_v62 }
 0x628   : > { %12555 = vmatpush3.bf16.msra.mxu1 %v13032_v38 }
 0x629   : > { %12556 = vmatprep.subr.bf16.mxu1 %v13033_v12 }
 0x62c   : > { %12557 = vmatpush3.bf16.msra.mxu1 %v13034_v2 }
 0x62f   : > { %v9805_v15 = vpop.f32.mrf.mxu1 }
 0x630   : > { %v9846_v39 = vpop.f32.mrf.mxu0  ;;  %v9806_v29 = vadd.f32 %v9805_v15, %v9765_v14 }
 0x631   : > { %v9807_v11 = vpop.f32.mrf.mxu1  ;;  %v9847_v50 = vadd.f32 %v9846_v39, %v9307_v45 }
 0x632   : > { %v9808_v20 = vadd.f32 %v9807_v11, %v9767_v26  ;;  %v9848_v60 = vpop.f32.mrf.mxu0  ;;  %v9980_v42 = vpack.c.bf16 %v9806_v29, %v9806_v29 }
 0x633   : > { %v9809_v25 = vpop.f32.mrf.mxu1  ;;  %v9849_v61 = vadd.f32 %v9848_v60, %v9311_v8 }
 0x634   : > { %v9981_v19 = vpack.c.bf16 %v9808_v20, %v9808_v20  ;;  %v9850_v22 = vpop.f32.mrf.mxu0 }
 0x635   : > { %v9810_v41 = vpop.f32.mrf.mxu1 }
 0x636   : > { %v9851_v10 = vpop.f32.mrf.mxu0  ;;  %10609 = vmatprep.mubr.bf16.mxu0 %v9981_v19 }
 0x637   : > { %10610 = vmatmul.mubr.bf16.vlgmr.msra.gmra.mxu0 %v9980_v42 }
 0x66f   : > { %v9887_v40 = vpop.f32.mrf.mxu1 }
 0x670   : > { %v9888_v58 = vadd.f32 %v9887_v40, %v9847_v50  ;;  %v9928_v30 = vpop.f32.mrf.mxu0 }
 0x671   : > { %v9889_v13 = vpop.f32.mrf.mxu1 }
 0x672   : > { %v9929_v59 = vadd.f32 %v9928_v30, %v9888_v58  ;;  %v9930_v24 = vpop.f32.mrf.mxu0  ;;  %v9890_v53 = vadd.f32 %v9889_v13, %v9849_v61 }
 0x673   : > { %v9891_v6 = vpop.f32.mrf.mxu1 }
 0x674   : > { %v9932_v3 = vpop.f32.mrf.mxu0  ;;  %v9931_v31 = vadd.f32 %v9930_v24, %v9890_v53 }
 0x675   : > { %v9892_v14 = vpop.f32.mrf.mxu1 }
 0x676   : > { %v9933_v1 = vpop.f32.mrf.mxu0 }
 0x690   : > { %v12492_v17 = vpop.f32.mrf.mxu0 }
 0x692   : > { %v12493_v47 = vpop.f32.mrf.mxu0 }
 0x693   : > { %v12494_v5 = vadd.f32 %v12493_v47, %v12492_v17 }
 0x694   : > { %v12495_v27 = vpop.f32.mrf.mxu0 }
 0x695   : > { %v10532_v4 = vadd.f32 %v12494_v5, %v10112_v33 }
 0x696   : > { %v12496_v18 = vpop.f32.mrf.mxu0 }
 0x6af   : > { %v9969_v56 = vpop.f32.mrf.mxu1 }
 0x6b0   : > { %v9970_v16 = vadd.f32 %v9969_v56, %v9929_v59 }
 0x6b1   : > { %v9971_v35 = vpop.f32.mrf.mxu1 }
 0x6b2   : > { %v9972_v36 = vadd.f32 %v9971_v35, %v9931_v31  ;;  %v9982_v43 = vpack.c.bf16 %v9970_v16, %v9970_v16 }
 0x6b3   : > { %v9973_v9 = vpop.f32.mrf.mxu1 }
 0x6b4   : > { %v9983_v63 = vpack.c.bf16 %v9972_v36, %v9972_v36 }
 0x6b5   : > { %v9974_v34 = vpop.f32.mrf.mxu1 }
 0x6b6   : > { %10649 = vmatprep.mubr.bf16.mxu1 %v9983_v63 }
 0x6b7   : > { %10650 = vmatmul.mubr.bf16.vlgmr.msra.gmra.mxu1 %v9982_v43 }
 0x6cf   : > { %v12514_v7 = vpop.f32.mrf.mxu1 }
 0x6d1   : > { %v12515_v46 = vpop.f32.mrf.mxu1 }
 0x6d2   : > { %v12516_v57 = vadd.f32 %v12515_v46, %v12514_v7 }
 0x6d3   : > { %v12517_v21 = vpop.f32.mrf.mxu1 }
 0x6d4   : > { %v10572_v54 = vadd.f32 %v12516_v57, %v10532_v4 }
 0x6d5   : > { %v12518_v48 = vpop.f32.mrf.mxu1 }
 0x6f7   : > { %v12536_v23 = vpop.f32.mrf.mxu0 }
 0x6f9   : > { %v12537_v0 = vpop.f32.mrf.mxu0 }
 0x6fa   : > { %v12538_v49 = vadd.f32 %v12537_v0, %v12536_v23 }
 0x6fb   : > { %v12539_v44 = vpop.f32.mrf.mxu0 }
 0x6fc   : > { %v10612_v51 = vadd.f32 %v12538_v49, %v10572_v54 }
 0x6fd   : > { %v12540_v32 = vpop.f32.mrf.mxu0 }
 0x777   : > { %v12558_v28 = vpop.f32.mrf.mxu1 }
 0x779   : > { %v12559_v52 = vpop.f32.mrf.mxu1 }
 0x77a   : > { %v12560_v37 = vadd.f32 %v12559_v52, %v12558_v28 }
 0x77b   : > { %v12561_v55 = vpop.f32.mrf.mxu1 }
 0x77c   : > { %v10652_v15 = vadd.f32 %v12560_v37, %v10612_v51 }
 0x77d   : > { %v12562_v26 = vpop.f32.mrf.mxu1 }
 0x77e   : > { %10657 = vst [vmem:[%s700_s15] sm:$0x1] %v10652_v15 }
 0x77f   : > { %13614 = shalt.err (!%p13611_p10)
}
 0x780   : > { %s13615_s10 = scalar_lea.hbm %s15627_s18, 16  ;;  %s13619_s22 = scalar_lea.hbm %s15748_s23, 32 }
 0x781   : > { %p13616_p4 = scmp.ne.s32.totalorder %s15627_s18, %s13615_s10  ;;  %p13620_p3 = scmp.lt.s32.totalorder %s15627_s18, %s15748_s23 }
 0x782   : > { %p13621_p8 = scmp.lt.s32.totalorder %s13619_s22, %s13615_s10 }
 0x783   : > { %p13617_p13 = pnand %p13616_p4, %p15749_p0 }
 0x784   : > { %p13622_p2 = por %p13621_p8, %p13620_p3 }
 0x785   : > { %p13618_p1 = pneg %p13617_p13 }
 0x787   : > { %p13623_p5 = pnand %p13622_p2, %p13618_p1 }
 0x789   : > { %13626 = shalt.err (!%p13623_p5)
}
 0x78a   : > { %12600 = dma.vmem_to_hbm [thread:$0]  (%p15749_p0), %s10680_s21, 16, %s15627_s18, %s10664_s1  }
 0x78b PF: > { %s15750_s0 = sld [smem:[#allocation28_spill]]  ;;  %p15753_p7 = scmp.ge.s32.totalorder %s13689_s16, 2 }
 0x78c   : > { %s15751_s20 = sld [smem:[#allocation33_spill]] }
 0x791   : > { %s10699_s5 = sand.u32 1, %s15750_s0  }
 0x792   : > { %p15752_p6 = scmp.ne.s32.totalorder %s15751_s20, 0  ;;  %s10700_s15 = scalar_lea.sflag [#allocation4], %s10699_s5 }
 0x794   : > { %p12635_p11 = pnand %p15753_p7, %p15752_p6 }
 0x796   : > { %p12636_p12 = pneg %p12635_p11 }
 0x798   : > { %13672 = dma.done.wait (%p12636_p12), %s10700_s15, 16  }
 0x799   : > { %13674 = vsyncadd (%p12636_p12), %s10700_s15, 4294967280  ;;  %s15754_s16 = sld [smem:[#allocation30_spill]]  ;;  %s15757_s29 = smov %s13681_s30 }
 0x79a   : > { %s15755_s25 = sld [smem:[#allocation29_spill]] }
 0x79b   : > { %s15756_s15 = sld [smem:[#allocation31_spill]] }
 0x79f   : > { %p37_p9 = scmp.ge.s32.totalorder %s15754_s16, 4  }
 0x7a0   : > { %s15758_s30 = smov %s15755_s25 }
 0x7a1   :  { %39 = sbr.rel (!%p37_p9) target bundleno = 22 (0x16), region = 196 }
 0x7a6   :  { %10704 = vsyncpa [#allocation3], 1 }
 0x7a7   :  { %10706 = vsyncpa [#allocation3 + $0x1], 1 }
 0x7a8   :  { %10707 = vsyncpa [#allocation6], 1 }
 0x7a9   :  { %10709 = vsyncpa [#allocation6 + $0x1], 1 }
 0x7aa   :  { %10710 = vsyncpa [#allocation9], 1 }
 0x7ab   :  { %10712 = vsyncpa [#allocation9 + $0x1], 1 }
 0x7ac   :  { %10713 = vsyncpa [#allocation12], 1 }
 0x7ad   :  { %10714 = vsyncpa [#allocation15], 1 }
 0x7ae   :  { %10715 = vsyncpa [#allocation18], 1 }
 0x7af   :  { %10716 = vsyncpa [#allocation4], 1 }
 0x7b0   :  { %10718 = vsyncpa [#allocation4 + $0x1], 1 }

</bundles_post_ra>
